<compile_context>
chip_gen: v6e
topology: v6e:2x2x1
jax: 0.10.0
libtpu: 0.0.40
codegen_flags: <defaults>
</compile_context>

<pallas_src>
import jax
import jax.numpy as jnp
from jax.experimental import pallas as pl
from jax.experimental.pallas import tpu as pltpu

_EPS = 1e-5                        # BatchNorm3d default eps
_VMEM_LIMIT = 48 * 1024 * 1024     # fits v7x (64 MiB VMEM), > v6e 32 MiB scoped default


def _elu(y):
    # ELU(alpha=1): y > 0 ? y : exp(y) - 1   (min() keeps exp() finite for large y).
    return jnp.where(y > 0.0, y, jnp.exp(jnp.minimum(y, 0.0)) - 1.0)


# ------------------------------------------------------------------------------ kernels
def _conv_body(src_ref, b_ref, y_ref, stats_ref):
    """9 accumulating (N*D*H, Wp*C) @ (Wp*C, TN) dots over (kd, kh) shifted windows.

    src_ref   : (N, D+2, H+2, Wp*C) bf16  replicate-padded (and pre-activated) slab
    b_ref     : (9, Wp*C, TN)       bf16  (kw, cin)-banded weight, one block per (kd, kh)
    y_ref     : (N*D*H, TN)         bf16  raw (pre-BN) conv output tile
    stats_ref : (1, 2*TN)           f32   lane-dense [sum | sum-of-squares] over rows
    """
    n, dp, hp, wpc = src_ref.shape
    d, h = dp - 2, hp - 2
    m = n * d * h
    acc = None
    for kd in range(3):
        for kh in range(3):
            lhs = src_ref[:, kd:kd + d, kh:kh + h, :].reshape(m, wpc)
            part = jnp.dot(lhs, b_ref[kd * 3 + kh],
                           preferred_element_type=jnp.float32)
            acc = part if acc is None else acc + part
    # Conv bias intentionally NOT added: it is cancelled exactly by training-mode BN
    # (batch-mean subtraction); see wrapper.
    y_ref[...] = acc.astype(y_ref.dtype)
    # Single-pass BN statistics, lane-dense store.
    stats_ref[...] = jnp.concatenate(
        [jnp.sum(acc, axis=0, keepdims=True),
         jnp.sum(acc * acc, axis=0, keepdims=True)], axis=-1)


def _conv_kernel(x_ref, b_ref, y_ref, stats_ref):
    _conv_body(x_ref, b_ref, y_ref, stats_ref)


def _conv_preact_kernel(x_ref, b_ref, scale_ref, shift_ref, y_ref, stats_ref, xs_ref):
    # BN+ELU of the *previous* block, fused as a pre-activation on the padded slab
    # (elementwise ops commute with replicate padding).  Computed once per kernel
    # call and cached in VMEM scratch so it is not redone per output-column tile.
    @pl.when(pl.program_id(0) == 0)
    def _():
        xf = x_ref[...].astype(jnp.float32) * scale_ref[...] + shift_ref[...]
        xs_ref[...] = _elu(xf).astype(jnp.bfloat16)

    _conv_body(xs_ref, b_ref, y_ref, stats_ref)


def _bn_elu_kernel(x_ref, scale_ref, shift_ref, o_ref):
    y = x_ref[...].astype(jnp.float32) * scale_ref[...] + shift_ref[...]
    o_ref[...] = _elu(y)


# ------------------------------------------------------------------------------ helpers
def _pick_tn(wc):
    for tn in (512, 384, 256, 128):
        if wc % tn == 0:
            return tn
    return wc            # fallback: whole (possibly non-128-aligned) lane axis


def _pad_slab(x_ndhwc):
    """Replicate-pad D/H/W and flatten (W, C) into a lane axis -> (N, D+2, H+2, (W+2)*C)."""
    xp = jnp.pad(x_ndhwc, ((0, 0), (1, 1), (1, 1), (1, 1), (0, 0)), mode="edge")
    n, dp, hp, wp, c = xp.shape
    return xp.reshape(n, dp, hp, wp * c)


def _band_weight(w_oidhw, W, C):
    """(Cout, Cin, 3, 3, 3) -> (9, (W+2)*C, W*C): one (kw, cin)-banded block per (kd, kh).

    Built once per parameter update, outside the jitted forward.
    """
    w = jnp.transpose(w_oidhw, (2, 3, 4, 1, 0)).astype(jnp.float32)   # (kd, kh, kw, Ci, Co)
    Wp = W + 2
    wo = jnp.arange(W).reshape(W, 1, 1)
    ci = jnp.arange(C).reshape(1, C, 1)
    co = jnp.arange(C).reshape(1, 1, C)
    taps = []
    for kd in range(3):
        for kh in range(3):
            B = jnp.zeros((Wp * C, W * C), jnp.float32)
            for kw in range(3):
                rows = (wo + kw) * C + ci            # input lane  (w_out + kw, ci)
                cols = wo * C + co                   # output lane (w_out, co)
                B = B.at[rows, cols].set(w[kd, kh, kw])
            taps.append(B)
    return jnp.stack(taps, axis=0).astype(jnp.bfloat16)


# ------------------------------------------------------------------------------ wrappers
def _conv_block(x_pad, b_taps, scale_lane=None, shift_lane=None, *, pre_act):
    n, dp, hp, wpc = x_pad.shape
    d, h = dp - 2, hp - 2
    m = n * d * h
    wc = b_taps.shape[-1]
    tn = _pick_tn(wc)
    nj = wc // tn

    in_specs = [
        pl.BlockSpec((n, dp, hp, wpc), lambda j: (0, 0, 0, 0)),   # resident slab
        pl.BlockSpec((9, wpc, tn), lambda j: (0, 0, j)),          # streamed weight tile
    ]
    args = [x_pad, b_taps]
    scratch = []
    if pre_act:
        in_specs += [pl.BlockSpec((1, 1, 1, wpc), lambda j: (0, 0, 0, 0)),
                     pl.BlockSpec((1, 1, 1, wpc), lambda j: (0, 0, 0, 0))]
        args += [scale_lane, shift_lane]
        scratch = [pltpu.VMEM((n, dp, hp, wpc), jnp.bfloat16)]
        kernel = _conv_preact_kernel
        # scratch is written at j == 0 and reused across column tiles -> "arbitrary".
        sem = ("arbitrary",)
    else:
        kernel = _conv_kernel
        sem = ("parallel",)

    # TODO(synk): at large N*D*H, add a "parallel" row-tile grid axis (batch/depth)
    # so the two v7x TensorCores each get chunky, balanced steps.
    return pl.pallas_call(
        kernel,
        out_shape=(jax.ShapeDtypeStruct((m, wc), jnp.bfloat16),
                   jax.ShapeDtypeStruct((nj, 2 * tn), jnp.float32)),
        grid=(nj,),
        in_specs=in_specs,
        out_specs=(pl.BlockSpec((m, tn), lambda j: (0, j)),
                   pl.BlockSpec((1, 2 * tn), lambda j: (j, 0))),
        scratch_shapes=scratch,
        compiler_params=pltpu.CompilerParams(
            dimension_semantics=sem,
            vmem_limit_bytes=_VMEM_LIMIT),
    )(*args)


def _bn_elu(y_raw, scale, shift):
    m, wc = y_raw.shape
    tm = m if m <= 512 else 512
    return pl.pallas_call(
        _bn_elu_kernel,
        out_shape=jax.ShapeDtypeStruct((m, wc), jnp.float32),
        grid=(pl.cdiv(m, tm),),
        in_specs=[pl.BlockSpec((tm, wc), lambda i: (i, 0)),
                  pl.BlockSpec((1, wc), lambda i: (0, 0)),
                  pl.BlockSpec((1, wc), lambda i: (0, 0))],
        out_specs=pl.BlockSpec((tm, wc), lambda i: (i, 0)),
        compiler_params=pltpu.CompilerParams(
            dimension_semantics=("parallel",),
            vmem_limit_bytes=_VMEM_LIMIT),
    )(y_raw, scale, shift)


def _bn_affine(stats, gamma, beta, W, C, count):
    """Fold per-tile lane [sum | sumsq] rows into per-channel BN scale/shift."""
    nj, two_tn = stats.shape
    tn = two_tn // 2
    sums = stats[:, :tn].reshape(nj * tn).reshape(W, C).sum(axis=0)
    sqs = stats[:, tn:].reshape(nj * tn).reshape(W, C).sum(axis=0)
    mean = sums / count
    # NOTE: E[x^2]-E[x]^2 can cancel badly at scale; fine at this size/tolerance.
    var = jnp.maximum(sqs / count - mean * mean, 0.0)      # biased variance (train BN)
    scale = gamma * jax.lax.rsqrt(var + _EPS)
    shift = beta - mean * scale
    return scale, shift


@jax.jit
def double_conv3d(x_ncdhw, B1, g1, bt1, B2, g2, bt2):
    """Forward pass.  B1/B2 are pre-banded conv weights from _band_weight().

    Conv biases are dropped: training-mode BN mean subtraction cancels them exactly.
    """
    x = jnp.transpose(x_ncdhw, (0, 2, 3, 4, 1))                    # NCDHW -> NDHWC
    N, D, H, W, C = x.shape
    Wp = W + 2
    count = N * D * H * W

    # ---- block 1: conv1 + per-lane BN statistics ----
    y1_raw, st1 = _conv_block(_pad_slab(x.astype(jnp.bfloat16)), B1, pre_act=False)
    s1, sh1 = _bn_affine(st1, g1, bt1, W, C, count)

    # ---- block 2: BN1 + ELU1 fused in-kernel as pre-activation, conv2 + statistics ----
    y1_pad = _pad_slab(y1_raw.reshape(N, D, H, W, C))              # bf16 padded slab
    y2_raw, st2 = _conv_block(
        y1_pad, B2,
        jnp.tile(s1, Wp).reshape(1, 1, 1, Wp * C),
        jnp.tile(sh1, Wp).reshape(1, 1, 1, Wp * C),
        pre_act=True)
    s2, sh2 = _bn_affine(st2, g2, bt2, W, C, count)

    # ---- finalize: BN2 + ELU2 (lane-dense elementwise pass) ----
    y2 = _bn_elu(y2_raw,
                 jnp.tile(s2, W).reshape(1, W * C),
                 jnp.tile(sh2, W).reshape(1, W * C))

    # TODO(synk): BatchNorm running_mean/running_var (momentum=0.1) updates are
    # training-side bookkeeping and are not materialized; forward math uses batch stats.
    return jnp.transpose(y2.reshape(N, D, H, W, C), (0, 4, 1, 2, 3))   # -> NCDHW


# ------------------------------------------------------------------------------ reference
def _reference_double_conv3d(x_ncdhw, params):
    """Pure-JAX f32 reference (includes the conv bias; BN cancels it exactly)."""
    w1, b1, g1, bt1, w2, b2, g2, bt2 = params
    x = jnp.transpose(x_ncdhw, (0, 2, 3, 4, 1)).astype(jnp.float32)

    def block(x, w, b, g, bt):
        xp = jnp.pad(x, ((0, 0), (1, 1), (1, 1), (1, 1), (0, 0)), mode="edge")
        y = jax.lax.conv_general_dilated(
            xp, jnp.transpose(w, (2, 3, 4, 1, 0)).astype(jnp.float32),
            window_strides=(1, 1, 1), padding="VALID",
            dimension_numbers=("NDHWC", "DHWIO", "NDHWC"))
        y = y + b
        mean = jnp.mean(y, axis=(0, 1, 2, 3))
        var = jnp.mean((y - mean) ** 2, axis=(0, 1, 2, 3))
        y = (y - mean) * jax.lax.rsqrt(var + _EPS) * g + bt
        return jnp.where(y > 0.0, y, jnp.expm1(y))

    y = block(x, w1, b1, g1, bt1)
    y = block(y, w2, b2, g2, bt2)
    return jnp.transpose(y, (0, 4, 1, 2, 3))


if __name__ == "__main__":
    # Small shapes (NCDHW like PyTorch): batch=2, planes=8, spatial D=8, H=8, W=16
    # -> W*C = 128 (lane-dense output), M = N*D*H = 128 (full MXU rows).
    N, C, D, H, W = 2, 8, 8, 8, 16
    key = jax.random.PRNGKey(0)
    kx, kw1, kb1, kw2, kb2 = jax.random.split(key, 5)

    x = jax.random.normal(kx, (N, C, D, H, W), jnp.float32)

    def conv_params(kw, kb):
        w = jax.random.normal(kw, (C, C, 3, 3, 3), jnp.float32) * 0.1   # (Cout,Cin,kD,kH,kW)
        b = jax.random.normal(kb, (C,), jnp.float32) * 0.1
        gamma = jnp.ones((C,), jnp.float32)      # BatchNorm3d default affine init
        beta = jnp.zeros((C,), jnp.float32)
        return w, b, gamma, beta

    w1, b1, g1, bt1 = conv_params(kw1, kb1)
    w2, b2, g2, bt2 = conv_params(kw2, kb2)

    # Band the conv weights ONCE (outside the per-call jit), per review feedback.
    B1 = _band_weight(w1, W, C)
    B2 = _band_weight(w2, W, C)

    y = double_conv3d(x, B1, g1, bt1, B2, g2, bt2)
    y = jax.block_until_ready(y)

    assert y.shape == (N, C, D, H, W), y.shape
    assert bool(jnp.all(jnp.isfinite(y)))

    # Correctness check vs. pure-JAX f32 reference (bf16 MXU operands / intermediates
    # -> loose tolerance).
    y_ref = _reference_double_conv3d(x, (w1, b1, g1, bt1, w2, b2, g2, bt2))
    err = float(jnp.max(jnp.abs(y - y_ref)))
    assert err < 0.2, f"max abs err {err}"

    print("KERNEL_OK")
</pallas_src>

<mosaic_0001>
module attributes {stable_mosaic.version = 11 : i64} {
  func.func @_conv_kernel(%arg0: i32, %arg1: memref<2x10x10x144xbf16, #tpu.memory_space<vmem>>, %arg2: memref<9x144x128xbf16, #tpu.memory_space<vmem>>, %arg3: memref<128x128xbf16, #tpu.memory_space<vmem>>, %arg4: memref<1x256xf32, #tpu.memory_space<vmem>>) attributes {dimension_semantics = [#tpu.dimension_semantics<parallel>], iteration_bounds = array<i64: 1>, scalar_prefetch = 0 : i64, scratch_operands = 0 : i64, tpu.core_type = #tpu.core_type<tc>, window_params = [{pipeline_mode = #tpu.pipeline_mode<synchronous>, transform_indices = @transform_0, window_bounds = array<i64: 2, 10, 10, 144>}, {transform_indices = @transform_1, window_bounds = array<i64: 9, 144, 128>}, {transform_indices = @transform_2, window_bounds = array<i64: 128, 128>}, {transform_indices = @transform_3, window_bounds = array<i64: 1, 256>}]} {
    %c0 = arith.constant 0 : index
    %c0_0 = arith.constant 0 : index
    %c0_1 = arith.constant 0 : index
    %c0_2 = arith.constant 0 : index
    %0 = vector.load %arg1[%c0, %c0_0, %c0_1, %c0_2] : memref<2x10x10x144xbf16, #tpu.memory_space<vmem>>, vector<2x8x8x144xbf16>
    %1 = vector.shape_cast %0 : vector<2x8x8x144xbf16> to vector<128x144xbf16>
    %c0_3 = arith.constant 0 : index
    %c0_4 = arith.constant 0 : index
    %c0_5 = arith.constant 0 : index
    %2 = vector.load %arg2[%c0_3, %c0_4, %c0_5] : memref<9x144x128xbf16, #tpu.memory_space<vmem>>, vector<1x144x128xbf16>
    %3 = vector.shape_cast %2 : vector<1x144x128xbf16> to vector<144x128xbf16>
    %cst = arith.constant dense<0.000000e+00> : vector<128x128xf32>
    %4 = tpu.matmul %1, %3, %cst {dimension_numbers = #tpu.dot_dimension_numbers<[1], [0], [0], [1], [0, 0, 1, 1], [], []>} : vector<128x144xbf16>, vector<144x128xbf16>, vector<128x128xf32> -> vector<128x128xf32>
    %c0_6 = arith.constant 0 : index
    %c0_7 = arith.constant 0 : index
    %c1 = arith.constant 1 : index
    %c0_8 = arith.constant 0 : index
    %5 = vector.load %arg1[%c0_6, %c0_7, %c1, %c0_8] : memref<2x10x10x144xbf16, #tpu.memory_space<vmem>>, vector<2x8x8x144xbf16>
    %6 = vector.shape_cast %5 : vector<2x8x8x144xbf16> to vector<128x144xbf16>
    %c1_9 = arith.constant 1 : index
    %c0_10 = arith.constant 0 : index
    %c0_11 = arith.constant 0 : index
    %7 = vector.load %arg2[%c1_9, %c0_10, %c0_11] : memref<9x144x128xbf16, #tpu.memory_space<vmem>>, vector<1x144x128xbf16>
    %8 = vector.shape_cast %7 : vector<1x144x128xbf16> to vector<144x128xbf16>
    %cst_12 = arith.constant dense<0.000000e+00> : vector<128x128xf32>
    %9 = tpu.matmul %6, %8, %cst_12 {dimension_numbers = #tpu.dot_dimension_numbers<[1], [0], [0], [1], [0, 0, 1, 1], [], []>} : vector<128x144xbf16>, vector<144x128xbf16>, vector<128x128xf32> -> vector<128x128xf32>
    %10 = arith.addf %4, %9 : vector<128x128xf32>
    %c0_13 = arith.constant 0 : index
    %c0_14 = arith.constant 0 : index
    %c2 = arith.constant 2 : index
    %c0_15 = arith.constant 0 : index
    %11 = vector.load %arg1[%c0_13, %c0_14, %c2, %c0_15] : memref<2x10x10x144xbf16, #tpu.memory_space<vmem>>, vector<2x8x8x144xbf16>
    %12 = vector.shape_cast %11 : vector<2x8x8x144xbf16> to vector<128x144xbf16>
    %c2_16 = arith.constant 2 : index
    %c0_17 = arith.constant 0 : index
    %c0_18 = arith.constant 0 : index
    %13 = vector.load %arg2[%c2_16, %c0_17, %c0_18] : memref<9x144x128xbf16, #tpu.memory_space<vmem>>, vector<1x144x128xbf16>
    %14 = vector.shape_cast %13 : vector<1x144x128xbf16> to vector<144x128xbf16>
    %cst_19 = arith.constant dense<0.000000e+00> : vector<128x128xf32>
    %15 = tpu.matmul %12, %14, %cst_19 {dimension_numbers = #tpu.dot_dimension_numbers<[1], [0], [0], [1], [0, 0, 1, 1], [], []>} : vector<128x144xbf16>, vector<144x128xbf16>, vector<128x128xf32> -> vector<128x128xf32>
    %16 = arith.addf %10, %15 : vector<128x128xf32>
    %c0_20 = arith.constant 0 : index
    %c1_21 = arith.constant 1 : index
    %c0_22 = arith.constant 0 : index
    %c0_23 = arith.constant 0 : index
    %17 = vector.load %arg1[%c0_20, %c1_21, %c0_22, %c0_23] : memref<2x10x10x144xbf16, #tpu.memory_space<vmem>>, vector<2x8x8x144xbf16>
    %18 = vector.shape_cast %17 : vector<2x8x8x144xbf16> to vector<128x144xbf16>
    %c3 = arith.constant 3 : index
    %c0_24 = arith.constant 0 : index
    %c0_25 = arith.constant 0 : index
    %19 = vector.load %arg2[%c3, %c0_24, %c0_25] : memref<9x144x128xbf16, #tpu.memory_space<vmem>>, vector<1x144x128xbf16>
    %20 = vector.shape_cast %19 : vector<1x144x128xbf16> to vector<144x128xbf16>
    %cst_26 = arith.constant dense<0.000000e+00> : vector<128x128xf32>
    %21 = tpu.matmul %18, %20, %cst_26 {dimension_numbers = #tpu.dot_dimension_numbers<[1], [0], [0], [1], [0, 0, 1, 1], [], []>} : vector<128x144xbf16>, vector<144x128xbf16>, vector<128x128xf32> -> vector<128x128xf32>
    %22 = arith.addf %16, %21 : vector<128x128xf32>
    %c0_27 = arith.constant 0 : index
    %c1_28 = arith.constant 1 : index
    %c1_29 = arith.constant 1 : index
    %c0_30 = arith.constant 0 : index
    %23 = vector.load %arg1[%c0_27, %c1_28, %c1_29, %c0_30] : memref<2x10x10x144xbf16, #tpu.memory_space<vmem>>, vector<2x8x8x144xbf16>
    %24 = vector.shape_cast %23 : vector<2x8x8x144xbf16> to vector<128x144xbf16>
    %c4 = arith.constant 4 : index
    %c0_31 = arith.constant 0 : index
    %c0_32 = arith.constant 0 : index
    %25 = vector.load %arg2[%c4, %c0_31, %c0_32] : memref<9x144x128xbf16, #tpu.memory_space<vmem>>, vector<1x144x128xbf16>
    %26 = vector.shape_cast %25 : vector<1x144x128xbf16> to vector<144x128xbf16>
    %cst_33 = arith.constant dense<0.000000e+00> : vector<128x128xf32>
    %27 = tpu.matmul %24, %26, %cst_33 {dimension_numbers = #tpu.dot_dimension_numbers<[1], [0], [0], [1], [0, 0, 1, 1], [], []>} : vector<128x144xbf16>, vector<144x128xbf16>, vector<128x128xf32> -> vector<128x128xf32>
    %28 = arith.addf %22, %27 : vector<128x128xf32>
    %c0_34 = arith.constant 0 : index
    %c1_35 = arith.constant 1 : index
    %c2_36 = arith.constant 2 : index
    %c0_37 = arith.constant 0 : index
    %29 = vector.load %arg1[%c0_34, %c1_35, %c2_36, %c0_37] : memref<2x10x10x144xbf16, #tpu.memory_space<vmem>>, vector<2x8x8x144xbf16>
    %30 = vector.shape_cast %29 : vector<2x8x8x144xbf16> to vector<128x144xbf16>
    %c5 = arith.constant 5 : index
    %c0_38 = arith.constant 0 : index
    %c0_39 = arith.constant 0 : index
    %31 = vector.load %arg2[%c5, %c0_38, %c0_39] : memref<9x144x128xbf16, #tpu.memory_space<vmem>>, vector<1x144x128xbf16>
    %32 = vector.shape_cast %31 : vector<1x144x128xbf16> to vector<144x128xbf16>
    %cst_40 = arith.constant dense<0.000000e+00> : vector<128x128xf32>
    %33 = tpu.matmul %30, %32, %cst_40 {dimension_numbers = #tpu.dot_dimension_numbers<[1], [0], [0], [1], [0, 0, 1, 1], [], []>} : vector<128x144xbf16>, vector<144x128xbf16>, vector<128x128xf32> -> vector<128x128xf32>
    %34 = arith.addf %28, %33 : vector<128x128xf32>
    %c0_41 = arith.constant 0 : index
    %c2_42 = arith.constant 2 : index
    %c0_43 = arith.constant 0 : index
    %c0_44 = arith.constant 0 : index
    %35 = vector.load %arg1[%c0_41, %c2_42, %c0_43, %c0_44] : memref<2x10x10x144xbf16, #tpu.memory_space<vmem>>, vector<2x8x8x144xbf16>
    %36 = vector.shape_cast %35 : vector<2x8x8x144xbf16> to vector<128x144xbf16>
    %c6 = arith.constant 6 : index
    %c0_45 = arith.constant 0 : index
    %c0_46 = arith.constant 0 : index
    %37 = vector.load %arg2[%c6, %c0_45, %c0_46] : memref<9x144x128xbf16, #tpu.memory_space<vmem>>, vector<1x144x128xbf16>
    %38 = vector.shape_cast %37 : vector<1x144x128xbf16> to vector<144x128xbf16>
    %cst_47 = arith.constant dense<0.000000e+00> : vector<128x128xf32>
    %39 = tpu.matmul %36, %38, %cst_47 {dimension_numbers = #tpu.dot_dimension_numbers<[1], [0], [0], [1], [0, 0, 1, 1], [], []>} : vector<128x144xbf16>, vector<144x128xbf16>, vector<128x128xf32> -> vector<128x128xf32>
    %40 = arith.addf %34, %39 : vector<128x128xf32>
    %c0_48 = arith.constant 0 : index
    %c2_49 = arith.constant 2 : index
    %c1_50 = arith.constant 1 : index
    %c0_51 = arith.constant 0 : index
    %41 = vector.load %arg1[%c0_48, %c2_49, %c1_50, %c0_51] : memref<2x10x10x144xbf16, #tpu.memory_space<vmem>>, vector<2x8x8x144xbf16>
    %42 = vector.shape_cast %41 : vector<2x8x8x144xbf16> to vector<128x144xbf16>
    %c7 = arith.constant 7 : index
    %c0_52 = arith.constant 0 : index
    %c0_53 = arith.constant 0 : index
    %43 = vector.load %arg2[%c7, %c0_52, %c0_53] : memref<9x144x128xbf16, #tpu.memory_space<vmem>>, vector<1x144x128xbf16>
    %44 = vector.shape_cast %43 : vector<1x144x128xbf16> to vector<144x128xbf16>
    %cst_54 = arith.constant dense<0.000000e+00> : vector<128x128xf32>
    %45 = tpu.matmul %42, %44, %cst_54 {dimension_numbers = #tpu.dot_dimension_numbers<[1], [0], [0], [1], [0, 0, 1, 1], [], []>} : vector<128x144xbf16>, vector<144x128xbf16>, vector<128x128xf32> -> vector<128x128xf32>
    %46 = arith.addf %40, %45 : vector<128x128xf32>
    %c0_55 = arith.constant 0 : index
    %c2_56 = arith.constant 2 : index
    %c2_57 = arith.constant 2 : index
    %c0_58 = arith.constant 0 : index
    %47 = vector.load %arg1[%c0_55, %c2_56, %c2_57, %c0_58] : memref<2x10x10x144xbf16, #tpu.memory_space<vmem>>, vector<2x8x8x144xbf16>
    %48 = vector.shape_cast %47 : vector<2x8x8x144xbf16> to vector<128x144xbf16>
    %c8 = arith.constant 8 : index
    %c0_59 = arith.constant 0 : index
    %c0_60 = arith.constant 0 : index
    %49 = vector.load %arg2[%c8, %c0_59, %c0_60] : memref<9x144x128xbf16, #tpu.memory_space<vmem>>, vector<1x144x128xbf16>
    %50 = vector.shape_cast %49 : vector<1x144x128xbf16> to vector<144x128xbf16>
    %cst_61 = arith.constant dense<0.000000e+00> : vector<128x128xf32>
    %51 = tpu.matmul %48, %50, %cst_61 {dimension_numbers = #tpu.dot_dimension_numbers<[1], [0], [0], [1], [0, 0, 1, 1], [], []>} : vector<128x144xbf16>, vector<144x128xbf16>, vector<128x128xf32> -> vector<128x128xf32>
    %52 = arith.addf %46, %51 : vector<128x128xf32>
    %53 = arith.truncf %52 : vector<128x128xf32> to vector<128x128xbf16>
    %c0_62 = arith.constant 0 : index
    %c0_63 = arith.constant 0 : index
    %54 = vector.load %arg3[%c0_62, %c0_63] : memref<128x128xbf16, #tpu.memory_space<vmem>>, vector<128x128xbf16>
    tpu.vector_store %arg3[%c0_62, %c0_63], %53 {strides = array<i32>} : memref<128x128xbf16, #tpu.memory_space<vmem>>, vector<128x128xbf16>,
    %cst_64 = arith.constant dense<0.000000e+00> : vector<128xf32>
    %55 = vector.multi_reduction <add>, %52, %cst_64 [0] : vector<128x128xf32> to vector<128xf32>
    %56 = vector.shape_cast %55 : vector<128xf32> to vector<1x128xf32>
    %57 = arith.mulf %52, %52 : vector<128x128xf32>
    %cst_65 = arith.constant dense<0.000000e+00> : vector<128xf32>
    %58 = vector.multi_reduction <add>, %57, %cst_65 [0] : vector<128x128xf32> to vector<128xf32>
    %59 = vector.shape_cast %58 : vector<128xf32> to vector<1x128xf32>
    %60 = tpu.concatenate %56, %59 in 1 : vector<1x128xf32>, vector<1x128xf32> -> vector<1x256xf32>
    %c0_66 = arith.constant 0 : index
    %c0_67 = arith.constant 0 : index
    %61 = vector.load %arg4[%c0_66, %c0_67] : memref<1x256xf32, #tpu.memory_space<vmem>>, vector<1x256xf32>
    tpu.vector_store %arg4[%c0_66, %c0_67], %60 {strides = array<i32>} : memref<1x256xf32, #tpu.memory_space<vmem>>, vector<1x256xf32>,
    return
  }
  func.func @transform_0(%arg0: i32) -> (i32, i32, i32, i32) {
    %c0_i32 = arith.constant 0 : i32
    %c0_i32_0 = arith.constant 0 : i32
    %c0_i32_1 = arith.constant 0 : i32
    %c0_i32_2 = arith.constant 0 : i32
    %c0_i32_3 = arith.constant 0 : i32
    return %c0_i32, %c0_i32_0, %c0_i32_1, %c0_i32_2 : i32, i32, i32, i32
  }
  func.func @transform_1(%arg0: i32) -> (i32, i32, i32) {
    %c0_i32 = arith.constant 0 : i32
    %c0_i32_0 = arith.constant 0 : i32
    %c0_i32_1 = arith.constant 0 : i32
    return %c0_i32, %c0_i32_0, %arg0 : i32, i32, i32
  }
  func.func @transform_2(%arg0: i32) -> (i32, i32) {
    %c0_i32 = arith.constant 0 : i32
    %c0_i32_0 = arith.constant 0 : i32
    return %c0_i32, %arg0 : i32, i32
  }
  func.func @transform_3(%arg0: i32) -> (i32, i32) {
    %c0_i32 = arith.constant 0 : i32
    %c0_i32_0 = arith.constant 0 : i32
    return %arg0, %c0_i32 : i32, i32
  }
}

module attributes {stable_mosaic.version = 11 : i64} {
  func.func @_conv_preact_kernel(%arg0: i32, %arg1: memref<2x10x10x144xbf16, #tpu.memory_space<vmem>>, %arg2: memref<9x144x128xbf16, #tpu.memory_space<vmem>>, %arg3: memref<1x1x1x144xf32, #tpu.memory_space<vmem>>, %arg4: memref<1x1x1x144xf32, #tpu.memory_space<vmem>>, %arg5: memref<128x128xbf16, #tpu.memory_space<vmem>>, %arg6: memref<1x256xf32, #tpu.memory_space<vmem>>, %arg7: memref<2x10x10x144xbf16, #tpu.memory_space<vmem>>) attributes {dimension_semantics = [#tpu.dimension_semantics<arbitrary>], iteration_bounds = array<i64: 1>, scalar_prefetch = 0 : i64, scratch_operands = 1 : i64, tpu.core_type = #tpu.core_type<tc>, window_params = [{pipeline_mode = #tpu.pipeline_mode<synchronous>, transform_indices = @transform_0, window_bounds = array<i64: 2, 10, 10, 144>}, {transform_indices = @transform_1, window_bounds = array<i64: 9, 144, 128>}, {pipeline_mode = #tpu.pipeline_mode<synchronous>, transform_indices = @transform_2, window_bounds = array<i64: 1, 1, 1, 144>}, {pipeline_mode = #tpu.pipeline_mode<synchronous>, transform_indices = @transform_3, window_bounds = array<i64: 1, 1, 1, 144>}, {transform_indices = @transform_4, window_bounds = array<i64: 128, 128>}, {transform_indices = @transform_5, window_bounds = array<i64: 1, 256>}]} {
    %c0_i32 = arith.constant 0 : i32
    %0 = arith.cmpi eq, %arg0, %c0_i32 : i32
    %1 = arith.extui %0 : i1 to i32
    %c0_i32_0 = arith.constant 0 : i32
    %2 = arith.cmpi ne, %1, %c0_i32_0 : i32
    scf.if %2 {
      %c0_69 = arith.constant 0 : index
      %c0_70 = arith.constant 0 : index
      %c0_71 = arith.constant 0 : index
      %c0_72 = arith.constant 0 : index
      %65 = vector.load %arg1[%c0_69, %c0_70, %c0_71, %c0_72] : memref<2x10x10x144xbf16, #tpu.memory_space<vmem>>, vector<2x10x10x144xbf16>
      %66 = arith.extf %65 : vector<2x10x10x144xbf16> to vector<2x10x10x144xf32>
      %c0_73 = arith.constant 0 : index
      %c0_74 = arith.constant 0 : index
      %c0_75 = arith.constant 0 : index
      %c0_76 = arith.constant 0 : index
      %67 = vector.load %arg3[%c0_73, %c0_74, %c0_75, %c0_76] : memref<1x1x1x144xf32, #tpu.memory_space<vmem>>, vector<1x1x1x144xf32>
      %68 = vector.broadcast %67 : vector<1x1x1x144xf32> to vector<2x10x10x144xf32>
      %69 = arith.mulf %66, %68 : vector<2x10x10x144xf32>
      %c0_77 = arith.constant 0 : index
      %c0_78 = arith.constant 0 : index
      %c0_79 = arith.constant 0 : index
      %c0_80 = arith.constant 0 : index
      %70 = vector.load %arg4[%c0_77, %c0_78, %c0_79, %c0_80] : memref<1x1x1x144xf32, #tpu.memory_space<vmem>>, vector<1x1x1x144xf32>
      %71 = vector.broadcast %70 : vector<1x1x1x144xf32> to vector<2x10x10x144xf32>
      %72 = arith.addf %69, %71 : vector<2x10x10x144xf32>
      %cst_81 = arith.constant 0.000000e+00 : f32
      %73 = vector.broadcast %cst_81 : f32 to vector<2x10x10x144xf32>
      %74 = arith.cmpf ogt, %72, %73 : vector<2x10x10x144xf32>
      %cst_82 = arith.constant 0.000000e+00 : f32
      %75 = vector.broadcast %cst_82 : f32 to vector<2x10x10x144xf32>
      %76 = arith.minimumf %72, %75 : vector<2x10x10x144xf32>
      %77 = math.exp %76 : vector<2x10x10x144xf32>
      %cst_83 = arith.constant 1.000000e+00 : f32
      %78 = vector.broadcast %cst_83 : f32 to vector<2x10x10x144xf32>
      %79 = arith.subf %77, %78 : vector<2x10x10x144xf32>
      %80 = arith.select %74, %72, %79 : vector<2x10x10x144xi1>, vector<2x10x10x144xf32>
      %81 = arith.truncf %80 : vector<2x10x10x144xf32> to vector<2x10x10x144xbf16>
      %c0_84 = arith.constant 0 : index
      %c0_85 = arith.constant 0 : index
      %c0_86 = arith.constant 0 : index
      %c0_87 = arith.constant 0 : index
      %82 = vector.load %arg7[%c0_84, %c0_85, %c0_86, %c0_87] : memref<2x10x10x144xbf16, #tpu.memory_space<vmem>>, vector<2x10x10x144xbf16>
      tpu.vector_store %arg7[%c0_84, %c0_85, %c0_86, %c0_87], %81 {strides = array<i32>} : memref<2x10x10x144xbf16, #tpu.memory_space<vmem>>, vector<2x10x10x144xbf16>,
    } else {
    }
    %c0 = arith.constant 0 : index
    %c0_1 = arith.constant 0 : index
    %c0_2 = arith.constant 0 : index
    %c0_3 = arith.constant 0 : index
    %3 = vector.load %arg7[%c0, %c0_1, %c0_2, %c0_3] : memref<2x10x10x144xbf16, #tpu.memory_space<vmem>>, vector<2x8x8x144xbf16>
    %4 = vector.shape_cast %3 : vector<2x8x8x144xbf16> to vector<128x144xbf16>
    %c0_4 = arith.constant 0 : index
    %c0_5 = arith.constant 0 : index
    %c0_6 = arith.constant 0 : index
    %5 = vector.load %arg2[%c0_4, %c0_5, %c0_6] : memref<9x144x128xbf16, #tpu.memory_space<vmem>>, vector<1x144x128xbf16>
    %6 = vector.shape_cast %5 : vector<1x144x128xbf16> to vector<144x128xbf16>
    %cst = arith.constant dense<0.000000e+00> : vector<128x128xf32>
    %7 = tpu.matmul %4, %6, %cst {dimension_numbers = #tpu.dot_dimension_numbers<[1], [0], [0], [1], [0, 0, 1, 1], [], []>} : vector<128x144xbf16>, vector<144x128xbf16>, vector<128x128xf32> -> vector<128x128xf32>
    %c0_7 = arith.constant 0 : index
    %c0_8 = arith.constant 0 : index
    %c1 = arith.constant 1 : index
    %c0_9 = arith.constant 0 : index
    %8 = vector.load %arg7[%c0_7, %c0_8, %c1, %c0_9] : memref<2x10x10x144xbf16, #tpu.memory_space<vmem>>, vector<2x8x8x144xbf16>
    %9 = vector.shape_cast %8 : vector<2x8x8x144xbf16> to vector<128x144xbf16>
    %c1_10 = arith.constant 1 : index
    %c0_11 = arith.constant 0 : index
    %c0_12 = arith.constant 0 : index
    %10 = vector.load %arg2[%c1_10, %c0_11, %c0_12] : memref<9x144x128xbf16, #tpu.memory_space<vmem>>, vector<1x144x128xbf16>
    %11 = vector.shape_cast %10 : vector<1x144x128xbf16> to vector<144x128xbf16>
    %cst_13 = arith.constant dense<0.000000e+00> : vector<128x128xf32>
    %12 = tpu.matmul %9, %11, %cst_13 {dimension_numbers = #tpu.dot_dimension_numbers<[1], [0], [0], [1], [0, 0, 1, 1], [], []>} : vector<128x144xbf16>, vector<144x128xbf16>, vector<128x128xf32> -> vector<128x128xf32>
    %13 = arith.addf %7, %12 : vector<128x128xf32>
    %c0_14 = arith.constant 0 : index
    %c0_15 = arith.constant 0 : index
    %c2 = arith.constant 2 : index
    %c0_16 = arith.constant 0 : index
    %14 = vector.load %arg7[%c0_14, %c0_15, %c2, %c0_16] : memref<2x10x10x144xbf16, #tpu.memory_space<vmem>>, vector<2x8x8x144xbf16>
    %15 = vector.shape_cast %14 : vector<2x8x8x144xbf16> to vector<128x144xbf16>
    %c2_17 = arith.constant 2 : index
    %c0_18 = arith.constant 0 : index
    %c0_19 = arith.constant 0 : index
    %16 = vector.load %arg2[%c2_17, %c0_18, %c0_19] : memref<9x144x128xbf16, #tpu.memory_space<vmem>>, vector<1x144x128xbf16>
    %17 = vector.shape_cast %16 : vector<1x144x128xbf16> to vector<144x128xbf16>
    %cst_20 = arith.constant dense<0.000000e+00> : vector<128x128xf32>
    %18 = tpu.matmul %15, %17, %cst_20 {dimension_numbers = #tpu.dot_dimension_numbers<[1], [0], [0], [1], [0, 0, 1, 1], [], []>} : vector<128x144xbf16>, vector<144x128xbf16>, vector<128x128xf32> -> vector<128x128xf32>
    %19 = arith.addf %13, %18 : vector<128x128xf32>
    %c0_21 = arith.constant 0 : index
    %c1_22 = arith.constant 1 : index
    %c0_23 = arith.constant 0 : index
    %c0_24 = arith.constant 0 : index
    %20 = vector.load %arg7[%c0_21, %c1_22, %c0_23, %c0_24] : memref<2x10x10x144xbf16, #tpu.memory_space<vmem>>, vector<2x8x8x144xbf16>
    %21 = vector.shape_cast %20 : vector<2x8x8x144xbf16> to vector<128x144xbf16>
    %c3 = arith.constant 3 : index
    %c0_25 = arith.constant 0 : index
    %c0_26 = arith.constant 0 : index
    %22 = vector.load %arg2[%c3, %c0_25, %c0_26] : memref<9x144x128xbf16, #tpu.memory_space<vmem>>, vector<1x144x128xbf16>
    %23 = vector.shape_cast %22 : vector<1x144x128xbf16> to vector<144x128xbf16>
    %cst_27 = arith.constant dense<0.000000e+00> : vector<128x128xf32>
    %24 = tpu.matmul %21, %23, %cst_27 {dimension_numbers = #tpu.dot_dimension_numbers<[1], [0], [0], [1], [0, 0, 1, 1], [], []>} : vector<128x144xbf16>, vector<144x128xbf16>, vector<128x128xf32> -> vector<128x128xf32>
    %25 = arith.addf %19, %24 : vector<128x128xf32>
    %c0_28 = arith.constant 0 : index
    %c1_29 = arith.constant 1 : index
    %c1_30 = arith.constant 1 : index
    %c0_31 = arith.constant 0 : index
    %26 = vector.load %arg7[%c0_28, %c1_29, %c1_30, %c0_31] : memref<2x10x10x144xbf16, #tpu.memory_space<vmem>>, vector<2x8x8x144xbf16>
    %27 = vector.shape_cast %26 : vector<2x8x8x144xbf16> to vector<128x144xbf16>
    %c4 = arith.constant 4 : index
    %c0_32 = arith.constant 0 : index
    %c0_33 = arith.constant 0 : index
    %28 = vector.load %arg2[%c4, %c0_32, %c0_33] : memref<9x144x128xbf16, #tpu.memory_space<vmem>>, vector<1x144x128xbf16>
    %29 = vector.shape_cast %28 : vector<1x144x128xbf16> to vector<144x128xbf16>
    %cst_34 = arith.constant dense<0.000000e+00> : vector<128x128xf32>
    %30 = tpu.matmul %27, %29, %cst_34 {dimension_numbers = #tpu.dot_dimension_numbers<[1], [0], [0], [1], [0, 0, 1, 1], [], []>} : vector<128x144xbf16>, vector<144x128xbf16>, vector<128x128xf32> -> vector<128x128xf32>
    %31 = arith.addf %25, %30 : vector<128x128xf32>
    %c0_35 = arith.constant 0 : index
    %c1_36 = arith.constant 1 : index
    %c2_37 = arith.constant 2 : index
    %c0_38 = arith.constant 0 : index
    %32 = vector.load %arg7[%c0_35, %c1_36, %c2_37, %c0_38] : memref<2x10x10x144xbf16, #tpu.memory_space<vmem>>, vector<2x8x8x144xbf16>
    %33 = vector.shape_cast %32 : vector<2x8x8x144xbf16> to vector<128x144xbf16>
    %c5 = arith.constant 5 : index
    %c0_39 = arith.constant 0 : index
    %c0_40 = arith.constant 0 : index
    %34 = vector.load %arg2[%c5, %c0_39, %c0_40] : memref<9x144x128xbf16, #tpu.memory_space<vmem>>, vector<1x144x128xbf16>
    %35 = vector.shape_cast %34 : vector<1x144x128xbf16> to vector<144x128xbf16>
    %cst_41 = arith.constant dense<0.000000e+00> : vector<128x128xf32>
    %36 = tpu.matmul %33, %35, %cst_41 {dimension_numbers = #tpu.dot_dimension_numbers<[1], [0], [0], [1], [0, 0, 1, 1], [], []>} : vector<128x144xbf16>, vector<144x128xbf16>, vector<128x128xf32> -> vector<128x128xf32>
    %37 = arith.addf %31, %36 : vector<128x128xf32>
    %c0_42 = arith.constant 0 : index
    %c2_43 = arith.constant 2 : index
    %c0_44 = arith.constant 0 : index
    %c0_45 = arith.constant 0 : index
    %38 = vector.load %arg7[%c0_42, %c2_43, %c0_44, %c0_45] : memref<2x10x10x144xbf16, #tpu.memory_space<vmem>>, vector<2x8x8x144xbf16>
    %39 = vector.shape_cast %38 : vector<2x8x8x144xbf16> to vector<128x144xbf16>
    %c6 = arith.constant 6 : index
    %c0_46 = arith.constant 0 : index
    %c0_47 = arith.constant 0 : index
    %40 = vector.load %arg2[%c6, %c0_46, %c0_47] : memref<9x144x128xbf16, #tpu.memory_space<vmem>>, vector<1x144x128xbf16>
    %41 = vector.shape_cast %40 : vector<1x144x128xbf16> to vector<144x128xbf16>
    %cst_48 = arith.constant dense<0.000000e+00> : vector<128x128xf32>
    %42 = tpu.matmul %39, %41, %cst_48 {dimension_numbers = #tpu.dot_dimension_numbers<[1], [0], [0], [1], [0, 0, 1, 1], [], []>} : vector<128x144xbf16>, vector<144x128xbf16>, vector<128x128xf32> -> vector<128x128xf32>
    %43 = arith.addf %37, %42 : vector<128x128xf32>
    %c0_49 = arith.constant 0 : index
    %c2_50 = arith.constant 2 : index
    %c1_51 = arith.constant 1 : index
    %c0_52 = arith.constant 0 : index
    %44 = vector.load %arg7[%c0_49, %c2_50, %c1_51, %c0_52] : memref<2x10x10x144xbf16, #tpu.memory_space<vmem>>, vector<2x8x8x144xbf16>
    %45 = vector.shape_cast %44 : vector<2x8x8x144xbf16> to vector<128x144xbf16>
    %c7 = arith.constant 7 : index
    %c0_53 = arith.constant 0 : index
    %c0_54 = arith.constant 0 : index
    %46 = vector.load %arg2[%c7, %c0_53, %c0_54] : memref<9x144x128xbf16, #tpu.memory_space<vmem>>, vector<1x144x128xbf16>
    %47 = vector.shape_cast %46 : vector<1x144x128xbf16> to vector<144x128xbf16>
    %cst_55 = arith.constant dense<0.000000e+00> : vector<128x128xf32>
    %48 = tpu.matmul %45, %47, %cst_55 {dimension_numbers = #tpu.dot_dimension_numbers<[1], [0], [0], [1], [0, 0, 1, 1], [], []>} : vector<128x144xbf16>, vector<144x128xbf16>, vector<128x128xf32> -> vector<128x128xf32>
    %49 = arith.addf %43, %48 : vector<128x128xf32>
    %c0_56 = arith.constant 0 : index
    %c2_57 = arith.constant 2 : index
    %c2_58 = arith.constant 2 : index
    %c0_59 = arith.constant 0 : index
    %50 = vector.load %arg7[%c0_56, %c2_57, %c2_58, %c0_59] : memref<2x10x10x144xbf16, #tpu.memory_space<vmem>>, vector<2x8x8x144xbf16>
    %51 = vector.shape_cast %50 : vector<2x8x8x144xbf16> to vector<128x144xbf16>
    %c8 = arith.constant 8 : index
    %c0_60 = arith.constant 0 : index
    %c0_61 = arith.constant 0 : index
    %52 = vector.load %arg2[%c8, %c0_60, %c0_61] : memref<9x144x128xbf16, #tpu.memory_space<vmem>>, vector<1x144x128xbf16>
    %53 = vector.shape_cast %52 : vector<1x144x128xbf16> to vector<144x128xbf16>
    %cst_62 = arith.constant dense<0.000000e+00> : vector<128x128xf32>
    %54 = tpu.matmul %51, %53, %cst_62 {dimension_numbers = #tpu.dot_dimension_numbers<[1], [0], [0], [1], [0, 0, 1, 1], [], []>} : vector<128x144xbf16>, vector<144x128xbf16>, vector<128x128xf32> -> vector<128x128xf32>
    %55 = arith.addf %49, %54 : vector<128x128xf32>
    %56 = arith.truncf %55 : vector<128x128xf32> to vector<128x128xbf16>
    %c0_63 = arith.constant 0 : index
    %c0_64 = arith.constant 0 : index
    %57 = vector.load %arg5[%c0_63, %c0_64] : memref<128x128xbf16, #tpu.memory_space<vmem>>, vector<128x128xbf16>
    tpu.vector_store %arg5[%c0_63, %c0_64], %56 {strides = array<i32>} : memref<128x128xbf16, #tpu.memory_space<vmem>>, vector<128x128xbf16>,
    %cst_65 = arith.constant dense<0.000000e+00> : vector<128xf32>
    %58 = vector.multi_reduction <add>, %55, %cst_65 [0] : vector<128x128xf32> to vector<128xf32>
    %59 = vector.shape_cast %58 : vector<128xf32> to vector<1x128xf32>
    %60 = arith.mulf %55, %55 : vector<128x128xf32>
    %cst_66 = arith.constant dense<0.000000e+00> : vector<128xf32>
    %61 = vector.multi_reduction <add>, %60, %cst_66 [0] : vector<128x128xf32> to vector<128xf32>
    %62 = vector.shape_cast %61 : vector<128xf32> to vector<1x128xf32>
    %63 = tpu.concatenate %59, %62 in 1 : vector<1x128xf32>, vector<1x128xf32> -> vector<1x256xf32>
    %c0_67 = arith.constant 0 : index
    %c0_68 = arith.constant 0 : index
    %64 = vector.load %arg6[%c0_67, %c0_68] : memref<1x256xf32, #tpu.memory_space<vmem>>, vector<1x256xf32>
    tpu.vector_store %arg6[%c0_67, %c0_68], %63 {strides = array<i32>} : memref<1x256xf32, #tpu.memory_space<vmem>>, vector<1x256xf32>,
    return
  }
  func.func @transform_0(%arg0: i32) -> (i32, i32, i32, i32) {
    %c0_i32 = arith.constant 0 : i32
    %c0_i32_0 = arith.constant 0 : i32
    %c0_i32_1 = arith.constant 0 : i32
    %c0_i32_2 = arith.constant 0 : i32
    %c0_i32_3 = arith.constant 0 : i32
    return %c0_i32, %c0_i32_0, %c0_i32_1, %c0_i32_2 : i32, i32, i32, i32
  }
  func.func @transform_1(%arg0: i32) -> (i32, i32, i32) {
    %c0_i32 = arith.constant 0 : i32
    %c0_i32_0 = arith.constant 0 : i32
    %c0_i32_1 = arith.constant 0 : i32
    return %c0_i32, %c0_i32_0, %arg0 : i32, i32, i32
  }
  func.func @transform_2(%arg0: i32) -> (i32, i32, i32, i32) {
    %c0_i32 = arith.constant 0 : i32
    %c0_i32_0 = arith.constant 0 : i32
    %c0_i32_1 = arith.constant 0 : i32
    %c0_i32_2 = arith.constant 0 : i32
    %c0_i32_3 = arith.constant 0 : i32
    return %c0_i32, %c0_i32_0, %c0_i32_1, %c0_i32_2 : i32, i32, i32, i32
  }
  func.func @transform_3(%arg0: i32) -> (i32, i32, i32, i32) {
    %c0_i32 = arith.constant 0 : i32
    %c0_i32_0 = arith.constant 0 : i32
    %c0_i32_1 = arith.constant 0 : i32
    %c0_i32_2 = arith.constant 0 : i32
    %c0_i32_3 = arith.constant 0 : i32
    return %c0_i32, %c0_i32_0, %c0_i32_1, %c0_i32_2 : i32, i32, i32, i32
  }
  func.func @transform_4(%arg0: i32) -> (i32, i32) {
    %c0_i32 = arith.constant 0 : i32
    %c0_i32_0 = arith.constant 0 : i32
    return %c0_i32, %arg0 : i32, i32
  }
  func.func @transform_5(%arg0: i32) -> (i32, i32) {
    %c0_i32 = arith.constant 0 : i32
    %c0_i32_0 = arith.constant 0 : i32
    return %arg0, %c0_i32 : i32, i32
  }
}

module attributes {stable_mosaic.version = 11 : i64} {
  func.func @_bn_elu_kernel(%arg0: i32, %arg1: memref<128x128xbf16, #tpu.memory_space<vmem>>, %arg2: memref<1x128xf32, #tpu.memory_space<vmem>>, %arg3: memref<1x128xf32, #tpu.memory_space<vmem>>, %arg4: memref<128x128xf32, #tpu.memory_space<vmem>>) attributes {dimension_semantics = [#tpu.dimension_semantics<parallel>], iteration_bounds = array<i64: 1>, scalar_prefetch = 0 : i64, scratch_operands = 0 : i64, tpu.core_type = #tpu.core_type<tc>, window_params = [{transform_indices = @transform_0, window_bounds = array<i64: 128, 128>}, {pipeline_mode = #tpu.pipeline_mode<synchronous>, transform_indices = @transform_1, window_bounds = array<i64: 1, 128>}, {pipeline_mode = #tpu.pipeline_mode<synchronous>, transform_indices = @transform_2, window_bounds = array<i64: 1, 128>}, {transform_indices = @transform_3, window_bounds = array<i64: 128, 128>}]} {
    %c0 = arith.constant 0 : index
    %c0_0 = arith.constant 0 : index
    %0 = vector.load %arg1[%c0, %c0_0] : memref<128x128xbf16, #tpu.memory_space<vmem>>, vector<128x128xbf16>
    %1 = arith.extf %0 : vector<128x128xbf16> to vector<128x128xf32>
    %c0_1 = arith.constant 0 : index
    %c0_2 = arith.constant 0 : index
    %2 = vector.load %arg2[%c0_1, %c0_2] : memref<1x128xf32, #tpu.memory_space<vmem>>, vector<1x128xf32>
    %3 = vector.broadcast %2 : vector<1x128xf32> to vector<128x128xf32>
    %4 = arith.mulf %1, %3 : vector<128x128xf32>
    %c0_3 = arith.constant 0 : index
    %c0_4 = arith.constant 0 : index
    %5 = vector.load %arg3[%c0_3, %c0_4] : memref<1x128xf32, #tpu.memory_space<vmem>>, vector<1x128xf32>
    %6 = vector.broadcast %5 : vector<1x128xf32> to vector<128x128xf32>
    %7 = arith.addf %4, %6 : vector<128x128xf32>
    %cst = arith.constant 0.000000e+00 : f32
    %8 = vector.broadcast %cst : f32 to vector<128x128xf32>
    %9 = arith.cmpf ogt, %7, %8 : vector<128x128xf32>
    %cst_5 = arith.constant 0.000000e+00 : f32
    %10 = vector.broadcast %cst_5 : f32 to vector<128x128xf32>
    %11 = arith.minimumf %7, %10 : vector<128x128xf32>
    %12 = math.exp %11 : vector<128x128xf32>
    %cst_6 = arith.constant 1.000000e+00 : f32
    %13 = vector.broadcast %cst_6 : f32 to vector<128x128xf32>
    %14 = arith.subf %12, %13 : vector<128x128xf32>
    %15 = arith.select %9, %7, %14 : vector<128x128xi1>, vector<128x128xf32>
    %c0_7 = arith.constant 0 : index
    %c0_8 = arith.constant 0 : index
    %16 = vector.load %arg4[%c0_7, %c0_8] : memref<128x128xf32, #tpu.memory_space<vmem>>, vector<128x128xf32>
    tpu.vector_store %arg4[%c0_7, %c0_8], %15 {strides = array<i32>} : memref<128x128xf32, #tpu.memory_space<vmem>>, vector<128x128xf32>,
    return
  }
  func.func @transform_0(%arg0: i32) -> (i32, i32) {
    %c0_i32 = arith.constant 0 : i32
    %c0_i32_0 = arith.constant 0 : i32
    return %arg0, %c0_i32 : i32, i32
  }
  func.func @transform_1(%arg0: i32) -> (i32, i32) {
    %c0_i32 = arith.constant 0 : i32
    %c0_i32_0 = arith.constant 0 : i32
    %c0_i32_1 = arith.constant 0 : i32
    return %c0_i32, %c0_i32_0 : i32, i32
  }
  func.func @transform_2(%arg0: i32) -> (i32, i32) {
    %c0_i32 = arith.constant 0 : i32
    %c0_i32_0 = arith.constant 0 : i32
    %c0_i32_1 = arith.constant 0 : i32
    return %c0_i32, %c0_i32_0 : i32, i32
  }
  func.func @transform_3(%arg0: i32) -> (i32, i32) {
    %c0_i32 = arith.constant 0 : i32
    %c0_i32_0 = arith.constant 0 : i32
    return %arg0, %c0_i32 : i32, i32
  }
}

</mosaic_0001>

<bundles_post_ra>
// kernel: tile.28
= control target key start
LH: loop header
LB: loop body
LE: loop exit
PB: predicated region body
PF: predicated region fallthrough
CT: control target
= control target key end

     0   :  { %s34_s0 = inlined_call_operand.vmem [shape: f32[8], index: 0, kind: input, shape index: {}]   ;;  %s35_s1 = inlined_call_operand.vmem [shape: f32[18,8], index: 1, kind: output, shape index: {}]  }
   0x1   :  { %v4_v0 = vld [vmem:[%s34_s0] ss:$0 sm:$0xff] }
   0x2   :  { %5 = vst [vmem:[%s35_s1] sm:$0xff] %v4_v0  ;;  %10 = vst [vmem:[%s35_s1 + $0x8] sm:$0xff] %v4_v0 }
   0x3   :  { %11 = vst [vmem:[%s35_s1 + $0x10] sm:$0xff] %v4_v0 }

// kernel: tile.29
= control target key start
LH: loop header
LB: loop body
LE: loop exit
PB: predicated region body
PF: predicated region fallthrough
CT: control target
= control target key end

     0   :  { %s142_s10 = smov 120   ;;  %s143_s11 = smov 104   ;;  %vm4_vm0 = vcmask 64512   ;;  %vm10_vm1 = vcmask 1048512   ;;  %vm16_vm2 = vcmask 982912   ;;  %vm22_vm3 = vcmask 917312   ;;  %s221_s0 = inlined_call_operand.vmem [shape: f32[18,8], index: 0, kind: input, shape index: {}]   ;;  %s222_s1 = inlined_call_operand.vmem [shape: f32[1,1,1,144], index: 1, kind: output, shape index: {}]  }
   0x1   :  { %v111_v0 = vld [vmem:[%s221_s0 + $0xf] sm:$0x1]   ;;  %v113_v1 = vld [vmem:[%s221_s0 + $0xd] sm:$0x1]   ;;  %v112_v2 = vld [vmem:[%s221_s0 + $0xe] sm:$0x1]  }
   0x2   :  { %8 = vrot.lane.b32.xlu0 %v111_v0, %s142_s10  ;;  %20 = vrot.lane.b32.xlu1 %v113_v1, %s143_s11  ;;  %v114_v3 = vld [vmem:[%s221_s0 + $0xc] sm:$0x1]   ;;  %s144_s16 = smov 112   ;;  %s145_s17 = smov 96   ;;  %v115_v4 = vld [vmem:[%s221_s0 + $0xb] sm:$0x1]  }
   0x3   :  { %v116_v5 = vld [vmem:[%s221_s0 + $0xa] sm:$0x1]   ;;  %s2_s22 = smov 3  ;;  %s146_s23 = smov 88   ;;  %v117_v7 = vld [vmem:[%s221_s0 + $0x9] sm:$0x1]  }
   0x4   :  { %s147_s24 = smov 80   ;;  %v3_v6 = vld [vmem:[%s221_s0] ss:$16 sm:%s2_s22]   ;;  %v118_v8 = vld [vmem:[%s221_s0 + $0x8] sm:$0x1]   ;;  %s148_s2 = smov 72  }
   0x5   :  { %5 = vst.msk [vmem:[#allocation0] ss:$8 sm:$0x3] %vm4_vm0, %v3_v6   ;;  %s149_s3 = smov 64   ;;  %v119_v9 = vld [vmem:[%s221_s0 + $0x7] sm:$0x1]  }
   0x6   :  { %14 = vrot.lane.b32.xlu0 %v112_v2, %s144_s16  ;;  %26 = vrot.lane.b32.xlu1 %v114_v3, %s145_s17  ;;  %v120_v10 = vld [vmem:[%s221_s0 + $0x6] sm:$0x1]   ;;  %s150_s8 = smov 56   ;;  %s151_s9 = smov 48   ;;  %v121_v11 = vld [vmem:[%s221_s0 + $0x5] sm:$0x1]  }
   0x7   :  { %v122_v12 = vld [vmem:[%s221_s0 + $0x4] sm:$0x1]   ;;  %s152_s14 = smov 40   ;;  %s153_s15 = smov 32   ;;  %v123_v13 = vld [vmem:[%s221_s0 + $0x3] sm:$0x1]  }
   0x8   :  { %v124_v14 = vld [vmem:[%s221_s0 + $0x2] sm:$0x1]   ;;  %s91_s20 = smov 3  ;;  %s154_s21 = smov 24   ;;  %vm28_vm4 = vcmask 851712   ;;  %vm34_vm5 = vcmask 786112  }
   0x9   :  { %s155_s22 = smov 16   ;;  %v125_v15 = vld [vmem:[%s221_s0 + $0x1] ss:$16 sm:%s91_s20]   ;;  %s156_s0 = smov 8   ;;  %vm40_vm6 = vcmask 720512   ;;  %vm46_vm7 = vcmask 654912  }
   0xa   :  { %32 = vrot.lane.b32.xlu0 %v115_v4, %s146_s23  ;;  %38 = vrot.lane.b32.xlu1 %v116_v5, %s147_s24  ;;  %vm52_vm8 = vcmask 589312   ;;  %vm58_vm9 = vcmask 523712   ;;  %vm64_vm10 = vcmask 458112   ;;  %vm70_vm11 = vcmask 392512  }
   0xb   :  { %vm76_vm12 = vcmask 326912   ;;  %vm82_vm13 = vcmask 261312   ;;  %vm88_vm14 = vcmask 195712   ;;  %vm95_vm15 = vcmask 130112  }
   0xe   :  { %44 = vrot.lane.b32.xlu0 %v117_v7, %s148_s2  ;;  %50 = vrot.lane.b32.xlu1 %v118_v8, %s149_s3 }
  0x12   :  { %56 = vrot.lane.b32.xlu0 %v119_v9, %s150_s8  ;;  %62 = vrot.lane.b32.xlu1 %v120_v10, %s151_s9 }
  0x16   :  { %68 = vrot.lane.b32.xlu0 %v121_v11, %s152_s14  ;;  %74 = vrot.lane.b32.xlu1 %v122_v12, %s153_s15 }
  0x1a   :  { %80 = vrot.lane.b32.xlu0 %v123_v13, %s154_s21  ;;  %86 = vrot.lane.b32.xlu1 %v124_v14, %s155_s22 }
  0x1e   :  { %93 = vrot.lane.b32.xlu0 %v125_v15, %s156_s0 }
  0x74   :  { %v9_v16 = vpop.permute.xlu0 %8   ;;  %v21_v17 = vpop.permute.xlu1 %20  }
  0x75   :  { %11 = vst.msk [vmem:[#allocation0] sm:$0x1] %vm10_vm1, %v9_v16  }
  0x78   :  { %v15_v18 = vpop.permute.xlu0 %14   ;;  %v27_v19 = vpop.permute.xlu1 %26  }
  0x79   :  { %17 = vst.msk [vmem:[#allocation0] sm:$0x1] %vm16_vm2, %v15_v18  }
  0x7a   :  { %23 = vst.msk [vmem:[#allocation0] sm:$0x1] %vm22_vm3, %v21_v17  }
  0x7b   :  { %29 = vst.msk [vmem:[#allocation0] sm:$0x1] %vm28_vm4, %v27_v19  }
  0x7c   :  { %v33_v20 = vpop.permute.xlu0 %32   ;;  %v39_v21 = vpop.permute.xlu1 %38  }
  0x7d   :  { %35 = vst.msk [vmem:[#allocation0] sm:$0x1] %vm34_vm5, %v33_v20  }
  0x7e   :  { %41 = vst.msk [vmem:[#allocation0] sm:$0x1] %vm40_vm6, %v39_v21  }
  0x80   :  { %v45_v22 = vpop.permute.xlu0 %44   ;;  %v51_v23 = vpop.permute.xlu1 %50  }
  0x81   :  { %47 = vst.msk [vmem:[#allocation0] sm:$0x1] %vm46_vm7, %v45_v22  }
  0x82   :  { %53 = vst.msk [vmem:[#allocation0] sm:$0x1] %vm52_vm8, %v51_v23  }
  0x84   :  { %v57_v24 = vpop.permute.xlu0 %56   ;;  %v63_v25 = vpop.permute.xlu1 %62  }
  0x85   :  { %59 = vst.msk [vmem:[#allocation0] sm:$0x1] %vm58_vm9, %v57_v24  }
  0x86   :  { %65 = vst.msk [vmem:[#allocation0] sm:$0x1] %vm64_vm10, %v63_v25  }
  0x88   :  { %v69_v26 = vpop.permute.xlu0 %68   ;;  %v75_v27 = vpop.permute.xlu1 %74  }
  0x89   :  { %71 = vst.msk [vmem:[#allocation0] sm:$0x1] %vm70_vm11, %v69_v26  }
  0x8a   :  { %77 = vst.msk [vmem:[#allocation0] sm:$0x1] %vm76_vm12, %v75_v27  }
  0x8c   :  { %v81_v28 = vpop.permute.xlu0 %80   ;;  %v87_v29 = vpop.permute.xlu1 %86  }
  0x8d   :  { %83 = vst.msk [vmem:[#allocation0] sm:$0x1] %vm82_vm13, %v81_v28  }
  0x8e   :  { %89 = vst.msk [vmem:[#allocation0] sm:$0x1] %vm88_vm14, %v87_v29  }
  0x90   :  { %v94_v30 = vpop.permute.xlu0 %93  }
  0x91   :  { %96 = vst.msk [vmem:[#allocation0] ss:$8 sm:$0x3] %vm95_vm15, %v94_v30  }
  0x98   :  { %v101_v31 = vld [vmem:[#allocation0] sm:$0x1]  ;;  %v106_v32 = vld [vmem:[#allocation0 + $0x8] sm:$0x1] }
  0x99   :  { %104 = vst [vmem:[%s222_s1] sm:$0x1] %v101_v31  ;;  %126 = vst [vmem:[%s222_s1 + $0x1] sm:$0x1] %v106_v32 }

// kernel: double_conv3d.3
= control target key start
LH: loop header
LB: loop body
LE: loop exit
PB: predicated region body
PF: predicated region fallthrough
CT: control target
= control target key end

     0   :  { %v6877_v0 = vmov 0   ;;  %vm64_vm0 = vsmask.f32 3328  ;;  %vm65_vm1 = vsmask.f32 7440  ;;  %vm420_vm2 = vcmask 130048   ;;  %s6871_s1 = inlined_call_operand.vmem [shape: bf16[9,144,128], index: 1, kind: input, shape index: {}]   ;;  %s6872_s0 = inlined_call_operand.vmem [shape: bf16[2,10,10,144], index: 0, kind: input, shape index: {}]   ;;  %s6873_s2 = inlined_call_operand.vmem [shape: bf16[128,128], index: 2, kind: output, shape index: {0}]   ;;  %s6874_s3 = inlined_call_operand.vmem [shape: f32[1,256], index: 3, kind: output, shape index: {1}]  }
   0x1   :  { %445 = vmatprep.subr.bf16.mxu0 %v6877_v0  ;;  %692 = vmatprep.subr.bf16.mxu1 %v6877_v0  ;;  %v4453_v1 = vld [vmem:[%s6871_s1 + $0x80] sm:$0xff]   ;;  %v4454_v2 = vld [vmem:[%s6871_s1 + $0x38] sm:$0xff]   ;;  %v4456_v4 = vld [vmem:[%s6871_s1 + $0x30] sm:$0xff]   ;;  %vm837_vm4 = vcmask 1042432   ;;  %vm838_vm5 = vcmask 1046532  }
   0x2   :  { %446 = vmatpush1.bf16.msra.mxu0 %v4453_v1  ;;  %v4455_v3 = vld [vmem:[%s6871_s1 + $0x78] sm:$0xff]   ;;  %693 = vmatpush1.bf16.msra.mxu1 %v4454_v2  ;;  %v4457_v5 = vld [vmem:[%s6871_s1 + $0x70] sm:$0xff]   ;;  %v4458_v6 = vld [vmem:[%s6871_s1 + $0x28] sm:$0xff]  }
   0x3   :  { %447 = vmatprep.subr.bf16.mxu0 %v6877_v0  ;;  %694 = vmatprep.subr.bf16.mxu1 %v6877_v0  ;;  %v4459_v7 = vld [vmem:[%s6871_s1 + $0x68] sm:$0xff]   ;;  %v4460_v8 = vld [vmem:[%s6871_s1 + $0x20] sm:$0xff]   ;;  %v4462_v10 = vld [vmem:[%s6871_s1 + $0x18] sm:$0xff]  }
   0x4   :  { %v4461_v9 = vld [vmem:[%s6871_s1 + $0x60] sm:$0xff]   ;;  %v4463_v11 = vld [vmem:[%s6871_s1 + $0x58] sm:$0xff]   ;;  %v4464_v12 = vld [vmem:[%s6871_s1 + $0x10] sm:$0xff]  }
   0x5   :  { %v4653_v13 = vld [vmem:[%s6872_s0] sm:$0xff]  ;;  %v4658_v14 = vld [vmem:[%s6872_s0 + $0x10] sm:$0xff]  ;;  %v4663_v15 = vld [vmem:[%s6872_s0 + $0x8] sm:$0x11] }
   0x6   :  { %448 = vmatpush1.bf16.msra.mxu0 %v4455_v3  ;;  %695 = vmatpush1.bf16.msra.mxu1 %v4456_v4  ;;  %v4669_v16 = vld [vmem:[%s6872_s0 + $0x18] sm:$0x11]  ;;  %v68_v17 = vshrl.u32 %v4653_v13, 16  ;;  %v71_v18 = vshll.u32 %v4653_v13, 16  ;;  %v77_v19 = vshll.u32 %v4663_v15, 16  ;;  %v82_v20 = vshrl.u32 %v4658_v14, 16  ;;  %vm4715_vm3 = vmor %vm64_vm0, %vm65_vm1 }
   0x7   :  { %449 = vmatprep.subr.bf16.mxu0 %v6877_v0  ;;  %696 = vmatprep.subr.bf16.mxu1 %v6877_v0  ;;  %v85_v21 = vshll.u32 %v4658_v14, 16  ;;  %v91_v22 = vshll.u32 %v4669_v16, 16  ;;  %v4465_v23 = vld [vmem:[%s6871_s1 + $0x50] sm:$0xff]   ;;  %v4466_v27 = vld [vmem:[%s6871_s1 + $0x8] sm:$0xff]   ;;  %v3789_v31 = vcombine.high %v4653_v13, %v4658_v14  ;;  %v4689_v32 = vld [vmem:[%s6872_s0 + $0x20] sm:$0xff] }
   0x8   :  { %v70_v24 = vrot.slane %v68_v17, 4  ;;  %v73_v25 = vrot.slane %v71_v18, 5  ;;  %v84_v26 = vrot.slane %v82_v20, 4  ;;  %v79_v28 = vrot.slane %v77_v19, 5  ;;  %v4694_v33 = vld [vmem:[%s6872_s0 + $0x30] sm:$0xff]  ;;  %v4467_v39 = vld [vmem:[%s6871_s1 + $0x48] sm:$0xff]   ;;  %vm5061_vm6 = vmor %vm837_vm4, %vm838_vm5 }
   0x9   :  { %v87_v29 = vrot.slane %v85_v21, 5  ;;  %v93_v30 = vrot.slane %v91_v22, 5  ;;  %v4700_v35 = vld [vmem:[%s6872_s0 + $0x28] sm:$0x11]  ;;  %v4705_v36 = vld [vmem:[%s6872_s0 + $0x38] sm:$0x11]  ;;  %3813 = vmatprep.mubr.msk.bf16.mxu1 %vm420_vm2, %v3789_v31  ;;  %v3788_v19 = vcombine.low %v4653_v13, %v4658_v14  ;;  %v3791_v13 = vcombine.high %v4689_v32, %v4694_v33 }
   0xa   :  { %450 = vmatpush1.bf16.msra.mxu0 %v4457_v5  ;;  %697 = vmatpush1.bf16.msra.mxu1 %v4458_v6  ;;  %v74_v34 = vor.u32 %v73_v25, %v70_v24  ;;  %v96_v37 = vshrl.u32 %v4689_v32, 16  ;;  %v99_v38 = vshll.u32 %v4689_v32, 16  ;;  %v105_v42 = vshll.u32 %v4700_v35, 16  ;;  %v4468_v49 = vld [vmem:[%s6871_s1] sm:$0xff]   ;;  %v4738_v58 = vld [vmem:[%s6872_s0 + $0x50] sm:$0xff]  ;;  %v4469_v5 = vld [vmem:[%s6871_s1 + $0x88] sm:$0xff]  }
   0xb   :  { %451 = vmatprep.subr.bf16.mxu0 %v6877_v0  ;;  %698 = vmatprep.subr.bf16.mxu1 %v6877_v0  ;;  %v88_v41 = vor.u32 %v87_v29, %v84_v26  ;;  %v110_v43 = vshrl.u32 %v4694_v33, 16  ;;  %v113_v44 = vshll.u32 %v4694_v33, 16  ;;  %v119_v48 = vshll.u32 %v4705_v36, 16  ;;  %v4730_v54 = vld [vmem:[%s6872_s0 + $0x40] sm:$0xff]  ;;  %v4743_v59 = vld [vmem:[%s6872_s0 + $0x48] sm:$0x11] }
   0xc   :  { %v75_v45 = vrot.slane %v74_v34, 4  ;;  %v98_v46 = vrot.slane %v96_v37, 4  ;;  %v101_v47 = vrot.slane %v99_v38, 5  ;;  %v107_v51 = vrot.slane %v105_v42, 5  ;;  %v4748_v60 = vld [vmem:[%s6872_s0 + $0x58] sm:$0x11] }
   0xd   :  { %v89_v50 = vrot.slane %v88_v41, 4  ;;  %v112_v52 = vrot.slane %v110_v43, 4  ;;  %v115_v53 = vrot.slane %v113_v44, 5  ;;  %v121_v57 = vrot.slane %v119_v48, 5  ;;  %v4773_v18 = vld [vmem:[%s6872_s0 + $0x60] sm:$0xff]  ;;  %v4473_v29 = vld [vmem:[%s6871_s1 + $0xc8] sm:$0xff]  }
   0xe   :  { %452 = vmatpush1.bf16.msra.mxu0 %v4459_v7  ;;  %699 = vmatpush1.bf16.msra.mxu1 %v4460_v8  ;;  %v80_v55 = vsel %vm4715_vm3, %v75_v45, %v79_v28  ;;  %v102_v56 = vor.u32 %v101_v47, %v98_v46  ;;  %v124_v63 = vshrl.u32 %v4730_v54, 16  ;;  %v127_v1 = vshll.u32 %v4730_v54, 16  ;;  %v4791_v24 = vld [vmem:[%s6872_s0 + $0x68] sm:$0x11]  ;;  %v4798_v28 = vld [vmem:[%s6872_s0 + $0x78] sm:$0x11] }
   0xf   :  { %453 = vmatprep.subr.bf16.mxu0 %v6877_v0  ;;  %700 = vmatprep.subr.bf16.mxu1 %v6877_v0  ;;  %v94_v61 = vsel %vm4715_vm3, %v89_v50, %v93_v30  ;;  %v116_v62 = vor.u32 %v115_v53, %v112_v52  ;;  %v133_v4 = vshll.u32 %v4743_v59, 16  ;;  %v147_v17 = vshll.u32 %v4748_v60, 16  ;;  %v4480_v41 = vld [vmem:[%s6871_s1 + $0x110] sm:$0xff]   ;;  %v4818_v47 = vld [vmem:[%s6872_s0 + $0xa0] sm:$0xff] }
  0x10   :  { %v3756_v2 = vcombine.high %v80_v55, %v94_v61  ;;  %v103_v3 = vrot.slane %v102_v56, 4  ;;  %v126_v7 = vrot.slane %v124_v63, 4  ;;  %v129_v8 = vrot.slane %v127_v1, 5  ;;  %v4841_v63 = vld [vmem:[%s6872_s0 + $0xa8] sm:$0x11] }
  0x11   :  { %v117_v6 = vrot.slane %v116_v62, 4  ;;  %v3755_v25 = vcombine.low %v80_v55, %v94_v61  ;;  %v135_v26 = vrot.slane %v133_v4, 5  ;;  %v152_v34 = vshrl.u32 %v4773_v18, 16  ;;  %v4484_v61 = vld [vmem:[%s6871_s1 + $0x108] sm:$0xff]   ;;  %v4836_v62 = vld [vmem:[%s6872_s0 + $0xb0] sm:$0xff] }
  0x12   :  { %454 = vmatpush1.bf16.msra.mxu0 %v4461_v9  ;;  %701 = vmatpush1.bf16.msra.mxu1 %v4462_v10  ;;  %v138_v9 = vshrl.u32 %v4738_v58, 16  ;;  %v4470_v10 = vld [vmem:[%s6871_s1 + $0x40] sm:$0xff]   ;;  %v130_v21 = vor.u32 %v129_v8, %v126_v7  ;;  %v155_v37 = vshll.u32 %v4773_v18, 16  ;;  %v161_v46 = vshll.u32 %v4791_v24, 16 }
  0x13   :  { %455 = vmatprep.subr.bf16.mxu0 %v6877_v0  ;;  %702 = vmatprep.subr.bf16.mxu1 %v6877_v0  ;;  %v4781_v20 = vsel %vm4715_vm3, %v117_v6, %v121_v57  ;;  %v154_v44 = vrot.slane %v152_v34, 4  ;;  %v842_v48 = vrot.slane %v4663_v15, 5  ;;  %v846_v53 = vrot.slane %v4669_v16, 5  ;;  %v4894_v34 = vld [vmem:[%s6872_s0 + $0xd8] sm:$0x11] }
  0x14   :  { %3780 = vmatprep.mubr.msk.bf16.mxu0 %vm420_vm2, %v3756_v2  ;;  %v140_v22 = vrot.slane %v138_v9, 4  ;;  %v131_v31 = vrot.slane %v130_v21, 4  ;;  %v157_v45 = vrot.slane %v155_v37, 5  ;;  %v175_v57 = vshll.u32 %v4798_v28, 16  ;;  %v4479_v9 = vld [vmem:[%s6871_s1 + $0xb8] sm:$0xff]  }
  0x15   :  { %v183_v4 = vshll.u32 %v4818_v47, 16  ;;  %v3790_v6 = vcombine.low %v4689_v32, %v4694_v33  ;;  %v163_v8 = vrot.slane %v161_v46, 5  ;;  %v3792_v37 = vcombine.low %v4730_v54, %v4738_v58  ;;  %v4482_v46 = vld [vmem:[%s6871_s1 + $0xb0] sm:$0xff]   ;;  %v4502_v15 = vld [vmem:[%s6871_s1 + $0xd8] sm:$0xff]  }
  0x16   :  { %456 = vmatpush1.bf16.msra.mxu0 %v4463_v11  ;;  %703 = vmatpush1.bf16.msra.mxu1 %v4464_v12  ;;  %v4766_v11 = vsel %vm4715_vm3, %v103_v3, %v107_v51  ;;  %v141_v12 = vshll.u32 %v4738_v58, 16  ;;  %v4827_v55 = vsel %vm4715_vm3, %v131_v31, %v135_v26  ;;  %v158_v56 = vor.u32 %v157_v45, %v154_v44  ;;  %v4876_v26 = vld [vmem:[%s6872_s0 + $0xc0] sm:$0xff]  ;;  %v4889_v31 = vld [vmem:[%s6872_s0 + $0xd0] sm:$0xff] }
  0x17   :  { %457 = vmatprep.subr.bf16.mxu0 %v6877_v0  ;;  %704 = vmatprep.subr.bf16.mxu1 %v6877_v0  ;;  %v3758_v30 = vcombine.high %v4766_v11, %v4781_v20  ;;  %v180_v3 = vshrl.u32 %v4818_v47, 16  ;;  %v208_v44 = vshrl.u32 %v4876_v26, 16  ;;  %v211_v45 = vshll.u32 %v4876_v26, 16 }
  0x18   :  { %v159_v7 = vrot.slane %v158_v56, 4 }
  0x1a   :  { %458 = vmatpush1.bf16.msra.mxu0 %v4465_v23  ;;  %705 = vmatpush1.bf16.msra.mxu1 %v4466_v27  ;;  %v4786_v23 = vld [vmem:[%s6872_s0 + $0x70] sm:$0xff]  ;;  %v143_v27 = vrot.slane %v141_v12, 5  ;;  %v185_v12 = vrot.slane %v183_v4, 5 }
  0x1b   :  { %459 = vmatprep.subr.bf16.mxu0 %v6877_v0  ;;  %706 = vmatprep.subr.bf16.mxu1 %v6877_v0  ;;  %v166_v42 = vshrl.u32 %v4786_v23, 16  ;;  %v169_v43 = vshll.u32 %v4786_v23, 16 }
  0x1c   :  { %v144_v38 = vor.u32 %v143_v27, %v140_v22  ;;  %v177_v22 = vrot.slane %v175_v57, 5  ;;  %v4881_v27 = vld [vmem:[%s6872_s0 + $0xc8] sm:$0x11]  ;;  %v210_v57 = vrot.slane %v208_v44, 4 }
  0x1d   :  { %v168_v51 = vrot.slane %v166_v42, 4  ;;  %v171_v52 = vrot.slane %v169_v43, 5  ;;  %v4901_v42 = vsel %vm4715_vm3, %v159_v7, %v163_v8  ;;  %v4491_v8 = vld [vmem:[%s6871_s1 + $0xf8] sm:$0xff]  }
  0x1e   :  { %460 = vmatpush1.bf16.msra.mxu0 %v4467_v39  ;;  %707 = vmatpush1.bf16.msra.mxu1 %v4468_v49  ;;  %v149_v39 = vrot.slane %v147_v17, 5  ;;  %v4476_v49 = vld [vmem:[%s6871_s1 + $0xc0] sm:$0xff]   ;;  %v145_v50 = vrot.slane %v144_v38, 4  ;;  %v189_v17 = vshll.u32 %v4841_v63, 16 }
  0x1f   :  { %475 = vmatprep.subr.bf16.mxu0 %v6877_v0  ;;  %722 = vmatprep.subr.bf16.mxu1 %v6877_v0  ;;  %v172_v2 = vor.u32 %v171_v52, %v168_v51  ;;  %v222_v51 = vshrl.u32 %v4889_v31, 16  ;;  %v225_v52 = vshll.u32 %v4889_v31, 16 }
  0x20   :  { %v4847_v1 = vsel %vm4715_vm3, %v145_v50, %v149_v39  ;;  %v4903_v43 = vrot.slane %v189_v17, 5  ;;  %v217_v50 = vshll.u32 %v4881_v27, 16 }
  0x21   :  { %v173_v21 = vrot.slane %v172_v2, 4  ;;  %v231_v2 = vshll.u32 %v4894_v34, 16  ;;  %v227_v7 = vrot.slane %v225_v52, 5 }
  0x22   :  { %476 = vmatpush2.bf16.msra.mxu0 %v4469_v5  ;;  %723 = vmatpush2.bf16.msra.mxu1 %v4470_v10  ;;  %v3757_v5 = vcombine.low %v4766_v11, %v4781_v20  ;;  %v4863_v10 = vld [vmem:[%s6872_s0 + $0xb8] sm:$0x11]  ;;  %v182_v11 = vrot.slane %v180_v3, 4  ;;  %v3760_v20 = vcombine.high %v4827_v55, %v4847_v1  ;;  %v4924_v3 = vld [vmem:[%s6872_s0 + $0xe0] sm:$0xff] }
  0x23   :  { %1057 = vmatprep.subr.bf16.mxu0 %v6877_v0  ;;  %1356 = vmatprep.subr.bf16.mxu1 %v6877_v0  ;;  %v4918_v56 = vsel %vm4715_vm3, %v173_v21, %v177_v22  ;;  %v4494_v22 = vld [vmem:[%s6871_s1 + $0xf0] sm:$0xff]  }
  0x24   :  { %v186_v38 = vor.u32 %v185_v12, %v182_v11  ;;  %v3795_v11 = vcombine.high %v4773_v18, %v4786_v23  ;;  %v4485_v12 = vld [vmem:[%s6871_s1 + $0xa8] sm:$0xff]  }
  0x25   :  { %478 = vmatmul.mubr.bf16.vlgmr.msra.gmra.mxu0 %v3755_v25  ;;  %725 = vmatmul.mubr.bf16.vlgmr.msra.gmra.mxu1 %v3788_v19  ;;  %v194_v19 = vshrl.u32 %v4836_v62, 16  ;;  %v197_v25 = vshll.u32 %v4836_v62, 16 }
  0x26   :  { %1058 = vmatpush1.bf16.msra.mxu0 %v4473_v29  ;;  %3781 = vmatprep.mubr.msk.bf16.mxu0 %vm420_vm2, %v3758_v30  ;;  %v3793_v29 = vcombine.high %v4730_v54, %v4738_v58  ;;  %v187_v4 = vrot.slane %v186_v38, 4  ;;  %v219_v38 = vrot.slane %v217_v50, 5 }
  0x27   :  { %3814 = vmatprep.mubr.msk.bf16.mxu1 %vm420_vm2, %v3791_v13  ;;  %1059 = vmatprep.subr.bf16.mxu0 %v6877_v0  ;;  %v4488_v13 = vld [vmem:[%s6871_s1 + $0x100] sm:$0xff]   ;;  %v196_v30 = vrot.slane %v194_v19, 4  ;;  %v199_v39 = vrot.slane %v197_v25, 5  ;;  %v236_v25 = vshrl.u32 %v4924_v3, 16 }
  0x28   :  { %1357 = vmatpush1.bf16.msra.mxu1 %v4480_v41  ;;  %v203_v41 = vshll.u32 %v4863_v10, 16 }
  0x29   :  { %1358 = vmatprep.subr.bf16.mxu1 %v6877_v0 }
  0x2a   :  { %1060 = vmatpush1.bf16.msra.mxu0 %v4476_v49  ;;  %v200_v49 = vor.u32 %v199_v39, %v196_v30  ;;  %v3797_v30 = vcombine.high %v4818_v47, %v4836_v62  ;;  %v233_v39 = vrot.slane %v231_v2, 5 }
  0x2b   :  { %1061 = vmatprep.subr.bf16.mxu0 %v6877_v0 }
  0x2c   :  { %1359 = vmatpush1.bf16.msra.mxu1 %v4484_v61  ;;  %v213_v61 = vrot.slane %v211_v45, 5  ;;  %v201_v17 = vrot.slane %v200_v49, 4  ;;  %v238_v45 = vrot.slane %v236_v25, 4 }
  0x2d   :  { %486 = vmatmul.mubr.bf16.gmra.mxu0 %v3757_v5  ;;  %1360 = vmatprep.subr.bf16.mxu1 %v6877_v0  ;;  %v205_v5 = vrot.slane %v203_v41, 5  ;;  %v4962_v41 = vld [vmem:[%s6872_s0 + $0xf8] sm:$0x11] }
  0x2e   :  { %733 = vmatmul.mubr.bf16.gmra.mxu1 %v3790_v6  ;;  %3782 = vmatprep.mubr.msk.bf16.mxu0 %vm420_vm2, %v3760_v20  ;;  %v224_v6 = vrot.slane %v222_v51, 4  ;;  %v214_v19 = vor.u32 %v213_v61, %v210_v57  ;;  %v4941_v20 = vld [vmem:[%s6872_s0 + $0xf0] sm:$0xff]  ;;  %v3761_v51 = vcombine.low %v4901_v42, %v4918_v56  ;;  %v4974_v61 = vld [vmem:[%s6872_s0 + $0x100] sm:$0xff] }
  0x2f   :  { %3815 = vmatprep.mubr.msk.bf16.mxu1 %vm420_vm2, %v3793_v29  ;;  %1062 = vmatpush1.bf16.msra.mxu0 %v4479_v9  ;;  %v3759_v9 = vcombine.low %v4827_v55, %v4847_v1  ;;  %v4946_v55 = vld [vmem:[%s6872_s0 + $0xe8] sm:$0x11]  ;;  %v3762_v1 = vcombine.high %v4901_v42, %v4918_v56  ;;  %v3794_v29 = vcombine.low %v4773_v18, %v4786_v23  ;;  %v253_v57 = vshll.u32 %v4941_v20, 16  ;;  %v4489_v56 = vld [vmem:[%s6871_s1 + $0xa0] sm:$0xff]  }
  0x30   :  { %1063 = vmatprep.subr.bf16.mxu0 %v6877_v0  ;;  %1361 = vmatpush1.bf16.msra.mxu1 %v4488_v13  ;;  %v228_v21 = vor.u32 %v227_v7, %v224_v6  ;;  %v239_v13 = vshll.u32 %v4924_v3, 16  ;;  %v215_v44 = vrot.slane %v214_v19, 4  ;;  %v245_v50 = vshll.u32 %v4946_v55, 16 }
  0x31   :  { %1362 = vmatprep.subr.bf16.mxu1 %v6877_v0  ;;  %v259_v7 = vshll.u32 %v4962_v41, 16 }
  0x32   :  { %v241_v49 = vrot.slane %v239_v13, 5  ;;  %v229_v52 = vrot.slane %v228_v21, 4  ;;  %v5004_v21 = vld [vmem:[%s6872_s0 + $0x110] sm:$0xff]  ;;  %v247_v13 = vrot.slane %v245_v50, 5 }
  0x33   :  { %1064 = vmatpush1.bf16.msra.mxu0 %v4482_v46  ;;  %v250_v46 = vshrl.u32 %v4941_v20, 16 }
  0x34   :  { %1065 = vmatprep.subr.bf16.mxu0 %v6877_v0  ;;  %1363 = vmatpush1.bf16.msra.mxu1 %v4491_v8  ;;  %v242_v2 = vor.u32 %v241_v49, %v238_v45  ;;  %v4497_v8 = vld [vmem:[%s6871_s1 + $0xe8] sm:$0xff]   ;;  %v4493_v45 = vld [vmem:[%s6871_s1 + $0x98] sm:$0xff]   ;;  %v261_v49 = vrot.slane %v259_v7, 5 }
  0x35   :  { %494 = vmatmul.mubr.bf16.gmra.mxu0 %v3759_v9  ;;  %1364 = vmatprep.subr.bf16.mxu1 %v6877_v0  ;;  %v252_v6 = vrot.slane %v250_v46, 4  ;;  %v4997_v9 = vsel %vm4715_vm3, %v201_v17, %v205_v5  ;;  %v264_v5 = vshrl.u32 %v4974_v61, 16  ;;  %v5022_v17 = vsel %vm4715_vm3, %v229_v52, %v233_v39 }
  0x36   :  { %741 = vmatmul.mubr.bf16.gmra.mxu1 %v3792_v37  ;;  %3783 = vmatprep.mubr.msk.bf16.mxu0 %vm420_vm2, %v3762_v1  ;;  %v4993_v37 = vsel %vm4715_vm3, %v187_v4, %v4903_v43  ;;  %v255_v1 = vrot.slane %v253_v57, 5  ;;  %v5016_v4 = vld [vmem:[%s6872_s0 + $0x108] sm:$0x11]  ;;  %v243_v25 = vrot.slane %v242_v2, 4  ;;  %v278_v39 = vshrl.u32 %v5004_v21, 16  ;;  %v4499_v57 = vld [vmem:[%s6871_s1 + $0xe0] sm:$0xff]  }
  0x37   :  { %3816 = vmatprep.mubr.msk.bf16.mxu1 %vm420_vm2, %v3795_v11  ;;  %1066 = vmatpush1.bf16.msra.mxu0 %v4485_v12  ;;  %v5009_v11 = vsel %vm4715_vm3, %v215_v44, %v219_v38  ;;  %v267_v12 = vshll.u32 %v4974_v61, 16  ;;  %v3764_v44 = vcombine.high %v4993_v37, %v4997_v9  ;;  %v281_v46 = vshll.u32 %v5004_v21, 16 }
  0x38   :  { %1067 = vmatprep.subr.bf16.mxu0 %v6877_v0  ;;  %1365 = vmatpush1.bf16.msra.mxu1 %v4494_v22  ;;  %v256_v38 = vor.u32 %v255_v1, %v252_v6  ;;  %v5028_v22 = vld [vmem:[%s6872_s0 + $0x118] sm:$0x11]  ;;  %v3763_v52 = vcombine.low %v4993_v37, %v4997_v9  ;;  %v5042_v2 = vrot.slane %v264_v5, 4  ;;  %v273_v6 = vshll.u32 %v5016_v4, 16  ;;  %v789_v5 = vld [vmem:[%s6872_s0] sm:$0xee] }
  0x39   :  { %1366 = vmatprep.subr.bf16.mxu1 %v6877_v0  ;;  %v5050_v43 = vrot.slane %v267_v12, 5  ;;  %v5069_v12 = vsel %vm4715_vm3, %v243_v25, %v247_v13  ;;  %v3821_v1 = vrot.slane %v789_v5, 9  ;;  %v5080_v42 = vrot.slane %v278_v39, 4  ;;  %v791_v13 = vld [vmem:[%s6872_s0 + $0x20] sm:$0xee] }
  0x3a   :  { %v257_v50 = vrot.slane %v256_v38, 4  ;;  %v790_v38 = vld [vmem:[%s6872_s0 + $0x10] sm:$0xee]  ;;  %v6898_v37 = vcombine.high %v5009_v11, %v5022_v17 }
  0x3b   :  { %1068 = vmatpush1.bf16.msra.mxu0 %v4489_v56  ;;  %v287_v56 = vshll.u32 %v5028_v22, 16  ;;  %v3822_v7 = vrot.slane %v790_v38, 9  ;;  %v5105_v39 = vsel %vm5061_vm6, %v3821_v1, %v842_v48  ;;  %v854_v1 = vrot.slane %v4705_v36, 5  ;;  %v796_v25 = vld [vmem:[%s6872_s0 + $0x70] sm:$0xee] }
  0x3c   :  { %1069 = vmatprep.subr.bf16.mxu0 %v6877_v0  ;;  %1367 = vmatpush1.bf16.msra.mxu1 %v4497_v8  ;;  %v5082_v8 = vrot.slane %v281_v46, 5 }
  0x3d   :  { %502 = vmatmul.mubr.bf16.gmra.mxu0 %v3761_v51  ;;  %1368 = vmatprep.subr.bf16.mxu1 %v6877_v0  ;;  %v5078_v51 = vsel %vm4715_vm3, %v257_v50, %v261_v49  ;;  %v5099_v49 = vrot.slane %v273_v6, 5  ;;  %v5111_v46 = vsel %vm5061_vm6, %v3822_v7, %v846_v53  ;;  %v3823_v53 = vrot.slane %v791_v13, 9  ;;  %v793_v50 = vld [vmem:[%s6872_s0 + $0x40] sm:$0xee] }
  0x3e   :  { %749 = vmatmul.mubr.bf16.gmra.mxu1 %v3794_v29  ;;  %3784 = vmatprep.mubr.msk.bf16.mxu0 %vm420_vm2, %v3764_v44  ;;  %v792_v29 = vld [vmem:[%s6872_s0 + $0x30] sm:$0xee]  ;;  %v3855_v16 = vcombine.low %v5105_v39, %v5111_v46  ;;  %v3856_v48 = vcombine.high %v5105_v39, %v5111_v46  ;;  %v850_v6 = vrot.slane %v4700_v35, 5  ;;  %v3768_v5 = vcombine.high %v5069_v12, %v5078_v51 }
  0x3f   :  { %3817 = vmatprep.mubr.msk.bf16.mxu1 %vm420_vm2, %v3797_v30  ;;  %1070 = vmatpush1.bf16.msra.mxu0 %v4493_v45  ;;  %v4498_v44 = vld [vmem:[%s6871_s1 + $0x90] sm:$0xff]   ;;  %v3923_v30 = vcombine.high %v4658_v14, %v4689_v32  ;;  %v270_v45 = vor.u32 %v5050_v43, %v5042_v2  ;;  %v5131_v43 = vrot.slane %v287_v56, 5  ;;  %v3824_v7 = vrot.slane %v792_v29, 9  ;;  %v4504_v56 = vld [vmem:[%s6871_s1 + $0x118] sm:$0xff]   ;;  %v795_v29 = vld [vmem:[%s6872_s0 + $0x60] sm:$0xee] }
  0x40   :  { %1071 = vmatprep.subr.bf16.mxu0 %v6877_v0  ;;  %1369 = vmatpush1.bf16.msra.mxu1 %v4499_v57  ;;  %v794_v57 = vld [vmem:[%s6872_s0 + $0x50] sm:$0xee]  ;;  %v284_v38 = vor.u32 %v5082_v8, %v5080_v42  ;;  %v3925_v13 = vcombine.high %v4694_v33, %v4730_v54  ;;  %v5152_v35 = vsel %vm5061_vm6, %v3823_v53, %v850_v6  ;;  %v3825_v42 = vrot.slane %v793_v50, 9 }
  0x41   :  { %1370 = vmatprep.subr.bf16.mxu1 %v6877_v0  ;;  %v4503_v2 = vld [vmem:[%s6871_s1 + $0xd0] sm:$0xff]   ;;  %v5156_v36 = vsel %vm5061_vm6, %v3824_v7, %v854_v1  ;;  %v858_v8 = vrot.slane %v4743_v59, 5  ;;  %v3826_v50 = vrot.slane %v794_v57, 9  ;;  %v862_v59 = vrot.slane %v4748_v60, 5 }
  0x42   :  { %v3857_v53 = vcombine.low %v5152_v35, %v5156_v36  ;;  %v3926_v7 = vcombine.low %v4738_v58, %v4773_v18  ;;  %v3827_v1 = vrot.slane %v795_v29, 9  ;;  %v6897_v60 = vcombine.low %v4818_v47, %v4836_v62  ;;  %v4522_v39 = vld [vmem:[%s6871_s1 + $0x190] sm:$0xff]  }
  0x43   :  { %1072 = vmatpush1.bf16.msra.mxu0 %v4498_v44  ;;  %v3858_v44 = vcombine.high %v5152_v35, %v5156_v36  ;;  %v5177_v6 = vsel %vm5061_vm6, %v3825_v42, %v858_v8  ;;  %v5192_v9 = vsel %vm5061_vm6, %v3826_v50, %v862_v59  ;;  %v3828_v57 = vrot.slane %v796_v25, 9  ;;  %v798_v50 = vld [vmem:[%s6872_s0 + $0xb0] sm:$0xee]  ;;  %v4519_v35 = vld [vmem:[%s6871_s1 + $0x138] sm:$0xff]   ;;  %v4528_v36 = vld [vmem:[%s6871_s1 + $0x180] sm:$0xff]  }
  0x44   :  { %1087 = vmatprep.subr.bf16.mxu0 %v6877_v0  ;;  %1371 = vmatpush1.bf16.msra.mxu1 %v4502_v15  ;;  %v3927_v15 = vcombine.high %v4738_v58, %v4773_v18  ;;  %v870_v42 = vrot.slane %v4798_v28, 5  ;;  %v6899_v8 = vcombine.high %v4876_v26, %v4889_v31  ;;  %v271_v47 = vrot.slane %v270_v45, 4  ;;  %v4531_v58 = vld [vmem:[%s6871_s1 + $0x178] sm:$0xff]  }
  0x45   :  { %510 = vmatmul.mubr.bf16.gmra.mxu0 %v3763_v52  ;;  %1386 = vmatprep.subr.bf16.mxu1 %v6877_v0  ;;  %v866_v52 = vrot.slane %v4791_v24, 5  ;;  %v3860_v29 = vcombine.high %v5177_v6, %v5192_v9  ;;  %v797_v24 = vld [vmem:[%s6872_s0 + $0xa0] sm:$0xee]  ;;  %v874_v25 = vrot.slane %v4841_v63, 5  ;;  %v285_v28 = vrot.slane %v284_v38, 4 }
  0x46   :  { %757 = vmatmul.mubr.bf16.gmra.mxu1 %v6897_v60  ;;  %3785 = vmatprep.mubr.msk.bf16.mxu0 %vm420_vm2, %v6898_v37  ;;  %v3859_v60 = vcombine.low %v5177_v6, %v5192_v9  ;;  %v3829_v59 = vrot.slane %v797_v24, 9  ;;  %v6904_v46 = vcombine.low %v4694_v33, %v4730_v54  ;;  %v4516_v33 = vld [vmem:[%s6871_s1 + $0x140] sm:$0xff]   ;;  %v4525_v54 = vld [vmem:[%s6871_s1 + $0x188] sm:$0xff]   ;;  %v4533_v6 = vld [vmem:[%s6871_s1 + $0x170] sm:$0xff]   ;;  %v6905_v9 = vcombine.high %v4836_v62, %v4876_v26 }
  0x47   :  { %3818 = vmatprep.mubr.msk.bf16.mxu1 %vm420_vm2, %v6899_v8  ;;  %1088 = vmatpush2.bf16.msra.mxu0 %v4503_v2  ;;  %v5211_v45 = vsel %vm5061_vm6, %v3827_v1, %v866_v52  ;;  %v5215_v2 = vsel %vm5061_vm6, %v3828_v57, %v870_v42  ;;  %v878_v1 = vrot.slane %v4863_v10, 5  ;;  %v799_v42 = vld [vmem:[%s6872_s0 + $0xc0] sm:$0xee]  ;;  %v882_v8 = vrot.slane %v4881_v27, 5  ;;  %v800_v10 = vld [vmem:[%s6872_s0 + $0xd0] sm:$0xee] }
  0x48   :  { %1387 = vmatpush2.bf16.msra.mxu1 %v4504_v56  ;;  %1878 = vmatprep.subr.bf16.mxu0 %v6877_v0  ;;  %v3862_v63 = vcombine.high %v5211_v45, %v5215_v2  ;;  %v3861_v38 = vcombine.low %v5211_v45, %v5215_v2  ;;  %v3830_v56 = vrot.slane %v798_v50, 9  ;;  %v5228_v37 = vsel %vm5061_vm6, %v3829_v59, %v874_v25 }
  0x49   :  { %2256 = vmatprep.subr.bf16.mxu1 %v6877_v0  ;;  %v3831_v25 = vrot.slane %v799_v42, 9  ;;  %v886_v50 = vrot.slane %v4894_v34, 5  ;;  %v3832_v52 = vrot.slane %v800_v10, 9  ;;  %v890_v42 = vrot.slane %v4946_v55, 5 }
  0x4a   :  { %v5240_v24 = vsel %vm5061_vm6, %v3830_v56, %v878_v1  ;;  %v3932_v56 = vcombine.low %v4889_v31, %v4924_v3  ;;  %v6900_v1 = vcombine.low %v5009_v11, %v5022_v17  ;;  %v6901_v10 = vcombine.low %v4876_v26, %v4889_v31  ;;  %v801_v17 = vld [vmem:[%s6872_s0 + $0xe0] sm:$0xee] }
  0x4b   :  { %v3864_v57 = vcombine.high %v5228_v37, %v5240_v24  ;;  %v5259_v34 = vsel %vm5061_vm6, %v3831_v25, %v882_v8  ;;  %v276_v11 = vsel %vm4715_vm3, %v271_v47, %v5099_v49  ;;  %v5278_v55 = vsel %vm5061_vm6, %v3832_v52, %v886_v50  ;;  %v802_v52 = vld [vmem:[%s6872_s0 + $0xf0] sm:$0xee] }
  0x4c   :  { %v894_v8 = vrot.slane %v4962_v41, 5  ;;  %v6902_v25 = vcombine.high %v4924_v3, %v4941_v20  ;;  %v3866_v49 = vcombine.high %v5259_v34, %v5278_v55  ;;  %v3865_v47 = vcombine.low %v5259_v34, %v5278_v55 }
  0x4d   :  { %518 = vmatmul.mubr.bf16.gmra.mxu0 %v6900_v1  ;;  %v3833_v41 = vrot.slane %v801_v17, 9  ;;  %v3834_v50 = vrot.slane %v802_v52, 9  ;;  %v3767_v1 = vcombine.low %v5069_v12, %v5078_v51  ;;  %v803_v17 = vld [vmem:[%s6872_s0 + $0x100] sm:$0xee]  ;;  %v804_v12 = vld [vmem:[%s6872_s0 + $0x110] sm:$0xee] }
  0x4e   :  { %765 = vmatmul.mubr.bf16.gmra.mxu1 %v6901_v10  ;;  %3786 = vmatprep.mubr.msk.bf16.mxu0 %vm420_vm2, %v3768_v5  ;;  %v290_v5 = vsel %vm4715_vm3, %v285_v28, %v5131_v43  ;;  %v3800_v10 = vcombine.low %v4924_v3, %v4941_v20  ;;  %v898_v51 = vrot.slane %v5016_v4, 5  ;;  %v3836_v59 = vrot.slane %v804_v12, 9 }
  0x4f   :  { %3819 = vmatprep.mubr.msk.bf16.mxu1 %vm420_vm2, %v6902_v25  ;;  %v5304_v43 = vsel %vm5061_vm6, %v3833_v41, %v890_v42  ;;  %v3770_v28 = vcombine.high %v276_v11, %v290_v5  ;;  %v3803_v25 = vcombine.high %v4974_v61, %v5004_v21  ;;  %v5310_v27 = vsel %vm5061_vm6, %v3834_v50, %v894_v8 }
  0x50   :  { %v3868_v42 = vcombine.high %v5304_v43, %v5310_v27  ;;  %v3867_v52 = vcombine.low %v5304_v43, %v5310_v27  ;;  %v3835_v41 = vrot.slane %v803_v17, 9  ;;  %v902_v8 = vrot.slane %v5028_v22, 5 }
  0x51   :  { %v3802_v12 = vcombine.low %v4974_v61, %v5004_v21 }
  0x52   :  { %v5326_v50 = vsel %vm5061_vm6, %v3835_v41, %v898_v51  ;;  %v5331_v4 = vsel %vm5061_vm6, %v3836_v59, %v902_v8  ;;  %v4507_v59 = vld [vmem:[%s6871_s1 + $0x158] sm:$0xff]   ;;  %v6906_v8 = vcombine.low %v5228_v37, %v5240_v24  ;;  %v5511_v37 = vld [vmem:[%s6872_s0 + $0x30] sm:$0xff]  ;;  %v6908_v24 = vcombine.high %v4889_v31, %v4924_v3 }
  0x53   :  { %v3870_v17 = vcombine.high %v5326_v50, %v5331_v4  ;;  %v3869_v22 = vcombine.low %v5326_v50, %v5331_v4 }
  0x55   :  { %526 = vmatmul.mubr.bf16.gmra.mxu0 %v3767_v1  ;;  %v3769_v1 = vcombine.low %v276_v11, %v290_v5  ;;  %v4514_v11 = vld [vmem:[%s6871_s1 + $0x1a0] sm:$0xff]   ;;  %v3956_v5 = vld [vmem:[%s6872_s0 + $0x18] sm:$0x11] }
  0x56   :  { %773 = vmatmul.mubr.bf16.gmra.mxu1 %v3800_v10  ;;  %3787 = vmatprep.mubr.msk.bf16.mxu0 %vm420_vm2, %v3770_v28  ;;  %v5491_v10 = vld [vmem:[%s6872_s0 + $0x28] sm:$0x11] }
  0x57   :  { %3820 = vmatprep.mubr.msk.bf16.mxu1 %vm420_vm2, %v3803_v25 }
  0x5d   :  { %534 = vmatmul.mubr.bf16.gmra.mxu0 %v3769_v1  ;;  %v4038_v1 = vld [vmem:[%s6872_s0 + $0x10] sm:$0xee] }
  0x5e   :  { %781 = vmatmul.mubr.bf16.gmra.mxu1 %v3802_v12  ;;  %3880 = vmatprep.mubr.msk.bf16.mxu0 %vm420_vm2, %v3856_v48  ;;  %v6903_v48 = vcombine.low %v4658_v14, %v4689_v32  ;;  %v4518_v14 = vld [vmem:[%s6871_s1 + $0x198] sm:$0xff]   ;;  %v4513_v32 = vld [vmem:[%s6871_s1 + $0x148] sm:$0xff]   ;;  %v6907_v12 = vcombine.low %v4836_v62, %v4876_v26  ;;  %v1525_v62 = vshll.u32 %v5491_v10, 16  ;;  %v5521_v26 = vld [vmem:[%s6872_s0 + $0x40] sm:$0xff] }
  0x5f   :  { %3947 = vmatprep.mubr.msk.bf16.mxu1 %vm420_vm2, %v3923_v30  ;;  %v4510_v30 = vld [vmem:[%s6871_s1 + $0x150] sm:$0xff]  }
  0x65   :  { %1090 = vmatmul.mubr.bf16.vlgmr.msra.gmra.mxu0 %v3855_v16  ;;  %v5401_v16 = vld [vmem:[%s6872_s0 + $0x80] sm:$0xff] }
  0x66   :  { %1389 = vmatmul.mubr.bf16.vlgmr.msra.gmra.mxu1 %v6903_v48  ;;  %1879 = vmatpush1.bf16.msra.mxu0 %v4507_v59  ;;  %v3928_v18 = vcombine.low %v4786_v23, %v5401_v16  ;;  %v1511_v59 = vshll.u32 %v3956_v5, 16 }
  0x67   :  { %3881 = vmatprep.mubr.msk.bf16.mxu0 %vm420_vm2, %v3858_v44  ;;  %3948 = vmatprep.mubr.msk.bf16.mxu1 %vm420_vm2, %v3925_v13  ;;  %v3929_v13 = vcombine.high %v4786_v23, %v5401_v16  ;;  %v4523_v44 = vld [vmem:[%s6871_s1 + $0x130] sm:$0xff]  }
  0x68   :  { %1880 = vmatprep.subr.bf16.mxu0 %v6877_v0  ;;  %2257 = vmatpush1.bf16.msra.mxu1 %v4514_v11  ;;  %v3955_v23 = vld [vmem:[%s6872_s0 + $0x10] sm:$0xff] }
  0x69   :  { %2258 = vmatprep.subr.bf16.mxu1 %v6877_v0  ;;  %v1505_v45 = vshll.u32 %v3955_v23, 16 }
  0x6a   :  { %1881 = vmatpush1.bf16.msra.mxu0 %v4510_v30  ;;  %v4039_v30 = vld [vmem:[%s6872_s0 + $0x20] sm:$0xee] }
  0x6b   :  { %1882 = vmatprep.subr.bf16.mxu0 %v6877_v0  ;;  %v1507_v25 = vrot.slane %v1505_v45, 5  ;;  %v5564_v45 = vld [vmem:[%s6872_s0 + $0x50] sm:$0xff] }
  0x6c   :  { %2259 = vmatpush1.bf16.msra.mxu1 %v4518_v14  ;;  %v4054_v14 = vrot.slane %v4038_v1, 9  ;;  %v5619_v1 = vld [vmem:[%s6872_s0 + $0x58] sm:$0x11] }
  0x6d   :  { %1098 = vmatmul.mubr.bf16.gmra.mxu0 %v3857_v53  ;;  %2260 = vmatprep.subr.bf16.mxu1 %v6877_v0  ;;  %v4527_v53 = vld [vmem:[%s6871_s1 + $0x128] sm:$0xff]  }
  0x6e   :  { %1397 = vmatmul.mubr.bf16.gmra.mxu1 %v6904_v46  ;;  %3882 = vmatprep.mubr.msk.bf16.mxu0 %vm420_vm2, %v3860_v29  ;;  %v4536_v29 = vld [vmem:[%s6871_s1 + $0x168] sm:$0xff]   ;;  %v1533_v46 = vshll.u32 %v5511_v37, 16 }
  0x6f   :  { %3949 = vmatprep.mubr.msk.bf16.mxu1 %vm420_vm2, %v3927_v15  ;;  %1883 = vmatpush1.bf16.msra.mxu0 %v4513_v32  ;;  %v5459_v15 = vld [vmem:[%s6872_s0 + $0x20] sm:$0xff]  ;;  %v5535_v32 = vld [vmem:[%s6872_s0 + $0x38] sm:$0x11] }
  0x70   :  { %1884 = vmatprep.subr.bf16.mxu0 %v6877_v0  ;;  %2261 = vmatpush1.bf16.msra.mxu1 %v4522_v39  ;;  %v1516_v2 = vshrl.u32 %v5459_v15, 16  ;;  %v1530_v39 = vshrl.u32 %v5511_v37, 16 }
  0x71   :  { %2262 = vmatprep.subr.bf16.mxu1 %v6877_v0 }
  0x72   :  { %v1518_v51 = vrot.slane %v1516_v2, 4 }
  0x73   :  { %1885 = vmatpush1.bf16.msra.mxu0 %v4516_v33  ;;  %v1513_v33 = vrot.slane %v1511_v59, 5 }
  0x74   :  { %1886 = vmatprep.subr.bf16.mxu0 %v6877_v0  ;;  %2263 = vmatpush1.bf16.msra.mxu1 %v4525_v54  ;;  %v2041_v54 = vrot.slane %v3956_v5, 5  ;;  %v1603_v5 = vshll.u32 %v5401_v16, 16 }
  0x75   :  { %1106 = vmatmul.mubr.bf16.gmra.mxu0 %v3859_v60  ;;  %2264 = vmatprep.subr.bf16.mxu1 %v6877_v0  ;;  %v1502_v60 = vshrl.u32 %v3955_v23, 16  ;;  %v2045_v23 = vrot.slane %v5491_v10, 5 }
  0x76   :  { %1405 = vmatmul.mubr.bf16.gmra.mxu1 %v3926_v7  ;;  %3883 = vmatprep.mubr.msk.bf16.mxu0 %vm420_vm2, %v3862_v63  ;;  %v4532_v7 = vld [vmem:[%s6871_s1 + $0x120] sm:$0xff]   ;;  %v1519_v63 = vshll.u32 %v5459_v15, 16  ;;  %v5587_v31 = vsel %vm5061_vm6, %v4054_v14, %v2041_v54  ;;  %v1561_v14 = vshll.u32 %v5564_v45, 16 }
  0x77   :  { %3950 = vmatprep.mubr.msk.bf16.mxu1 %vm420_vm2, %v3929_v13  ;;  %1887 = vmatpush1.bf16.msra.mxu0 %v4519_v35  ;;  %v1504_v28 = vrot.slane %v1502_v60, 4  ;;  %v1544_v13 = vshrl.u32 %v5521_v26, 16  ;;  %v1547_v35 = vshll.u32 %v5521_v26, 16  ;;  %v5559_v60 = vld [vmem:[%s6872_s0 + $0x30] sm:$0xee] }
  0x78   :  { %1888 = vmatprep.subr.bf16.mxu0 %v6877_v0  ;;  %2265 = vmatpush1.bf16.msra.mxu1 %v4528_v36  ;;  %v1521_v41 = vrot.slane %v1519_v63, 5 }
  0x79   :  { %2266 = vmatprep.subr.bf16.mxu1 %v6877_v0  ;;  %v1508_v11 = vor.u32 %v1507_v25, %v1504_v28  ;;  %v1546_v55 = vrot.slane %v1544_v13, 4  ;;  %v5643_v13 = vld [vmem:[%s6872_s0 + $0x50] sm:$0xee] }
  0x7a   :  { %v1522_v48 = vor.u32 %v1521_v41, %v1518_v51  ;;  %v4056_v51 = vrot.slane %v5559_v60, 9  ;;  %v5609_v41 = vld [vmem:[%s6872_s0 + $0x60] sm:$0xff]  ;;  %v6910_v60 = vcombine.low %v4941_v20, %v4974_v61 }
  0x7b   :  { %1889 = vmatpush1.bf16.msra.mxu0 %v4523_v44  ;;  %v1527_v44 = vrot.slane %v1525_v62, 5  ;;  %v1575_v54 = vshll.u32 %v5609_v41, 16 }
  0x7c   :  { %1890 = vmatprep.subr.bf16.mxu0 %v6877_v0  ;;  %2267 = vmatpush1.bf16.msra.mxu1 %v4531_v58  ;;  %v4055_v58 = vrot.slane %v4039_v30, 9  ;;  %v5635_v30 = vld [vmem:[%s6872_s0 + $0x68] sm:$0x11] }
  0x7d   :  { %1114 = vmatmul.mubr.bf16.gmra.mxu0 %v3861_v38  ;;  %2268 = vmatprep.subr.bf16.mxu1 %v6877_v0  ;;  %v4537_v38 = vld [vmem:[%s6871_s1 + $0x160] sm:$0xff]  }
  0x7e   :  { %1413 = vmatmul.mubr.bf16.gmra.mxu1 %v3928_v18  ;;  %3884 = vmatprep.mubr.msk.bf16.mxu0 %vm420_vm2, %v3864_v57  ;;  %v4538_v57 = vld [vmem:[%s6871_s1 + $0x1a8] sm:$0xff]   ;;  %v5601_v28 = vsel %vm5061_vm6, %v4055_v58, %v2045_v23 }
  0x7f   :  { %3951 = vmatprep.mubr.msk.bf16.mxu1 %vm420_vm2, %v6905_v9  ;;  %1891 = vmatpush1.bf16.msra.mxu0 %v4527_v53  ;;  %v5547_v18 = vld [vmem:[%s6872_s0 + $0x48] sm:$0x11]  ;;  %v1509_v53 = vrot.slane %v1508_v11, 4  ;;  %v1532_v9 = vrot.slane %v1530_v39, 4  ;;  %v4089_v43 = vcombine.high %v5587_v31, %v5601_v28 }
  0x80   :  { %1892 = vmatprep.subr.bf16.mxu0 %v6877_v0  ;;  %2269 = vmatpush1.bf16.msra.mxu1 %v4533_v6  ;;  %v5549_v6 = vrot.slane %v1522_v48, 4  ;;  %v1553_v3 = vshll.u32 %v5547_v18, 16  ;;  %v2049_v48 = vrot.slane %v5535_v32, 5  ;;  %v2053_v23 = vrot.slane %v5547_v18, 5 }
  0x81   :  { %2270 = vmatprep.subr.bf16.mxu1 %v6877_v0  ;;  %v5597_v10 = vsel %vm4715_vm3, %v1509_v53, %v1513_v33  ;;  %v1572_v33 = vshrl.u32 %v5609_v41, 16  ;;  %v1563_v18 = vrot.slane %v1561_v14, 5 }
  0x82   :  { %v5629_v62 = vsel %vm4715_vm3, %v5549_v6, %v1527_v44  ;;  %v1555_v39 = vrot.slane %v1553_v3, 5  ;;  %v2057_v3 = vrot.slane %v5619_v1, 5  ;;  %v5700_v14 = vsel %vm5061_vm6, %v4056_v51, %v2049_v48  ;;  %v5720_v51 = vld [vmem:[%s6872_s0 + $0xf0] sm:$0xff] }
  0x83   :  { %1893 = vmatpush1.bf16.msra.mxu0 %v4532_v7  ;;  %v1539_v7 = vshll.u32 %v5535_v32, 16  ;;  %v4088_v32 = vcombine.low %v5587_v31, %v5601_v28  ;;  %v4005_v27 = vcombine.low %v5597_v10, %v5629_v62  ;;  %v5874_v31 = vld [vmem:[%s6872_s0 + $0x28] sm:$0x11]  ;;  %v5941_v28 = vld [vmem:[%s6872_s0 + $0xd8] sm:$0x11] }
  0x84   :  { %1908 = vmatprep.subr.bf16.mxu0 %v6877_v0  ;;  %2271 = vmatpush1.bf16.msra.mxu1 %v4536_v29  ;;  %v1535_v29 = vrot.slane %v1533_v46, 5 }
  0x85   :  { %1122 = vmatmul.mubr.bf16.gmra.mxu0 %v6906_v8  ;;  %2286 = vmatprep.subr.bf16.mxu1 %v6877_v0  ;;  %v5603_v25 = vrot.slane %v1539_v7, 5 }
  0x86   :  { %1421 = vmatmul.mubr.bf16.gmra.mxu1 %v6907_v12  ;;  %3885 = vmatprep.mubr.msk.bf16.mxu0 %vm420_vm2, %v3866_v49  ;;  %v5526_v49 = vld [vmem:[%s6872_s0 + $0x120] sm:$0xff]  ;;  %v1536_v8 = vor.u32 %v1535_v29, %v1532_v9  ;;  %v1558_v12 = vshrl.u32 %v5564_v45, 16  ;;  %v1567_v9 = vshll.u32 %v5619_v1, 16  ;;  %v1605_v1 = vrot.slane %v1603_v5, 5  ;;  %v4542_v5 = vld [vmem:[%s6871_s1 + $0x230] sm:$0xff]  }
  0x87   :  { %3952 = vmatprep.mubr.msk.bf16.mxu1 %vm420_vm2, %v6908_v24  ;;  %1909 = vmatpush2.bf16.msra.mxu0 %v4537_v38  ;;  %v3937_v36 = vcombine.high %v5004_v21, %v5526_v49  ;;  %v3936_v34 = vcombine.low %v5004_v21, %v5526_v49  ;;  %v4043_v29 = vld [vmem:[%s6872_s0 + $0x60] sm:$0xee] }
  0x88   :  { %2287 = vmatpush2.bf16.msra.mxu1 %v4538_v57  ;;  %2555 = vmatprep.subr.bf16.mxu0 %v6877_v0  ;;  %v6909_v57 = vcombine.high %v4941_v20, %v4974_v61  ;;  %v5654_v53 = vrot.slane %v1536_v8, 4  ;;  %v1560_v7 = vrot.slane %v1558_v12, 4  ;;  %v1574_v20 = vrot.slane %v1572_v33, 4  ;;  %v4540_v24 = vld [vmem:[%s6871_s1 + $0x1e0] sm:$0xff]  }
  0x89   :  { %3077 = vmatprep.subr.bf16.mxu1 %v6877_v0  ;;  %v1577_v61 = vrot.slane %v1575_v54, 5 }
  0x8a   :  { %v1564_v54 = vor.u32 %v1563_v18, %v1560_v7  ;;  %v1569_v18 = vrot.slane %v1567_v9, 5  ;;  %v5752_v7 = vld [vmem:[%s6872_s0 + $0x110] sm:$0xff]  ;;  %v4045_v9 = vld [vmem:[%s6872_s0 + $0x80] sm:$0xee] }
  0x8b   :  { %v1578_v48 = vor.u32 %v1577_v61, %v1574_v20  ;;  %v5747_v61 = vld [vmem:[%s6872_s0 + $0x100] sm:$0xff] }
  0x8c   :  { %6912 = vst [vmem:[#allocation3_spill] sm:$0xff] %v5747_v61  ;;  %v5768_v50 = vrot.slane %v1564_v54, 4 }
  0x8d   :  { %1130 = vmatmul.mubr.bf16.gmra.mxu0 %v3865_v47  ;;  %v1549_v47 = vrot.slane %v1547_v35, 5  ;;  %v5782_v21 = vrot.slane %v1578_v48, 4 }
  0x8e   :  { %1429 = vmatmul.mubr.bf16.gmra.mxu1 %v3932_v56  ;;  %3886 = vmatprep.mubr.msk.bf16.mxu0 %vm420_vm2, %v3868_v42  ;;  %v4041_v56 = vld [vmem:[%s6872_s0 + $0x40] sm:$0xee]  ;;  %v1600_v42 = vshrl.u32 %v5401_v16, 16  ;;  %v5614_v16 = vld [vmem:[%s6872_s0 + $0x70] sm:$0xff] }
  0x8f   :  { %3953 = vmatprep.mubr.msk.bf16.mxu1 %vm420_vm2, %v6909_v57  ;;  %v1550_v11 = vor.u32 %v1549_v47, %v1546_v55  ;;  %v4057_v46 = vrot.slane %v4041_v56, 9  ;;  %v1586_v35 = vshrl.u32 %v5614_v16, 16  ;;  %v1589_v44 = vshll.u32 %v5614_v16, 16  ;;  %v5677_v55 = vld [vmem:[%s6872_s0 + $0x78] sm:$0x11] }
  0x90   :  { %v4058_v47 = vrot.slane %v5643_v13, 9  ;;  %v5688_v57 = vld [vmem:[%s6872_s0 + $0x88] sm:$0x11]  ;;  %v1602_v12 = vrot.slane %v1600_v42, 4  ;;  %v5709_v42 = vld [vmem:[%s6872_s0 + $0xd0] sm:$0xff]  ;;  %v4059_v13 = vrot.slane %v4043_v29, 9  ;;  %v5736_v29 = vsel %vm4715_vm3, %v5654_v53, %v5603_v25 }
  0x91   :  { %v1588_v56 = vrot.slane %v1586_v35, 4  ;;  %v1591_v8 = vrot.slane %v1589_v44, 5  ;;  %v5704_v33 = vsel %vm5061_vm6, %v4057_v46, %v2053_v23  ;;  %v2061_v35 = vrot.slane %v5635_v30, 5  ;;  %v5715_v44 = vld [vmem:[%s6872_s0 + $0xe0] sm:$0xff] }
  0x92   :  { %6911 = vst [vmem:[#allocation2_spill] sm:$0xff] %v5715_v44  ;;  %v1595_v46 = vshll.u32 %v5677_v55, 16  ;;  %v1609_v20 = vshll.u32 %v5688_v57, 16 }
  0x93   :  { %v1592_v25 = vor.u32 %v1591_v8, %v1588_v56  ;;  %v5776_v56 = vsel %vm5061_vm6, %v4059_v13, %v2061_v35  ;;  %v3971_v8 = vld [vmem:[%s6872_s0 + $0xb0] sm:$0xff] }
  0x94   :  { %v1614_v35 = vshrl.u32 %v3971_v8, 16  ;;  %v1617_v48 = vshll.u32 %v3971_v8, 16 }
  0x95   :  { %1138 = vmatmul.mubr.bf16.gmra.mxu0 %v3867_v52  ;;  %v5672_v52 = vrot.slane %v1550_v11, 4  ;;  %v4006_v11 = vcombine.high %v5597_v10, %v5629_v62  ;;  %v5788_v54 = vrot.slane %v1592_v25, 4  ;;  %v4272_v10 = vld [vmem:[%s6872_s0 + $0x30] sm:$0xee] }
  0x96   :  { %1437 = vmatmul.mubr.bf16.gmra.mxu1 %v6910_v60  ;;  %3887 = vmatprep.mubr.msk.bf16.mxu0 %vm420_vm2, %v3870_v17  ;;  %v1581_v17 = vshll.u32 %v5635_v30, 16  ;;  %v4044_v30 = vld [vmem:[%s6872_s0 + $0x70] sm:$0xee]  ;;  %v4288_v59 = vrot.slane %v4272_v10, 9  ;;  %v4541_v10 = vld [vmem:[%s6871_s1 + $0x1d8] sm:$0xff]  }
  0x97   :  { %3954 = vmatprep.mubr.msk.bf16.mxu1 %vm420_vm2, %v3937_v36  ;;  %v5694_v36 = vld [vmem:[%s6872_s0 + $0xc0] sm:$0xff]  ;;  %v5741_v60 = vsel %vm4715_vm3, %v5672_v52, %v1555_v39  ;;  %v1606_v39 = vor.u32 %v1605_v1, %v1602_v12  ;;  %v4060_v12 = vrot.slane %v4044_v30, 9  ;;  %v4061_v1 = vrot.slane %v4045_v9, 9 }
  0x98   :  { %v1583_v4 = vrot.slane %v1581_v17, 5  ;;  %v2065_v17 = vrot.slane %v5677_v55, 5  ;;  %v4539_v55 = vld [vmem:[%s6871_s1 + $0x1e8] sm:$0xff]   ;;  %v1628_v30 = vshrl.u32 %v5694_v36, 16  ;;  %v4008_v25 = vcombine.high %v5736_v29, %v5741_v60 }
  0x99   :  { %v1607_v13 = vrot.slane %v1606_v39, 4  ;;  %v4007_v39 = vcombine.low %v5736_v29, %v5741_v60  ;;  %v5811_v9 = vsel %vm4715_vm3, %v5768_v50, %v1569_v18  ;;  %v5977_v60 = vld [vmem:[%s6872_s0 + $0xe8] sm:$0x11] }
  0x9a   :  { %v5816_v8 = vsel %vm4715_vm3, %v5782_v21, %v1583_v4  ;;  %v5825_v23 = vsel %vm5061_vm6, %v4060_v12, %v2065_v17  ;;  %v4271_v4 = vld [vmem:[%s6872_s0 + $0x20] sm:$0xee] }
  0x9b   :  { %v4010_v62 = vcombine.high %v5811_v9, %v5816_v8 }
  0x9d   :  { %1146 = vmatmul.mubr.bf16.gmra.mxu0 %v3869_v22  ;;  %v5772_v22 = vsel %vm5061_vm6, %v4058_v47, %v2057_v3  ;;  %v2069_v47 = vrot.slane %v5688_v57, 5  ;;  %v4091_v57 = vcombine.high %v5700_v14, %v5704_v33 }
  0x9e   :  { %1445 = vmatmul.mubr.bf16.gmra.mxu1 %v3936_v34  ;;  %4030 = vmatprep.mubr.msk.bf16.mxu0 %vm420_vm2, %v4006_v11  ;;  %v1597_v34 = vrot.slane %v1595_v46, 5  ;;  %v1611_v11 = vrot.slane %v1609_v20, 5  ;;  %v1631_v20 = vshll.u32 %v5694_v36, 16 }
  0x9f   :  { %4113 = vmatprep.mubr.msk.bf16.mxu1 %vm420_vm2, %v4089_v43  ;;  %v5793_v43 = vld [vmem:[%s6872_s0 + $0xb8] sm:$0x11]  ;;  %v5829_v18 = vsel %vm5061_vm6, %v4061_v1, %v2069_v47  ;;  %v5850_v1 = vrot.slane %v1614_v35, 4  ;;  %v1619_v47 = vrot.slane %v1617_v48, 5  ;;  %v4287_v48 = vrot.slane %v4271_v4, 9 }
  0xa0   :  { %v1623_v58 = vshll.u32 %v5793_v43, 16  ;;  %v5844_v12 = vsel %vm4715_vm3, %v5788_v54, %v1597_v34  ;;  %v5848_v17 = vsel %vm4715_vm3, %v1607_v13, %v1611_v11  ;;  %v5865_v34 = vld [vmem:[%s6872_s0 + $0xc8] sm:$0x11]  ;;  %v5867_v11 = vrot.slane %v1628_v30, 4  ;;  %v5885_v35 = vld [vmem:[%s6872_s0 + $0x38] sm:$0x11] }
  0xa1   :  { %v5869_v13 = vrot.slane %v1631_v20, 5  ;;  %v4273_v30 = vld [vmem:[%s6872_s0 + $0x40] sm:$0xee]  ;;  %v5902_v4 = vld [vmem:[%s6872_s0 + $0xb0] sm:$0xee]  ;;  %v3244_v38 = vrot.slane %v5885_v35, 5 }
  0xa2   :  { %v5907_v2 = vrot.slane %v1623_v58, 5  ;;  %v1637_v63 = vshll.u32 %v5865_v34, 16  ;;  %v5923_v58 = vld [vmem:[%s6872_s0 + $0xc0] sm:$0xee] }
  0xa5   :  { %1911 = vmatmul.mubr.bf16.vlgmr.msra.gmra.mxu0 %v4005_v27  ;;  %v4546_v27 = vld [vmem:[%s6871_s1 + $0x220] sm:$0xff]  }
  0xa6   :  { %2289 = vmatmul.mubr.bf16.vlgmr.msra.gmra.mxu1 %v4088_v32  ;;  %2556 = vmatpush1.bf16.msra.mxu0 %v4539_v55  ;;  %v3240_v55 = vrot.slane %v5874_v31, 5  ;;  %v4274_v32 = vld [vmem:[%s6872_s0 + $0x50] sm:$0xee] }
  0xa7   :  { %4031 = vmatprep.mubr.msk.bf16.mxu0 %vm420_vm2, %v4008_v25  ;;  %4114 = vmatprep.mubr.msk.bf16.mxu1 %vm420_vm2, %v4091_v57  ;;  %v4544_v25 = vld [vmem:[%s6871_s1 + $0x228] sm:$0xff]   ;;  %v5957_v57 = vld [vmem:[%s6872_s0 + $0x58] sm:$0x11]  ;;  %v4290_v46 = vrot.slane %v4274_v32, 9  ;;  %v6915_v32 = vcombine.low %v5700_v14, %v5704_v33  ;;  %v6917_v14 = vcombine.high %v5772_v22, %v5776_v56 }
  0xa8   :  { %2557 = vmatprep.subr.bf16.mxu0 %v6877_v0  ;;  %3078 = vmatpush1.bf16.msra.mxu1 %v4542_v5  ;;  %v1620_v5 = vor.u32 %v1619_v47, %v5850_v1  ;;  %v5912_v20 = vsel %vm5061_vm6, %v4287_v48, %v3240_v55  ;;  %v1642_v1 = vshrl.u32 %v5709_v42, 16  ;;  %v1645_v47 = vshll.u32 %v5709_v42, 16 }
  0xa9   :  { %3079 = vmatprep.subr.bf16.mxu1 %v6877_v0  ;;  %6913 = vst [vmem:[#allocation4_spill] sm:$0xff] %v5912_v20  ;;  %v5929_v48 = vsel %vm5061_vm6, %v4288_v59, %v3244_v38  ;;  %v4289_v55 = vrot.slane %v4273_v30, 9  ;;  %v5946_v38 = vld [vmem:[%s6872_s0 + $0x48] sm:$0x11]  ;;  %v1656_v30 = vshrl.u32 %v5715_v44, 16  ;;  %v1639_v59 = vrot.slane %v1637_v63, 5 }
  0xaa   :  { %2558 = vmatpush1.bf16.msra.mxu0 %v4540_v24  ;;  %6914 = vst [vmem:[#allocation5_spill] sm:$0xff] %v5929_v48  ;;  %v1634_v24 = vor.u32 %v5869_v13, %v5867_v11  ;;  %v3248_v3 = vrot.slane %v5946_v38, 5  ;;  %v1659_v13 = vshll.u32 %v5715_v44, 16  ;;  %v3252_v48 = vrot.slane %v5957_v57, 5  ;;  %v4548_v11 = vld [vmem:[%s6871_s1 + $0x218] sm:$0xff]  }
  0xab   :  { %2559 = vmatprep.subr.bf16.mxu0 %v6877_v0  ;;  %v1621_v29 = vrot.slane %v1620_v5, 4  ;;  %v1644_v63 = vrot.slane %v1642_v1, 4  ;;  %v1651_v5 = vshll.u32 %v5941_v28, 16 }
  0xac   :  { %3080 = vmatpush1.bf16.msra.mxu1 %v4544_v25  ;;  %v4543_v25 = vld [vmem:[%s6871_s1 + $0x1d0] sm:$0xff]   ;;  %v5997_v1 = vsel %vm5061_vm6, %v4290_v46, %v3252_v48  ;;  %v6014_v46 = vld [vmem:[%s6872_s0 + $0x78] sm:$0x11] }
  0xad   :  { %1919 = vmatmul.mubr.bf16.gmra.mxu0 %v4007_v39  ;;  %3081 = vmatprep.subr.bf16.mxu1 %v6877_v0  ;;  %v1647_v39 = vrot.slane %v1645_v47, 5  ;;  %v5984_v0 = vsel %vm5061_vm6, %v4289_v55, %v3248_v3  ;;  %6918 = vst [vmem:[#allocation7_spill] sm:$0xff] %v5997_v1  ;;  %v4275_v3 = vld [vmem:[%s6872_s0 + $0x60] sm:$0xee]  ;;  %v4276_v47 = vld [vmem:[%s6872_s0 + $0x70] sm:$0xee]  ;;  %v6031_v48 = vsel %vm4715_vm3, %v1621_v29, %v5907_v2 }
  0xae   :  { %2297 = vmatmul.mubr.bf16.gmra.mxu1 %v6915_v32  ;;  %4032 = vmatprep.mubr.msk.bf16.mxu0 %vm420_vm2, %v4010_v62  ;;  %6916 = vst [vmem:[#allocation6_spill] sm:$0xff] %v5984_v0  ;;  %v5992_v62 = vrot.slane %v1634_v24, 4  ;;  %v1658_v55 = vrot.slane %v1656_v30, 4  ;;  %v6009_v24 = vld [vmem:[%s6872_s0 + $0x68] sm:$0x11]  ;;  %v4292_v20 = vrot.slane %v4276_v47, 9 }
  0xaf   :  { %4115 = vmatprep.mubr.msk.bf16.mxu1 %vm420_vm2, %v6917_v14  ;;  %2560 = vmatpush1.bf16.msra.mxu0 %v4541_v10  ;;  %v6919_v10 = vmov 0   ;;  %v4291_v14 = vrot.slane %v4275_v3, 9  ;;  %v6024_v30 = vld [vmem:[%s6872_s0 + $0xd0] sm:$0xee]  ;;  %v3256_v33 = vrot.slane %v6009_v24, 5  ;;  %v3260_v44 = vrot.slane %v6014_v46, 5 }
  0xb0   :  { %2561 = vmatprep.subr.bf16.mxu0 %v6919_v10  ;;  %3082 = vmatpush1.bf16.msra.mxu1 %v4546_v27  ;;  %v1661_v27 = vrot.slane %v1659_v13, 5  ;;  %v2077_v3 = vrot.slane %v5865_v34, 5  ;;  %v1648_v32 = vor.u32 %v1647_v39, %v1644_v63  ;;  %v1665_v13 = vshll.u32 %v5977_v60, 16  ;;  %v6038_v1 = vld [vmem:[%s6872_s0 + $0xe0] sm:$0xee]  ;;  %v4545_v47 = vld [vmem:[%s6871_s1 + $0x1c8] sm:$0xff]  }
  0xb1   :  { %3083 = vmatprep.subr.bf16.mxu1 %v6919_v10  ;;  %v6046_v2 = vsel %vm4715_vm3, %v5992_v62, %v1639_v59  ;;  %v1653_v29 = vrot.slane %v1651_v5, 5  ;;  %v6050_v34 = vsel %vm5061_vm6, %v4291_v14, %v3256_v33  ;;  %v6054_v63 = vsel %vm5061_vm6, %v4292_v20, %v3260_v44  ;;  %v4550_v59 = vld [vmem:[%s6871_s1 + $0x210] sm:$0xff]   ;;  %v4547_v20 = vld [vmem:[%s6871_s1 + $0x1c0] sm:$0xff]  }
  0xb2   :  { %6920 = vst [vmem:[#allocation8_spill] sm:$0xff] %v6050_v34  ;;  %6921 = vst [vmem:[#allocation9_spill] sm:$0xff] %v6054_v63  ;;  %v2081_v39 = vrot.slane %v5941_v28, 5  ;;  %v6922_v44 = vcombine.low %v5811_v9, %v5816_v8  ;;  %v1662_v28 = vor.u32 %v1661_v27, %v1658_v55  ;;  %v1670_v14 = vshrl.u32 %v5720_v51, 16  ;;  %v6135_v34 = vld [vmem:[%s6872_s0 + $0xf8] sm:$0x11] }
  0xb3   :  { %2562 = vmatpush1.bf16.msra.mxu0 %v4543_v25  ;;  %v4064_v25 = vrot.slane %v6024_v30, 9  ;;  %v1673_v30 = vshll.u32 %v5720_v51, 16  ;;  %v6923_v33 = vcombine.low %v5772_v22, %v5776_v56  ;;  %v6924_v9 = vcombine.high %v5844_v12, %v5848_v17 }
  0xb4   :  { %2563 = vmatprep.subr.bf16.mxu0 %v6919_v10  ;;  %3084 = vmatpush1.bf16.msra.mxu1 %v4548_v11  ;;  %v4065_v11 = vrot.slane %v6038_v1, 9  ;;  %v6083_v8 = vrot.slane %v1648_v32, 4  ;;  %v1667_v55 = vrot.slane %v1665_v13, 5  ;;  %v1684_v1 = vshrl.u32 %v5747_v61, 16 }
  0xb5   :  { %1927 = vmatmul.mubr.bf16.gmra.mxu0 %v6922_v44  ;;  %3085 = vmatprep.subr.bf16.mxu1 %v6919_v10  ;;  %v1687_v27 = vshll.u32 %v5747_v61, 16  ;;  %v6090_v44 = vld [vmem:[%s6872_s0 + $0x88] sm:$0x11]  ;;  %v6925_v22 = vcombine.high %v5825_v23, %v5829_v18  ;;  %v4014_v56 = vcombine.high %v6031_v48, %v6046_v2  ;;  %v6926_v32 = vrot.slane %v5793_v43, 5  ;;  %v4277_v43 = vld [vmem:[%s6872_s0 + $0x80] sm:$0xee] }
  0xb6   :  { %2305 = vmatmul.mubr.bf16.gmra.mxu1 %v6923_v33  ;;  %4033 = vmatprep.mubr.msk.bf16.mxu0 %vm420_vm2, %v6924_v9  ;;  %v6927_v13 = vrot.slane %v5902_v4, 9  ;;  %v6928_v9 = vrot.slane %v5923_v58, 9  ;;  %v4278_v4 = vld [vmem:[%s6872_s0 + $0x90] sm:$0xee]  ;;  %v4551_v58 = vld [vmem:[%s6871_s1 + $0x208] sm:$0xff]   ;;  %v2085_v63 = vrot.slane %v5977_v60, 5 }
  0xb7   :  { %4116 = vmatprep.mubr.msk.bf16.mxu1 %vm420_vm2, %v6925_v22  ;;  %2564 = vmatpush1.bf16.msra.mxu0 %v4545_v47  ;;  %v6115_v47 = vld [vmem:[%s6872_s0 + $0x98] sm:$0x11]  ;;  %v3264_v22 = vrot.slane %v6090_v44, 5  ;;  %v1675_v0 = vrot.slane %v1673_v30, 5  ;;  %v1689_v61 = vrot.slane %v1687_v27, 5  ;;  %v1679_v27 = vshll.u32 %v6135_v34, 16 }
  0xb8   :  { %v6104_v33 = vsel %vm5061_vm6, %v6927_v13, %v6926_v32  ;;  %v6110_v5 = vsel %vm5061_vm6, %v6928_v9, %v2077_v3  ;;  %2565 = vmatprep.subr.bf16.mxu0 %v6919_v10  ;;  %3086 = vmatpush1.bf16.msra.mxu1 %v4550_v59  ;;  %v4293_v3 = vrot.slane %v4277_v43, 9  ;;  %v4294_v32 = vrot.slane %v4278_v4, 9  ;;  %v6141_v43 = vld [vmem:[%s6872_s0 + $0x108] sm:$0x11]  ;;  %v4549_v30 = vld [vmem:[%s6871_s1 + $0x1b8] sm:$0xff]  }
  0xb9   :  { %v3268_v13 = vrot.slane %v6115_v47, 5  ;;  %v6129_v9 = vrot.slane %v1662_v28, 4  ;;  %v1672_v59 = vrot.slane %v1670_v14, 4  ;;  %3087 = vmatprep.subr.bf16.mxu1 %v6919_v10  ;;  %v1686_v4 = vrot.slane %v1684_v1, 4 }
  0xba   :  { %v6145_v28 = vsel %vm5061_vm6, %v4293_v3, %v3264_v22  ;;  %v4097_v14 = vcombine.high %v6104_v33, %v6110_v5  ;;  %v4553_v3 = vld [vmem:[%s6871_s1 + $0x200] sm:$0xff]   ;;  %v1693_v1 = vshll.u32 %v6141_v43, 16 }
  0xbb   :  { %v6149_v60 = vsel %vm5061_vm6, %v4294_v32, %v3268_v13  ;;  %2566 = vmatpush1.bf16.msra.mxu0 %v4547_v20  ;;  %v6929_v20 = vcombine.low %v5844_v12, %v5848_v17  ;;  %v6171_v32 = vsel %vm4715_vm3, %v6083_v8, %v1653_v29  ;;  %v6175_v13 = vsel %vm5061_vm6, %v4064_v25, %v2081_v39  ;;  %v4051_v39 = vld [vmem:[%s6872_s0 + $0x100] sm:$0xee] }
  0xbc   :  { %2567 = vmatprep.subr.bf16.mxu0 %v6919_v10  ;;  %3088 = vmatpush1.bf16.msra.mxu1 %v4551_v58  ;;  %v6179_v58 = vsel %vm5061_vm6, %v4065_v11, %v2085_v63  ;;  %v6930_v12 = vcombine.low %v5825_v23, %v5829_v18  ;;  %v6190_v17 = vsel %vm4715_vm3, %v6129_v9, %v1667_v55  ;;  %v4050_v63 = vld [vmem:[%s6872_s0 + $0xf0] sm:$0xee]  ;;  %v1698_v18 = vshrl.u32 %v5752_v7, 16 }
  0xbd   :  { %1935 = vmatmul.mubr.bf16.gmra.mxu0 %v6929_v20  ;;  %3089 = vmatprep.subr.bf16.mxu1 %v6919_v10  ;;  %v1676_v29 = vor.u32 %v1675_v0, %v1672_v59  ;;  %v1690_v25 = vor.u32 %v1689_v61, %v1686_v4  ;;  %v4552_v23 = vld [vmem:[%s6871_s1 + $0x1b0] sm:$0xff]   ;;  %v1701_v0 = vshll.u32 %v5752_v7, 16  ;;  %v1712_v61 = vshrl.u32 %v5526_v49, 16 }
  0xbe   :  { %2313 = vmatmul.mubr.bf16.gmra.mxu1 %v6930_v12  ;;  %4034 = vmatprep.mubr.msk.bf16.mxu0 %vm420_vm2, %v4014_v56  ;;  %v1715_v11 = vshll.u32 %v5526_v49, 16  ;;  %v4013_v55 = vcombine.low %v6031_v48, %v6046_v2  ;;  %v4096_v56 = vcombine.low %v6104_v33, %v6110_v5  ;;  %v4099_v59 = vcombine.high %v6175_v13, %v6179_v58 }
  0xbf   :  { %4117 = vmatprep.mubr.msk.bf16.mxu1 %vm420_vm2, %v4097_v14  ;;  %2568 = vmatpush1.bf16.msra.mxu0 %v4549_v30  ;;  %v1681_v4 = vrot.slane %v1679_v27, 5  ;;  %v4554_v14 = vld [vmem:[%s6871_s1 + $0x1f8] sm:$0xff]   ;;  %v4016_v49 = vcombine.high %v6171_v32, %v6190_v17  ;;  %v1695_v30 = vrot.slane %v1693_v1, 5  ;;  %v4066_v20 = vrot.slane %v4050_v63, 9 }
  0xc0   :  { %2569 = vmatprep.subr.bf16.mxu0 %v6919_v10  ;;  %3090 = vmatpush1.bf16.msra.mxu1 %v4553_v3  ;;  %v2089_v48 = vrot.slane %v6135_v34, 5  ;;  %v6220_v2 = vrot.slane %v1676_v29, 4  ;;  %v6222_v5 = vrot.slane %v1690_v25, 4  ;;  %v4067_v33 = vrot.slane %v4051_v39, 9  ;;  %v3984_v3 = vld [vmem:[%s6872_s0 + $0x118] sm:$0x11] }
  0xc1   :  { %3091 = vmatprep.subr.bf16.mxu1 %v6919_v10  ;;  %v2093_v27 = vrot.slane %v6141_v43, 5  ;;  %v1700_v12 = vrot.slane %v1698_v18, 4  ;;  %v1703_v22 = vrot.slane %v1701_v0, 5  ;;  %v1714_v1 = vrot.slane %v1712_v61, 4  ;;  %v4555_v34 = vld [vmem:[%s6871_s1 + $0x1f0] sm:$0xff]   ;;  %v4556_v43 = vld [vmem:[%s6871_s1 + $0x238] sm:$0xff]  }
  0xc2   :  { %v1717_v63 = vrot.slane %v1715_v11, 5  ;;  %v3986_v29 = vld [vmem:[%s6872_s0 + $0x128] sm:$0x11]  ;;  %v1682_v25 = vsel %vm4715_vm3, %v6220_v2, %v1681_v4  ;;  %v2090_v39 = vsel %vm5061_vm6, %v4066_v20, %v2089_v48  ;;  %v1707_v18 = vshll.u32 %v3984_v3, 16  ;;  %v4052_v4 = vld [vmem:[%s6872_s0 + $0x110] sm:$0xee] }
  0xc3   :  { %2570 = vmatpush1.bf16.msra.mxu0 %v4552_v23  ;;  %v2094_v23 = vsel %vm5061_vm6, %v4067_v33, %v2093_v27  ;;  %v1696_v0 = vsel %vm4715_vm3, %v6222_v5, %v1695_v30  ;;  %v1704_v61 = vor.u32 %v1703_v22, %v1700_v12  ;;  %v4098_v22 = vcombine.low %v6175_v13, %v6179_v58 }
  0xc4   :  { %2585 = vmatprep.subr.bf16.mxu0 %v6919_v10  ;;  %3092 = vmatpush1.bf16.msra.mxu1 %v4554_v14  ;;  %v1718_v11 = vor.u32 %v1717_v63, %v1714_v1  ;;  %v4018_v14 = vcombine.high %v1682_v25, %v1696_v0  ;;  %v1709_v20 = vrot.slane %v1707_v18, 5  ;;  %v2097_v33 = vrot.slane %v3984_v3, 5 }
  0xc5   :  { %1943 = vmatmul.mubr.bf16.gmra.mxu0 %v4013_v55  ;;  %3107 = vmatprep.subr.bf16.mxu1 %v6919_v10  ;;  %v1721_v55 = vshll.u32 %v3986_v29, 16  ;;  %v6263_v30 = vrot.slane %v1704_v61, 4  ;;  %v2101_v12 = vrot.slane %v3986_v29, 5  ;;  %v2710_v63 = vshll.u32 %v5874_v31, 16 }
  0xc6   :  { %2321 = vmatmul.mubr.bf16.gmra.mxu1 %v4096_v56  ;;  %4035 = vmatprep.mubr.msk.bf16.mxu0 %vm420_vm2, %v4016_v49  ;;  %v4015_v56 = vcombine.low %v6171_v32, %v6190_v17  ;;  %v4101_v49 = vcombine.high %v2090_v39, %v2094_v23  ;;  %v1719_v48 = vrot.slane %v1718_v11, 4  ;;  %v4068_v17 = vrot.slane %v4052_v4, 9 }
  0xc7   :  { %4118 = vmatprep.mubr.msk.bf16.mxu1 %vm420_vm2, %v4099_v59  ;;  %2586 = vmatpush2.bf16.msra.mxu0 %v4555_v34  ;;  %v4053_v59 = vld [vmem:[%s6872_s0 + $0x120] sm:$0xee]  ;;  %v1723_v32 = vrot.slane %v1721_v55, 5  ;;  %v1710_v13 = vsel %vm4715_vm3, %v6263_v30, %v1709_v20  ;;  %v2724_v34 = vshll.u32 %v5885_v35, 16  ;;  %v4017_v29 = vcombine.low %v1682_v25, %v1696_v0 }
  0xc8   :  { %3108 = vmatpush2.bf16.msra.mxu1 %v4556_v43  ;;  %3455 = vmatprep.subr.bf16.mxu0 %v6919_v10  ;;  %v4069_v27 = vrot.slane %v4053_v59, 9  ;;  %v2098_v1 = vsel %vm5061_vm6, %v4068_v17, %v2097_v33  ;;  %v4100_v43 = vcombine.low %v2090_v39, %v2094_v23  ;;  %v2712_v11 = vrot.slane %v2710_v63, 5 }
  0xc9   :  { %4433 = vmatprep.subr.bf16.mxu1 %v6919_v10  ;;  %v1724_v58 = vsel %vm4715_vm3, %v1719_v48, %v1723_v32  ;;  %v2726_v55 = vrot.slane %v2724_v34, 5  ;;  %v2752_v4 = vshll.u32 %v5957_v57, 16  ;;  %v6296_v57 = vld [vmem:[%s6872_s0 + $0x90] sm:$0xff]  ;;  %v6957_v19 = vcombine.high %v6145_v28, %v6149_v60 }
  0xca   :  { %v2102_v3 = vsel %vm5061_vm6, %v4069_v27, %v2101_v12  ;;  %v4020_v18 = vcombine.high %v1710_v13, %v1724_v58  ;;  %v2713_v31 = vsel %vm4715_vm3, %v5549_v6, %v2712_v11  ;;  %v4019_v25 = vcombine.low %v1710_v13, %v1724_v58  ;;  %v4562_v34 = vld [vmem:[%s6871_s1 + $0x270] sm:$0xff]  }
  0xcb   :  { %v4103_v61 = vcombine.high %v2098_v1, %v2102_v3  ;;  %v2727_v35 = vsel %vm4715_vm3, %v5654_v53, %v2726_v55  ;;  %v4102_v39 = vcombine.low %v2098_v1, %v2102_v3  ;;  %v2754_v59 = vrot.slane %v2752_v4, 5 }
  0xcc   :  { %v4239_v23 = vcombine.high %v2713_v31, %v2727_v35  ;;  %v6931_v6 = vcombine.high %v5459_v15, %v5511_v37  ;;  %v2799_v32 = vshrl.u32 %v6296_v57, 16  ;;  %v2802_v17 = vshll.u32 %v6296_v57, 16 }
  0xcd   :  { %1951 = vmatmul.mubr.bf16.gmra.mxu0 %v4015_v56  ;;  %v2738_v56 = vshll.u32 %v5946_v38, 16  ;;  %v6291_v38 = vld [vmem:[%s6872_s0 + $0x80] sm:$0xff]  ;;  %v4238_v33 = vcombine.low %v2713_v31, %v2727_v35  ;;  %v6932_v3 = vcombine.low %v5459_v15, %v5511_v37  ;;  %v2794_v37 = vshll.u32 %v6090_v44, 16 }
  0xce   :  { %2329 = vmatmul.mubr.bf16.gmra.mxu1 %v4098_v22  ;;  %4036 = vmatprep.mubr.msk.bf16.mxu0 %vm420_vm2, %v4018_v14  ;;  %v2755_v22 = vsel %vm4715_vm3, %v5768_v50, %v2754_v59  ;;  %v2766_v14 = vshll.u32 %v6009_v24, 16  ;;  %v2785_v20 = vshrl.u32 %v6291_v38, 16  ;;  %v2788_v48 = vshll.u32 %v6291_v38, 16 }
  0xcf   :  { %4119 = vmatprep.mubr.msk.bf16.mxu1 %vm420_vm2, %v4101_v49  ;;  %v2740_v0 = vrot.slane %v2738_v56, 5  ;;  %v2780_v49 = vshll.u32 %v6014_v46, 16  ;;  %v2801_v58 = vrot.slane %v2799_v32, 4  ;;  %v2804_v46 = vrot.slane %v2802_v17, 5  ;;  %v4567_v32 = vld [vmem:[%s6871_s1 + $0x260] sm:$0xff]  }
  0xd0   :  { %v2768_v12 = vrot.slane %v2766_v14, 5  ;;  %v2787_v13 = vrot.slane %v2785_v20, 4  ;;  %v2790_v24 = vrot.slane %v2788_v48, 5  ;;  %v2808_v4 = vshll.u32 %v6115_v47, 16 }
  0xd1   :  { %v2741_v53 = vsel %vm4715_vm3, %v5672_v52, %v2740_v0  ;;  %v4559_v52 = vld [vmem:[%s6871_s1 + $0x278] sm:$0xff]   ;;  %v2782_v50 = vrot.slane %v2780_v49, 5  ;;  %v2805_v56 = vor.u32 %v2804_v46, %v2801_v58  ;;  %v2796_v47 = vrot.slane %v2794_v37, 5 }
  0xd2   :  { %v4241_v27 = vcombine.high %v2741_v53, %v2755_v22  ;;  %v6334_v15 = vsel %vm4715_vm3, %v5782_v21, %v2768_v12  ;;  %v2791_v55 = vor.u32 %v2790_v24, %v2787_v13  ;;  %v4240_v21 = vcombine.low %v2741_v53, %v2755_v22  ;;  %v6356_v22 = vld [vmem:[%s6872_s0 + $0xc8] sm:$0x11]  ;;  %v6361_v49 = vld [vmem:[%s6872_s0 + $0xd8] sm:$0x11] }
  0xd3   :  { %v2783_v11 = vsel %vm4715_vm3, %v5788_v54, %v2782_v50  ;;  %v4565_v54 = vld [vmem:[%s6871_s1 + $0x268] sm:$0xff]   ;;  %v2806_v59 = vrot.slane %v2805_v56, 4  ;;  %v6934_v53 = vcombine.low %v5521_v26, %v5564_v45  ;;  %v6935_v48 = vcombine.high %v5609_v41, %v5614_v16  ;;  %v6402_v37 = vld [vmem:[%s6872_s0 + $0xf8] sm:$0x11] }
  0xd4   :  { %v2792_v0 = vrot.slane %v2791_v55, 4  ;;  %v2836_v12 = vshll.u32 %v6361_v49, 16  ;;  %v4242_v24 = vcombine.low %v6334_v15, %v2783_v11  ;;  %v4162_v58 = vcombine.high %v6291_v38, %v6296_v57 }
  0xd5   :  { %1959 = vmatmul.mubr.bf16.gmra.mxu0 %v4017_v29 }
  0xd6   :  { %2337 = vmatmul.mubr.bf16.gmra.mxu1 %v4100_v43  ;;  %4037 = vmatprep.mubr.msk.bf16.mxu0 %vm420_vm2, %v4020_v18  ;;  %v6933_v18 = vcombine.high %v5521_v26, %v5564_v45 }
  0xd7   :  { %4120 = vmatprep.mubr.msk.bf16.mxu1 %vm420_vm2, %v4103_v61 }
  0xdd   :  { %1967 = vmatmul.mubr.bf16.gmra.mxu0 %v4019_v25 }
  0xde   :  { %2345 = vmatmul.mubr.bf16.gmra.mxu1 %v4102_v39  ;;  %4180 = vmatprep.mubr.msk.bf16.mxu0 %vm420_vm2, %v6931_v6  ;;  %v4243_v39 = vcombine.high %v6334_v15, %v2783_v11  ;;  %v2810_v6 = vrot.slane %v2808_v4, 5  ;;  %v6397_v15 = vld [vmem:[%s6872_s0 + $0xe8] sm:$0x11]  ;;  %v6936_v11 = vcombine.low %v5609_v41, %v5614_v16  ;;  %v2864_v41 = vshll.u32 %v6402_v37, 16 }
  0xdf   :  { %4263 = vmatprep.mubr.msk.bf16.mxu1 %vm420_vm2, %v4239_v23 }
  0xe5   :  { %v479_v1 = vpop.f32.mrf.mxu0  ;;  %2588 = vmatmul.mubr.bf16.vlgmr.msra.gmra.mxu0 %v6932_v3  ;;  %v726_v63 = vpop.f32.mrf.mxu1 }
  0xe6   :  { %3110 = vmatmul.mubr.bf16.vlgmr.msra.gmra.mxu1 %v4238_v33  ;;  %3456 = vmatpush1.bf16.msra.mxu0 %v4559_v52  ;;  %v6324_v29 = vadd.f32 %v726_v63, %v479_v1  ;;  %v6377_v33 = vsel %vm4715_vm3, %v2792_v0, %v2796_v47  ;;  %v4569_v63 = vld [vmem:[%s6871_s1 + $0x258] sm:$0xff]  }
  0xe7   :  { %v481_v43 = vpop.f32.mrf.mxu0  ;;  %4181 = vmatprep.mubr.msk.bf16.mxu0 %vm420_vm2, %v6933_v18  ;;  %4264 = vmatprep.mubr.msk.bf16.mxu1 %vm420_vm2, %v4241_v27  ;;  %v728_v61 = vpop.f32.mrf.mxu1  ;;  %v2822_v27 = vshll.u32 %v6356_v22, 16  ;;  %v2838_v18 = vrot.slane %v2836_v12, 5 }
  0xe8   :  { %3457 = vmatprep.subr.bf16.mxu0 %v6919_v10  ;;  %4442 = vmatpush1.bf16.msra.mxu1 %v4559_v52  ;;  %v2811_v52 = vsel %vm4715_vm3, %v2806_v59, %v2810_v6  ;;  %v2866_v6 = vrot.slane %v2864_v41, 5  ;;  %v6501_v41 = vld [vmem:[%s6872_s0 + $0x128] sm:$0x11] }
  0xe9   :  { %v482_v31 = vpop.f32.mrf.mxu0  ;;  %4434 = vmatprep.subr.bf16.mxu1 %v6919_v10  ;;  %v729_v35 = vpop.f32.mrf.mxu1  ;;  %v4245_v3 = vcombine.high %v6377_v33, %v2811_v52  ;;  %v2824_v43 = vrot.slane %v2822_v27, 5  ;;  %v4244_v0 = vcombine.low %v6377_v33, %v2811_v52 }
  0xea   :  { %3458 = vmatpush1.bf16.msra.mxu0 %v4562_v34  ;;  %v6343_v25 = vadd.f32 %v729_v35, %v482_v31  ;;  %v4572_v31 = vld [vmem:[%s6871_s1 + $0x250] sm:$0xff]   ;;  %v2850_v35 = vshll.u32 %v6397_v15, 16 }
  0xeb   :  { %v484_v44 = vpop.f32.mrf.mxu0  ;;  %3459 = vmatprep.subr.bf16.mxu0 %v6919_v10  ;;  %v731_v23 = vpop.f32.mrf.mxu1 }
  0xec   :  { %4443 = vmatpush1.bf16.msra.mxu1 %v4562_v34  ;;  %v6425_v44 = vsel %vm4715_vm3, %v6083_v8, %v2838_v18  ;;  %v2852_v8 = vrot.slane %v2850_v35, 5 }
  0xed   :  { %v487_v14 = vpop.f32.mrf.mxu0  ;;  %2596 = vmatmul.mubr.bf16.gmra.mxu0 %v6934_v53  ;;  %4435 = vmatprep.subr.bf16.mxu1 %v6919_v10  ;;  %v6448_v53 = vld [vmem:[%s6872_s0 + $0x118] sm:$0x11] }
  0xee   :  { %v734_v20 = vpop.f32.mrf.mxu1  ;;  %3118 = vmatmul.mubr.bf16.gmra.mxu1 %v4240_v21  ;;  %4182 = vmatprep.mubr.msk.bf16.mxu0 %vm420_vm2, %v6935_v48  ;;  %v6420_v21 = vsel %vm4715_vm3, %v5992_v62, %v2824_v43  ;;  %v6454_v48 = vld [vmem:[%s6872_s0 + $0x120] sm:$0xff]  ;;  %v6472_v12 = vsel %vm4715_vm3, %v6129_v9, %v2852_v8 }
  0xef   :  { %v6368_v26 = vadd.f32 %v734_v20, %v487_v14  ;;  %v489_v45 = vpop.f32.mrf.mxu0  ;;  %4265 = vmatprep.mubr.msk.bf16.mxu1 %vm420_vm2, %v4243_v39  ;;  %3460 = vmatpush1.bf16.msra.mxu0 %v4565_v54  ;;  %v4247_v59 = vcombine.high %v6420_v21, %v6425_v44  ;;  %v4575_v14 = vld [vmem:[%s6871_s1 + $0x248] sm:$0xff]   ;;  %v2900_v9 = vshll.u32 %v6454_v48, 16  ;;  %v4246_v43 = vcombine.low %v6420_v21, %v6425_v44 }
  0xf0   :  { %v736_v17 = vpop.f32.mrf.mxu1  ;;  %3461 = vmatprep.subr.bf16.mxu0 %v6919_v10  ;;  %4444 = vmatpush1.bf16.msra.mxu1 %v4565_v54  ;;  %v4161_v54 = vcombine.low %v6291_v38, %v6296_v57  ;;  %v6442_v38 = vld [vmem:[%s6872_s0 + $0x108] sm:$0x11]  ;;  %v6459_v45 = vld [vmem:[%s6872_s0 + $0x130] sm:$0xff] }
  0xf1   :  { %v490_v50 = vpop.f32.mrf.mxu0  ;;  %4436 = vmatprep.subr.bf16.mxu1 %v6919_v10  ;;  %v6937_v17 = vcombine.high %v5694_v36, %v5709_v42  ;;  %v2878_v33 = vshll.u32 %v6442_v38, 16  ;;  %v2902_v21 = vrot.slane %v2900_v9, 5 }
  0xf2   :  { %v737_v13 = vpop.f32.mrf.mxu1 }
  0xf3   :  { %v6387_v46 = vadd.f32 %v737_v13, %v490_v50  ;;  %v492_v1 = vpop.f32.mrf.mxu0  ;;  %3462 = vmatpush1.bf16.msra.mxu0 %v4567_v32  ;;  %v6477_v50 = vsel %vm4715_vm3, %v6220_v2, %v2866_v6  ;;  %v2892_v13 = vshll.u32 %v6448_v53, 16  ;;  %v2914_v2 = vshll.u32 %v6459_v45, 16 }
  0xf4   :  { %v739_v34 = vpop.f32.mrf.mxu1  ;;  %3463 = vmatprep.subr.bf16.mxu0 %v6919_v10  ;;  %4445 = vmatpush1.bf16.msra.mxu1 %v4567_v32  ;;  %v2897_v1 = vshrl.u32 %v6454_v48, 16 }
  0xf5   :  { %v495_v61 = vpop.f32.mrf.mxu0  ;;  %2604 = vmatmul.mubr.bf16.gmra.mxu0 %v6936_v11  ;;  %4437 = vmatprep.subr.bf16.mxu1 %v6919_v10  ;;  %v4249_v11 = vcombine.high %v6472_v12, %v6477_v50 }
  0xf6   :  { %v742_v55 = vpop.f32.mrf.mxu1  ;;  %3126 = vmatmul.mubr.bf16.gmra.mxu1 %v4242_v24  ;;  %4183 = vmatprep.mubr.msk.bf16.mxu0 %vm420_vm2, %v4162_v58  ;;  %v4578_v24 = vld [vmem:[%s6871_s1 + $0x240] sm:$0xff]  }
  0xf7   :  { %v6409_v56 = vadd.f32 %v742_v55, %v495_v61  ;;  %v497_v4 = vpop.f32.mrf.mxu0  ;;  %4266 = vmatprep.mubr.msk.bf16.mxu1 %vm420_vm2, %v4245_v3  ;;  %3464 = vmatpush1.bf16.msra.mxu0 %v4569_v63  ;;  %v2911_v3 = vshrl.u32 %v6459_v45, 16  ;;  %v2880_v55 = vrot.slane %v2878_v33, 5 }
  0xf8   :  { %v744_v16 = vpop.f32.mrf.mxu1  ;;  %3465 = vmatprep.subr.bf16.mxu0 %v6919_v10  ;;  %4446 = vmatpush1.bf16.msra.mxu1 %v4569_v63  ;;  %v2894_v4 = vrot.slane %v2892_v13, 5  ;;  %v4248_v13 = vcombine.low %v6472_v12, %v6477_v50 }
  0xf9   :  { %v498_v39 = vpop.f32.mrf.mxu0  ;;  %4438 = vmatprep.subr.bf16.mxu1 %v6919_v10  ;;  %v2899_v16 = vrot.slane %v2897_v1, 4  ;;  %v2913_v44 = vrot.slane %v2911_v3, 4 }
  0xfa   :  { %v745_v23 = vpop.f32.mrf.mxu1 }
  0xfb   :  { %v6432_v47 = vadd.f32 %v745_v23, %v498_v39  ;;  %v500_v62 = vpop.f32.mrf.mxu0  ;;  %3466 = vmatpush1.bf16.msra.mxu0 %v4572_v31  ;;  %v2916_v39 = vrot.slane %v2914_v2, 5  ;;  %v6938_v23 = vcombine.low %v5694_v36, %v5709_v42  ;;  %v2881_v36 = vsel %vm4715_vm3, %v6222_v5, %v2880_v55 }
  0xfc   :  { %v747_v57 = vpop.f32.mrf.mxu1  ;;  %3467 = vmatprep.subr.bf16.mxu0 %v6919_v10  ;;  %4447 = vmatpush1.bf16.msra.mxu1 %v4572_v31  ;;  %v4581_v31 = vld [vmem:[%s6871_s1 + $0x280] sm:$0xff]   ;;  %v2906_v42 = vshll.u32 %v6501_v41, 16 }
  0xfd   :  { %v503_v20 = vpop.f32.mrf.mxu0  ;;  %2612 = vmatmul.mubr.bf16.gmra.mxu0 %v4161_v54  ;;  %4439 = vmatprep.subr.bf16.mxu1 %v6919_v10  ;;  %v2895_v57 = vsel %vm4715_vm3, %v6263_v30, %v2894_v4 }
  0xfe   :  { %v750_v32 = vpop.f32.mrf.mxu1  ;;  %3134 = vmatmul.mubr.bf16.gmra.mxu1 %v4244_v0  ;;  %4184 = vmatprep.mubr.msk.bf16.mxu0 %vm420_vm2, %v6937_v17  ;;  %v6510_v0 = vld [vmem:[%s6872_s0 + $0x138] sm:$0x11]  ;;  %v2908_v3 = vrot.slane %v2906_v42, 5  ;;  %v3276_v42 = vrot.slane %v6361_v49, 5 }
  0xff   :  { %v6466_v52 = vadd.f32 %v750_v32, %v503_v20  ;;  %v505_v27 = vpop.f32.mrf.mxu0  ;;  %4267 = vmatprep.mubr.msk.bf16.mxu1 %vm420_vm2, %v4247_v59  ;;  %3468 = vmatpush1.bf16.msra.mxu0 %v4575_v14  ;;  %v6939_v59 = vld [vmem:[#allocation2_spill] sm:$0xff]  ;;  %v2903_v20 = vor.u32 %v2902_v21, %v2899_v16  ;;  %v2917_v32 = vor.u32 %v2916_v39, %v2913_v44  ;;  %v2920_v17 = vshll.u32 %v6510_v0, 16  ;;  %v4280_v16 = vld [vmem:[%s6872_s0 + $0xd0] sm:$0xee] }
 0x100   :  { %v752_v58 = vpop.f32.mrf.mxu1  ;;  %3469 = vmatprep.subr.bf16.mxu0 %v6919_v10  ;;  %4448 = vmatpush1.bf16.msra.mxu1 %v4575_v14  ;;  %v6940_v8 = vcombine.high %v6939_v59, %v5720_v51  ;;  %v4250_v44 = vcombine.low %v2881_v36, %v2895_v57  ;;  %v4170_v39 = vcombine.high %v6454_v48, %v6459_v45 }
 0x101   :  { %v506_v63 = vpop.f32.mrf.mxu0  ;;  %4440 = vmatprep.subr.bf16.mxu1 %v6919_v10  ;;  %v4251_v58 = vcombine.high %v2881_v36, %v2895_v57  ;;  %v2904_v9 = vrot.slane %v2903_v20, 4  ;;  %v2918_v2 = vrot.slane %v2917_v32, 4 }
 0x102   :  { %v753_v34 = vpop.f32.mrf.mxu1 }
 0x103   :  { %v6491_v18 = vadd.f32 %v753_v34, %v506_v63  ;;  %v508_v61 = vpop.f32.mrf.mxu0  ;;  %3470 = vmatpush1.bf16.msra.mxu0 %v4578_v24  ;;  %v2922_v63 = vrot.slane %v2920_v17, 5  ;;  %v6941_v34 = vcombine.low %v6939_v59, %v5720_v51  ;;  %v2909_v4 = vsel %vm4715_vm3, %v2904_v9, %v2908_v3 }
 0x104   :  { %v755_v35 = vpop.f32.mrf.mxu1  ;;  %4449 = vmatpush1.bf16.msra.mxu1 %v4578_v24  ;;  %3485 = vmatprep.subr.bf16.mxu0 %v6919_v10  ;;  %v6942_v61 = vld [vmem:[#allocation3_spill] sm:$0xff] }
 0x105   :  { %v511_v54 = vpop.f32.mrf.mxu0  ;;  %2620 = vmatmul.mubr.bf16.gmra.mxu0 %v6938_v23  ;;  %4441 = vmatprep.subr.bf16.mxu1 %v6919_v10  ;;  %v2923_v51 = vsel %vm4715_vm3, %v2918_v2, %v2922_v63  ;;  %v4279_v35 = vld [vmem:[%s6872_s0 + $0xc0] sm:$0xee]  ;;  %v6944_v20 = vcombine.low %v6942_v61, %v5752_v7 }
 0x106   :  { %v758_v62 = vpop.f32.mrf.mxu1  ;;  %3142 = vmatmul.mubr.bf16.gmra.mxu1 %v4246_v43  ;;  %4185 = vmatprep.mubr.msk.bf16.mxu0 %vm420_vm2, %v6940_v8  ;;  %v4295_v59 = vrot.slane %v4279_v35, 9  ;;  %v3272_v8 = vrot.slane %v6356_v22, 5  ;;  %v4283_v35 = vld [vmem:[%s6872_s0 + $0x100] sm:$0xee] }
 0x107   :  { %v6517_v6 = vadd.f32 %v758_v62, %v511_v54  ;;  %v513_v14 = vpop.f32.mrf.mxu0  ;;  %4268 = vmatprep.mubr.msk.bf16.mxu1 %vm420_vm2, %v4249_v11  ;;  %3486 = vmatpush2.bf16.msra.mxu0 %v4581_v31  ;;  %v6943_v11 = vcombine.high %v6942_v61, %v5752_v7  ;;  %v4253_v62 = vcombine.high %v2909_v4, %v2923_v51  ;;  %v6945_v61 = vld [vmem:[#allocation4_spill] sm:$0xff] }
 0x108   :  { %v760_v10 = vpop.f32.mrf.mxu1  ;;  %4450 = vmatpush2.bf16.msra.mxu1 %v4581_v31  ;;  %v4296_v14 = vrot.slane %v4280_v16, 9  ;;  %v3273_v22 = vsel %vm5061_vm6, %v4295_v59, %v3272_v8  ;;  %v4169_v7 = vcombine.low %v6454_v48, %v6459_v45  ;;  %v3284_v48 = vrot.slane %v6402_v37, 5  ;;  %v4284_v16 = vld [vmem:[%s6872_s0 + $0x110] sm:$0xee] }
 0x109   :  { %v514_v33 = vpop.f32.mrf.mxu0  ;;  %v4299_v59 = vrot.slane %v4283_v35, 9  ;;  %v3288_v8 = vrot.slane %v6442_v38, 5 }
 0x10a   :  { %v761_v27 = vpop.f32.mrf.mxu1  ;;  %v3277_v49 = vsel %vm5061_vm6, %v4296_v14, %v3276_v42  ;;  %v4300_v14 = vrot.slane %v4284_v16, 9  ;;  %v3292_v42 = vrot.slane %v6448_v53, 5 }
 0x10b   :  { %v6530_v24 = vadd.f32 %v761_v27, %v514_v33  ;;  %v516_v5 = vpop.f32.mrf.mxu0  ;;  %v4281_v27 = vld [vmem:[%s6872_s0 + $0xe0] sm:$0xee]  ;;  %v4330_v3 = vcombine.high %v3273_v22, %v3277_v49 }
 0x10c   :  { %v763_v1 = vpop.f32.mrf.mxu1  ;;  %v4297_v63 = vrot.slane %v4281_v27, 9  ;;  %v3293_v27 = vsel %vm5061_vm6, %v4300_v14, %v3292_v42 }
 0x10d   :  { %v519_v30 = vpop.f32.mrf.mxu0  ;;  %2628 = vmatmul.mubr.bf16.gmra.mxu0 %v6941_v34 }
 0x10e   :  { %v766_v43 = vpop.f32.mrf.mxu1  ;;  %3150 = vmatmul.mubr.bf16.gmra.mxu1 %v4248_v13  ;;  %4186 = vmatprep.mubr.msk.bf16.mxu0 %vm420_vm2, %v6943_v11  ;;  %v4282_v13 = vld [vmem:[%s6872_s0 + $0xf0] sm:$0xee]  ;;  %v6946_v11 = vld [vmem:[#allocation5_spill] sm:$0xff] }
 0x10f   :  { %v6539_v12 = vadd.f32 %v766_v43, %v519_v30  ;;  %v521_v50 = vpop.f32.mrf.mxu0  ;;  %4269 = vmatprep.mubr.msk.bf16.mxu1 %vm420_vm2, %v4251_v58  ;;  %v4252_v58 = vcombine.low %v2909_v4, %v2923_v51  ;;  %v3280_v30 = vrot.slane %v6397_v15, 5  ;;  %v4298_v34 = vrot.slane %v4282_v13, 9 }
 0x110   :  { %v768_v55 = vpop.f32.mrf.mxu1  ;;  %v6947_v50 = vcombine.high %v6945_v61, %v6946_v11 }
 0x111   :  { %v522_v31 = vpop.f32.mrf.mxu0  ;;  %v3281_v15 = vsel %vm5061_vm6, %v4297_v63, %v3280_v30  ;;  %v3285_v37 = vsel %vm5061_vm6, %v4298_v34, %v3284_v48 }
 0x112   :  { %v769_v21 = vpop.f32.mrf.mxu1 }
 0x113   :  { %v6554_v54 = vadd.f32 %v769_v21, %v522_v31  ;;  %v524_v23 = vpop.f32.mrf.mxu0 }
 0x114   :  { %v771_v40 = vpop.f32.mrf.mxu1 }
 0x115   :  { %v527_v10 = vpop.f32.mrf.mxu0  ;;  %2636 = vmatmul.mubr.bf16.gmra.mxu0 %v6944_v20  ;;  %v6948_v20 = vcombine.low %v6945_v61, %v6946_v11  ;;  %v3300_v61 = vrot.slane %v6510_v0, 5 }
 0x116   :  { %v774_v36 = vpop.f32.mrf.mxu1  ;;  %3158 = vmatmul.mubr.bf16.gmra.mxu1 %v4250_v44  ;;  %4187 = vmatprep.mubr.msk.bf16.mxu0 %vm420_vm2, %v4170_v39  ;;  %v4329_v44 = vcombine.low %v3273_v22, %v3277_v49  ;;  %v6950_v22 = vld [vmem:[#allocation7_spill] sm:$0xff] }
 0x117   :  { %v6562_v57 = vadd.f32 %v774_v36, %v527_v10  ;;  %v529_v32 = vpop.f32.mrf.mxu0  ;;  %4270 = vmatprep.mubr.msk.bf16.mxu1 %vm420_vm2, %v4253_v62  ;;  %v4332_v62 = vcombine.high %v3281_v15, %v3285_v37 }
 0x118   :  { %v776_v17 = vpop.f32.mrf.mxu1 }
 0x119   :  { %v530_v33 = vpop.f32.mrf.mxu0  ;;  %v6949_v17 = vld [vmem:[#allocation6_spill] sm:$0xff] }
 0x11a   :  { %v777_v5 = vpop.f32.mrf.mxu1  ;;  %v6951_v49 = vcombine.high %v6949_v17, %v6950_v22 }
 0x11b   :  { %v6577_v1 = vadd.f32 %v777_v5, %v530_v33  ;;  %v532_v9 = vpop.f32.mrf.mxu0  ;;  %v4286_v5 = vld [vmem:[%s6872_s0 + $0x130] sm:$0xee] }
 0x11c   :  { %v779_v2 = vpop.f32.mrf.mxu1 }
 0x11d   :  { %v535_v45 = vpop.f32.mrf.mxu0  ;;  %2644 = vmatmul.mubr.bf16.gmra.mxu0 %v4169_v7  ;;  %v3289_v7 = vsel %vm5061_vm6, %v4299_v59, %v3288_v8 }
 0x11e   :  { %v782_v43 = vpop.f32.mrf.mxu1  ;;  %3166 = vmatmul.mubr.bf16.gmra.mxu1 %v4252_v58  ;;  %4346 = vmatprep.mubr.msk.bf16.mxu0 %vm420_vm2, %v6947_v50  ;;  %v4334_v63 = vcombine.high %v3289_v7, %v3293_v27  ;;  %v6952_v50 = vcombine.low %v6949_v17, %v6950_v22 }
 0x11f   :  { %v6585_v55 = vadd.f32 %v782_v43, %v535_v45  ;;  %v537_v4 = vpop.f32.mrf.mxu0  ;;  %4350 = vmatprep.mubr.msk.bf16.mxu1 %vm420_vm2, %v4330_v3  ;;  %v4331_v3 = vcombine.low %v3281_v15, %v3285_v37  ;;  %v3296_v45 = vrot.slane %v6501_v41, 5  ;;  %v4302_v43 = vrot.slane %v4286_v5, 9  ;;  %v6954_v15 = vld [vmem:[#allocation9_spill] sm:$0xff] }
 0x120   :  { %v784_v51 = vpop.f32.mrf.mxu1 }
 0x121   :  { %v538_v31 = vpop.f32.mrf.mxu0  ;;  %v6953_v51 = vld [vmem:[#allocation8_spill] sm:$0xff]  ;;  %v3301_v16 = vsel %vm5061_vm6, %v4302_v43, %v3300_v61 }
 0x122   :  { %v785_v21 = vpop.f32.mrf.mxu1  ;;  %v6955_v37 = vcombine.high %v6953_v51, %v6954_v15  ;;  %v6956_v42 = vcombine.low %v6953_v51, %v6954_v15 }
 0x123   :  { %v6598_v39 = vadd.f32 %v785_v21, %v538_v31  ;;  %v540_v23 = vpop.f32.mrf.mxu0 }
 0x124   :  { %v787_v40 = vpop.f32.mrf.mxu1  ;;  %v4333_v23 = vcombine.low %v3289_v7, %v3293_v27 }
 0x125   :  { %v1091_v10 = vpop.f32.mrf.mxu0  ;;  %3488 = vmatmul.mubr.bf16.vlgmr.msra.gmra.mxu0 %v6948_v20 }
 0x126   :  { %v1154_v36 = vadd.f32 %v1091_v10, %v6324_v29  ;;  %v1390_v32 = vpop.f32.mrf.mxu1  ;;  %3520 = vmatmul.mubr.bf16.vlgmr.msra.gmra.mxu1 %v4329_v44  ;;  %4347 = vmatprep.mubr.msk.bf16.mxu0 %vm420_vm2, %v6951_v49  ;;  %v4285_v29 = vld [vmem:[%s6872_s0 + $0x120] sm:$0xee] }
 0x127   :  { %v1093_v33 = vpop.f32.mrf.mxu0  ;;  %4351 = vmatprep.mubr.msk.bf16.mxu1 %vm420_vm2, %v4332_v62  ;;  %v4301_v30 = vrot.slane %v4285_v29, 9  ;;  %v6958_v29 = vcombine.low %v6145_v28, %v6149_v60 }
 0x128   :  { %v6611_v38 = vadd.f32 %v1390_v32, %v1154_v36  ;;  %v1392_v53 = vpop.f32.mrf.mxu1 }
 0x129   :  { %v1094_v13 = vpop.f32.mrf.mxu0  ;;  %v3297_v35 = vsel %vm5061_vm6, %v4301_v30, %v3296_v45 }
 0x12a   :  { %v1155_v58 = vadd.f32 %v1094_v13, %v6343_v25  ;;  %v1393_v9 = vpop.f32.mrf.mxu1  ;;  %v4336_v40 = vcombine.high %v3297_v35, %v3301_v16  ;;  %v4335_v33 = vcombine.low %v3297_v35, %v3301_v16 }
 0x12b   :  { %v1096_v2 = vpop.f32.mrf.mxu0 }
 0x12c   :  { %v6624_v34 = vadd.f32 %v1393_v9, %v1155_v58  ;;  %v1395_v48 = vpop.f32.mrf.mxu1 }
 0x12d   :  { %v1099_v11 = vpop.f32.mrf.mxu0  ;;  %3496 = vmatmul.mubr.bf16.gmra.mxu0 %v6952_v50 }
 0x12e   :  { %v1156_v25 = vadd.f32 %v1099_v11, %v6368_v26  ;;  %v1398_v4 = vpop.f32.mrf.mxu1  ;;  %3528 = vmatmul.mubr.bf16.gmra.mxu1 %v4331_v3  ;;  %4348 = vmatprep.mubr.msk.bf16.mxu0 %vm420_vm2, %v6955_v37 }
 0x12f   :  { %v1101_v31 = vpop.f32.mrf.mxu0  ;;  %4352 = vmatprep.mubr.msk.bf16.mxu1 %vm420_vm2, %v4334_v63 }
 0x130   :  { %v6637_v41 = vadd.f32 %v1398_v4, %v1156_v25  ;;  %v1400_v0 = vpop.f32.mrf.mxu1 }
 0x131   :  { %v1102_v26 = vpop.f32.mrf.mxu0 }
 0x132   :  { %v1157_v21 = vadd.f32 %v1102_v26, %v6387_v46  ;;  %v1401_v44 = vpop.f32.mrf.mxu1 }
 0x133   :  { %v1104_v62 = vpop.f32.mrf.mxu0 }
 0x134   :  { %v6644_v59 = vadd.f32 %v1401_v44, %v1157_v21  ;;  %v1403_v8 = vpop.f32.mrf.mxu1 }
 0x135   :  { %v1107_v14 = vpop.f32.mrf.mxu0  ;;  %3504 = vmatmul.mubr.bf16.gmra.mxu0 %v6956_v42 }
 0x136   :  { %v1158_v10 = vadd.f32 %v1107_v14, %v6409_v56  ;;  %v1406_v20 = vpop.f32.mrf.mxu1  ;;  %3536 = vmatmul.mubr.bf16.gmra.mxu1 %v4333_v23  ;;  %4349 = vmatprep.mubr.msk.bf16.mxu0 %vm420_vm2, %v6957_v19 }
 0x137   :  { %v1109_v46 = vpop.f32.mrf.mxu0  ;;  %4353 = vmatprep.mubr.msk.bf16.mxu1 %vm420_vm2, %v4336_v40 }
 0x138   :  { %v6655_v36 = vadd.f32 %v1406_v20, %v1158_v10  ;;  %v1408_v32 = vpop.f32.mrf.mxu1 }
 0x139   :  { %v1110_v17 = vpop.f32.mrf.mxu0 }
 0x13a   :  { %v1159_v22 = vadd.f32 %v1110_v17, %v6432_v47  ;;  %v1409_v49 = vpop.f32.mrf.mxu1 }
 0x13b   :  { %v1112_v53 = vpop.f32.mrf.mxu0 }
 0x13c   :  { %v6658_v56 = vadd.f32 %v1409_v49, %v1159_v22  ;;  %v1411_v7 = vpop.f32.mrf.mxu1 }
 0x13d   :  { %v1115_v27 = vpop.f32.mrf.mxu0  ;;  %3512 = vmatmul.mubr.bf16.gmra.mxu0 %v6958_v29 }
 0x13e   :  { %v1160_v13 = vadd.f32 %v1115_v27, %v6466_v52  ;;  %v1414_v5 = vpop.f32.mrf.mxu1  ;;  %3544 = vmatmul.mubr.bf16.gmra.mxu1 %v4335_v33 }
 0x13f   :  { %v1117_v58 = vpop.f32.mrf.mxu0 }
 0x140   :  { %v6664_v9 = vadd.f32 %v1414_v5, %v1160_v13  ;;  %v1416_v3 = vpop.f32.mrf.mxu1 }
 0x141   :  { %v1118_v47 = vpop.f32.mrf.mxu0 }
 0x142   :  { %v1161_v2 = vadd.f32 %v1118_v47, %v6491_v18  ;;  %v1417_v63 = vpop.f32.mrf.mxu1 }
 0x143   :  { %v1120_v30 = vpop.f32.mrf.mxu0 }
 0x144   :  { %v6667_v48 = vadd.f32 %v1417_v63, %v1161_v2  ;;  %v1419_v45 = vpop.f32.mrf.mxu1 }
 0x145   :  { %v1123_v43 = vpop.f32.mrf.mxu0 }
 0x146   :  { %v1162_v28 = vadd.f32 %v1123_v43, %v6517_v6  ;;  %v1422_v60 = vpop.f32.mrf.mxu1 }
 0x147   :  { %v1125_v61 = vpop.f32.mrf.mxu0 }
 0x148   :  { %v6670_v52 = vadd.f32 %v1422_v60, %v1162_v28  ;;  %v1424_v11 = vpop.f32.mrf.mxu1 }
 0x149   :  { %v1126_v50 = vpop.f32.mrf.mxu0 }
 0x14a   :  { %v1163_v25 = vadd.f32 %v1126_v50, %v6530_v24  ;;  %v1425_v4 = vpop.f32.mrf.mxu1 }
 0x14b   :  { %v1128_v51 = vpop.f32.mrf.mxu0 }
 0x14c   :  { %v6673_v15 = vadd.f32 %v1425_v4, %v1163_v25  ;;  %v1427_v18 = vpop.f32.mrf.mxu1 }
 0x14d   :  { %v1131_v37 = vpop.f32.mrf.mxu0 }
 0x14e   :  { %v1164_v31 = vadd.f32 %v1131_v37, %v6539_v12  ;;  %v1430_v0 = vpop.f32.mrf.mxu1 }
 0x14f   :  { %v1133_v35 = vpop.f32.mrf.mxu0 }
 0x150   :  { %v6676_v16 = vadd.f32 %v1430_v0, %v1164_v31  ;;  %v1432_v6 = vpop.f32.mrf.mxu1 }
 0x151   :  { %v1134_v26 = vpop.f32.mrf.mxu0 }
 0x152   :  { %v1165_v21 = vadd.f32 %v1134_v26, %v6554_v54  ;;  %v1433_v44 = vpop.f32.mrf.mxu1 }
 0x153   :  { %v1136_v23 = vpop.f32.mrf.mxu0 }
 0x154   :  { %v6679_v62 = vadd.f32 %v1433_v44, %v1165_v21  ;;  %v1435_v24 = vpop.f32.mrf.mxu1 }
 0x155   :  { %v1139_v40 = vpop.f32.mrf.mxu0 }
 0x156   :  { %v1166_v8 = vadd.f32 %v1139_v40, %v6562_v57  ;;  %v1438_v14 = vpop.f32.mrf.mxu1 }
 0x157   :  { %v1141_v42 = vpop.f32.mrf.mxu0 }
 0x158   :  { %v6682_v10 = vadd.f32 %v1438_v14, %v1166_v8  ;;  %v1440_v12 = vpop.f32.mrf.mxu1 }
 0x159   :  { %v1142_v20 = vpop.f32.mrf.mxu0 }
 0x15a   :  { %v1167_v19 = vadd.f32 %v1142_v20, %v6577_v1  ;;  %v1441_v46 = vpop.f32.mrf.mxu1 }
 0x15b   :  { %v1144_v32 = vpop.f32.mrf.mxu0 }
 0x15c   :  { %v6685_v17 = vadd.f32 %v1441_v46, %v1167_v19  ;;  %v1443_v54 = vpop.f32.mrf.mxu1 }
 0x15d   :  { %v1147_v22 = vpop.f32.mrf.mxu0 }
 0x15e   :  { %v1168_v49 = vadd.f32 %v1147_v22, %v6585_v55  ;;  %v1446_v33 = vpop.f32.mrf.mxu1 }
 0x15f   :  { %v1149_v53 = vpop.f32.mrf.mxu0 }
 0x160   :  { %v6688_v7 = vadd.f32 %v1446_v33, %v1168_v49  ;;  %v1448_v57 = vpop.f32.mrf.mxu1 }
 0x161   :  { %v1150_v27 = vpop.f32.mrf.mxu0 }
 0x162   :  { %v1169_v29 = vadd.f32 %v1150_v27, %v6598_v39  ;;  %v1449_v13 = vpop.f32.mrf.mxu1 }
 0x163   :  { %v1152_v5 = vpop.f32.mrf.mxu0 }
 0x164   :  { %v6691_v58 = vadd.f32 %v1449_v13, %v1169_v29  ;;  %v1451_v1 = vpop.f32.mrf.mxu1 }
 0x165   :  { %v1912_v3 = vpop.f32.mrf.mxu0 }
 0x166   :  { %v1975_v47 = vadd.f32 %v1912_v3, %v6611_v38  ;;  %v2290_v2 = vpop.f32.mrf.mxu1 }
 0x167   :  { %v1914_v63 = vpop.f32.mrf.mxu0 }
 0x168   :  { %v6694_v30 = vadd.f32 %v2290_v2, %v1975_v47  ;;  %v2292_v55 = vpop.f32.mrf.mxu1 }
 0x169   :  { %v1915_v45 = vpop.f32.mrf.mxu0 }
 0x16a   :  { %v1976_v43 = vadd.f32 %v1915_v45, %v6624_v34  ;;  %v2293_v28 = vpop.f32.mrf.mxu1 }
 0x16b   :  { %v1917_v60 = vpop.f32.mrf.mxu0 }
 0x16c   :  { %v6697_v61 = vadd.f32 %v2293_v28, %v1976_v43  ;;  %v2295_v39 = vpop.f32.mrf.mxu1 }
 0x16d   :  { %v1920_v11 = vpop.f32.mrf.mxu0 }
 0x16e   :  { %v1977_v50 = vadd.f32 %v1920_v11, %v6637_v41  ;;  %v2298_v25 = vpop.f32.mrf.mxu1 }
 0x16f   :  { %v1922_v4 = vpop.f32.mrf.mxu0 }
 0x170   :  { %v6700_v51 = vadd.f32 %v2298_v25, %v1977_v50  ;;  %v2300_v38 = vpop.f32.mrf.mxu1 }
 0x171   :  { %v1923_v18 = vpop.f32.mrf.mxu0 }
 0x172   :  { %v1978_v37 = vadd.f32 %v1923_v18, %v6644_v59  ;;  %v2301_v31 = vpop.f32.mrf.mxu1 }
 0x173   :  { %v1925_v0 = vpop.f32.mrf.mxu0 }
 0x174   :  { %v6703_v35 = vadd.f32 %v2301_v31, %v1978_v37  ;;  %v2303_v34 = vpop.f32.mrf.mxu1 }
 0x175   :  { %v1928_v6 = vpop.f32.mrf.mxu0 }
 0x176   :  { %v1979_v26 = vadd.f32 %v1928_v6, %v6655_v36  ;;  %v2306_v21 = vpop.f32.mrf.mxu1 }
 0x177   :  { %v1930_v44 = vpop.f32.mrf.mxu0 }
 0x178   :  { %v6706_v23 = vadd.f32 %v2306_v21, %v1979_v26  ;;  %v2308_v41 = vpop.f32.mrf.mxu1 }
 0x179   :  { %v1931_v24 = vpop.f32.mrf.mxu0 }
 0x17a   :  { %v1980_v40 = vadd.f32 %v1931_v24, %v6658_v56  ;;  %v2309_v8 = vpop.f32.mrf.mxu1 }
 0x17b   :  { %v1933_v14 = vpop.f32.mrf.mxu0 }
 0x17c   :  { %v6709_v42 = vadd.f32 %v2309_v8, %v1980_v40  ;;  %v2311_v59 = vpop.f32.mrf.mxu1 }
 0x17d   :  { %v1936_v12 = vpop.f32.mrf.mxu0 }
 0x17e   :  { %v1981_v20 = vadd.f32 %v1936_v12, %v6664_v9  ;;  %v2314_v19 = vpop.f32.mrf.mxu1 }
 0x17f   :  { %v1938_v46 = vpop.f32.mrf.mxu0 }
 0x180   :  { %v6712_v32 = vadd.f32 %v2314_v19, %v1981_v20  ;;  %v2316_v36 = vpop.f32.mrf.mxu1 }
 0x181   :  { %v1939_v54 = vpop.f32.mrf.mxu0 }
 0x182   :  { %v1982_v22 = vadd.f32 %v1939_v54, %v6667_v48  ;;  %v2317_v49 = vpop.f32.mrf.mxu1 }
 0x183   :  { %v1941_v33 = vpop.f32.mrf.mxu0 }
 0x184   :  { %v6715_v53 = vadd.f32 %v2317_v49, %v1982_v22  ;;  %v2319_v56 = vpop.f32.mrf.mxu1 }
 0x185   :  { %v1944_v57 = vpop.f32.mrf.mxu0 }
 0x186   :  { %v1983_v27 = vadd.f32 %v1944_v57, %v6670_v52  ;;  %v2322_v29 = vpop.f32.mrf.mxu1 }
 0x187   :  { %v1946_v13 = vpop.f32.mrf.mxu0 }
 0x188   :  { %v6718_v5 = vadd.f32 %v2322_v29, %v1983_v27  ;;  %v2324_v9 = vpop.f32.mrf.mxu1 }
 0x189   :  { %v1947_v1 = vpop.f32.mrf.mxu0 }
 0x18a   :  { %v1984_v3 = vadd.f32 %v1947_v1, %v6673_v15  ;;  %v2325_v47 = vpop.f32.mrf.mxu1 }
 0x18b   :  { %v1949_v2 = vpop.f32.mrf.mxu0 }
 0x18c   :  { %v6721_v63 = vadd.f32 %v2325_v47, %v1984_v3  ;;  %v2327_v48 = vpop.f32.mrf.mxu1 }
 0x18d   :  { %v1952_v55 = vpop.f32.mrf.mxu0 }
 0x18e   :  { %v1985_v45 = vadd.f32 %v1952_v55, %v6676_v16  ;;  %v2330_v43 = vpop.f32.mrf.mxu1 }
 0x18f   :  { %v1954_v28 = vpop.f32.mrf.mxu0 }
 0x190   :  { %v6724_v60 = vadd.f32 %v2330_v43, %v1985_v45  ;;  %v2332_v52 = vpop.f32.mrf.mxu1 }
 0x191   :  { %v1955_v39 = vpop.f32.mrf.mxu0 }
 0x192   :  { %v1986_v11 = vadd.f32 %v1955_v39, %v6679_v62  ;;  %v2333_v50 = vpop.f32.mrf.mxu1 }
 0x193   :  { %v1957_v25 = vpop.f32.mrf.mxu0 }
 0x194   :  { %v6727_v4 = vadd.f32 %v2333_v50, %v1986_v11  ;;  %v2335_v15 = vpop.f32.mrf.mxu1 }
 0x195   :  { %v1960_v38 = vpop.f32.mrf.mxu0 }
 0x196   :  { %v1987_v18 = vadd.f32 %v1960_v38, %v6682_v10  ;;  %v2338_v37 = vpop.f32.mrf.mxu1 }
 0x197   :  { %v1962_v31 = vpop.f32.mrf.mxu0 }
 0x198   :  { %v6730_v0 = vadd.f32 %v2338_v37, %v1987_v18  ;;  %v2340_v16 = vpop.f32.mrf.mxu1 }
 0x199   :  { %v1963_v34 = vpop.f32.mrf.mxu0 }
 0x19a   :  { %v1988_v6 = vadd.f32 %v1963_v34, %v6685_v17  ;;  %v2341_v26 = vpop.f32.mrf.mxu1 }
 0x19b   :  { %v1965_v21 = vpop.f32.mrf.mxu0 }
 0x19c   :  { %v6733_v44 = vadd.f32 %v2341_v26, %v1988_v6  ;;  %v2343_v62 = vpop.f32.mrf.mxu1 }
 0x19d   :  { %v1968_v41 = vpop.f32.mrf.mxu0 }
 0x19e   :  { %v1989_v24 = vadd.f32 %v1968_v41, %v6688_v7  ;;  %v2346_v40 = vpop.f32.mrf.mxu1 }
 0x19f   :  { %v1970_v8 = vpop.f32.mrf.mxu0 }
 0x1a0   :  { %v6736_v14 = vadd.f32 %v2346_v40, %v1989_v24  ;;  %v2348_v10 = vpop.f32.mrf.mxu1 }
 0x1a1   :  { %v1971_v59 = vpop.f32.mrf.mxu0 }
 0x1a2   :  { %v1990_v12 = vadd.f32 %v1971_v59, %v6691_v58  ;;  %v2349_v20 = vpop.f32.mrf.mxu1 }
 0x1a3   :  { %v1973_v19 = vpop.f32.mrf.mxu0 }
 0x1a4   :  { %v6739_v46 = vadd.f32 %v2349_v20, %v1990_v12  ;;  %v2351_v17 = vpop.f32.mrf.mxu1 }
 0x1a5   :  { %v2589_v36 = vpop.f32.mrf.mxu0 }
 0x1a6   :  { %v2652_v54 = vadd.f32 %v2589_v36, %v6694_v30  ;;  %v3111_v22 = vpop.f32.mrf.mxu1 }
 0x1a7   :  { %v2591_v49 = vpop.f32.mrf.mxu0 }
 0x1a8   :  { %v6742_v33 = vadd.f32 %v3111_v22, %v2652_v54  ;;  %v3113_v7 = vpop.f32.mrf.mxu1 }
 0x1a9   :  { %v6744_v56 = vpop.f32.mrf.mxu0 }
 0x1aa   :  { %v6746_v57 = vpop.f32.mrf.mxu1 }
 0x1ab   :  { %v2594_v27 = vpop.f32.mrf.mxu0 }
 0x1ac   :  { %v3116_v29 = vpop.f32.mrf.mxu1 }
 0x1ad   :  { %v2597_v58 = vpop.f32.mrf.mxu0 }
 0x1ae   :  { %v2654_v13 = vadd.f32 %v2597_v58, %v6700_v51  ;;  %v3119_v9 = vpop.f32.mrf.mxu1 }
 0x1af   :  { %v2599_v1 = vpop.f32.mrf.mxu0 }
 0x1b0   :  { %v6749_v3 = vadd.f32 %v3119_v9, %v2654_v13  ;;  %v3121_v47 = vpop.f32.mrf.mxu1 }
 0x1b1   :  { %v6751_v30 = vpop.f32.mrf.mxu0 }
 0x1b2   :  { %v6753_v2 = vpop.f32.mrf.mxu1 }
 0x1b3   :  { %v2602_v48 = vpop.f32.mrf.mxu0 }
 0x1b4   :  { %v3124_v55 = vpop.f32.mrf.mxu1 }
 0x1b5   :  { %v2605_v45 = vpop.f32.mrf.mxu0 }
 0x1b6   :  { %v2656_v43 = vadd.f32 %v2605_v45, %v6706_v23  ;;  %v3127_v28 = vpop.f32.mrf.mxu1 }
 0x1b7   :  { %v2607_v52 = vpop.f32.mrf.mxu0 }
 0x1b8   :  { %v6756_v39 = vadd.f32 %v3127_v28, %v2656_v43  ;;  %v3129_v11 = vpop.f32.mrf.mxu1 }
 0x1b9   :  { %v6758_v51 = vpop.f32.mrf.mxu0  ;;  %v2653_v11 = vadd.f32 %v6744_v56, %v6697_v61  ;;  %v2655_v61 = vadd.f32 %v6751_v30, %v6703_v35 }
 0x1ba   :  { %v6760_v50 = vpop.f32.mrf.mxu1 }
 0x1bb   :  { %v2610_v25 = vpop.f32.mrf.mxu0 }
 0x1bc   :  { %v3132_v15 = vpop.f32.mrf.mxu1 }
 0x1bd   :  { %v6762_v38 = vpop.f32.mrf.mxu0 }
 0x1be   :  { %v6764_v18 = vpop.f32.mrf.mxu1 }
 0x1bf   :  { %v2615_v37 = vpop.f32.mrf.mxu0 }
 0x1c0   :  { %v3137_v31 = vpop.f32.mrf.mxu1 }
 0x1c1   :  { %v6766_v16 = vpop.f32.mrf.mxu0 }
 0x1c2   :  { %v6768_v23 = vpop.f32.mrf.mxu1 }
 0x1c3   :  { %v2618_v34 = vpop.f32.mrf.mxu0 }
 0x1c4   :  { %v3140_v6 = vpop.f32.mrf.mxu1 }
 0x1c5   :  { %v2621_v26 = vpop.f32.mrf.mxu0 }
 0x1c6   :  { %v3143_v21 = vpop.f32.mrf.mxu1  ;;  %v2660_v15 = vadd.f32 %v2621_v26, %v6718_v5 }
 0x1c7   :  { %v2623_v62 = vpop.f32.mrf.mxu0 }
 0x1c8   :  { %v3145_v41 = vpop.f32.mrf.mxu1  ;;  %v3175_v62 = vadd.f32 %v6746_v57, %v2653_v11 }
 0x1c9   :  { %v2624_v24 = vpop.f32.mrf.mxu0 }
 0x1ca   :  { %v3146_v40 = vpop.f32.mrf.mxu1  ;;  %v2661_v37 = vadd.f32 %v2624_v24, %v6721_v63 }
 0x1cb   :  { %v2626_v8 = vpop.f32.mrf.mxu0 }
 0x1cc   :  { %v3148_v10 = vpop.f32.mrf.mxu1 }
 0x1cd   :  { %v2629_v59 = vpop.f32.mrf.mxu0  ;;  %v3182_v10 = vadd.f32 %v3143_v21, %v2660_v15 }
 0x1ce   :  { %v3151_v12 = vpop.f32.mrf.mxu1 }
 0x1cf   :  { %v2631_v20 = vpop.f32.mrf.mxu0 }
 0x1d0   :  { %v3153_v19 = vpop.f32.mrf.mxu1  ;;  %v3183_v20 = vadd.f32 %v3146_v40, %v2661_v37 }
 0x1d1   :  { %v2632_v17 = vpop.f32.mrf.mxu0 }
 0x1d2   :  { %v3154_v36 = vpop.f32.mrf.mxu1  ;;  %v2663_v21 = vadd.f32 %v2632_v17, %v6727_v4 }
 0x1d3   :  { %v2634_v54 = vpop.f32.mrf.mxu0 }
 0x1d4   :  { %v3156_v22 = vpop.f32.mrf.mxu1 }
 0x1d5   :  { %v6770_v49 = vpop.f32.mrf.mxu0 }
 0x1d6   :  { %v6772_v7 = vpop.f32.mrf.mxu1 }
 0x1d7   :  { %v2639_v27 = vpop.f32.mrf.mxu0 }
 0x1d8   :  { %v3161_v29 = vpop.f32.mrf.mxu1 }
 0x1d9   :  { %v6774_v58 = vpop.f32.mrf.mxu0 }
 0x1da   :  { %v6776_v13 = vpop.f32.mrf.mxu1 }
 0x1db   :  { %v2642_v9 = vpop.f32.mrf.mxu0 }
 0x1dc   :  { %v3164_v1 = vpop.f32.mrf.mxu1 }
 0x1dd   :  { %v6778_v47 = vpop.f32.mrf.mxu0 }
 0x1de   :  { %v6780_v48 = vpop.f32.mrf.mxu1 }
 0x1df   :  { %v2647_v55 = vpop.f32.mrf.mxu0 }
 0x1e0   :  { %v3169_v45 = vpop.f32.mrf.mxu1 }
 0x1e1   :  { %v6782_v43 = vpop.f32.mrf.mxu0 }
 0x1e2   :  { %v6784_v28 = vpop.f32.mrf.mxu1 }
 0x1e3   :  { %v2650_v52 = vpop.f32.mrf.mxu0 }
 0x1e4   :  { %v3172_v25 = vpop.f32.mrf.mxu1  ;;  %v3185_v52 = vadd.f32 %v3154_v36, %v2663_v21  ;;  %v2665_v36 = vadd.f32 %v6774_v58, %v6733_v44 }
 0x1e5   :  { %v3489_v31 = vpop.f32.mrf.mxu0 }
 0x1e6   :  { %v3521_v34 = vpop.f32.mrf.mxu1  ;;  %v3552_v41 = vadd.f32 %v3489_v31, %v6742_v33  ;;  %v2662_v33 = vadd.f32 %v2629_v59, %v6724_v60  ;;  %v3177_v60 = vadd.f32 %v6753_v2, %v2655_v61 }
 0x1e7   :  { %v3491_v6 = vpop.f32.mrf.mxu0  ;;  %v6794_v56 = vadd.f32 %v3521_v34, %v3182_v10 }
 0x1e8   :  { %v3523_v8 = vpop.f32.mrf.mxu1  ;;  %v3669_v26 = vmul.f32 %v3552_v41, %v3552_v41  ;;  %v3184_v45 = vadd.f32 %v3151_v12, %v2662_v33  ;;  %v2657_v6 = vadd.f32 %v6758_v51, %v6709_v42  ;;  %v2664_v12 = vadd.f32 %v6770_v49, %v6730_v0 }
 0x1e9   :  { %v3492_v19 = vpop.f32.mrf.mxu0  ;;  %v2659_v33 = vadd.f32 %v6766_v16, %v6715_v53 }
 0x1ea   :  { %v3553_v54 = vadd.f32 %v3492_v19, %v3175_v62  ;;  %v3524_v22 = vpop.f32.mrf.mxu1  ;;  %v3179_v44 = vadd.f32 %v6760_v50, %v2657_v6  ;;  %v3186_v61 = vadd.f32 %v6772_v7, %v2664_v12  ;;  %v2666_v7 = vadd.f32 %v6778_v47, %v6736_v14 }
 0x1eb   :  { %v6796_v5 = vadd.f32 %v3524_v22, %v3183_v20  ;;  %v3494_v63 = vpop.f32.mrf.mxu0  ;;  %v3181_v16 = vadd.f32 %v6768_v23, %v2659_v33  ;;  %v3677_v23 = vmul.f32 %v6794_v56, %v6794_v56  ;;  %v4583_v33 = vmov 1966171168  }
 0x1ec   :  { %v4389_v24 = vpack.c.bf16 %v3553_v54, %v3552_v41  ;;  %v3648_v27 = vadd.f32 %v3553_v54, %v3552_v41  ;;  %v3670_v57 = vmul.f32 %v3553_v54, %v3553_v54  ;;  %v3526_v29 = vpop.f32.mrf.mxu1  ;;  %v2658_v54 = vadd.f32 %v6762_v38, %v6712_v32 }
 0x1ed   :  { %v4409_v40 = vpack.c.bf16 %v6796_v5, %v6794_v56  ;;  %v3497_v9 = vpop.f32.mrf.mxu0  ;;  %v3187_v63 = vadd.f32 %v6776_v13, %v2665_v36  ;;  %v2667_v13 = vadd.f32 %v6782_v43, %v6739_v46  ;;  %v3188_v46 = vadd.f32 %v6780_v48, %v2666_v7 }
 0x1ee   :  { %4390 = vst [vmem:[%s6873_s2] sm:$0xff] %v4389_v24   ;;  %v3685_v35 = vadd.f32 %v3670_v57, %v3669_v26  ;;  %v3554_v30 = vadd.f32 %v3497_v9, %v6749_v3  ;;  %v3529_v1 = vpop.f32.mrf.mxu1  ;;  %v3180_v32 = vadd.f32 %v6764_v18, %v2658_v54 }
 0x1ef   :  { %4429 = vst [vmem:[%s6873_s2 + $0x20] sm:$0xff] %v4409_v40   ;;  %v3499_v55 = vpop.f32.mrf.mxu0  ;;  %v6810_v31 = vadd.f32 %v3529_v1, %v3184_v45  ;;  %v3189_v43 = vadd.f32 %v6784_v28, %v2667_v13 }
 0x1f0   :  { %v3649_v4 = vadd.f32 %v3648_v27, %v3554_v30  ;;  %v3671_v59 = vmul.f32 %v3554_v30, %v3554_v30  ;;  %v3531_v17 = vpop.f32.mrf.mxu1 }
 0x1f1   :  { %v3500_v11 = vpop.f32.mrf.mxu0  ;;  %v3679_v12 = vmul.f32 %v6810_v31, %v6810_v31 }
 0x1f2   :  { %v3686_v25 = vadd.f32 %v3685_v35, %v3671_v59  ;;  %v3555_v15 = vadd.f32 %v3500_v11, %v3177_v60  ;;  %v3532_v37 = vpop.f32.mrf.mxu1 }
 0x1f3   :  { %v6812_v3 = vadd.f32 %v3532_v37, %v3185_v52  ;;  %v3502_v34 = vpop.f32.mrf.mxu0 }
 0x1f4   :  { %v4394_v62 = vpack.c.bf16 %v3555_v15, %v3554_v30  ;;  %v3650_v41 = vadd.f32 %v3649_v4, %v3555_v15  ;;  %v3672_v2 = vmul.f32 %v3555_v15, %v3555_v15  ;;  %v3534_v8 = vpop.f32.mrf.mxu1 }
 0x1f5   :  { %v4414_v10 = vpack.c.bf16 %v6812_v3, %v6810_v31  ;;  %v3505_v20 = vpop.f32.mrf.mxu0 }
 0x1f6   :  { %4426 = vst [vmem:[%s6873_s2 + $0x8] sm:$0xff] %v4394_v62   ;;  %v3687_v19 = vadd.f32 %v3686_v25, %v3672_v2  ;;  %v3556_v42 = vadd.f32 %v3505_v20, %v6756_v39  ;;  %v3537_v51 = vpop.f32.mrf.mxu1 }
 0x1f7   :  { %4430 = vst [vmem:[%s6873_s2 + $0x28] sm:$0xff] %v4414_v10   ;;  %v3507_v0 = vpop.f32.mrf.mxu0  ;;  %v3564_v38 = vadd.f32 %v3537_v51, %v3186_v61 }
 0x1f8   :  { %v3651_v49 = vadd.f32 %v3650_v41, %v3556_v42  ;;  %v3673_v58 = vmul.f32 %v3556_v42, %v3556_v42  ;;  %v3539_v22 = vpop.f32.mrf.mxu1  ;;  %v3678_v41 = vmul.f32 %v6796_v5, %v6796_v5 }
 0x1f9   :  { %v3508_v26 = vpop.f32.mrf.mxu0 }
 0x1fa   :  { %v3688_v39 = vadd.f32 %v3687_v19, %v3673_v58  ;;  %v3557_v24 = vadd.f32 %v3508_v26, %v3179_v44  ;;  %v3540_v27 = vpop.f32.mrf.mxu1 }
 0x1fb   :  { %v3565_v57 = vadd.f32 %v3540_v27, %v3187_v63  ;;  %v3510_v29 = vpop.f32.mrf.mxu0 }
 0x1fc   :  { %v4399_v50 = vpack.c.bf16 %v3557_v24, %v3556_v42  ;;  %v3652_v21 = vadd.f32 %v3651_v49, %v3557_v24  ;;  %v3674_v40 = vmul.f32 %v3557_v24, %v3557_v24  ;;  %v3542_v9 = vpop.f32.mrf.mxu1  ;;  %v3681_v42 = vmul.f32 %v3564_v38, %v3564_v38 }
 0x1fd   :  { %v4419_v35 = vpack.c.bf16 %v3565_v57, %v3564_v38  ;;  %v3513_v30 = vpop.f32.mrf.mxu0  ;;  %v3682_v0 = vmul.f32 %v3565_v57, %v3565_v57 }
 0x1fe   :  { %4427 = vst [vmem:[%s6873_s2 + $0x10] sm:$0xff] %v4399_v50   ;;  %v3689_v18 = vadd.f32 %v3688_v39, %v3674_v40  ;;  %v3558_v1 = vadd.f32 %v3513_v30, %v3180_v32  ;;  %v3545_v55 = vpop.f32.mrf.mxu1  ;;  %v3712_v50 = vlaneseq }
 0x1ff   :  { %4431 = vst [vmem:[%s6873_s2 + $0x30] sm:$0xff] %v4419_v35   ;;  %v3515_v53 = vpop.f32.mrf.mxu0  ;;  %v3566_v52 = vadd.f32 %v3545_v55, %v3188_v46 }
 0x200   :  { %v3653_v14 = vadd.f32 %v3652_v21, %v3558_v1  ;;  %v3675_v47 = vmul.f32 %v3558_v1, %v3558_v1  ;;  %v3547_v60 = vpop.f32.mrf.mxu1  ;;  %v3713_v7 = vshrl.u32 %v3712_v50, 7  ;;  %vm3726_vm7 = vcmp.lt.s32.totalorder %v3712_v50, 256 }
 0x201   :  { %v3516_v4 = vpop.f32.mrf.mxu0 }
 0x202   :  { %v3690_v59 = vadd.f32 %v3689_v18, %v3675_v47  ;;  %v3559_v17 = vadd.f32 %v3516_v4, %v3181_v16  ;;  %v3548_v45 = vpop.f32.mrf.mxu1 }
 0x203   :  { %v3567_v11 = vadd.f32 %v3548_v45, %v3189_v43  ;;  %v3518_v25 = vpop.f32.mrf.mxu0 }
 0x204   :  { %v4404_v15 = vpack.c.bf16 %v3559_v17, %v3558_v1  ;;  %v3654_v37 = vadd.f32 %v3653_v14, %v3559_v17  ;;  %v3676_v34 = vmul.f32 %v3559_v17, %v3559_v17  ;;  %v3550_v6 = vpop.f32.mrf.mxu1 }
 0x205   :  { %v4424_v62 = vpack.c.bf16 %v3567_v11, %v3566_v52  ;;  %v3684_v63 = vmul.f32 %v3567_v11, %v3567_v11 }
 0x206   :  { %4428 = vst [vmem:[%s6873_s2 + $0x18] sm:$0xff] %v4404_v15   ;;  %v3655_v48 = vadd.f32 %v3654_v37, %v6794_v56  ;;  %v3691_v28 = vadd.f32 %v3690_v59, %v3676_v34  ;;  %v3680_v56 = vmul.f32 %v6812_v3, %v6812_v3 }
 0x207   :  { %4432 = vst [vmem:[%s6873_s2 + $0x38] sm:$0xff] %v4424_v62  }
 0x208   :  { %v3656_v2 = vadd.f32 %v3655_v48, %v6796_v5  ;;  %v3692_v8 = vadd.f32 %v3691_v28, %v3677_v23  ;;  %v3683_v5 = vmul.f32 %v3566_v52, %v3566_v52 }
 0x20a   :  { %v3657_v36 = vadd.f32 %v3656_v2, %v6810_v31  ;;  %v3693_v10 = vadd.f32 %v3692_v8, %v3678_v41 }
 0x20c   :  { %v3694_v20 = vadd.f32 %v3693_v10, %v3679_v12  ;;  %v3658_v19 = vadd.f32 %v3657_v36, %v6812_v3  ;;  %v3710_v3 = vunpack.c.l.s4 %v4583_v33 }
 0x20e   :  { %v3659_v51 = vadd.f32 %v3658_v19, %v3564_v38  ;;  %v3695_v54 = vadd.f32 %v3694_v20, %v3680_v56  ;;  %v3711_v9 = vunpack.c.0.s8 %v3710_v3 }
 0x210   :  { %v3660_v44 = vadd.f32 %v3659_v51, %v3565_v57  ;;  %v3696_v49 = vadd.f32 %v3695_v54, %v3681_v42  ;;  %v3714_v18 = vsub.s32 %v3711_v9, %v3713_v7 }
 0x212   :  { %v3661_v58 = vadd.f32 %v3660_v44, %v3566_v52  ;;  %v3697_v22 = vadd.f32 %v3696_v49, %v3682_v0 }
 0x214   :  { %v3662_v61 = vadd.f32 %v3661_v58, %v3567_v11  ;;  %v3698_v26 = vadd.f32 %v3697_v22, %v3683_v5 }
 0x216   :  { %v3663_v31 = vrot.slane %v3662_v61, 4  ;;  %v3699_v39 = vadd.f32 %v3698_v26, %v3684_v63 }
 0x218   :  { %v3664_v24 = vadd.f32 %v3663_v31, %v3662_v61  ;;  %v3700_v27 = vrot.slane %v3699_v39, 4 }
 0x21a   :  { %v3665_v32 = vrot.slane %v3664_v24, 2  ;;  %v3701_v29 = vadd.f32 %v3700_v27, %v3699_v39 }
 0x21c   :  { %v3666_v38 = vadd.f32 %v3665_v32, %v3664_v24  ;;  %v3702_v21 = vrot.slane %v3701_v29, 2 }
 0x21e   :  { %v3667_v40 = vrot.slane %v3666_v38, 1  ;;  %v3703_v57 = vadd.f32 %v3702_v21, %v3701_v29 }
 0x220   :  { %v3704_v13 = vrot.slane %v3703_v57, 1  ;;  %v3668_v35 = vadd.f32 %v3667_v40, %v3666_v38 }
 0x222   :  { %v3705_v30 = vadd.f32 %v3704_v13, %v3703_v57 }
 0x224   :  { %v3708_v1 = vcombine.low %v3668_v35, %v3705_v30 }
 0x226   :  { %v3715_v55 = vrot.slane %v3708_v1, %v3714_v18 }
 0x228   :  { %v3722_v53 = vrot.slane %v3715_v55, %v3714_v18 }
 0x22a   :  { %3728 = vst.msk [vmem:[%s6874_s3] sm:$0x3] %vm3726_vm7, %v3722_v53 }

// kernel: tile.38
= control target key start
LH: loop header
LB: loop body
LE: loop exit
PB: predicated region body
PF: predicated region fallthrough
CT: control target
= control target key end

     0   :  { %s28_s0 = inlined_call_operand.vmem [shape: f32[8], index: 0, kind: input, shape index: {}]   ;;  %s29_s1 = inlined_call_operand.vmem [shape: f32[16,8], index: 1, kind: output, shape index: {}]  }
   0x1   :  { %v4_v0 = vld [vmem:[%s28_s0] ss:$0 sm:$0xff] }
   0x2   :  { %5 = vst [vmem:[%s29_s1] sm:$0xff] %v4_v0  ;;  %8 = vst [vmem:[%s29_s1 + $0x8] sm:$0xff] %v4_v0 }

// kernel: tile.39
= control target key start
LH: loop header
LB: loop body
LE: loop exit
PB: predicated region body
PF: predicated region fallthrough
CT: control target
= control target key end

     0   :  { %s133_s10 = smov 120   ;;  %s134_s11 = smov 104   ;;  %vm3_vm0 = vcmask 64512   ;;  %vm9_vm1 = vcmask 1048512   ;;  %vm15_vm2 = vcmask 982912   ;;  %vm21_vm3 = vcmask 917312   ;;  %s209_s0 = inlined_call_operand.vmem [shape: f32[16,8], index: 0, kind: input, shape index: {}]   ;;  %s210_s1 = inlined_call_operand.vmem [shape: f32[1,128], index: 1, kind: output, shape index: {}]  }
   0x1   :  { %v103_v0 = vld [vmem:[%s209_s0 + $0xf] sm:$0x1]   ;;  %v105_v1 = vld [vmem:[%s209_s0 + $0xd] sm:$0x1]   ;;  %v104_v2 = vld [vmem:[%s209_s0 + $0xe] sm:$0x1]  }
   0x2   :  { %7 = vrot.lane.b32.xlu0 %v103_v0, %s133_s10  ;;  %19 = vrot.lane.b32.xlu1 %v105_v1, %s134_s11  ;;  %v106_v3 = vld [vmem:[%s209_s0 + $0xc] sm:$0x1]   ;;  %s135_s16 = smov 112   ;;  %s136_s17 = smov 96   ;;  %v107_v4 = vld [vmem:[%s209_s0 + $0xb] sm:$0x1]  }
   0x3   :  { %v108_v5 = vld [vmem:[%s209_s0 + $0xa] sm:$0x1]   ;;  %v2_v6 = vld [vmem:[%s209_s0] sm:$0x1]   ;;  %s137_s24 = smov 88   ;;  %s138_s25 = smov 80  }
   0x4   :  { %4 = vst.msk [vmem:[#allocation0] sm:$0x1] %vm3_vm0, %v2_v6   ;;  %v109_v7 = vld [vmem:[%s209_s0 + $0x9] sm:$0x1]   ;;  %v110_v8 = vld [vmem:[%s209_s0 + $0x8] sm:$0x1]  }
   0x5   :  { %s139_s30 = smov 72   ;;  %s140_s2 = smov 64   ;;  %v111_v9 = vld [vmem:[%s209_s0 + $0x7] sm:$0x1]   ;;  %v112_v10 = vld [vmem:[%s209_s0 + $0x6] sm:$0x1]  }
   0x6   :  { %13 = vrot.lane.b32.xlu0 %v104_v2, %s135_s16  ;;  %25 = vrot.lane.b32.xlu1 %v106_v3, %s136_s17  ;;  %s141_s7 = smov 56   ;;  %s142_s8 = smov 48   ;;  %v113_v11 = vld [vmem:[%s209_s0 + $0x5] sm:$0x1]   ;;  %v114_v12 = vld [vmem:[%s209_s0 + $0x4] sm:$0x1]  }
   0x7   :  { %s143_s13 = smov 40   ;;  %s144_s14 = smov 32   ;;  %v115_v13 = vld [vmem:[%s209_s0 + $0x3] sm:$0x1]   ;;  %v116_v14 = vld [vmem:[%s209_s0 + $0x2] sm:$0x1]  }
   0x8   :  { %s145_s19 = smov 24   ;;  %s146_s20 = smov 16   ;;  %v117_v15 = vld [vmem:[%s209_s0 + $0x1] sm:$0x1]   ;;  %vm27_vm4 = vcmask 851712   ;;  %vm33_vm5 = vcmask 786112  }
   0x9   :  { %s147_s0 = smov 8   ;;  %vm39_vm6 = vcmask 720512   ;;  %vm45_vm7 = vcmask 654912   ;;  %vm51_vm8 = vcmask 589312   ;;  %vm57_vm9 = vcmask 523712  }
   0xa   :  { %31 = vrot.lane.b32.xlu0 %v107_v4, %s137_s24  ;;  %37 = vrot.lane.b32.xlu1 %v108_v5, %s138_s25  ;;  %vm63_vm10 = vcmask 458112   ;;  %vm69_vm11 = vcmask 392512   ;;  %vm75_vm12 = vcmask 326912   ;;  %vm81_vm13 = vcmask 261312  }
   0xb   :  { %vm87_vm14 = vcmask 195712   ;;  %vm93_vm15 = vcmask 130112  }
   0xe   :  { %43 = vrot.lane.b32.xlu0 %v109_v7, %s139_s30  ;;  %49 = vrot.lane.b32.xlu1 %v110_v8, %s140_s2 }
  0x12   :  { %55 = vrot.lane.b32.xlu0 %v111_v9, %s141_s7  ;;  %61 = vrot.lane.b32.xlu1 %v112_v10, %s142_s8 }
  0x16   :  { %67 = vrot.lane.b32.xlu0 %v113_v11, %s143_s13  ;;  %73 = vrot.lane.b32.xlu1 %v114_v12, %s144_s14 }
  0x1a   :  { %79 = vrot.lane.b32.xlu0 %v115_v13, %s145_s19  ;;  %85 = vrot.lane.b32.xlu1 %v116_v14, %s146_s20 }
  0x1e   :  { %91 = vrot.lane.b32.xlu0 %v117_v15, %s147_s0 }
  0x74   :  { %v8_v16 = vpop.permute.xlu0 %7   ;;  %v20_v17 = vpop.permute.xlu1 %19  }
  0x75   :  { %10 = vst.msk [vmem:[#allocation0] sm:$0x1] %vm9_vm1, %v8_v16  }
  0x78   :  { %v14_v18 = vpop.permute.xlu0 %13   ;;  %v26_v19 = vpop.permute.xlu1 %25  }
  0x79   :  { %16 = vst.msk [vmem:[#allocation0] sm:$0x1] %vm15_vm2, %v14_v18  }
  0x7a   :  { %22 = vst.msk [vmem:[#allocation0] sm:$0x1] %vm21_vm3, %v20_v17  }
  0x7b   :  { %28 = vst.msk [vmem:[#allocation0] sm:$0x1] %vm27_vm4, %v26_v19  }
  0x7c   :  { %v32_v20 = vpop.permute.xlu0 %31   ;;  %v38_v21 = vpop.permute.xlu1 %37  }
  0x7d   :  { %34 = vst.msk [vmem:[#allocation0] sm:$0x1] %vm33_vm5, %v32_v20  }
  0x7e   :  { %40 = vst.msk [vmem:[#allocation0] sm:$0x1] %vm39_vm6, %v38_v21  }
  0x80   :  { %v44_v22 = vpop.permute.xlu0 %43   ;;  %v50_v23 = vpop.permute.xlu1 %49  }
  0x81   :  { %46 = vst.msk [vmem:[#allocation0] sm:$0x1] %vm45_vm7, %v44_v22  }
  0x82   :  { %52 = vst.msk [vmem:[#allocation0] sm:$0x1] %vm51_vm8, %v50_v23  }
  0x84   :  { %v56_v24 = vpop.permute.xlu0 %55   ;;  %v62_v25 = vpop.permute.xlu1 %61  }
  0x85   :  { %58 = vst.msk [vmem:[#allocation0] sm:$0x1] %vm57_vm9, %v56_v24  }
  0x86   :  { %64 = vst.msk [vmem:[#allocation0] sm:$0x1] %vm63_vm10, %v62_v25  }
  0x88   :  { %v68_v26 = vpop.permute.xlu0 %67   ;;  %v74_v27 = vpop.permute.xlu1 %73  }
  0x89   :  { %70 = vst.msk [vmem:[#allocation0] sm:$0x1] %vm69_vm11, %v68_v26  }
  0x8a   :  { %76 = vst.msk [vmem:[#allocation0] sm:$0x1] %vm75_vm12, %v74_v27  }
  0x8c   :  { %v80_v28 = vpop.permute.xlu0 %79   ;;  %v86_v29 = vpop.permute.xlu1 %85  }
  0x8d   :  { %82 = vst.msk [vmem:[#allocation0] sm:$0x1] %vm81_vm13, %v80_v28  }
  0x8e   :  { %88 = vst.msk [vmem:[#allocation0] sm:$0x1] %vm87_vm14, %v86_v29  }
  0x90   :  { %v92_v30 = vpop.permute.xlu0 %91  }
  0x91   :  { %94 = vst.msk [vmem:[#allocation0] sm:$0x1] %vm93_vm15, %v92_v30  }
  0x98   :  { %v99_v31 = vld [vmem:[#allocation0] sm:$0x1] }
  0x99   :  { %102 = vst [vmem:[%s210_s1] sm:$0x1] %v99_v31 }

// kernel: double_conv3d.5
= control target key start
LH: loop header
LB: loop body
LE: loop exit
PB: predicated region body
PF: predicated region fallthrough
CT: control target
= control target key end

     0   :  { %s525_s0 = inlined_call_operand.vmem [shape: bf16[128,128], index: 0, kind: input, shape index: {}]   ;;  %s526_s1 = inlined_call_operand.vmem [shape: f32[1,128], index: 1, kind: input, shape index: {}]   ;;  %s527_s2 = inlined_call_operand.vmem [shape: f32[1,128], index: 2, kind: input, shape index: {}]   ;;  %s528_s3 = inlined_call_operand.vmem [shape: f32[128,128], index: 3, kind: output, shape index: {}]  }
   0x1   :  { %v227_v0 = vld [vmem:[%s525_s0] sm:$0xff]   ;;  %v258_v4 = vld [vmem:[%s525_s0 + $0x8] sm:$0xff]   ;;  %v259_v5 = vld [vmem:[%s525_s0 + $0x10] sm:$0xff]  }
   0x2   :  { %v323_v1 = vld [vmem:[%s526_s1] ss:$0 sm:$0xff]  ;;  %v228_v2 = vunpack.c.l.bf16 %v227_v0  ;;  %v229_v3 = vunpack.c.h.bf16 %v227_v0  ;;  %v260_v6 = vld [vmem:[%s525_s0 + $0x18] sm:$0xff]   ;;  %v232_v8 = vunpack.c.l.bf16 %v258_v4  ;;  %v233_v9 = vunpack.c.h.bf16 %v258_v4  ;;  %v262_v45 = vld [vmem:[%s525_s0 + $0x28] sm:$0xff]  }
   0x3   :  { %v337_v7 = vld [vmem:[%s527_s2] ss:$0 sm:$0xff]  ;;  %v236_v10 = vunpack.c.l.bf16 %v259_v5  ;;  %v237_v11 = vunpack.c.h.bf16 %v259_v5  ;;  %v240_v14 = vunpack.c.l.bf16 %v260_v6  ;;  %v241_v15 = vunpack.c.h.bf16 %v260_v6  ;;  %v263_v50 = vld [vmem:[%s525_s0 + $0x30] sm:$0xff]   ;;  %v264_v60 = vld [vmem:[%s525_s0 + $0x38] sm:$0xff]  }
   0x4   :  { %v53_v12 = vmul.f32 %v228_v2, %v323_v1  ;;  %v54_v13 = vmul.f32 %v229_v3, %v323_v1  ;;  %v55_v16 = vmul.f32 %v232_v8, %v323_v1  ;;  %v56_v17 = vmul.f32 %v233_v9, %v323_v1  ;;  %v261_v35 = vld [vmem:[%s525_s0 + $0x20] sm:$0xff]  }
   0x5   :  { %v57_v18 = vmul.f32 %v236_v10, %v323_v1  ;;  %v58_v19 = vmul.f32 %v237_v11, %v323_v1  ;;  %v59_v28 = vmul.f32 %v240_v14, %v323_v1  ;;  %v60_v29 = vmul.f32 %v241_v15, %v323_v1 }
   0x6   :  { %v346_v20 = vadd.f32 %v337_v7, %v53_v12  ;;  %v349_v21 = vadd.f32 %v337_v7, %v54_v13  ;;  %v352_v22 = vadd.f32 %v337_v7, %v55_v16  ;;  %v355_v23 = vadd.f32 %v337_v7, %v56_v17 }
   0x7   :  { %v358_v24 = vadd.f32 %v337_v7, %v57_v18  ;;  %v361_v25 = vadd.f32 %v337_v7, %v58_v19  ;;  %v375_v40 = vadd.f32 %v337_v7, %v59_v28  ;;  %v378_v41 = vadd.f32 %v337_v7, %v60_v29 }
   0x8   :  { %v108_v26 = vmin.f32 %v346_v20, 0.0  ;;  %v109_v27 = vmin.f32 %v349_v21, 0.0  ;;  %v110_v30 = vmin.f32 %v352_v22, 0.0  ;;  %v111_v31 = vmin.f32 %v355_v23, 0.0 }
   0x9   :  { %v112_v34 = vmin.f32 %v358_v24, 0.0  ;;  %v113_v38 = vmin.f32 %v361_v25, 0.0  ;;  %v244_v43 = vunpack.c.l.bf16 %v261_v35  ;;  %v245_v44 = vunpack.c.h.bf16 %v261_v35 }
   0xa   :  { %v124_v32 = vmul.f32 1.442695, %v108_v26  ;;  %v126_v33 = vmul.f32 1.442695, %v109_v27  ;;  %v128_v36 = vmul.f32 1.442695, %v110_v30  ;;  %v248_v52 = vunpack.c.l.bf16 %v262_v45 }
   0xb   :  { %v130_v37 = vmul.f32 1.442695, %v111_v31  ;;  %v132_v39 = vmul.f32 1.442695, %v112_v34  ;;  %v134_v42 = vmul.f32 1.442695, %v113_v38  ;;  %v61_v48 = vmul.f32 %v244_v43, %v323_v1 }
   0xc   :  { %265 = vpow2.f32 %v124_v32  ;;  %v114_v46 = vmin.f32 %v375_v40, 0.0  ;;  %v115_v47 = vmin.f32 %v378_v41, 0.0  ;;  %v62_v49 = vmul.f32 %v245_v44, %v323_v1 }
   0xd   :  { %267 = vpow2.f32 %v126_v33  ;;  %v249_v53 = vunpack.c.h.bf16 %v262_v45  ;;  %v391_v55 = vadd.f32 %v337_v7, %v61_v48  ;;  %v63_v57 = vmul.f32 %v248_v52, %v323_v1 }
   0xe   :  { %269 = vpow2.f32 %v128_v36  ;;  %v136_v51 = vmul.f32 1.442695, %v114_v46  ;;  %v138_v54 = vmul.f32 1.442695, %v115_v47  ;;  %v394_v56 = vadd.f32 %v337_v7, %v62_v49 }
   0xf   :  { %271 = vpow2.f32 %v130_v37  ;;  %v64_v58 = vmul.f32 %v249_v53, %v323_v1  ;;  %v252_v59 = vunpack.c.l.bf16 %v263_v50  ;;  %vm92_vm0 = vcmp.gt.f32.partialorder %v346_v20, 0.0 }
  0x10   :  { %273 = vpow2.f32 %v132_v39  ;;  %v116_v61 = vmin.f32 %v391_v55, 0.0  ;;  %v117_v62 = vmin.f32 %v394_v56, 0.0  ;;  %v405_v63 = vadd.f32 %v337_v7, %v63_v57 }
  0x11   :  { %275 = vpow2.f32 %v134_v42  ;;  %v408_v0 = vadd.f32 %v337_v7, %v64_v58  ;;  %v65_v2 = vmul.f32 %v252_v59, %v323_v1  ;;  %v253_v4 = vunpack.c.h.bf16 %v263_v50 }
  0x12   :  { %277 = vpow2.f32 %v136_v51  ;;  %v140_v3 = vmul.f32 1.442695, %v116_v61  ;;  %v256_v5 = vunpack.c.l.bf16 %v264_v60  ;;  %v257_v6 = vunpack.c.h.bf16 %v264_v60 }
  0x13   :  { %279 = vpow2.f32 %v138_v54  ;;  %vm93_vm1 = vcmp.gt.f32.partialorder %v349_v21, 0.0  ;;  %vm94_vm2 = vcmp.gt.f32.partialorder %v352_v22, 0.0  ;;  %v142_v8 = vmul.f32 1.442695, %v117_v62 }
  0x14   :  { %v118_v9 = vmin.f32 %v405_v63, 0.0  ;;  %281 = vpow2.f32 %v140_v3  ;;  %v119_v10 = vmin.f32 %v408_v0, 0.0  ;;  %v416_v11 = vadd.f32 %v337_v7, %v65_v2 }
  0x15   :  { %v66_v12 = vmul.f32 %v253_v4, %v323_v1  ;;  %283 = vpow2.f32 %v142_v8  ;;  %v67_v14 = vmul.f32 %v256_v5, %v323_v1  ;;  %v68_v15 = vmul.f32 %v257_v6, %v323_v1 }
  0x16   :  { %v144_v13 = vmul.f32 1.442695, %v118_v9  ;;  %vm95_vm3 = vcmp.gt.f32.partialorder %v355_v23, 0.0  ;;  %v146_v17 = vmul.f32 1.442695, %v119_v10  ;;  %v120_v18 = vmin.f32 %v416_v11, 0.0 }
  0x17   :  { %v424_v19 = vadd.f32 %v337_v7, %v66_v12  ;;  %vm96_vm4 = vcmp.gt.f32.partialorder %v358_v24, 0.0  ;;  %v428_v28 = vadd.f32 %v337_v7, %v67_v14  ;;  %v431_v31 = vadd.f32 %v337_v7, %v68_v15 }
  0x18   :  { %285 = vpow2.f32 %v144_v13  ;;  %v148_v1 = vmul.f32 1.442695, %v120_v18  ;;  %vm97_vm5 = vcmp.gt.f32.partialorder %v361_v25, 0.0  ;;  %vm98_vm6 = vcmp.gt.f32.partialorder %v375_v40, 0.0 }
  0x19   :  { %v266_v16 = vpop.eup %265  ;;  %287 = vpow2.f32 %v146_v17  ;;  %v121_v35 = vmin.f32 %v424_v19, 0.0  ;;  %v122_v38 = vmin.f32 %v428_v28, 0.0  ;;  %v123_v47 = vmin.f32 %v431_v31, 0.0 }
  0x1a   :  { %v268_v26 = vpop.eup %267  ;;  %v210_v27 = vadd.f32 -1.0, %v266_v16  ;;  %289 = vpow2.f32 %v148_v1  ;;  %vm99_vm7 = vcmp.gt.f32.partialorder %v378_v41, 0.0  ;;  %vm100_vm8 = vcmp.gt.f32.partialorder %v391_v55, 0.0 }
  0x1b   :  { %v270_v29 = vpop.eup %269  ;;  %v211_v30 = vadd.f32 -1.0, %v268_v26  ;;  %v150_v43 = vmul.f32 1.442695, %v121_v35  ;;  %v152_v46 = vmul.f32 1.442695, %v122_v38  ;;  %vm101_vm9 = vcmp.gt.f32.partialorder %v394_v56, 0.0 }
  0x1c   :  { %v272_v32 = vpop.eup %271  ;;  %v172_v33 = vsel %vm92_vm0, %v346_v20, %v210_v27  ;;  %v212_v34 = vadd.f32 -1.0, %v270_v29  ;;  %v154_v51 = vmul.f32 1.442695, %v123_v47  ;;  %vm102_vm10 = vcmp.gt.f32.partialorder %v405_v63, 0.0 }
  0x1d   :  { %v274_v36 = vpop.eup %273  ;;  %188 = vst [vmem:[%s528_s3] sm:$0xff] %v172_v33  ;;  %v173_v7 = vsel %vm93_vm1, %v349_v21, %v211_v30  ;;  %v213_v37 = vadd.f32 -1.0, %v272_v32  ;;  %291 = vpow2.f32 %v150_v43  ;;  %vm103_vm11 = vcmp.gt.f32.partialorder %v408_v0, 0.0 }
  0x1e   :  { %v276_v39 = vpop.eup %275  ;;  %189 = vst [vmem:[%s528_s3 + $0x8] sm:$0xff] %v173_v7  ;;  %v174_v20 = vsel %vm94_vm2, %v352_v22, %v212_v34  ;;  %v214_v42 = vadd.f32 -1.0, %v274_v36  ;;  %293 = vpow2.f32 %v152_v46  ;;  %vm104_vm12 = vcmp.gt.f32.partialorder %v416_v11, 0.0 }
  0x1f   :  { %v278_v44 = vpop.eup %277  ;;  %190 = vst [vmem:[%s528_s3 + $0x10] sm:$0xff] %v174_v20  ;;  %v175_v21 = vsel %vm95_vm3, %v355_v23, %v213_v37  ;;  %v215_v45 = vadd.f32 -1.0, %v276_v39  ;;  %295 = vpow2.f32 %v154_v51  ;;  %vm105_vm13 = vcmp.gt.f32.partialorder %v424_v19, 0.0 }
  0x20   :  { %v280_v48 = vpop.eup %279  ;;  %191 = vst [vmem:[%s528_s3 + $0x18] sm:$0xff] %v175_v21  ;;  %v176_v22 = vsel %vm96_vm4, %v358_v24, %v214_v42  ;;  %v216_v49 = vadd.f32 -1.0, %v278_v44  ;;  %vm106_vm14 = vcmp.gt.f32.partialorder %v428_v28, 0.0  ;;  %vm107_vm15 = vcmp.gt.f32.partialorder %v431_v31, 0.0 }
  0x21   :  { %192 = vst [vmem:[%s528_s3 + $0x20] sm:$0xff] %v176_v22  ;;  %v177_v23 = vsel %vm97_vm5, %v361_v25, %v215_v45  ;;  %v217_v50 = vadd.f32 -1.0, %v280_v48  ;;  %v282_v53 = vpop.eup %281 }
  0x22   :  { %193 = vst [vmem:[%s528_s3 + $0x28] sm:$0xff] %v177_v23  ;;  %v178_v24 = vsel %vm98_vm6, %v375_v40, %v216_v49  ;;  %v284_v25 = vpop.eup %283  ;;  %v218_v54 = vadd.f32 -1.0, %v282_v53 }
  0x23   :  { %194 = vst [vmem:[%s528_s3 + $0x30] sm:$0xff] %v178_v24  ;;  %v179_v52 = vsel %vm99_vm7, %v378_v41, %v217_v50  ;;  %v219_v57 = vadd.f32 -1.0, %v284_v25 }
  0x24   :  { %195 = vst [vmem:[%s528_s3 + $0x38] sm:$0xff] %v179_v52  ;;  %v180_v58 = vsel %vm100_vm8, %v391_v55, %v218_v54 }
  0x25   :  { %v286_v40 = vpop.eup %285  ;;  %196 = vst [vmem:[%s528_s3 + $0x40] sm:$0xff] %v180_v58  ;;  %v181_v41 = vsel %vm101_vm9, %v394_v56, %v219_v57 }
  0x26   :  { %v288_v59 = vpop.eup %287  ;;  %v220_v60 = vadd.f32 -1.0, %v286_v40  ;;  %197 = vst [vmem:[%s528_s3 + $0x48] sm:$0xff] %v181_v41 }
  0x27   :  { %v221_v61 = vadd.f32 -1.0, %v288_v59  ;;  %v290_v62 = vpop.eup %289 }
  0x28   :  { %v182_v55 = vsel %vm102_vm10, %v405_v63, %v220_v60  ;;  %v222_v56 = vadd.f32 -1.0, %v290_v62 }
  0x29   :  { %198 = vst [vmem:[%s528_s3 + $0x50] sm:$0xff] %v182_v55  ;;  %v183_v2 = vsel %vm103_vm11, %v408_v0, %v221_v61 }
  0x2a   :  { %199 = vst [vmem:[%s528_s3 + $0x58] sm:$0xff] %v183_v2  ;;  %v292_v3 = vpop.eup %291  ;;  %v184_v4 = vsel %vm104_vm12, %v416_v11, %v222_v56 }
  0x2b   :  { %v294_v5 = vpop.eup %293  ;;  %200 = vst [vmem:[%s528_s3 + $0x60] sm:$0xff] %v184_v4  ;;  %v223_v63 = vadd.f32 -1.0, %v292_v3 }
  0x2c   :  { %v224_v6 = vadd.f32 -1.0, %v294_v5  ;;  %v296_v0 = vpop.eup %295 }
  0x2d   :  { %v185_v8 = vsel %vm105_vm13, %v424_v19, %v223_v63  ;;  %v225_v10 = vadd.f32 -1.0, %v296_v0 }
  0x2e   :  { %201 = vst [vmem:[%s528_s3 + $0x68] sm:$0xff] %v185_v8  ;;  %v186_v9 = vsel %vm106_vm14, %v428_v28, %v224_v6 }
  0x2f   :  { %202 = vst [vmem:[%s528_s3 + $0x70] sm:$0xff] %v186_v9  ;;  %v187_v11 = vsel %vm107_vm15, %v431_v31, %v225_v10 }
  0x30   :  { %203 = vst [vmem:[%s528_s3 + $0x78] sm:$0xff] %v187_v11 }

// kernel: double_conv3d.4
= control target key start
LH: loop header
LB: loop body
LE: loop exit
PB: predicated region body
PF: predicated region fallthrough
CT: control target
= control target key end

     0   :  { %v8854_v0 = vmov 0   ;;  %v8850_v5 = vlaneseq  ;;  %vm1048_vm0 = vcmask 1043456   ;;  %vm1049_vm1 = vcmask 130052   ;;  %s8844_s1 = inlined_call_operand.vmem [shape: bf16[9,144,128], index: 1, kind: input, shape index: {}]   ;;  %s8845_s0 = inlined_call_operand.vmem [shape: bf16[2,10,10,144], index: 0, kind: input, shape index: {}]   ;;  %s8846_s2 = inlined_call_operand.vmem [shape: f32[1,1,1,144], index: 2, kind: input, shape index: {}]   ;;  %s8847_s3 = inlined_call_operand.vmem [shape: f32[1,1,1,144], index: 3, kind: input, shape index: {}]   ;;  %s8848_s4 = inlined_call_operand.vmem [shape: bf16[128,128], index: 4, kind: output, shape index: {0}]   ;;  %s8849_s5 = inlined_call_operand.vmem [shape: f32[1,256], index: 5, kind: output, shape index: {1}]  }
   0x1   :  { %1772 = vmatprep.subr.bf16.mxu1 %v8854_v0  ;;  %v5565_v1 = vld [vmem:[%s8844_s1 + $0x38] sm:$0xff]   ;;  %1525 = vmatprep.subr.bf16.mxu0 %v8854_v0  ;;  %v5566_v2 = vld [vmem:[%s8844_s1 + $0x30] sm:$0xff]   ;;  %v5567_v3 = vld [vmem:[%s8844_s1 + $0x80] sm:$0xff]   ;;  %vm1052_vm11 = vcmask 1040384   ;;  %vm1053_vm12 = vcmask 126980   ;;  %vm1500_vm13 = vcmask 130048  }
   0x2   :  { %1773 = vmatpush1.bf16.msra.mxu1 %v5565_v1  ;;  %1526 = vmatpush1.bf16.msra.mxu0 %v5567_v3  ;;  %v5569_v4 = vld [vmem:[%s8844_s1 + $0x78] sm:$0xff]   ;;  %v5568_v6 = vld [vmem:[%s8844_s1 + $0x28] sm:$0xff]   ;;  %v5571_v7 = vld [vmem:[%s8844_s1 + $0x70] sm:$0xff]   ;;  %v5900_v8 = vshrl.u32 %v8850_v5, 7 }
   0x3   :  { %1774 = vmatprep.subr.bf16.mxu1 %v8854_v0  ;;  %1527 = vmatprep.subr.bf16.mxu0 %v8854_v0  ;;  %v5570_v9 = vld [vmem:[%s8844_s1 + $0x20] sm:$0xff]   ;;  %v5573_v10 = vld [vmem:[%s8844_s1 + $0x68] sm:$0xff]   ;;  %v5572_v12 = vld [vmem:[%s8844_s1 + $0x18] sm:$0xff]  }
   0x4   :  { %8879 = vst [vmem:[#allocation3_spill] sm:$0xff] %v5900_v8  ;;  %v148_v11 = vsub.s32 0, %v5900_v8  ;;  %v152_v13 = vsub.s32 1, %v5900_v8  ;;  %v5575_v14 = vld [vmem:[%s8844_s1 + $0x60] sm:$0xff]   ;;  %v26_v16 = vld [vmem:[%s8845_s0 + $0x10] sm:$0xff]  ;;  %v5577_v29 = vld [vmem:[%s8844_s1 + $0x58] sm:$0xff]  }
   0x5   :  { %v24_v15 = vld [vmem:[%s8845_s0] sm:$0xff]  ;;  %v68_v20 = vunpack.c.l.bf16 %v26_v16  ;;  %v69_v21 = vunpack.c.h.bf16 %v26_v16  ;;  %v5574_v23 = vld [vmem:[%s8844_s1 + $0x10] sm:$0xff]   ;;  %v5576_v39 = vld [vmem:[%s8844_s1 + $0x8] sm:$0xff]  }
   0x6   :  { %1775 = vmatpush1.bf16.msra.mxu1 %v5566_v2  ;;  %1528 = vmatpush1.bf16.msra.mxu0 %v5569_v4  ;;  %v144_v17 = vld [vmem:[%s8846_s2] sm:$0x3]  ;;  %v64_v18 = vunpack.c.l.bf16 %v24_v15  ;;  %v65_v19 = vunpack.c.h.bf16 %v24_v15  ;;  %v30_v34 = vld [vmem:[%s8845_s0 + $0x30] sm:$0xff]  ;;  %v25_v58 = vld [vmem:[%s8845_s0 + $0x8] sm:$0x11] }
   0x7   :  { %1776 = vmatprep.subr.bf16.mxu1 %v8854_v0  ;;  %1529 = vmatprep.subr.bf16.mxu0 %v8854_v0  ;;  %v236_v22 = vld [vmem:[%s8847_s3] sm:$0x3]  ;;  %v5935_v24 = vrot.slane %v144_v17, %v148_v11  ;;  %v5937_v25 = vrot.slane %v144_v17, %v152_v13  ;;  %v76_v37 = vunpack.c.l.bf16 %v30_v34  ;;  %v77_v38 = vunpack.c.h.bf16 %v30_v34  ;;  %v5579_v48 = vld [vmem:[%s8844_s1 + $0x50] sm:$0xff]   ;;  %v5583_v63 = vld [vmem:[%s8844_s1 + $0x48] sm:$0xff]  }
   0x8   :  { %v5939_v26 = vrot.slane %v236_v22, %v148_v11  ;;  %v5941_v27 = vrot.slane %v236_v22, %v152_v13  ;;  %v28_v28 = vld [vmem:[%s8845_s0 + $0x20] sm:$0xff]  ;;  %v27_v1 = vld [vmem:[%s8845_s0 + $0x18] sm:$0x11]  ;;  %v67_v11 = vunpack.c.h.bf16 %v25_v58  ;;  %v34_v22 = vld [vmem:[%s8845_s0 + $0x50] sm:$0xff] }
   0x9   :  { %v156_v30 = vmul.f32 %v5935_v24, %v64_v18  ;;  %v157_v31 = vmul.f32 %v5937_v25, %v65_v19  ;;  %v160_v32 = vmul.f32 %v5935_v24, %v68_v20  ;;  %v161_v33 = vmul.f32 %v5937_v25, %v69_v21  ;;  %v5578_v53 = vld [vmem:[%s8844_s1] sm:$0xff]   ;;  %vm6093_vm10 = vmor %vm1049_vm1, %vm1048_vm0 }
   0xa   :  { %1777 = vmatpush1.bf16.msra.mxu1 %v5568_v6  ;;  %1530 = vmatpush1.bf16.msra.mxu0 %v5571_v7  ;;  %v72_v35 = vunpack.c.l.bf16 %v28_v28  ;;  %v73_v36 = vunpack.c.h.bf16 %v28_v28  ;;  %v168_v46 = vmul.f32 %v5935_v24, %v76_v37  ;;  %v169_v47 = vmul.f32 %v5937_v25, %v77_v38  ;;  %v5580_v2 = vld [vmem:[%s8844_s1 + $0x40] sm:$0xff]   ;;  %v5584_v7 = vld [vmem:[%s8844_s1 + $0x88] sm:$0xff]  }
   0xb   :  { %1778 = vmatprep.subr.bf16.mxu1 %v8854_v0  ;;  %1531 = vmatprep.subr.bf16.mxu0 %v8854_v0  ;;  %v5962_v40 = vadd.f32 %v5939_v26, %v156_v30  ;;  %v5965_v41 = vadd.f32 %v5941_v27, %v157_v31  ;;  %v5968_v42 = vadd.f32 %v5939_v26, %v160_v32  ;;  %v66_v6 = vunpack.c.l.bf16 %v25_v58  ;;  %v6070_v58 = vld [vmem:[%s8845_s0 + $0x28] sm:$0x11] }
   0xc   :  { %v5971_v43 = vadd.f32 %v5941_v27, %v161_v33  ;;  %v164_v44 = vmul.f32 %v5935_v24, %v72_v35  ;;  %v165_v45 = vmul.f32 %v5937_v25, %v73_v36  ;;  %v5996_v56 = vadd.f32 %v5939_v26, %v168_v46 }
   0xd   :  { %v408_v49 = vmin.f32 %v5962_v40, 0.0  ;;  %v409_v50 = vmin.f32 %v5965_v41, 0.0  ;;  %v412_v51 = vmin.f32 %v5968_v42, 0.0  ;;  %v5999_v57 = vadd.f32 %v5941_v27, %v169_v47 }
   0xe   :  { %1779 = vmatpush1.bf16.msra.mxu1 %v5570_v9  ;;  %1532 = vmatpush1.bf16.msra.mxu0 %v5573_v10  ;;  %v413_v52 = vmin.f32 %v5971_v43, 0.0  ;;  %v5990_v54 = vadd.f32 %v5939_v26, %v164_v44  ;;  %v5993_v55 = vadd.f32 %v5941_v27, %v165_v45  ;;  %v420_v9 = vmin.f32 %v5996_v56, 0.0 }
   0xf   :  { %1780 = vmatprep.subr.bf16.mxu1 %v8854_v0  ;;  %1533 = vmatprep.subr.bf16.mxu0 %v8854_v0  ;;  %v488_v59 = vmul.f32 1.442695, %v408_v49  ;;  %v490_v60 = vmul.f32 1.442695, %v409_v50  ;;  %v496_v61 = vmul.f32 1.442695, %v412_v51  ;;  %v70_v15 = vunpack.c.l.bf16 %v27_v1 }
  0x10   :  { %v498_v62 = vmul.f32 1.442695, %v413_v52  ;;  %v416_v3 = vmin.f32 %v5990_v54, 0.0  ;;  %v417_v4 = vmin.f32 %v5993_v55, 0.0  ;;  %v421_v10 = vmin.f32 %v5999_v57, 0.0 }
  0x11   :  { %5675 = vpow2.f32 %v488_v59  ;;  %v512_v16 = vmul.f32 1.442695, %v420_v9  ;;  %v71_v18 = vunpack.c.h.bf16 %v27_v1  ;;  %v158_v19 = vmul.f32 %v5935_v24, %v66_v6 }
  0x12   :  { %1781 = vmatpush1.bf16.msra.mxu1 %v5572_v12  ;;  %1534 = vmatpush1.bf16.msra.mxu0 %v5575_v14  ;;  %5677 = vpow2.f32 %v490_v60  ;;  %v32_v12 = vld [vmem:[%s8845_s0 + $0x40] sm:$0xff]  ;;  %v504_v13 = vmul.f32 1.442695, %v416_v3  ;;  %v506_v14 = vmul.f32 1.442695, %v417_v4  ;;  %v159_v20 = vmul.f32 %v5937_v25, %v67_v11 }
  0x13   :  { %1782 = vmatprep.subr.bf16.mxu1 %v8854_v0  ;;  %1535 = vmatprep.subr.bf16.mxu0 %v8854_v0  ;;  %5679 = vpow2.f32 %v496_v61  ;;  %v514_v17 = vmul.f32 1.442695, %v421_v10  ;;  %v162_v21 = vmul.f32 %v5935_v24, %v70_v15  ;;  %v80_v28 = vunpack.c.l.bf16 %v32_v12 }
  0x14   :  { %5681 = vpow2.f32 %v498_v62  ;;  %v6035_v30 = vadd.f32 %v5939_v26, %v158_v19  ;;  %v6038_v31 = vadd.f32 %v5941_v27, %v159_v20  ;;  %v84_v34 = vunpack.c.l.bf16 %v34_v22 }
  0x15   :  { %5683 = vpow2.f32 %v504_v13  ;;  %v6041_v32 = vadd.f32 %v5939_v26, %v162_v21  ;;  %v85_v35 = vunpack.c.h.bf16 %v34_v22  ;;  %vm328_vm2 = vcmp.gt.f32.partialorder %v5962_v40, 0.0 }
  0x16   :  { %1783 = vmatpush1.bf16.msra.mxu1 %v5574_v23  ;;  %1536 = vmatpush1.bf16.msra.mxu0 %v5577_v29  ;;  %5685 = vpow2.f32 %v506_v14  ;;  %v163_v23 = vmul.f32 %v5937_v25, %v71_v18  ;;  %v81_v29 = vunpack.c.h.bf16 %v32_v12  ;;  %vm329_vm3 = vcmp.gt.f32.partialorder %v5965_v41, 0.0 }
  0x17   :  { %1784 = vmatprep.subr.bf16.mxu1 %v8854_v0  ;;  %1537 = vmatprep.subr.bf16.mxu0 %v8854_v0  ;;  %5687 = vpow2.f32 %v512_v16  ;;  %vm332_vm4 = vcmp.gt.f32.partialorder %v5968_v42, 0.0  ;;  %v410_v36 = vmin.f32 %v6035_v30, 0.0  ;;  %vm333_vm5 = vcmp.gt.f32.partialorder %v5971_v43, 0.0 }
  0x18   :  { %5689 = vpow2.f32 %v514_v17  ;;  %v6045_v33 = vadd.f32 %v5941_v27, %v163_v23  ;;  %v411_v37 = vmin.f32 %v6038_v31, 0.0  ;;  %v414_v38 = vmin.f32 %v6041_v32, 0.0 }
  0x19   :  { %v492_v44 = vmul.f32 1.442695, %v410_v36  ;;  %v172_v45 = vmul.f32 %v5935_v24, %v80_v28  ;;  %v173_v46 = vmul.f32 %v5937_v25, %v81_v29  ;;  %v176_v47 = vmul.f32 %v5935_v24, %v84_v34 }
  0x1a   :  { %1785 = vmatpush1.bf16.msra.mxu1 %v5576_v39  ;;  %1538 = vmatpush1.bf16.msra.mxu0 %v5579_v48  ;;  %v415_v39 = vmin.f32 %v6045_v33, 0.0  ;;  %v494_v48 = vmul.f32 1.442695, %v411_v37  ;;  %v500_v49 = vmul.f32 1.442695, %v414_v38  ;;  %v177_v51 = vmul.f32 %v5937_v25, %v85_v35 }
  0x1b   :  { %1786 = vmatprep.subr.bf16.mxu1 %v8854_v0  ;;  %1539 = vmatprep.subr.bf16.mxu0 %v8854_v0  ;;  %vm336_vm6 = vcmp.gt.f32.partialorder %v5990_v54, 0.0  ;;  %5691 = vpow2.f32 %v492_v44  ;;  %v6062_v52 = vadd.f32 %v5939_v26, %v172_v45  ;;  %vm337_vm7 = vcmp.gt.f32.partialorder %v5993_v55, 0.0 }
  0x1c   :  { %v502_v50 = vmul.f32 1.442695, %v415_v39  ;;  %5693 = vpow2.f32 %v494_v48  ;;  %v6074_v60 = vadd.f32 %v5939_v26, %v176_v47  ;;  %v6077_v61 = vadd.f32 %v5941_v27, %v177_v51 }
  0x1d   :  { %vm340_vm8 = vcmp.gt.f32.partialorder %v5996_v56, 0.0  ;;  %vm341_vm9 = vcmp.gt.f32.partialorder %v5999_v57, 0.0  ;;  %5695 = vpow2.f32 %v500_v49  ;;  %v74_v3 = vunpack.c.l.bf16 %v6070_v58 }
  0x1e   :  { %1787 = vmatpush1.bf16.msra.mxu1 %v5578_v53  ;;  %1540 = vmatpush1.bf16.msra.mxu0 %v5583_v63  ;;  %v6065_v53 = vadd.f32 %v5941_v27, %v173_v46  ;;  %v5676_v59 = vpop.eup %5675  ;;  %5697 = vpow2.f32 %v502_v50  ;;  %v75_v4 = vunpack.c.h.bf16 %v6070_v58  ;;  %v424_v10 = vmin.f32 %v6062_v52, 0.0 }
  0x1f   :  { %1802 = vmatprep.subr.bf16.mxu1 %v8854_v0  ;;  %1555 = vmatprep.subr.bf16.mxu0 %v8854_v0  ;;  %v5678_v62 = vpop.eup %5677  ;;  %v4817_v63 = vadd.f32 -1.0, %v5676_v59  ;;  %v8880_v15 = vmov 0  ;;  %v428_v16 = vmin.f32 %v6074_v60, 0.0  ;;  %vm330_vm14 = vcmp.gt.f32.partialorder %v6035_v30, 0.0 }
  0x20   :  { %v5680_v1 = vpop.eup %5679  ;;  %v425_v11 = vmin.f32 %v6065_v53, 0.0  ;;  %v8881_v15 = vsel %vm6093_vm10, 4294967295, %v8880_v15  ;;  %v520_v21 = vmul.f32 1.442695, %v424_v10  ;;  %vm331_vm15 = vcmp.gt.f32.partialorder %v6038_v31, 0.0  ;;  %v6152_v10 = vld [vmem:[%s8845_s0 + $0x70] sm:$0xff] }
  0x21   :  { %v5682_v6 = vpop.eup %5681  ;;  %v728_v9 = vsel %vm328_vm2, %v5962_v40, %v4817_v63  ;;  %8882 = vst [vmem:[#allocation4_spill] sm:$0xff] %v8881_v15  ;;  %v429_v40 = vmin.f32 %v6077_v61, 0.0  ;;  %v528_v29 = vmul.f32 1.442695, %v428_v16  ;;  %vm334_vm0 = vcmp.gt.f32.partialorder %v6041_v32, 0.0 }
  0x22   :  { %1803 = vmatpush2.bf16.msra.mxu1 %v5580_v2  ;;  %1556 = vmatpush2.bf16.msra.mxu0 %v5584_v7  ;;  %v4818_v2 = vadd.f32 -1.0, %v5678_v62  ;;  %v4821_v7 = vadd.f32 -1.0, %v5680_v1  ;;  %v5684_v12 = vpop.eup %5683  ;;  %v4822_v13 = vadd.f32 -1.0, %v5682_v6  ;;  %v522_v28 = vmul.f32 1.442695, %v425_v11 }
  0x23   :  { %2436 = vmatprep.subr.bf16.mxu1 %v8854_v0  ;;  %2137 = vmatprep.subr.bf16.mxu0 %v8854_v0  ;;  %v5686_v17 = vpop.eup %5685  ;;  %v4825_v20 = vadd.f32 -1.0, %v5684_v12  ;;  %5699 = vpow2.f32 %v520_v21  ;;  %v530_v39 = vmul.f32 1.442695, %v429_v40  ;;  %vm335_vm1 = vcmp.gt.f32.partialorder %v6045_v33, 0.0 }
  0x24   :  { %v729_v14 = vsel %vm329_vm3, %v5965_v41, %v4818_v2  ;;  %v732_v18 = vsel %vm332_vm4, %v5968_v42, %v4821_v7  ;;  %v5688_v22 = vpop.eup %5687  ;;  %v733_v41 = vsel %vm333_vm5, %v5971_v43, %v4822_v13  ;;  %v4826_v23 = vadd.f32 -1.0, %v5686_v17  ;;  %v31_v43 = vld [vmem:[%s8845_s0 + $0x38] sm:$0x11] }
  0x25   :  { %v5442_v19 = vpack.c.bf16 %v729_v14, %v728_v9  ;;  %v5690_v34 = vpop.eup %5689  ;;  %v5444_v35 = vpack.c.bf16 %v733_v41, %v732_v18  ;;  %v4829_v36 = vadd.f32 -1.0, %v5688_v22  ;;  %v736_v42 = vsel %vm336_vm6, %v5990_v54, %v4825_v20  ;;  %vm6168_vm6 = vmor %vm1053_vm12, %vm1052_vm11 }
  0x26   :  { %v4830_v37 = vadd.f32 -1.0, %v5690_v34  ;;  %v737_v38 = vsel %vm337_vm7, %v5993_v55, %v4826_v23  ;;  %5701 = vpow2.f32 %v522_v28  ;;  %v78_v46 = vunpack.c.l.bf16 %v31_v43 }
  0x27   :  { %1051 = vst.msk [vmem:[#allocation2] sm:$0xff] %vm6093_vm10, %v5442_v19  ;;  %1056 = vst.msk [vmem:[#allocation2 + $0x10] sm:$0xff] %vm6093_vm10, %v5444_v35  ;;  %v740_v54 = vsel %vm340_vm8, %v5996_v56, %v4829_v36  ;;  %v5446_v44 = vpack.c.bf16 %v737_v38, %v736_v42  ;;  %5703 = vpow2.f32 %v528_v29  ;;  %v79_v55 = vunpack.c.h.bf16 %v31_v43  ;;  %v6133_v56 = vld [vmem:[%s8845_s0 + $0x60] sm:$0xff] }
  0x28   :  { %v741_v45 = vsel %vm341_vm9, %v5999_v57, %v4830_v37  ;;  %5705 = vpow2.f32 %v530_v39  ;;  %v5692_v48 = vpop.eup %5691  ;;  %v166_v57 = vmul.f32 %v5935_v24, %v74_v3  ;;  %v167_v49 = vmul.f32 %v5937_v25, %v75_v4 }
  0x29   :  { %v5448_v47 = vpack.c.bf16 %v741_v45, %v740_v54  ;;  %1058 = vst.msk [vmem:[#allocation2 + $0x20] sm:$0xff] %vm6093_vm10, %v5446_v44  ;;  %v5694_v50 = vpop.eup %5693  ;;  %v4819_v51 = vadd.f32 -1.0, %v5692_v48  ;;  %vm344_vm2 = vcmp.gt.f32.partialorder %v6062_v52, 0.0  ;;  %vm345_vm3 = vcmp.gt.f32.partialorder %v6065_v53, 0.0 }
  0x2a   :  { %v5696_v58 = vpop.eup %5695  ;;  %v4820_v62 = vadd.f32 -1.0, %v5694_v50  ;;  %vm348_vm4 = vcmp.gt.f32.partialorder %v6074_v60, 0.0  ;;  %v170_v63 = vmul.f32 %v5935_v24, %v78_v46  ;;  %v171_v1 = vmul.f32 %v5937_v25, %v79_v55  ;;  %v5594_v46 = vld [vmem:[%s8844_s1 + $0x108] sm:$0xff]  }
  0x2b   :  { %1060 = vst.msk [vmem:[#allocation2 + $0x30] sm:$0xff] %vm6093_vm10, %v5448_v47  ;;  %v88_v2 = vunpack.c.l.bf16 %v6133_v56  ;;  %v5698_v3 = vpop.eup %5697  ;;  %v4823_v7 = vadd.f32 -1.0, %v5696_v58  ;;  %v730_v9 = vsel %vm330_vm14, %v6035_v30, %v4819_v51  ;;  %vm349_vm5 = vcmp.gt.f32.partialorder %v6077_v61, 0.0  ;;  %v5591_v30 = vld [vmem:[%s8844_s1 + $0x110] sm:$0xff]  }
  0x2c   :  { %v4824_v12 = vadd.f32 -1.0, %v5698_v3  ;;  %v731_v13 = vsel %vm331_vm15, %v6038_v31, %v4820_v62  ;;  %v6158_v14 = vadd.f32 %v5939_v26, %v166_v57  ;;  %v6161_v16 = vadd.f32 %v5941_v27, %v167_v49 }
  0x2d   :  { %v734_v21 = vsel %vm334_vm0, %v6041_v32, %v4823_v7  ;;  %v5443_v41 = vpack.c.bf16 %v731_v13, %v730_v9  ;;  %vm1144_vm7 = vsmask.f32 3328  ;;  %vm1145_vm8 = vsmask.f32 7440 }
  0x2e   :  { %v1094_v59 = vld [vmem:[#allocation2] sm:$0xff]  ;;  %v1095_v11 = vld [vmem:[#allocation2 + $0x10] sm:$0xff]  ;;  %v735_v22 = vsel %vm335_vm1, %v6045_v33, %v4824_v12  ;;  %v6182_v34 = vadd.f32 %v5939_v26, %v170_v63  ;;  %v6185_v35 = vadd.f32 %v5941_v27, %v171_v1  ;;  %v89_v43 = vunpack.c.h.bf16 %v6133_v56  ;;  %vm6236_vm9 = vmor %vm1144_vm7, %vm1145_vm8 }
  0x2f   :  { %v1148_v4 = vshrl.u32 %v1094_v59, 16  ;;  %v1151_v6 = vshll.u32 %v1094_v59, 16  ;;  %v1162_v40 = vshrl.u32 %v1095_v11, 16  ;;  %v1165_v17 = vshll.u32 %v1095_v11, 16  ;;  %1055 = vst.msk [vmem:[#allocation2 + $0x8] sm:$0x11] %vm6168_vm6, %v5443_v41 }
  0x30   :  { %v4989_v18 = vcombine.high %v1094_v59, %v1095_v11  ;;  %v4988_v19 = vcombine.low %v1094_v59, %v1095_v11  ;;  %v6172_v31 = vld [vmem:[#allocation2 + $0x20] sm:$0xff]  ;;  %v5445_v28 = vpack.c.bf16 %v735_v22, %v734_v21  ;;  %v5700_v36 = vpop.eup %5699  ;;  %v92_v37 = vunpack.c.l.bf16 %v6152_v10  ;;  %v5600_v56 = vld [vmem:[%s8844_s1 + $0xf0] sm:$0xff]  }
  0x31   :  { %v1150_v23 = vrot.slane %v1148_v4, 4  ;;  %v1153_v29 = vrot.slane %v1151_v6, 5  ;;  %v1164_v33 = vrot.slane %v1162_v40, 4  ;;  %v1167_v42 = vrot.slane %v1165_v17, 5  ;;  %v5595_v6 = vld [vmem:[%s8844_s1 + $0x100] sm:$0xff]  }
  0x32   :  { %5013 = vmatprep.mubr.msk.bf16.mxu1 %vm1500_vm13, %v4989_v18  ;;  %v6187_v32 = vld [vmem:[#allocation2 + $0x30] sm:$0xff]  ;;  %v1176_v39 = vshrl.u32 %v6172_v31, 16  ;;  %1057 = vst.msk [vmem:[#allocation2 + $0x18] sm:$0x11] %vm6168_vm6, %v5445_v28  ;;  %v418_v44 = vmin.f32 %v6158_v14, 0.0  ;;  %v419_v45 = vmin.f32 %v6161_v16, 0.0  ;;  %v93_v49 = vunpack.c.h.bf16 %v6152_v10 }
  0x33   :  { %1805 = vmatmul.mubr.bf16.vlgmr.msra.gmra.mxu1 %v4988_v19  ;;  %v5702_v38 = vpop.eup %5701  ;;  %v4991_v54 = vcombine.high %v6172_v31, %v6187_v32  ;;  %v1154_v47 = vor.u32 %v1153_v29, %v1150_v23  ;;  %v4833_v48 = vadd.f32 -1.0, %v5700_v36  ;;  %v1168_v51 = vor.u32 %v1167_v42, %v1164_v33  ;;  %v33_v33 = vld [vmem:[%s8845_s0 + $0x48] sm:$0x11] }
  0x34   :  { %2437 = vmatpush1.bf16.msra.mxu1 %v5591_v30  ;;  %v5704_v55 = vpop.eup %5703  ;;  %v4834_v57 = vadd.f32 -1.0, %v5702_v38  ;;  %v422_v59 = vmin.f32 %v6182_v34, 0.0  ;;  %v423_v62 = vmin.f32 %v6185_v35, 0.0  ;;  %v4990_v63 = vcombine.low %v6172_v31, %v6187_v32 }
  0x35   :  { %2438 = vmatprep.subr.bf16.mxu1 %v8854_v0  ;;  %v5706_v50 = vpop.eup %5705  ;;  %5014 = vmatprep.mubr.msk.bf16.mxu1 %vm1500_vm13, %v4991_v54  ;;  %v4837_v58 = vadd.f32 -1.0, %v5704_v55  ;;  %v744_v3 = vsel %vm344_vm2, %v6062_v52, %v4833_v48  ;;  %v508_v11 = vmul.f32 1.442695, %v418_v44  ;;  %v510_v12 = vmul.f32 1.442695, %v419_v45  ;;  %v5586_v48 = vld [vmem:[%s8844_s1 + $0xc8] sm:$0xff]  }
  0x36   :  { %v4838_v1 = vadd.f32 -1.0, %v5706_v50  ;;  %v745_v4 = vsel %vm345_vm3, %v6065_v53, %v4834_v57  ;;  %v1179_v13 = vshll.u32 %v6172_v31, 16  ;;  %v516_v30 = vmul.f32 1.442695, %v422_v59  ;;  %v1128_v18 = vld [vmem:[#allocation2 + $0x8] sm:$0x11] }
  0x37   :  { %v748_v7 = vsel %vm348_vm4, %v6074_v60, %v4837_v58  ;;  %v5450_v9 = vpack.c.bf16 %v745_v4, %v744_v3  ;;  %v518_v53 = vmul.f32 1.442695, %v423_v62  ;;  %v1190_v40 = vshrl.u32 %v6187_v32, 16 }
  0x38   :  { %2439 = vmatpush1.bf16.msra.mxu1 %v5594_v46  ;;  %v749_v52 = vsel %vm349_vm5, %v6077_v61, %v4838_v1  ;;  %v1193_v17 = vshll.u32 %v6187_v32, 16  ;;  %5707 = vpow2.f32 %v508_v11  ;;  %v1155_v31 = vrot.slane %v1154_v47, 4  ;;  %v5598_v61 = vld [vmem:[%s8844_s1 + $0xf8] sm:$0xff]  }
  0x39   :  { %2440 = vmatprep.subr.bf16.mxu1 %v8854_v0  ;;  %v5452_v60 = vpack.c.bf16 %v749_v52, %v748_v7  ;;  %1062 = vst.msk [vmem:[#allocation2 + $0x40] sm:$0xff] %vm6093_vm10, %v5450_v9  ;;  %v1129_v19 = vld [vmem:[#allocation2 + $0x18] sm:$0x11]  ;;  %v1157_v21 = vshll.u32 %v1128_v18, 16  ;;  %v1169_v22 = vrot.slane %v1168_v51, 4  ;;  %5709 = vpow2.f32 %v510_v12  ;;  %v5602_v7 = vld [vmem:[%s8844_s1 + $0xe8] sm:$0xff]  }
  0x3a   :  { %v1171_v23 = vshll.u32 %v1129_v19, 16  ;;  %5711 = vpow2.f32 %v516_v30  ;;  %v1178_v28 = vrot.slane %v1176_v39, 4  ;;  %v1181_v36 = vrot.slane %v1179_v13, 5  ;;  %v35_v1 = vld [vmem:[%s8845_s0 + $0x58] sm:$0x11]  ;;  %v5588_v9 = vld [vmem:[%s8844_s1 + $0xc0] sm:$0xff]  }
  0x3b   :  { %1813 = vmatmul.mubr.bf16.gmra.mxu1 %v4990_v63  ;;  %1064 = vst.msk [vmem:[#allocation2 + $0x50] sm:$0xff] %vm6093_vm10, %v5452_v60  ;;  %v1159_v29 = vrot.slane %v1157_v21, 5  ;;  %5713 = vpow2.f32 %v518_v53  ;;  %v180_v32 = vmul.f32 %v5935_v24, %v88_v2  ;;  %v6249_v38 = vrot.slane %v1190_v40, 4 }
  0x3c   :  { %2441 = vmatpush1.bf16.msra.mxu1 %v5595_v6  ;;  %v1173_v42 = vrot.slane %v1171_v23, 5  ;;  %v181_v39 = vmul.f32 %v5937_v25, %v89_v43  ;;  %v184_v54 = vmul.f32 %v5935_v24, %v92_v37  ;;  %v6259_v44 = vrot.slane %v1193_v17, 5 }
  0x3d   :  { %2442 = vmatprep.subr.bf16.mxu1 %v8854_v0  ;;  %v1160_v2 = vsel %vm6236_vm9, %v1155_v31, %v1159_v29  ;;  %v185_v45 = vmul.f32 %v5937_v25, %v93_v49  ;;  %v6263_v46 = vadd.f32 %v5939_v26, %v180_v32  ;;  %vm338_vm11 = vcmp.gt.f32.partialorder %v6158_v14, 0.0 }
  0x3e   :  { %v1174_v43 = vsel %vm6236_vm9, %v1169_v22, %v1173_v42  ;;  %v6271_v10 = vadd.f32 %v5941_v27, %v181_v39  ;;  %v6274_v37 = vadd.f32 %v5939_v26, %v184_v54  ;;  %vm339_vm12 = vcmp.gt.f32.partialorder %v6161_v16, 0.0  ;;  %v5590_v42 = vld [vmem:[%s8844_s1 + $0xb8] sm:$0xff]  }
  0x3f   :  { %v4955_v55 = vcombine.low %v1160_v2, %v1174_v43  ;;  %v4956_v47 = vcombine.high %v1160_v2, %v1174_v43  ;;  %v6282_v49 = vadd.f32 %v5941_v27, %v185_v45  ;;  %vm342_vm14 = vcmp.gt.f32.partialorder %v6182_v34, 0.0 }
  0x40   :  { %2443 = vmatpush1.bf16.msra.mxu1 %v5598_v61  ;;  %v6279_v57 = vld [vmem:[#allocation2 + $0x40] sm:$0xff]  ;;  %v82_v50 = vunpack.c.l.bf16 %v33_v33  ;;  %v1182_v58 = vor.u32 %v1181_v36, %v1178_v28  ;;  %v432_v59 = vmin.f32 %v6263_v46, 0.0  ;;  %v433_v62 = vmin.f32 %v6271_v10, 0.0 }
  0x41   :  { %2444 = vmatprep.subr.bf16.mxu1 %v8854_v0  ;;  %4980 = vmatprep.mubr.msk.bf16.mxu0 %vm1500_vm13, %v4956_v47  ;;  %v436_v63 = vmin.f32 %v6274_v37, 0.0  ;;  %vm343_vm15 = vcmp.gt.f32.partialorder %v6185_v35, 0.0  ;;  %v1196_v4 = vor.u32 %v6259_v44, %v6249_v38  ;;  %v437_v11 = vmin.f32 %v6282_v49, 0.0  ;;  %v5604_v28 = vld [vmem:[%s8844_s1 + $0xe0] sm:$0xff]  }
  0x42   :  { %v6289_v51 = vld [vmem:[#allocation2 + $0x50] sm:$0xff]  ;;  %1558 = vmatmul.mubr.bf16.vlgmr.msra.gmra.mxu0 %v4955_v55  ;;  %v536_v12 = vmul.f32 1.442695, %v432_v59  ;;  %v538_v13 = vmul.f32 1.442695, %v433_v62  ;;  %v83_v52 = vunpack.c.h.bf16 %v33_v33  ;;  %v86_v53 = vunpack.c.l.bf16 %v35_v1 }
  0x43   :  { %v4993_v3 = vcombine.high %v6279_v57, %v6289_v51  ;;  %v4992_v6 = vcombine.low %v6279_v57, %v6289_v51  ;;  %2138 = vmatpush1.bf16.msra.mxu0 %v5586_v48  ;;  %v544_v30 = vmul.f32 1.442695, %v436_v63  ;;  %v87_v40 = vunpack.c.h.bf16 %v35_v1  ;;  %v46_v63 = vld [vmem:[%s8845_s0 + $0xb0] sm:$0xff] }
  0x44   :  { %2445 = vmatpush1.bf16.msra.mxu1 %v5600_v56  ;;  %2139 = vmatprep.subr.bf16.mxu0 %v8854_v0  ;;  %v174_v17 = vmul.f32 %v5935_v24, %v82_v50  ;;  %v6315_v60 = vrot.slane %v1182_v58, 4  ;;  %5715 = vpow2.f32 %v536_v12  ;;  %v546_v19 = vmul.f32 1.442695, %v437_v11 }
  0x45   :  { %2446 = vmatprep.subr.bf16.mxu1 %v8854_v0  ;;  %5015 = vmatprep.mubr.msk.bf16.mxu1 %vm1500_vm13, %v4993_v3  ;;  %v5708_v18 = vpop.eup %5707  ;;  %v175_v31 = vmul.f32 %v5937_v25, %v83_v52  ;;  %5717 = vpow2.f32 %v538_v13  ;;  %v178_v61 = vmul.f32 %v5935_v24, %v86_v53  ;;  %v179_v23 = vmul.f32 %v5937_v25, %v87_v40 }
  0x46   :  { %1821 = vmatmul.mubr.bf16.gmra.mxu1 %v4992_v6  ;;  %v5710_v21 = vpop.eup %5709  ;;  %v4827_v22 = vadd.f32 -1.0, %v5708_v18  ;;  %5719 = vpow2.f32 %v544_v30  ;;  %v6324_v32 = vadd.f32 %v5939_v26, %v174_v17  ;;  %v6343_v56 = vrot.slane %v1196_v4, 4 }
  0x47   :  { %v5712_v29 = vpop.eup %5711  ;;  %v4828_v36 = vadd.f32 -1.0, %v5710_v21  ;;  %2140 = vmatpush1.bf16.msra.mxu0 %v5588_v9  ;;  %v6327_v33 = vadd.f32 %v5941_v27, %v175_v31  ;;  %5721 = vpow2.f32 %v546_v19  ;;  %v6338_v2 = vadd.f32 %v5939_v26, %v178_v61  ;;  %v5599_v19 = vld [vmem:[%s8844_s1 + $0xa0] sm:$0xff]  }
  0x48   :  { %2447 = vmatpush1.bf16.msra.mxu1 %v5602_v7  ;;  %v5714_v38 = vpop.eup %5713  ;;  %v4831_v39 = vadd.f32 -1.0, %v5712_v29  ;;  %v738_v54 = vsel %vm338_vm11, %v6158_v14, %v4827_v22  ;;  %2141 = vmatprep.subr.bf16.mxu0 %v8854_v0  ;;  %v6346_v43 = vadd.f32 %v5941_v27, %v179_v23  ;;  %v44_v14 = vld [vmem:[%s8845_s0 + $0xa0] sm:$0xff]  ;;  %v1204_v55 = vshrl.u32 %v6279_v57, 16  ;;  %v5596_v7 = vld [vmem:[%s8844_s1 + $0xa8] sm:$0xff]  }
  0x49   :  { %2448 = vmatprep.subr.bf16.mxu1 %v8854_v0  ;;  %v4832_v44 = vadd.f32 -1.0, %v5714_v38  ;;  %v739_v45 = vsel %vm339_vm12, %v6161_v16, %v4828_v36  ;;  %v1207_v47 = vshll.u32 %v6279_v57, 16  ;;  %vm352_vm0 = vcmp.gt.f32.partialorder %v6263_v46, 0.0  ;;  %v5593_v57 = vld [vmem:[%s8844_s1 + $0xb0] sm:$0xff]  }
  0x4a   :  { %v742_v48 = vsel %vm342_vm14, %v6182_v34, %v4831_v39  ;;  %v5447_v50 = vpack.c.bf16 %v739_v45, %v738_v54  ;;  %vm353_vm1 = vcmp.gt.f32.partialorder %v6271_v10, 0.0  ;;  %v426_v58 = vmin.f32 %v6324_v32, 0.0 }
  0x4b   :  { %v743_v16 = vsel %vm343_vm15, %v6185_v35, %v4832_v44  ;;  %v427_v59 = vmin.f32 %v6327_v33, 0.0  ;;  %2142 = vmatpush1.bf16.msra.mxu0 %v5590_v42  ;;  %vm356_vm2 = vcmp.gt.f32.partialorder %v6274_v37, 0.0  ;;  %v430_v35 = vmin.f32 %v6338_v2, 0.0 }
  0x4c   :  { %2449 = vmatpush1.bf16.msra.mxu1 %v5604_v28  ;;  %v5449_v34 = vpack.c.bf16 %v743_v16, %v742_v48  ;;  %1059 = vst.msk [vmem:[#allocation2 + $0x28] sm:$0x11] %vm6168_vm6, %v5447_v50  ;;  %v431_v62 = vmin.f32 %v6346_v43, 0.0  ;;  %2143 = vmatprep.subr.bf16.mxu0 %v8854_v0  ;;  %v1218_v1 = vshrl.u32 %v6289_v51, 16  ;;  %v1221_v3 = vshll.u32 %v6289_v51, 16 }
  0x4d   :  { %2450 = vmatprep.subr.bf16.mxu1 %v8854_v0  ;;  %v524_v4 = vmul.f32 1.442695, %v426_v58  ;;  %v526_v6 = vmul.f32 1.442695, %v427_v59  ;;  %v532_v9 = vmul.f32 1.442695, %v430_v35  ;;  %v104_v12 = vunpack.c.l.bf16 %v44_v14 }
  0x4e   :  { %1061 = vst.msk [vmem:[#allocation2 + $0x38] sm:$0x11] %vm6168_vm6, %v5449_v34  ;;  %v534_v11 = vmul.f32 1.442695, %v431_v62  ;;  %v105_v13 = vunpack.c.h.bf16 %v44_v14  ;;  %v108_v52 = vunpack.c.l.bf16 %v46_v63  ;;  %v6386_v51 = vld [vmem:[%s8845_s0 + $0x68] sm:$0x11]  ;;  %v109_v30 = vunpack.c.h.bf16 %v46_v63 }
  0x4f   :  { %5723 = vpow2.f32 %v524_v4  ;;  %2144 = vmatpush1.bf16.msra.mxu0 %v5593_v57  ;;  %vm357_vm3 = vcmp.gt.f32.partialorder %v6282_v49, 0.0  ;;  %v196_v53 = vmul.f32 %v5935_v24, %v104_v12  ;;  %v6391_v40 = vrot.slane %v1204_v55, 4  ;;  %v39_v58 = vld [vmem:[%s8845_s0 + $0x78] sm:$0x11] }
  0x50   :  { %5725 = vpow2.f32 %v526_v6  ;;  %2145 = vmatprep.subr.bf16.mxu0 %v8854_v0  ;;  %v197_v17 = vmul.f32 %v5937_v25, %v105_v13  ;;  %v200_v18 = vmul.f32 %v5935_v24, %v108_v52  ;;  %v6398_v21 = vrot.slane %v1207_v47, 5 }
  0x51   :  { %5727 = vpow2.f32 %v532_v9  ;;  %v5716_v31 = vpop.eup %5715  ;;  %v6400_v22 = vrot.slane %v1218_v1, 4  ;;  %v201_v61 = vmul.f32 %v5937_v25, %v109_v30  ;;  %v6403_v36 = vrot.slane %v1221_v3, 5  ;;  %v5608_v9 = vld [vmem:[%s8844_s1 + $0x118] sm:$0xff]  }
  0x52   :  { %5729 = vpow2.f32 %v534_v11  ;;  %v5718_v23 = vpop.eup %5717  ;;  %v4841_v29 = vadd.f32 -1.0, %v5716_v31  ;;  %v6406_v42 = vadd.f32 %v5939_v26, %v196_v53  ;;  %vm346_vm4 = vcmp.gt.f32.partialorder %v6324_v32, 0.0 }
  0x53   :  { %v1130_v28 = vld [vmem:[#allocation2 + $0x28] sm:$0x11]  ;;  %2146 = vmatpush1.bf16.msra.mxu0 %v5596_v7  ;;  %v5720_v38 = vpop.eup %5719  ;;  %v4842_v54 = vadd.f32 -1.0, %v5718_v23  ;;  %v6410_v44 = vadd.f32 %v5941_v27, %v197_v17  ;;  %v90_v45 = vunpack.c.l.bf16 %v6386_v51  ;;  %vm347_vm5 = vcmp.gt.f32.partialorder %v6327_v33, 0.0 }
  0x54   :  { %v1185_v39 = vshll.u32 %v1130_v28, 16  ;;  %2147 = vmatprep.subr.bf16.mxu0 %v8854_v0  ;;  %v5722_v14 = vpop.eup %5721  ;;  %v4845_v47 = vadd.f32 -1.0, %v5720_v38  ;;  %v752_v48 = vsel %vm352_vm0, %v6263_v46, %v4841_v29  ;;  %v6419_v50 = vadd.f32 %v5939_v26, %v200_v18  ;;  %v5606_v46 = vld [vmem:[%s8844_s1 + $0xd8] sm:$0xff]  }
  0x55   :  { %v1131_v55 = vld [vmem:[#allocation2 + $0x38] sm:$0x11]  ;;  %v6422_v16 = vadd.f32 %v5941_v27, %v201_v61  ;;  %v4846_v34 = vadd.f32 -1.0, %v5722_v14  ;;  %v753_v35 = vsel %vm353_vm1, %v6271_v10, %v4842_v54  ;;  %vm350_vm7 = vcmp.gt.f32.partialorder %v6338_v2, 0.0  ;;  %2451 = vmatpush1.bf16.msra.mxu1 %v5606_v46 }
  0x56   :  { %v1187_v59 = vrot.slane %v1185_v39, 5  ;;  %v1199_v57 = vshll.u32 %v1131_v55, 16  ;;  %v756_v62 = vsel %vm356_vm2, %v6274_v37, %v4845_v47  ;;  %v5454_v63 = vpack.c.bf16 %v753_v35, %v752_v48  ;;  %v5603_v10 = vld [vmem:[%s8844_s1 + $0x98] sm:$0xff]   ;;  %2466 = vmatprep.subr.bf16.mxu1 %v8854_v0 }
  0x57   :  { %vm351_vm8 = vcmp.gt.f32.partialorder %v6346_v43, 0.0  ;;  %v448_v1 = vmin.f32 %v6406_v42, 0.0  ;;  %v91_v3 = vunpack.c.h.bf16 %v6386_v51  ;;  %2148 = vmatpush1.bf16.msra.mxu0 %v5599_v19  ;;  %v757_v37 = vsel %vm357_vm3, %v6282_v49, %v4846_v34  ;;  %v5607_v49 = vld [vmem:[%s8844_s1 + $0x90] sm:$0xff]  }
  0x58   :  { %v1188_v4 = vsel %vm6236_vm9, %v6315_v60, %v1187_v59  ;;  %v1201_v6 = vrot.slane %v1199_v57, 5  ;;  %v449_v7 = vmin.f32 %v6410_v44, 0.0  ;;  %2149 = vmatprep.subr.bf16.mxu0 %v8854_v0  ;;  %v5456_v11 = vpack.c.bf16 %v757_v37, %v756_v62  ;;  %1066 = vst.msk [vmem:[#allocation2 + $0x60] sm:$0xff] %vm6093_vm10, %v5454_v63 }
  0x59   :  { %v452_v60 = vmin.f32 %v6419_v50, 0.0  ;;  %v453_v12 = vmin.f32 %v6422_v16, 0.0  ;;  %v568_v13 = vmul.f32 1.442695, %v448_v1  ;;  %v94_v30 = vunpack.c.l.bf16 %v39_v58  ;;  %2467 = vmatpush2.bf16.msra.mxu1 %v5608_v9  ;;  %v48_v1 = vld [vmem:[%s8845_s0 + $0xc0] sm:$0xff] }
  0x5a   :  { %v1202_v52 = vsel %vm6236_vm9, %v6343_v56, %v1201_v6  ;;  %v570_v51 = vmul.f32 1.442695, %v449_v7  ;;  %v95_v53 = vunpack.c.h.bf16 %v39_v58  ;;  %1068 = vst.msk [vmem:[#allocation2 + $0x70] sm:$0xff] %vm6093_vm10, %v5456_v11  ;;  %v182_v23 = vmul.f32 %v5935_v24, %v90_v45  ;;  %3336 = vmatprep.subr.bf16.mxu1 %v8854_v0  ;;  %v5611_v7 = vld [vmem:[%s8844_s1 + $0xd0] sm:$0xff]  }
  0x5b   :  { %v4958_v17 = vcombine.high %v1188_v4, %v1202_v52  ;;  %v4957_v18 = vcombine.low %v1188_v4, %v1202_v52  ;;  %5731 = vpow2.f32 %v568_v13  ;;  %v576_v19 = vmul.f32 1.442695, %v452_v60  ;;  %2150 = vmatpush1.bf16.msra.mxu0 %v5603_v10  ;;  %v50_v11 = vld [vmem:[%s8845_s0 + $0xd0] sm:$0xff] }
  0x5c   :  { %v5724_v31 = vpop.eup %5723  ;;  %5733 = vpow2.f32 %v570_v51  ;;  %v578_v61 = vmul.f32 1.442695, %v453_v12  ;;  %v183_v28 = vmul.f32 %v5937_v25, %v91_v3  ;;  %2151 = vmatprep.subr.bf16.mxu0 %v8854_v0  ;;  %v186_v38 = vmul.f32 %v5935_v24, %v94_v30 }
  0x5d   :  { %v5726_v56 = vpop.eup %5725  ;;  %4981 = vmatprep.mubr.msk.bf16.mxu0 %vm1500_vm13, %v4958_v17  ;;  %v4835_v29 = vadd.f32 -1.0, %v5724_v31  ;;  %5735 = vpow2.f32 %v576_v19  ;;  %v187_v39 = vmul.f32 %v5937_v25, %v95_v53  ;;  %v1210_v45 = vor.u32 %v6398_v21, %v6391_v40 }
  0x5e   :  { %v5728_v54 = vpop.eup %5727  ;;  %1566 = vmatmul.mubr.bf16.gmra.mxu0 %v4957_v18  ;;  %v4836_v14 = vadd.f32 -1.0, %v5726_v56  ;;  %5737 = vpow2.f32 %v578_v61  ;;  %v6477_v55 = vadd.f32 %v5939_v26, %v182_v23  ;;  %v1224_v59 = vor.u32 %v6403_v36, %v6400_v22 }
  0x5f   :  { %v5730_v47 = vpop.eup %5729  ;;  %v4839_v48 = vadd.f32 -1.0, %v5728_v54  ;;  %v746_v58 = vsel %vm346_vm4, %v6324_v32, %v4835_v29  ;;  %v6485_v57 = vadd.f32 %v5941_v27, %v183_v28  ;;  %2152 = vmatpush1.bf16.msra.mxu0 %v5607_v49  ;;  %v6487_v34 = vld [vmem:[#allocation2 + $0x60] sm:$0xff]  ;;  %v6493_v35 = vadd.f32 %v5939_v26, %v186_v38 }
  0x60   :  { %v4840_v40 = vadd.f32 -1.0, %v5730_v47  ;;  %v747_v21 = vsel %vm347_vm5, %v6327_v33, %v4836_v14  ;;  %v6496_v46 = vadd.f32 %v5941_v27, %v187_v39  ;;  %2167 = vmatprep.subr.bf16.mxu0 %v8854_v0  ;;  %v6507_v33 = vrot.slane %v1210_v45, 4 }
  0x61   :  { %v750_v32 = vsel %vm350_vm7, %v6338_v2, %v4839_v48  ;;  %v5451_v22 = vpack.c.bf16 %v747_v21, %v746_v58  ;;  %v6502_v36 = vld [vmem:[#allocation2 + $0x70] sm:$0xff]  ;;  %v434_v63 = vmin.f32 %v6477_v55, 0.0  ;;  %v6517_v2 = vrot.slane %v1224_v59, 4 }
  0x62   :  { %v751_v62 = vsel %vm351_vm8, %v6346_v43, %v4840_v40  ;;  %v4995_v3 = vcombine.high %v6487_v34, %v6502_v36  ;;  %vm368_vm11 = vcmp.gt.f32.partialorder %v6406_v42, 0.0  ;;  %v4994_v43 = vcombine.low %v6487_v34, %v6502_v36 }
  0x63   :  { %v5453_v10 = vpack.c.bf16 %v751_v62, %v750_v32  ;;  %1063 = vst.msk [vmem:[#allocation2 + $0x48] sm:$0x11] %vm6168_vm6, %v5451_v22  ;;  %v435_v4 = vmin.f32 %v6485_v57, 0.0  ;;  %v438_v6 = vmin.f32 %v6493_v35, 0.0  ;;  %v439_v37 = vmin.f32 %v6496_v46, 0.0  ;;  %2168 = vmatpush2.bf16.msra.mxu0 %v5611_v7 }
  0x64   :  { %5016 = vmatprep.mubr.msk.bf16.mxu1 %vm1500_vm13, %v4995_v3  ;;  %vm369_vm12 = vcmp.gt.f32.partialorder %v6410_v44, 0.0  ;;  %vm372_vm14 = vcmp.gt.f32.partialorder %v6419_v50, 0.0  ;;  %vm373_vm15 = vcmp.gt.f32.partialorder %v6422_v16, 0.0  ;;  %v540_v9 = vmul.f32 1.442695, %v434_v63  ;;  %2958 = vmatprep.subr.bf16.mxu0 %v8854_v0 }
  0x65   :  { %1065 = vst.msk [vmem:[#allocation2 + $0x58] sm:$0x11] %vm6168_vm6, %v5453_v10  ;;  %1829 = vmatmul.mubr.bf16.gmra.mxu1 %v4994_v43  ;;  %v542_v60 = vmul.f32 1.442695, %v435_v4  ;;  %v548_v12 = vmul.f32 1.442695, %v438_v6  ;;  %v112_v49 = vunpack.c.l.bf16 %v48_v1  ;;  %v113_v30 = vunpack.c.h.bf16 %v48_v1 }
  0x66   :  { %v550_v13 = vmul.f32 1.442695, %v439_v37  ;;  %v1232_v52 = vshrl.u32 %v6487_v34, 16  ;;  %v1235_v51 = vshll.u32 %v6487_v34, 16  ;;  %5739 = vpow2.f32 %v540_v9  ;;  %v47_v4 = vld [vmem:[%s8845_s0 + $0xb8] sm:$0x11] }
  0x67   :  { %5741 = vpow2.f32 %v542_v60  ;;  %v116_v17 = vunpack.c.l.bf16 %v50_v11  ;;  %v117_v18 = vunpack.c.h.bf16 %v50_v11  ;;  %v204_v19 = vmul.f32 %v5935_v24, %v112_v49 }
  0x68   :  { %v5732_v53 = vpop.eup %5731  ;;  %v1246_v61 = vshrl.u32 %v6502_v36, 16  ;;  %5743 = vpow2.f32 %v548_v12  ;;  %v205_v38 = vmul.f32 %v5937_v25, %v113_v30  ;;  %v1249_v14 = vshll.u32 %v6502_v36, 16 }
  0x69   :  { %v5734_v31 = vpop.eup %5733  ;;  %v4857_v23 = vadd.f32 -1.0, %v5732_v53  ;;  %5745 = vpow2.f32 %v550_v13  ;;  %v208_v39 = vmul.f32 %v5935_v24, %v116_v17  ;;  %vm354_vm0 = vcmp.gt.f32.partialorder %v6477_v55, 0.0 }
  0x6a   :  { %v5736_v28 = vpop.eup %5735  ;;  %v1132_v56 = vld [vmem:[#allocation2 + $0x48] sm:$0x11]  ;;  %v4858_v29 = vadd.f32 -1.0, %v5734_v31  ;;  %v209_v40 = vmul.f32 %v5937_v25, %v117_v18  ;;  %v6554_v21 = vadd.f32 %v5939_v26, %v204_v19  ;;  %vm355_vm1 = vcmp.gt.f32.partialorder %v6485_v57, 0.0 }
  0x6b   :  { %v5738_v54 = vpop.eup %5737  ;;  %v1213_v45 = vshll.u32 %v1132_v56, 16  ;;  %v4861_v47 = vadd.f32 -1.0, %v5736_v28  ;;  %v768_v48 = vsel %vm368_vm11, %v6406_v42, %v4857_v23  ;;  %vm358_vm2 = vcmp.gt.f32.partialorder %v6493_v35, 0.0 }
  0x6c   :  { %v1133_v58 = vld [vmem:[#allocation2 + $0x58] sm:$0x11]  ;;  %v4862_v59 = vadd.f32 -1.0, %v5738_v54  ;;  %v769_v34 = vsel %vm369_vm12, %v6410_v44, %v4858_v29  ;;  %v6565_v62 = vadd.f32 %v5941_v27, %v205_v38  ;;  %v6568_v63 = vadd.f32 %v5939_v26, %v208_v39 }
  0x6d   :  { %v1215_v32 = vrot.slane %v1213_v45, 5  ;;  %v1227_v22 = vshll.u32 %v1133_v58, 16  ;;  %v772_v36 = vsel %vm372_vm14, %v6419_v50, %v4861_v47  ;;  %v5462_v42 = vpack.c.bf16 %v769_v34, %v768_v48  ;;  %v45_v50 = vld [vmem:[%s8845_s0 + $0xa8] sm:$0x11] }
  0x6e   :  { %v773_v44 = vsel %vm373_vm15, %v6422_v16, %v4862_v59  ;;  %v6571_v1 = vadd.f32 %v5941_v27, %v209_v40  ;;  %v1234_v43 = vrot.slane %v1232_v52, 4  ;;  %v1237_v6 = vrot.slane %v1235_v51, 5 }
  0x6f   :  { %v1216_v3 = vsel %vm6236_vm9, %v6507_v33, %v1215_v32  ;;  %v1229_v16 = vrot.slane %v1227_v22, 5  ;;  %v5464_v10 = vpack.c.bf16 %v773_v44, %v772_v36  ;;  %1074 = vst.msk [vmem:[#allocation2 + $0xa0] sm:$0xff] %vm6093_vm10, %v5462_v42  ;;  %v1248_v37 = vrot.slane %v1246_v61, 4 }
  0x70   :  { %v1251_v7 = vrot.slane %v1249_v14, 5  ;;  %v456_v9 = vmin.f32 %v6554_v21, 0.0  ;;  %v457_v33 = vmin.f32 %v6565_v62, 0.0  ;;  %v460_v60 = vmin.f32 %v6568_v63, 0.0 }
  0x71   :  { %v1230_v11 = vsel %vm6236_vm9, %v6517_v2, %v1229_v16  ;;  %1076 = vst.msk [vmem:[#allocation2 + $0xb0] sm:$0xff] %vm6093_vm10, %v5464_v10  ;;  %v461_v12 = vmin.f32 %v6571_v1, 0.0  ;;  %v106_v51 = vunpack.c.l.bf16 %v45_v50  ;;  %v107_v18 = vunpack.c.h.bf16 %v45_v50 }
  0x72   :  { %v4960_v13 = vcombine.high %v1216_v3, %v1230_v11  ;;  %v4959_v49 = vcombine.low %v1216_v3, %v1230_v11  ;;  %v584_v52 = vmul.f32 1.442695, %v456_v9  ;;  %v586_v30 = vmul.f32 1.442695, %v457_v33  ;;  %v52_v3 = vld [vmem:[%s8845_s0 + $0xe0] sm:$0xff]  ;;  %v54_v9 = vld [vmem:[%s8845_s0 + $0xf0] sm:$0xff] }
  0x73   :  { %v592_v53 = vmul.f32 1.442695, %v460_v60  ;;  %v594_v17 = vmul.f32 1.442695, %v461_v12  ;;  %v5740_v19 = vpop.eup %5739  ;;  %v110_v2 = vunpack.c.l.bf16 %v47_v4  ;;  %v111_v31 = vunpack.c.h.bf16 %v47_v4 }
  0x74   :  { %4982 = vmatprep.mubr.msk.bf16.mxu0 %vm1500_vm13, %v4960_v13  ;;  %5747 = vpow2.f32 %v584_v52  ;;  %v198_v61 = vmul.f32 %v5935_v24, %v106_v51  ;;  %v5742_v23 = vpop.eup %5741  ;;  %vm359_vm3 = vcmp.gt.f32.partialorder %v6496_v46, 0.0  ;;  %v4843_v28 = vadd.f32 -1.0, %v5740_v19 }
  0x75   :  { %1574 = vmatmul.mubr.bf16.gmra.mxu0 %v4959_v49  ;;  %v1238_v56 = vor.u32 %v1237_v6, %v1234_v43  ;;  %5749 = vpow2.f32 %v586_v30  ;;  %v5744_v29 = vpop.eup %5743  ;;  %v4844_v39 = vadd.f32 -1.0, %v5742_v23  ;;  %v1252_v54 = vor.u32 %v1251_v7, %v1248_v37 }
  0x76   :  { %v6596_v38 = vld [vmem:[#allocation2 + $0xa0] sm:$0xff]  ;;  %5751 = vpow2.f32 %v592_v53  ;;  %v199_v14 = vmul.f32 %v5937_v25, %v107_v18  ;;  %v5746_v45 = vpop.eup %5745  ;;  %v4847_v47 = vadd.f32 -1.0, %v5744_v29  ;;  %v754_v48 = vsel %vm354_vm0, %v6477_v55, %v4843_v28 }
  0x77   :  { %v202_v58 = vmul.f32 %v5935_v24, %v110_v2  ;;  %v203_v59 = vmul.f32 %v5937_v25, %v111_v31  ;;  %v4848_v40 = vadd.f32 -1.0, %v5746_v45  ;;  %v755_v32 = vsel %vm355_vm1, %v6485_v57, %v4844_v39 }
  0x78   :  { %v6604_v34 = vld [vmem:[#allocation2 + $0xb0] sm:$0xff]  ;;  %5753 = vpow2.f32 %v594_v17  ;;  %v6610_v22 = vadd.f32 %v5939_v26, %v198_v61  ;;  %v758_v55 = vsel %vm358_vm2, %v6493_v35, %v4847_v47  ;;  %v5455_v44 = vpack.c.bf16 %v755_v32, %v754_v48 }
  0x79   :  { %v4997_v36 = vcombine.high %v6596_v38, %v6604_v34  ;;  %v759_v42 = vsel %vm359_vm3, %v6496_v46, %v4848_v40  ;;  %v4996_v50 = vcombine.low %v6596_v38, %v6604_v34  ;;  %v6623_v57 = vadd.f32 %v5941_v27, %v199_v14 }
  0x7a   :  { %v5457_v16 = vpack.c.bf16 %v759_v42, %v758_v55  ;;  %v6630_v35 = vadd.f32 %v5939_v26, %v202_v58  ;;  %v6633_v10 = vadd.f32 %v5941_v27, %v203_v59  ;;  %1067 = vst.msk [vmem:[#allocation2 + $0x68] sm:$0x11] %vm6168_vm6, %v5455_v44  ;;  %v1239_v46 = vrot.slane %v1238_v56, 4 }
  0x7b   :  { %5017 = vmatprep.mubr.msk.bf16.mxu1 %vm1500_vm13, %v4997_v36  ;;  %v6637_v43 = vrot.slane %v1252_v54, 4  ;;  %v450_v4 = vmin.f32 %v6610_v22, 0.0  ;;  %v451_v6 = vmin.f32 %v6623_v57, 0.0  ;;  %vm376_vm4 = vcmp.gt.f32.partialorder %v6554_v21, 0.0 }
  0x7c   :  { %1837 = vmatmul.mubr.bf16.gmra.mxu1 %v4996_v50  ;;  %1069 = vst.msk [vmem:[#allocation2 + $0x78] sm:$0x11] %vm6168_vm6, %v5457_v16  ;;  %v454_v37 = vmin.f32 %v6630_v35, 0.0  ;;  %v455_v7 = vmin.f32 %v6633_v10, 0.0  ;;  %v120_v11 = vunpack.c.l.bf16 %v52_v3  ;;  %vm377_vm5 = vcmp.gt.f32.partialorder %v6565_v62, 0.0 }
  0x7d   :  { %vm380_vm7 = vcmp.gt.f32.partialorder %v6568_v63, 0.0  ;;  %v572_v33 = vmul.f32 1.442695, %v450_v4  ;;  %v574_v60 = vmul.f32 1.442695, %v451_v6  ;;  %vm381_vm8 = vcmp.gt.f32.partialorder %v6571_v1, 0.0 }
  0x7e   :  { %v580_v12 = vmul.f32 1.442695, %v454_v37  ;;  %v582_v13 = vmul.f32 1.442695, %v455_v7  ;;  %v121_v49 = vunpack.c.h.bf16 %v52_v3  ;;  %v1260_v52 = vshrl.u32 %v6596_v38, 16 }
  0x7f   :  { %5755 = vpow2.f32 %v572_v33  ;;  %v124_v51 = vunpack.c.l.bf16 %v54_v9  ;;  %v125_v30 = vunpack.c.h.bf16 %v54_v9  ;;  %v1263_v17 = vshll.u32 %v6596_v38, 16  ;;  %v49_v6 = vld [vmem:[%s8845_s0 + $0xc8] sm:$0x11] }
  0x80   :  { %5757 = vpow2.f32 %v574_v60  ;;  %v212_v18 = vmul.f32 %v5935_v24, %v120_v11  ;;  %v213_v19 = vmul.f32 %v5937_v25, %v121_v49  ;;  %v1274_v31 = vshrl.u32 %v6604_v34, 16 }
  0x81   :  { %v5748_v53 = vpop.eup %5747  ;;  %5759 = vpow2.f32 %v580_v12  ;;  %v216_v23 = vmul.f32 %v5935_v24, %v124_v51  ;;  %v1277_v56 = vshll.u32 %v6604_v34, 16  ;;  %v1134_v29 = vld [vmem:[#allocation2 + $0x68] sm:$0x11]  ;;  %v217_v38 = vmul.f32 %v5937_v25, %v125_v30 }
  0x82   :  { %v5750_v2 = vpop.eup %5749  ;;  %v4865_v61 = vadd.f32 -1.0, %v5748_v53  ;;  %5761 = vpow2.f32 %v582_v13  ;;  %v1241_v14 = vshll.u32 %v1134_v29, 16  ;;  %v6664_v48 = vadd.f32 %v5939_v26, %v212_v18 }
  0x83   :  { %v5752_v28 = vpop.eup %5751  ;;  %v4866_v39 = vadd.f32 -1.0, %v5750_v2  ;;  %v1135_v54 = vld [vmem:[#allocation2 + $0x78] sm:$0x11]  ;;  %vm370_vm11 = vcmp.gt.f32.partialorder %v6610_v22, 0.0  ;;  %v6671_v40 = vadd.f32 %v5941_v27, %v213_v19  ;;  %v6674_v32 = vadd.f32 %v5939_v26, %v216_v23 }
  0x84   :  { %v4869_v45 = vadd.f32 -1.0, %v5752_v28  ;;  %v776_v47 = vsel %vm376_vm4, %v6554_v21, %v4865_v61  ;;  %v1255_v59 = vshll.u32 %v1135_v54, 16  ;;  %v1243_v36 = vrot.slane %v1241_v14, 5 }
  0x85   :  { %v5754_v58 = vpop.eup %5753  ;;  %v777_v34 = vsel %vm377_vm5, %v6565_v62, %v4866_v39  ;;  %vm371_vm12 = vcmp.gt.f32.partialorder %v6623_v57, 0.0  ;;  %vm374_vm14 = vcmp.gt.f32.partialorder %v6630_v35, 0.0  ;;  %v6681_v62 = vrot.slane %v1260_v52, 4 }
  0x86   :  { %v4870_v55 = vadd.f32 -1.0, %v5754_v58  ;;  %v780_v21 = vsel %vm380_vm7, %v6568_v63, %v4869_v45  ;;  %v5466_v42 = vpack.c.bf16 %v777_v34, %v776_v47  ;;  %v1257_v44 = vrot.slane %v1255_v59, 5 }
  0x87   :  { %v6684_v50 = vadd.f32 %v5941_v27, %v217_v38  ;;  %v1244_v3 = vsel %vm6236_vm9, %v1239_v46, %v1243_v36  ;;  %v1265_v63 = vrot.slane %v1263_v17, 5  ;;  %v464_v4 = vmin.f32 %v6664_v48, 0.0 }
  0x88   :  { %v781_v16 = vsel %vm381_vm8, %v6571_v1, %v4870_v55  ;;  %1078 = vst.msk [vmem:[#allocation2 + $0xc0] sm:$0xff] %vm6093_vm10, %v5466_v42  ;;  %v1258_v37 = vsel %vm6236_vm9, %v6637_v43, %v1257_v44  ;;  %v1276_v46 = vrot.slane %v1274_v31, 4  ;;  %v465_v9 = vmin.f32 %v6671_v40, 0.0  ;;  %v51_v1 = vld [vmem:[%s8845_s0 + $0xd8] sm:$0x11] }
  0x89   :  { %v5468_v7 = vpack.c.bf16 %v781_v16, %v780_v21  ;;  %v4962_v11 = vcombine.high %v1244_v3, %v1258_v37  ;;  %v4961_v33 = vcombine.low %v1244_v3, %v1258_v37  ;;  %v468_v60 = vmin.f32 %v6674_v32, 0.0  ;;  %v56_v3 = vld [vmem:[%s8845_s0 + $0x100] sm:$0xff] }
  0x8a   :  { %v469_v12 = vmin.f32 %v6684_v50, 0.0  ;;  %v600_v13 = vmul.f32 1.442695, %v464_v4  ;;  %v602_v49 = vmul.f32 1.442695, %v465_v9  ;;  %v114_v43 = vunpack.c.l.bf16 %v49_v6 }
  0x8b   :  { %1080 = vst.msk [vmem:[#allocation2 + $0xd0] sm:$0xff] %vm6093_vm10, %v5468_v7  ;;  %v115_v52 = vunpack.c.h.bf16 %v49_v6  ;;  %4983 = vmatprep.mubr.msk.bf16.mxu0 %vm1500_vm13, %v4962_v11  ;;  %v1279_v51 = vrot.slane %v1277_v56, 5  ;;  %v608_v30 = vmul.f32 1.442695, %v468_v60  ;;  %v118_v53 = vunpack.c.l.bf16 %v51_v1 }
  0x8c   :  { %v119_v17 = vunpack.c.h.bf16 %v51_v1  ;;  %v5756_v18 = vpop.eup %5755  ;;  %1582 = vmatmul.mubr.bf16.gmra.mxu0 %v4961_v33  ;;  %5763 = vpow2.f32 %v600_v13  ;;  %v610_v19 = vmul.f32 1.442695, %v469_v12  ;;  %v206_v2 = vmul.f32 %v5935_v24, %v114_v43 }
  0x8d   :  { %v207_v31 = vmul.f32 %v5937_v25, %v115_v52  ;;  %v5758_v61 = vpop.eup %5757  ;;  %v4859_v23 = vadd.f32 -1.0, %v5756_v18  ;;  %5765 = vpow2.f32 %v602_v49  ;;  %v210_v28 = vmul.f32 %v5935_v24, %v118_v53 }
  0x8e   :  { %v211_v29 = vmul.f32 %v5937_v25, %v119_v17  ;;  %v5760_v39 = vpop.eup %5759  ;;  %vm375_vm15 = vcmp.gt.f32.partialorder %v6633_v10, 0.0  ;;  %v4860_v56 = vadd.f32 -1.0, %v5758_v61  ;;  %v1266_v38 = vor.u32 %v1265_v63, %v6681_v62 }
  0x8f   :  { %5767 = vpow2.f32 %v608_v30  ;;  %v5762_v54 = vpop.eup %5761  ;;  %v6715_v14 = vld [vmem:[#allocation2 + $0xc0] sm:$0xff]  ;;  %v4863_v45 = vadd.f32 -1.0, %v5760_v39  ;;  %v770_v47 = vsel %vm370_vm11, %v6610_v22, %v4859_v23  ;;  %v6721_v58 = vadd.f32 %v5939_v26, %v206_v2 }
  0x90   :  { %v6724_v59 = vadd.f32 %v5941_v27, %v207_v31  ;;  %v4864_v34 = vadd.f32 -1.0, %v5762_v54  ;;  %v771_v36 = vsel %vm371_vm12, %v6623_v57, %v4860_v56  ;;  %5769 = vpow2.f32 %v610_v19 }
  0x91   :  { %v6730_v55 = vadd.f32 %v5939_v26, %v210_v28  ;;  %v774_v22 = vsel %vm374_vm14, %v6630_v35, %v4863_v45  ;;  %v5463_v42 = vpack.c.bf16 %v771_v36, %v770_v47  ;;  %v1280_v44 = vor.u32 %v1279_v51, %v1276_v46 }
  0x92   :  { %v6732_v21 = vld [vmem:[#allocation2 + $0xd0] sm:$0xff]  ;;  %v6738_v62 = vadd.f32 %v5941_v27, %v211_v29  ;;  %v775_v16 = vsel %vm375_vm15, %v6633_v10, %v4864_v34  ;;  %v1267_v35 = vrot.slane %v1266_v38, 4  ;;  %v458_v6 = vmin.f32 %v6721_v58, 0.0 }
  0x93   :  { %v4999_v57 = vcombine.high %v6715_v14, %v6732_v21  ;;  %v5465_v63 = vpack.c.bf16 %v775_v16, %v774_v22  ;;  %1075 = vst.msk [vmem:[#allocation2 + $0xa8] sm:$0x11] %vm6168_vm6, %v5463_v42  ;;  %v4998_v4 = vcombine.low %v6715_v14, %v6732_v21  ;;  %v459_v37 = vmin.f32 %v6724_v59, 0.0  ;;  %v58_v10 = vld [vmem:[%s8845_s0 + $0x110] sm:$0xff] }
  0x94   :  { %v462_v7 = vmin.f32 %v6730_v55, 0.0  ;;  %v128_v46 = vunpack.c.l.bf16 %v56_v3  ;;  %v1281_v9 = vrot.slane %v1280_v44, 4  ;;  %vm384_vm0 = vcmp.gt.f32.partialorder %v6664_v48, 0.0 }
  0x95   :  { %5018 = vmatprep.mubr.msk.bf16.mxu1 %vm1500_vm13, %v4999_v57  ;;  %1077 = vst.msk [vmem:[#allocation2 + $0xb8] sm:$0x11] %vm6168_vm6, %v5465_v63  ;;  %vm385_vm1 = vcmp.gt.f32.partialorder %v6671_v40, 0.0  ;;  %v463_v1 = vmin.f32 %v6738_v62, 0.0  ;;  %v588_v11 = vmul.f32 1.442695, %v458_v6  ;;  %v129_v12 = vunpack.c.h.bf16 %v56_v3 }
  0x96   :  { %1845 = vmatmul.mubr.bf16.gmra.mxu1 %v4998_v4  ;;  %v590_v33 = vmul.f32 1.442695, %v459_v37  ;;  %v596_v60 = vmul.f32 1.442695, %v462_v7  ;;  %vm388_vm2 = vcmp.gt.f32.partialorder %v6674_v32, 0.0  ;;  %vm389_vm3 = vcmp.gt.f32.partialorder %v6684_v50, 0.0 }
  0x97   :  { %v598_v13 = vmul.f32 1.442695, %v463_v1  ;;  %v132_v49 = vunpack.c.l.bf16 %v58_v10  ;;  %5771 = vpow2.f32 %v588_v11  ;;  %v133_v43 = vunpack.c.h.bf16 %v58_v10  ;;  %v55_v1 = vld [vmem:[%s8845_s0 + $0xf8] sm:$0x11] }
  0x98   :  { %v220_v52 = vmul.f32 %v5935_v24, %v128_v46  ;;  %v221_v51 = vmul.f32 %v5937_v25, %v129_v12  ;;  %v1288_v53 = vshrl.u32 %v6715_v14, 16  ;;  %v1291_v17 = vshll.u32 %v6715_v14, 16 }
  0x99   :  { %v5764_v30 = vpop.eup %5763  ;;  %5773 = vpow2.f32 %v590_v33  ;;  %v224_v18 = vmul.f32 %v5935_v24, %v132_v49  ;;  %v1302_v2 = vshrl.u32 %v6732_v21, 16  ;;  %v225_v23 = vmul.f32 %v5937_v25, %v133_v43 }
  0x9a   :  { %v5766_v19 = vpop.eup %5765  ;;  %v6772_v31 = vld [vmem:[#allocation2 + $0xa8] sm:$0x11]  ;;  %v4873_v61 = vadd.f32 -1.0, %v5764_v30  ;;  %5775 = vpow2.f32 %v596_v60  ;;  %v6777_v56 = vadd.f32 %v5939_v26, %v220_v52  ;;  %v6785_v45 = vadd.f32 %v5941_v27, %v221_v51 }
  0x9b   :  { %v1269_v29 = vshll.u32 %v6772_v31, 16  ;;  %v4874_v39 = vadd.f32 -1.0, %v5766_v19  ;;  %5777 = vpow2.f32 %v598_v13  ;;  %v6788_v47 = vadd.f32 %v5939_v26, %v224_v18 }
  0x9c   :  { %v5768_v28 = vpop.eup %5767  ;;  %v6779_v38 = vld [vmem:[#allocation2 + $0xb8] sm:$0x11]  ;;  %v784_v14 = vsel %vm384_vm0, %v6664_v48, %v4873_v61  ;;  %vm378_vm4 = vcmp.gt.f32.partialorder %v6721_v58, 0.0  ;;  %v6796_v44 = vadd.f32 %v5941_v27, %v225_v23  ;;  %v1305_v48 = vshll.u32 %v6732_v21, 16 }
  0x9d   :  { %v4877_v54 = vadd.f32 -1.0, %v5768_v28  ;;  %v5770_v34 = vpop.eup %5769  ;;  %v1271_v36 = vrot.slane %v1269_v29, 5  ;;  %v1283_v22 = vshll.u32 %v6779_v38, 16  ;;  %v785_v42 = vsel %vm385_vm1, %v6671_v40, %v4874_v39 }
  0x9e   :  { %v4878_v3 = vadd.f32 -1.0, %v5770_v34  ;;  %v5470_v16 = vpack.c.bf16 %v785_v42, %v784_v14  ;;  %vm379_vm5 = vcmp.gt.f32.partialorder %v6724_v59, 0.0  ;;  %v6805_v40 = vrot.slane %v1288_v53, 4 }
  0x9f   :  { %v788_v57 = vsel %vm388_vm2, %v6674_v32, %v4877_v54  ;;  %v1272_v63 = vsel %vm6236_vm9, %v1267_v35, %v1271_v36  ;;  %v1285_v4 = vrot.slane %v1283_v22, 5  ;;  %v6812_v21 = vrot.slane %v1291_v17, 5  ;;  %v53_v35 = vld [vmem:[%s8845_s0 + $0xe8] sm:$0x11] }
  0xa0   :  { %v789_v6 = vsel %vm389_vm3, %v6684_v50, %v4878_v3  ;;  %1082 = vst.msk [vmem:[#allocation2 + $0xe0] sm:$0xff] %vm6093_vm10, %v5470_v16  ;;  %v472_v32 = vmin.f32 %v6777_v56, 0.0  ;;  %v473_v37 = vmin.f32 %v6785_v45, 0.0  ;;  %v476_v46 = vmin.f32 %v6788_v47, 0.0 }
  0xa1   :  { %v1286_v7 = vsel %vm6236_vm9, %v1281_v9, %v1285_v4  ;;  %v5472_v10 = vpack.c.bf16 %v789_v6, %v788_v57  ;;  %v477_v50 = vmin.f32 %v6796_v44, 0.0  ;;  %v122_v43 = vunpack.c.l.bf16 %v53_v35 }
  0xa2   :  { %v4964_v11 = vcombine.high %v1272_v63, %v1286_v7  ;;  %v4963_v33 = vcombine.low %v1272_v63, %v1286_v7  ;;  %v616_v60 = vmul.f32 1.442695, %v472_v32  ;;  %v618_v12 = vmul.f32 1.442695, %v473_v37 }
  0xa3   :  { %1084 = vst.msk [vmem:[#allocation2 + $0xf0] sm:$0xff] %vm6093_vm10, %v5472_v10  ;;  %v624_v13 = vmul.f32 1.442695, %v476_v46  ;;  %v626_v49 = vmul.f32 1.442695, %v477_v50  ;;  %v123_v9 = vunpack.c.h.bf16 %v53_v35  ;;  %v1304_v52 = vrot.slane %v1302_v2, 4 }
  0xa4   :  { %4984 = vmatprep.mubr.msk.bf16.mxu0 %vm1500_vm13, %v4964_v11  ;;  %5779 = vpow2.f32 %v616_v60  ;;  %v126_v51 = vunpack.c.l.bf16 %v55_v1  ;;  %v127_v30 = vunpack.c.h.bf16 %v55_v1  ;;  %v5772_v53 = vpop.eup %5771  ;;  %v1307_v17 = vrot.slane %v1305_v48, 5  ;;  %v6877_v46 = vld [vmem:[#allocation2 + $0x8] sm:$0x11] }
  0xa5   :  { %1590 = vmatmul.mubr.bf16.gmra.mxu0 %v4963_v33  ;;  %5781 = vpow2.f32 %v618_v12  ;;  %v214_v18 = vmul.f32 %v5935_v24, %v122_v43  ;;  %v215_v19 = vmul.f32 %v5937_v25, %v123_v9  ;;  %v4867_v23 = vadd.f32 -1.0, %v5772_v53  ;;  %v59_v33 = vld [vmem:[%s8845_s0 + $0x118] sm:$0x11] }
  0xa6   :  { %v5774_v61 = vpop.eup %5773  ;;  %5783 = vpow2.f32 %v624_v13  ;;  %v218_v28 = vmul.f32 %v5935_v24, %v126_v51  ;;  %v219_v29 = vmul.f32 %v5937_v25, %v127_v30  ;;  %vm382_vm7 = vcmp.gt.f32.partialorder %v6730_v55, 0.0 }
  0xa7   :  { %v5776_v39 = vpop.eup %5775  ;;  %vm383_vm8 = vcmp.gt.f32.partialorder %v6738_v62, 0.0  ;;  %v4868_v2 = vadd.f32 -1.0, %v5774_v61  ;;  %5785 = vpow2.f32 %v626_v49  ;;  %v6835_v14 = vld [vmem:[#allocation2 + $0xe0] sm:$0xff]  ;;  %v778_v36 = vsel %vm378_vm4, %v6721_v58, %v4867_v23 }
  0xa8   :  { %v5778_v54 = vpop.eup %5777  ;;  %v4871_v34 = vadd.f32 -1.0, %v5776_v39  ;;  %v6841_v22 = vadd.f32 %v5939_v26, %v214_v18  ;;  %v6844_v42 = vadd.f32 %v5941_v27, %v215_v19  ;;  %v6850_v57 = vadd.f32 %v5939_v26, %v218_v28 }
  0xa9   :  { %v4872_v48 = vadd.f32 -1.0, %v5778_v54  ;;  %v779_v3 = vsel %vm379_vm5, %v6724_v59, %v4868_v2  ;;  %v6853_v16 = vadd.f32 %v5941_v27, %v219_v29  ;;  %v1294_v6 = vor.u32 %v6812_v21, %v6805_v40 }
  0xaa   :  { %v6855_v63 = vld [vmem:[#allocation2 + $0xf0] sm:$0xff]  ;;  %v782_v58 = vsel %vm382_vm7, %v6730_v55, %v4871_v34  ;;  %v5467_v4 = vpack.c.bf16 %v779_v3, %v778_v36  ;;  %v1308_v32 = vor.u32 %v1307_v17, %v1304_v52  ;;  %v57_v55 = vld [vmem:[%s8845_s0 + $0x108] sm:$0x11]  ;;  %v466_v40 = vmin.f32 %v6841_v22, 0.0 }
  0xab   :  { %v5001_v37 = vcombine.high %v6835_v14, %v6855_v63  ;;  %v783_v59 = vsel %vm383_vm8, %v6738_v62, %v4872_v48  ;;  %v5000_v7 = vcombine.low %v6835_v14, %v6855_v63  ;;  %v467_v21 = vmin.f32 %v6844_v42, 0.0 }
  0xac   :  { %v5469_v35 = vpack.c.bf16 %v783_v59, %v782_v58  ;;  %1079 = vst.msk [vmem:[#allocation2 + $0xc8] sm:$0x11] %vm6168_vm6, %v5467_v4  ;;  %v470_v10 = vmin.f32 %v6850_v57, 0.0  ;;  %v471_v62 = vmin.f32 %v6853_v16, 0.0  ;;  %v1922_v50 = vrot.slane %v6877_v46, 5 }
  0xad   :  { %5019 = vmatprep.mubr.msk.bf16.mxu1 %vm1500_vm13, %v5001_v37  ;;  %v1295_v1 = vrot.slane %v1294_v6, 4  ;;  %v1309_v11 = vrot.slane %v1308_v32, 4  ;;  %v604_v60 = vmul.f32 1.442695, %v466_v40  ;;  %v606_v12 = vmul.f32 1.442695, %v467_v21 }
  0xae   :  { %1081 = vst.msk [vmem:[#allocation2 + $0xd8] sm:$0x11] %vm6168_vm6, %v5469_v35  ;;  %1853 = vmatmul.mubr.bf16.gmra.mxu1 %v5000_v7  ;;  %v612_v13 = vmul.f32 1.442695, %v470_v10  ;;  %v130_v49 = vunpack.c.l.bf16 %v57_v55  ;;  %vm392_vm11 = vcmp.gt.f32.partialorder %v6777_v56, 0.0  ;;  %vm393_vm12 = vcmp.gt.f32.partialorder %v6785_v45, 0.0 }
  0xaf   :  { %v614_v43 = vmul.f32 1.442695, %v471_v62  ;;  %v131_v9 = vunpack.c.h.bf16 %v57_v55  ;;  %5787 = vpow2.f32 %v604_v60  ;;  %v134_v51 = vunpack.c.l.bf16 %v59_v33  ;;  %v5836_v55 = vld [vmem:[#allocation2 + $0x18] sm:$0x11]  ;;  %v6932_v60 = vld [vmem:[#allocation2 + $0x20] sm:$0xff] }
  0xb0   :  { %v135_v30 = vunpack.c.h.bf16 %v59_v33  ;;  %v222_v53 = vmul.f32 %v5935_v24, %v130_v49  ;;  %vm396_vm14 = vcmp.gt.f32.partialorder %v6788_v47, 0.0  ;;  %vm397_vm15 = vcmp.gt.f32.partialorder %v6796_v44, 0.0  ;;  %v6930_v33 = vld [vmem:[#allocation2 + $0x10] sm:$0xff] }
  0xb1   :  { %v5780_v52 = vpop.eup %5779  ;;  %5789 = vpow2.f32 %v606_v12  ;;  %v223_v28 = vmul.f32 %v5937_v25, %v131_v9  ;;  %v226_v29 = vmul.f32 %v5935_v24, %v134_v51  ;;  %v1926_v40 = vrot.slane %v5836_v55, 5  ;;  %v1869_v9 = vld [vmem:[#allocation2] sm:$0xee] }
  0xb2   :  { %v5782_v17 = vpop.eup %5781  ;;  %v4881_v18 = vadd.f32 -1.0, %v5780_v52  ;;  %5791 = vpow2.f32 %v612_v13  ;;  %v227_v58 = vmul.f32 %v5937_v25, %v135_v30  ;;  %v6905_v4 = vadd.f32 %v5939_v26, %v222_v53 }
  0xb3   :  { %v5784_v19 = vpop.eup %5783  ;;  %v6890_v61 = vld [vmem:[#allocation2 + $0xc8] sm:$0x11]  ;;  %v4882_v23 = vadd.f32 -1.0, %v5782_v17  ;;  %5793 = vpow2.f32 %v614_v43  ;;  %v6915_v35 = vadd.f32 %v5941_v27, %v223_v28  ;;  %v1319_v62 = vshll.u32 %v6835_v14, 16  ;;  %v1870_v17 = vld [vmem:[#allocation2 + $0x10] sm:$0xee] }
  0xb4   :  { %v5786_v39 = vpop.eup %5785  ;;  %v1297_v2 = vshll.u32 %v6890_v61, 16  ;;  %v4885_v54 = vadd.f32 -1.0, %v5784_v19  ;;  %v792_v34 = vsel %vm392_vm11, %v6777_v56, %v4881_v18  ;;  %v6921_v7 = vadd.f32 %v5941_v27, %v227_v58 }
  0xb5   :  { %v6898_v36 = vld [vmem:[#allocation2 + $0xd8] sm:$0x11]  ;;  %v4886_v48 = vadd.f32 -1.0, %v5786_v39  ;;  %v793_v3 = vsel %vm393_vm12, %v6785_v45, %v4882_v23  ;;  %v6918_v45 = vadd.f32 %v5939_v26, %v226_v29  ;;  %vm386_vm0 = vcmp.gt.f32.partialorder %v6841_v22, 0.0 }
  0xb6   :  { %v1299_v6 = vrot.slane %v1297_v2, 5  ;;  %v1311_v32 = vshll.u32 %v6898_v36, 16  ;;  %v796_v56 = vsel %vm396_vm14, %v6788_v47, %v4885_v54  ;;  %v5474_v37 = vpack.c.bf16 %v793_v3, %v792_v34 }
  0xb7   :  { %v797_v59 = vsel %vm397_vm15, %v6796_v44, %v4886_v48  ;;  %v1316_v44 = vshrl.u32 %v6835_v14, 16  ;;  %v474_v12 = vmin.f32 %v6905_v4, 0.0  ;;  %v475_v13 = vmin.f32 %v6915_v35, 0.0 }
  0xb8   :  { %v1300_v21 = vsel %vm6236_vm9, %v1295_v1, %v1299_v6  ;;  %v1313_v47 = vrot.slane %v1311_v32, 5  ;;  %v5476_v10 = vpack.c.bf16 %v797_v59, %v796_v56  ;;  %1086 = vst.msk [vmem:[#allocation2 + $0x100] sm:$0xff] %vm6093_vm10, %v5474_v37  ;;  %v478_v49 = vmin.f32 %v6918_v45, 0.0 }
  0xb9   :  { %v479_v43 = vmin.f32 %v6921_v7, 0.0  ;;  %v1330_v52 = vshrl.u32 %v6855_v63, 16  ;;  %v620_v53 = vmul.f32 1.442695, %v474_v12  ;;  %v5107_v18 = vcombine.high %v6930_v33, %v6932_v60 }
  0xba   :  { %v1314_v1 = vsel %vm6236_vm9, %v1309_v11, %v1313_v47  ;;  %1088 = vst.msk [vmem:[#allocation2 + $0x110] sm:$0xff] %vm6093_vm10, %v5476_v10  ;;  %v622_v11 = vmul.f32 1.442695, %v475_v13  ;;  %v628_v19 = vmul.f32 1.442695, %v478_v49  ;;  %v1333_v28 = vshll.u32 %v6855_v63, 16 }
  0xbb   :  { %v4966_v51 = vcombine.high %v1300_v21, %v1314_v1  ;;  %v4965_v30 = vcombine.low %v1300_v21, %v1314_v1  ;;  %v630_v23 = vmul.f32 1.442695, %v479_v43  ;;  %5795 = vpow2.f32 %v620_v53  ;;  %v40_v43 = vld [vmem:[%s8845_s0 + $0x80] sm:$0xff] }
  0xbc   :  { %vm1917_vm1 = vcmask 1042432   ;;  %vm1918_vm2 = vcmask 1046532   ;;  %v5788_v29 = vpop.eup %5787  ;;  %vm387_vm3 = vcmp.gt.f32.partialorder %v6844_v42, 0.0  ;;  %5797 = vpow2.f32 %v622_v11 }
  0xbd   :  { %4985 = vmatprep.mubr.msk.bf16.mxu0 %vm1500_vm13, %v4966_v51  ;;  %v5021_v39 = vrot.slane %v1869_v9, 9  ;;  %v5022_v2 = vrot.slane %v1870_v17, 9  ;;  %vm390_vm4 = vcmp.gt.f32.partialorder %v6850_v57, 0.0  ;;  %vm391_vm5 = vcmp.gt.f32.partialorder %v6853_v16, 0.0  ;;  %vm6952_vm7 = vmor %vm1917_vm1, %vm1918_vm2  ;;  %v6999_v51 = vld [vmem:[#allocation2 + $0x40] sm:$0xff] }
  0xbe   :  { %1598 = vmatmul.mubr.bf16.gmra.mxu0 %v4965_v30  ;;  %v5790_v54 = vpop.eup %5789  ;;  %v4875_v48 = vadd.f32 -1.0, %v5788_v29  ;;  %5799 = vpow2.f32 %v628_v19  ;;  %v1318_v32 = vrot.slane %v1316_v44, 4  ;;  %v1321_v56 = vrot.slane %v1319_v62, 5 }
  0xbf   :  { %v6948_v34 = vld [vmem:[#allocation2 + $0x100] sm:$0xff]  ;;  %v5792_v58 = vpop.eup %5791  ;;  %v4876_v6 = vadd.f32 -1.0, %v5790_v54  ;;  %5801 = vpow2.f32 %v630_v23  ;;  %v1332_v47 = vrot.slane %v1330_v52, 4  ;;  %v1335_v10 = vrot.slane %v1333_v28, 5 }
  0xc0   :  { %v5794_v37 = vpop.eup %5793  ;;  %v4879_v55 = vadd.f32 -1.0, %v5792_v58  ;;  %v786_v21 = vsel %vm386_vm0, %v6841_v22, %v4875_v48  ;;  %v6967_v44 = vsel %vm6952_vm7, %v5021_v39, %v1922_v50  ;;  %v6971_v62 = vsel %vm6952_vm7, %v5022_v2, %v1926_v40  ;;  %v5621_v58 = vld [vmem:[%s8844_s1 + $0x1a0] sm:$0xff]  }
  0xc1   :  { %v6956_v59 = vld [vmem:[#allocation2 + $0x110] sm:$0xff]  ;;  %v4880_v1 = vadd.f32 -1.0, %v5794_v37  ;;  %v787_v22 = vsel %vm387_vm3, %v6844_v42, %v4876_v6  ;;  %v1322_v40 = vor.u32 %v1321_v56, %v1318_v32  ;;  %v1336_v9 = vor.u32 %v1335_v10, %v1332_v47 }
  0xc2   :  { %v5003_v12 = vcombine.high %v6948_v34, %v6956_v59  ;;  %v790_v13 = vsel %vm390_vm4, %v6850_v57, %v4879_v55  ;;  %v5002_v49 = vcombine.low %v6948_v34, %v6956_v59  ;;  %v5471_v50 = vpack.c.bf16 %v787_v22, %v786_v21  ;;  %v7021_v10 = vld [vmem:[#allocation2 + $0x50] sm:$0xff] }
  0xc3   :  { %v791_v46 = vsel %vm391_vm5, %v6853_v16, %v4880_v1  ;;  %v5055_v57 = vcombine.low %v6967_v44, %v6971_v62  ;;  %v5056_v52 = vcombine.high %v6967_v44, %v6971_v62  ;;  %v6997_v16 = vld [vmem:[#allocation2 + $0x30] sm:$0xff]  ;;  %v96_v30 = vunpack.c.l.bf16 %v40_v43 }
  0xc4   :  { %5020 = vmatprep.mubr.msk.bf16.mxu1 %vm1500_vm13, %v5003_v12  ;;  %v5473_v42 = vpack.c.bf16 %v791_v46, %v790_v13  ;;  %1083 = vst.msk [vmem:[#allocation2 + $0xe8] sm:$0x11] %vm6168_vm6, %v5471_v50  ;;  %v97_v53 = vunpack.c.h.bf16 %v40_v43  ;;  %v1344_v17 = vshrl.u32 %v6948_v34, 16  ;;  %v1347_v11 = vshll.u32 %v6948_v34, 16  ;;  %v7031_v50 = vld [vmem:[#allocation2 + $0x60] sm:$0xff] }
  0xc5   :  { %1861 = vmatmul.mubr.bf16.gmra.mxu1 %v5002_v49  ;;  %v1323_v19 = vrot.slane %v1322_v40, 4  ;;  %v5106_v23 = vcombine.low %v6930_v33, %v6932_v60  ;;  %v1358_v28 = vshrl.u32 %v6956_v59, 16  ;;  %vm394_vm8 = vcmp.gt.f32.partialorder %v6905_v4, 0.0 }
  0xc6   :  { %5131 = vmatprep.mubr.msk.bf16.mxu1 %vm1500_vm13, %v5107_v18  ;;  %1085 = vst.msk [vmem:[#allocation2 + $0xf8] sm:$0x11] %vm6168_vm6, %v5473_v42  ;;  %v1337_v18 = vrot.slane %v1336_v9, 4  ;;  %v188_v29 = vmul.f32 %v5935_v24, %v96_v30  ;;  %v1361_v2 = vshll.u32 %v6956_v59, 16  ;;  %vm395_vm11 = vcmp.gt.f32.partialorder %v6915_v35, 0.0 }
  0xc7   :  { %v5109_v54 = vcombine.high %v6997_v16, %v6999_v51  ;;  %v189_v48 = vmul.f32 %v5937_v25, %v97_v53  ;;  %vm398_vm12 = vcmp.gt.f32.partialorder %v6918_v45, 0.0  ;;  %vm399_vm14 = vcmp.gt.f32.partialorder %v6921_v7, 0.0 }
  0xc8   :  { %v5796_v39 = vpop.eup %5795  ;;  %v7019_v56 = vadd.f32 %v5939_v26, %v188_v29  ;;  %v1346_v21 = vrot.slane %v1344_v17, 4  ;;  %v1349_v47 = vrot.slane %v1347_v11, 5  ;;  %v1360_v46 = vrot.slane %v1358_v28, 4 }
  0xc9   :  { %v5798_v6 = vpop.eup %5797  ;;  %v4883_v32 = vadd.f32 -1.0, %v5796_v39  ;;  %v7024_v12 = vadd.f32 %v5941_v27, %v189_v48  ;;  %v1363_v53 = vrot.slane %v1361_v2, 5  ;;  %v5108_v39 = vcombine.low %v6997_v16, %v6999_v51  ;;  %v7055_v2 = vld [vmem:[#allocation2 + $0x20] sm:$0xee] }
  0xca   :  { %v4884_v55 = vadd.f32 -1.0, %v5798_v6  ;;  %v440_v40 = vmin.f32 %v7019_v56, 0.0  ;;  %vm360_vm15 = vcmp.gt.f32.partialorder %v7019_v56, 0.0 }
  0xcb   :  { %v5800_v37 = vpop.eup %5799  ;;  %v7026_v22 = vld [vmem:[#allocation2 + $0xe8] sm:$0x11]  ;;  %v794_v49 = vsel %vm394_vm8, %v6905_v4, %v4883_v32  ;;  %v5625_v4 = vld [vmem:[%s8844_s1 + $0x198] sm:$0xff]   ;;  %v441_v28 = vmin.f32 %v7024_v12, 0.0  ;;  %v1877_v32 = vld [vmem:[#allocation2 + $0xa0] sm:$0xee] }
  0xcc   :  { %v5802_v1 = vpop.eup %5801  ;;  %v4887_v13 = vadd.f32 -1.0, %v5800_v37  ;;  %v1325_v42 = vshll.u32 %v7026_v22, 16  ;;  %v795_v30 = vsel %vm395_vm11, %v6915_v35, %v4884_v55  ;;  %v1364_v55 = vor.u32 %v1363_v53, %v1360_v46 }
  0xcd   :  { %2469 = vmatmul.mubr.bf16.vlgmr.msra.gmra.mxu1 %v5106_v23  ;;  %v7034_v43 = vld [vmem:[#allocation2 + $0xf8] sm:$0x11]  ;;  %v4888_v9 = vadd.f32 -1.0, %v5802_v1  ;;  %v5475_v23 = vpack.c.bf16 %v795_v30, %v794_v49  ;;  %v554_v6 = vmul.f32 1.442695, %v441_v28  ;;  %v5626_v49 = vld [vmem:[%s8844_s1 + $0x190] sm:$0xff]   ;;  %v5110_v30 = vcombine.low %v7021_v10, %v7031_v50 }
  0xce   :  { %5132 = vmatprep.mubr.msk.bf16.mxu1 %vm1500_vm13, %v5109_v54  ;;  %3337 = vmatpush1.bf16.msra.mxu1 %v5621_v58  ;;  %v1339_v17 = vshll.u32 %v7034_v43, 16  ;;  %v798_v11 = vsel %vm398_vm12, %v6918_v45, %v4887_v13  ;;  %v1327_v35 = vrot.slane %v1325_v42, 5  ;;  %v552_v54 = vmul.f32 1.442695, %v440_v40  ;;  %v1878_v1 = vld [vmem:[#allocation2 + $0xb0] sm:$0xee] }
  0xcf   :  { %3338 = vmatprep.subr.bf16.mxu1 %v8854_v0  ;;  %v799_v29 = vsel %vm399_vm14, %v6921_v7, %v4888_v9  ;;  %1087 = vst.msk [vmem:[#allocation2 + $0x108] sm:$0x11] %vm6168_vm6, %v5475_v23  ;;  %v5111_v45 = vcombine.high %v7021_v10, %v7031_v50  ;;  %v1350_v7 = vor.u32 %v1349_v47, %v1346_v21  ;;  %v1879_v40 = vld [vmem:[#allocation2 + $0xc0] sm:$0xee]  ;;  %v5023_v47 = vrot.slane %v7055_v2, 9  ;;  %v5614_v2 = vld [vmem:[%s8844_s1 + $0x158] sm:$0xff]  }
  0xd0   :  { %v1341_v48 = vrot.slane %v1339_v17, 5  ;;  %v5477_v58 = vpack.c.bf16 %v799_v29, %v798_v11  ;;  %v1328_v37 = vsel %vm6236_vm9, %v1323_v19, %v1327_v35  ;;  %5803 = vpow2.f32 %v552_v54  ;;  %v1880_v42 = vld [vmem:[#allocation2 + $0xd0] sm:$0xee]  ;;  %v7072_v9 = vld [vmem:[#allocation2 + $0x28] sm:$0x11]  ;;  %v60_v17 = vld [vmem:[%s8845_s0 + $0x120] sm:$0xff] }
  0xd1   :  { %5805 = vpow2.f32 %v554_v6  ;;  %v5029_v46 = vrot.slane %v1877_v32, 9  ;;  %v1954_v53 = vrot.slane %v6772_v31, 5  ;;  %v1351_v11 = vrot.slane %v1350_v7, 4  ;;  %v5628_v31 = vld [vmem:[%s8844_s1 + $0x188] sm:$0xff]  }
  0xd2   :  { %3339 = vmatpush1.bf16.msra.mxu1 %v5625_v4  ;;  %v1342_v13 = vsel %vm6236_vm9, %v1337_v18, %v1341_v48  ;;  %1089 = vst.msk [vmem:[#allocation2 + $0x118] sm:$0x11] %vm6168_vm6, %v5477_v58  ;;  %v1930_v18 = vrot.slane %v7072_v9, 5  ;;  %v5030_v4 = vrot.slane %v1878_v1, 9  ;;  %v1365_v23 = vrot.slane %v1364_v55, 4  ;;  %v5634_v9 = vld [vmem:[%s8844_s1 + $0x168] sm:$0xff]  }
  0xd3   :  { %3340 = vmatprep.subr.bf16.mxu1 %v8854_v0  ;;  %v4968_v19 = vcombine.high %v1328_v37, %v1342_v13  ;;  %v4967_v21 = vcombine.low %v1328_v37, %v1342_v13  ;;  %v1958_v28 = vrot.slane %v6779_v38, 5  ;;  %v5031_v35 = vrot.slane %v1879_v40, 9  ;;  %v1881_v58 = vld [vmem:[#allocation2 + $0xe0] sm:$0xee]  ;;  %v1882_v1 = vld [vmem:[#allocation2 + $0xf0] sm:$0xee] }
  0xd4   :  { %v7086_v29 = vsel %vm6952_vm7, %v5029_v46, %v1954_v53  ;;  %v5032_v54 = vrot.slane %v1880_v42, 9  ;;  %v1966_v48 = vrot.slane %v6898_v36, 5  ;;  %v136_v32 = vunpack.c.l.bf16 %v60_v17 }
  0xd5   :  { %2477 = vmatmul.mubr.bf16.gmra.mxu1 %v5108_v39  ;;  %4986 = vmatprep.mubr.msk.bf16.mxu0 %vm1500_vm13, %v4968_v19  ;;  %v1962_v39 = vrot.slane %v6890_v61, 5  ;;  %v7097_v38 = vsel %vm6952_vm7, %v5030_v4, %v1958_v28  ;;  %v137_v37 = vunpack.c.h.bf16 %v60_v17  ;;  %v5033_v46 = vrot.slane %v1881_v58, 9  ;;  %v5630_v4 = vld [vmem:[%s8844_s1 + $0x180] sm:$0xff]  }
  0xd6   :  { %5133 = vmatprep.mubr.msk.bf16.mxu1 %vm1500_vm13, %v5111_v45  ;;  %1606 = vmatmul.mubr.bf16.gmra.mxu0 %v4967_v21  ;;  %v7093_v45 = vld [vmem:[#allocation2 + $0x108] sm:$0x11]  ;;  %v7115_v40 = vsel %vm6952_vm7, %v5032_v54, %v1966_v48  ;;  %v228_v19 = vmul.f32 %v5935_v24, %v136_v32  ;;  %v5034_v54 = vrot.slane %v1882_v1, 9  ;;  %vm361_vm0 = vcmp.gt.f32.partialorder %v7024_v12, 0.0 }
  0xd7   :  { %3341 = vmatpush1.bf16.msra.mxu1 %v5626_v49  ;;  %v1353_v7 = vshll.u32 %v7093_v45, 16  ;;  %v7109_v55 = vsel %vm6952_vm7, %v5031_v35, %v1962_v39  ;;  %v1872_v49 = vld [vmem:[#allocation2 + $0x30] sm:$0xee]  ;;  %v229_v21 = vmul.f32 %v5937_v25, %v137_v37  ;;  %v1974_v37 = vrot.slane %v7034_v43, 5 }
  0xd8   :  { %3342 = vmatprep.subr.bf16.mxu1 %v8854_v0  ;;  %v7129_v35 = vadd.f32 %v5939_v26, %v228_v19  ;;  %v5024_v32 = vrot.slane %v1872_v49, 9  ;;  %v2638_v6 = vshrl.u32 %v7021_v10, 16  ;;  %v2641_v61 = vshll.u32 %v7021_v10, 16 }
  0xd9   :  { %v7111_v13 = vld [vmem:[#allocation2 + $0x118] sm:$0x11]  ;;  %v1355_v42 = vrot.slane %v1353_v7, 5  ;;  %v7132_v39 = vadd.f32 %v5941_v27, %v229_v21 }
  0xda   :  { %v1367_v53 = vshll.u32 %v7111_v13, 16  ;;  %v5838_v7 = vld [vmem:[#allocation2 + $0x38] sm:$0x11]  ;;  %v480_v19 = vmin.f32 %v7129_v35, 0.0  ;;  %vm400_vm1 = vcmp.gt.f32.partialorder %v7129_v35, 0.0 }
  0xdb   :  { %3343 = vmatpush1.bf16.msra.mxu1 %v5628_v31  ;;  %v1970_v31 = vrot.slane %v7026_v22, 5  ;;  %v1356_v48 = vsel %vm6236_vm9, %v1351_v11, %v1355_v42  ;;  %v1934_v5 = vrot.slane %v5838_v7, 5  ;;  %v481_v21 = vmin.f32 %v7132_v39, 0.0 }
  0xdc   :  { %3344 = vmatprep.subr.bf16.mxu1 %v8854_v0  ;;  %v1369_v58 = vrot.slane %v1367_v53, 5  ;;  %v7153_v11 = vsel %vm6952_vm7, %v5034_v54, %v1974_v37  ;;  %v5633_v54 = vld [vmem:[%s8844_s1 + $0x170] sm:$0xff]   ;;  %v1873_v37 = vld [vmem:[#allocation2 + $0x40] sm:$0xee]  ;;  %vm401_vm2 = vcmp.gt.f32.partialorder %v7132_v39, 0.0 }
  0xdd   :  { %2485 = vmatmul.mubr.bf16.gmra.mxu1 %v5110_v30  ;;  %v5804_v28 = vpop.eup %5803  ;;  %v5631_v30 = vld [vmem:[%s8844_s1 + $0x178] sm:$0xff]   ;;  %v7149_v43 = vsel %vm6952_vm7, %v5033_v46, %v1970_v31 }
  0xde   :  { %v1370_v22 = vsel %vm6236_vm9, %v1365_v23, %v1369_v58  ;;  %v5806_v1 = vpop.eup %5805  ;;  %v4849_v53 = vadd.f32 -1.0, %v5804_v28  ;;  %v632_v23 = vmul.f32 1.442695, %v480_v19  ;;  %v634_v58 = vmul.f32 1.442695, %v481_v21 }
  0xdf   :  { %3345 = vmatpush1.bf16.msra.mxu1 %v5630_v4  ;;  %v4970_v49 = vcombine.high %v1356_v48, %v1370_v22  ;;  %v4969_v42 = vcombine.low %v1356_v48, %v1370_v22  ;;  %v4850_v4 = vadd.f32 -1.0, %v5806_v1  ;;  %v5840_v21 = vld [vmem:[#allocation2 + $0x58] sm:$0x11]  ;;  %v7200_v1 = vld [vmem:[#allocation2 + $0xc0] sm:$0xff] }
  0xe0   :  { %3346 = vmatprep.subr.bf16.mxu1 %v8854_v0  ;;  %v760_v31 = vsel %vm360_vm15, %v7019_v56, %v4849_v53  ;;  %5807 = vpow2.f32 %v632_v23  ;;  %v7181_v56 = vsel %vm6952_vm7, %v5023_v47, %v1930_v18  ;;  %v5025_v18 = vrot.slane %v1873_v37, 9  ;;  %v1876_v53 = vld [vmem:[#allocation2 + $0x70] sm:$0xee]  ;;  %v5636_v23 = vld [vmem:[%s8844_s1 + $0x1a8] sm:$0xff]  }
  0xe1   :  { %4987 = vmatprep.mubr.msk.bf16.mxu0 %vm1500_vm13, %v4970_v49  ;;  %v761_v28 = vsel %vm361_vm0, %v7024_v12, %v4850_v4  ;;  %5809 = vpow2.f32 %v634_v58  ;;  %v7185_v12 = vsel %vm6952_vm7, %v5024_v32, %v1934_v5  ;;  %v5839_v5 = vld [vmem:[#allocation2 + $0x48] sm:$0x11]  ;;  %v1942_v22 = vrot.slane %v5840_v21, 5  ;;  %v1875_v49 = vld [vmem:[#allocation2 + $0x60] sm:$0xee]  ;;  %v5617_v58 = vld [vmem:[%s8844_s1 + $0x150] sm:$0xff]  }
  0xe2   :  { %1614 = vmatmul.mubr.bf16.gmra.mxu0 %v4969_v42  ;;  %v5458_v48 = vpack.c.bf16 %v761_v28, %v760_v31  ;;  %v5058_v47 = vcombine.high %v7181_v56, %v7185_v12  ;;  %v1938_v32 = vrot.slane %v5839_v5, 5  ;;  %v7205_v42 = vld [vmem:[#allocation2 + $0x70] sm:$0xff]  ;;  %v5057_v4 = vcombine.low %v7181_v56, %v7185_v12 }
  0xe3   :  { %3347 = vmatpush1.bf16.msra.mxu1 %v5631_v30  ;;  %5080 = vmatprep.mubr.msk.bf16.mxu0 %vm1500_vm13, %v5056_v52  ;;  %v1874_v52 = vld [vmem:[#allocation2 + $0x50] sm:$0xee]  ;;  %v2610_v56 = vshrl.u32 %v6997_v16, 16  ;;  %v2613_v12 = vshll.u32 %v6997_v16, 16 }
  0xe4   :  { %3348 = vmatprep.subr.bf16.mxu1 %v8854_v0  ;;  %1070 = vst.msk [vmem:[#allocation2 + $0x80] sm:$0xff] %vm6093_vm10, %v5458_v48  ;;  %v5026_v19 = vrot.slane %v1874_v52, 9  ;;  %v7198_v30 = vld [vmem:[#allocation2 + $0xb0] sm:$0xff]  ;;  %v7218_v44 = vsel %vm6952_vm7, %v5025_v18, %v1938_v32  ;;  %v7236_v18 = vld [vmem:[#allocation2 + $0x38] sm:$0x11] }
  0xe5   :  { %v5115_v62 = vcombine.high %v7198_v30, %v7200_v1  ;;  %v2612_v32 = vrot.slane %v2610_v56, 4  ;;  %v2619_v21 = vshll.u32 %v7236_v18, 16 }
  0xe6   :  { %v7227_v28 = vsel %vm6952_vm7, %v5026_v19, %v1942_v22  ;;  %v2615_v19 = vrot.slane %v2613_v12, 5  ;;  %v2624_v12 = vshrl.u32 %v6999_v51, 16 }
  0xe7   :  { %3349 = vmatpush1.bf16.msra.mxu1 %v5633_v54  ;;  %v5841_v54 = vld [vmem:[#allocation2 + $0x68] sm:$0x11]  ;;  %v5060_v22 = vcombine.high %v7218_v44, %v7227_v28 }
  0xe8   :  { %3350 = vmatprep.subr.bf16.mxu1 %v8854_v0  ;;  %v1946_v48 = vrot.slane %v5841_v54, 5  ;;  %v2616_v56 = vor.u32 %v2615_v19, %v2612_v32  ;;  %v7270_v19 = vld [vmem:[#allocation2 + $0x48] sm:$0x11] }
  0xea   :  { %2170 = vmatmul.mubr.bf16.vlgmr.msra.gmra.mxu0 %v5055_v57  ;;  %v5027_v57 = vrot.slane %v1875_v49, 9  ;;  %v5620_v49 = vld [vmem:[%s8844_s1 + $0x148] sm:$0xff]   ;;  %v2617_v46 = vrot.slane %v2616_v56, 4 }
  0xeb   :  { %3351 = vmatpush1.bf16.msra.mxu1 %v5634_v9  ;;  %2959 = vmatpush1.bf16.msra.mxu0 %v5614_v2  ;;  %v7223_v31 = vld [vmem:[#allocation2 + $0x80] sm:$0xff]  ;;  %v5028_v9 = vrot.slane %v1876_v53, 9  ;;  %v5842_v2 = vld [vmem:[#allocation2 + $0x78] sm:$0x11] }
  0xec   :  { %5081 = vmatprep.mubr.msk.bf16.mxu0 %vm1500_vm13, %v5058_v47  ;;  %2960 = vmatprep.subr.bf16.mxu0 %v8854_v0  ;;  %v5113_v37 = vcombine.high %v7205_v42, %v7223_v31  ;;  %v5112_v52 = vcombine.low %v7205_v42, %v7223_v31  ;;  %v1950_v47 = vrot.slane %v5842_v2, 5  ;;  %v7259_v2 = vsel %vm6952_vm7, %v5027_v57, %v1946_v48 }
  0xed   :  { %3366 = vmatprep.subr.bf16.mxu1 %v8854_v0  ;;  %v5808_v5 = vpop.eup %5807  ;;  %v2621_v48 = vrot.slane %v2619_v21, 5  ;;  %v5114_v21 = vcombine.low %v7198_v30, %v7200_v1 }
  0xee   :  { %v5810_v16 = vpop.eup %5809  ;;  %5134 = vmatprep.mubr.msk.bf16.mxu1 %vm1500_vm13, %v5113_v37  ;;  %v4889_v53 = vadd.f32 -1.0, %v5808_v5  ;;  %v41_v37 = vld [vmem:[%s8845_s0 + $0x88] sm:$0x11]  ;;  %v7265_v5 = vld [vmem:[#allocation2 + $0xd0] sm:$0xff] }
  0xef   :  { %3367 = vmatpush2.bf16.msra.mxu1 %v5636_v23  ;;  %2961 = vmatpush1.bf16.msra.mxu0 %v5617_v58  ;;  %v5059_v23 = vcombine.low %v7218_v44, %v7227_v28  ;;  %v4890_v58 = vadd.f32 -1.0, %v5810_v16  ;;  %v2627_v16 = vshll.u32 %v6999_v51, 16  ;;  %v5629_v44 = vld [vmem:[%s8844_s1 + $0x130] sm:$0xff]  }
  0xf0   :  { %2962 = vmatprep.subr.bf16.mxu0 %v8854_v0  ;;  %2493 = vmatmul.mubr.bf16.gmra.mxu1 %v5112_v52  ;;  %v7263_v52 = vsel %vm6952_vm7, %v5028_v9, %v1950_v47  ;;  %v800_v32 = vsel %vm400_vm1, %v7129_v35, %v4889_v53  ;;  %v2626_v9 = vrot.slane %v2624_v12, 4  ;;  %v2633_v47 = vshll.u32 %v7270_v19, 16  ;;  %v5623_v35 = vld [vmem:[%s8844_s1 + $0x140] sm:$0xff]   ;;  %v3071_v53 = vld [vmem:[#allocation2 + $0x10] sm:$0xee] }
  0xf1   :  { %5135 = vmatprep.mubr.msk.bf16.mxu1 %vm1500_vm13, %v5115_v62  ;;  %4157 = vmatprep.subr.bf16.mxu1 %v8854_v0  ;;  %v801_v57 = vsel %vm401_vm2, %v7132_v39, %v4890_v58  ;;  %v5062_v39 = vcombine.high %v7259_v2, %v7263_v52  ;;  %v99_v58 = vunpack.c.h.bf16 %v41_v37  ;;  %v5190_v17 = vrot.slane %v3071_v53, 9 }
  0xf2   :  { %2178 = vmatmul.mubr.bf16.gmra.mxu0 %v5057_v4  ;;  %v5478_v51 = vpack.c.bf16 %v801_v57, %v800_v32  ;;  %v98_v4 = vunpack.c.l.bf16 %v41_v37  ;;  %v2635_v32 = vrot.slane %v2633_v47, 5  ;;  %v5627_v37 = vld [vmem:[%s8844_s1 + $0x138] sm:$0xff]  }
  0xf3   :  { %v7247_v54 = vpop.f32.mrf.mxu1  ;;  %5082 = vmatprep.mubr.msk.bf16.mxu0 %vm1500_vm13, %v5060_v22  ;;  %2963 = vmatpush1.bf16.msra.mxu0 %v5620_v49  ;;  %v5117_v22 = vcombine.high %v7265_v5, %v6835_v14  ;;  %v7291_v49 = vld [vmem:[#allocation2 + $0x18] sm:$0x11]  ;;  %v191_v36 = vmul.f32 %v5937_v25, %v99_v58  ;;  %v3072_v58 = vld [vmem:[#allocation2 + $0x20] sm:$0xee] }
  0xf4   :  { %2964 = vmatprep.subr.bf16.mxu0 %v8854_v0  ;;  %1090 = vst.msk [vmem:[#allocation2 + $0x120] sm:$0xff] %vm6093_vm10, %v5478_v51  ;;  %v3121_v56 = vrot.slane %v7291_v49, 5 }
  0xf5   :  { %v1808_v62 = vpop.f32.mrf.mxu1  ;;  %v7316_v10 = vadd.f32 %v5941_v27, %v191_v36  ;;  %v7334_v36 = vld [vmem:[#allocation2 + $0x28] sm:$0x11] }
  0xf6   :  { %v2629_v62 = vrot.slane %v2627_v16, 5  ;;  %v190_v16 = vmul.f32 %v5935_v24, %v98_v4  ;;  %v2652_v4 = vshrl.u32 %v7031_v50, 16  ;;  %v7350_v28 = vsel %vm6952_vm7, %v5190_v17, %v3121_v56  ;;  %v7362_v56 = vld [vmem:[#allocation2 + $0x110] sm:$0xee] }
  0xf7   :  { %v7282_v7 = vpop.f32.mrf.mxu1  ;;  %2965 = vmatpush1.bf16.msra.mxu0 %v5623_v35  ;;  %v2640_v35 = vrot.slane %v2638_v6, 4  ;;  %v3125_v17 = vrot.slane %v7334_v36, 5  ;;  %vm363_vm4 = vcmp.gt.f32.partialorder %v7316_v10, 0.0 }
  0xf8   :  { %8889 = vst [vmem:[#allocation5_spill] sm:$0xff] %v7282_v7  ;;  %v2630_v12 = vor.u32 %v2629_v62, %v2626_v9  ;;  %v7307_v9 = vsel %vm6236_vm9, %v2617_v46, %v2621_v48  ;;  %v7310_v51 = vadd.f32 %v5939_v26, %v190_v16  ;;  %2501 = vmatmul.mubr.bf16.gmra.mxu1 %v5114_v21  ;;  %v2643_v62 = vrot.slane %v2641_v61, 5 }
  0xf9   :  { %v1811_v57 = vpop.f32.mrf.mxu1  ;;  %2966 = vmatprep.subr.bf16.mxu0 %v8854_v0  ;;  %5136 = vmatprep.mubr.msk.bf16.mxu1 %vm1500_vm13, %v5117_v22  ;;  %v5116_v46 = vcombine.low %v7265_v5, %v6835_v14  ;;  %v5119_v48 = vcombine.high %v6855_v63, %v6948_v34  ;;  %v7336_v14 = vld [vmem:[#allocation2 + $0x100] sm:$0xee]  ;;  %v2655_v16 = vshll.u32 %v7031_v50, 16  ;;  %v2654_v15 = vrot.slane %v2652_v4, 4  ;;  %v5632_v4 = vld [vmem:[%s8844_s1 + $0x128] sm:$0xff]  }
  0xfa   :  { %v2631_v47 = vrot.slane %v2630_v12, 4  ;;  %v7324_v12 = vld [vmem:[#allocation2 + $0x58] sm:$0x11]  ;;  %v442_v6 = vmin.f32 %v7310_v51, 0.0  ;;  %2186 = vmatmul.mubr.bf16.gmra.mxu0 %v5059_v23  ;;  %v7352_v23 = vld [vmem:[#allocation2 + $0x68] sm:$0x11] }
  0xfb   :  { %v7312_v53 = vpop.f32.mrf.mxu1  ;;  %v2647_v57 = vshll.u32 %v7324_v12, 16  ;;  %5083 = vmatprep.mubr.msk.bf16.mxu0 %vm1500_vm13, %v5062_v39  ;;  %2967 = vmatpush1.bf16.msra.mxu0 %v5627_v37  ;;  %v5191_v39 = vrot.slane %v3072_v58, 9  ;;  %v7358_v37 = vld [vmem:[#allocation2 + $0x30] sm:$0xee]  ;;  %v2585_v7 = vshll.u32 %v6930_v33, 16  ;;  %vm362_vm3 = vcmp.gt.f32.partialorder %v7310_v51, 0.0 }
  0xfc   :  { %8890 = vst [vmem:[#allocation6_spill] sm:$0xff] %v7312_v53  ;;  %v7328_v21 = vsel %vm6236_vm9, %v2631_v47, %v2635_v32  ;;  %v443_v32 = vmin.f32 %v7316_v10, 0.0  ;;  %v556_v47 = vmul.f32 1.442695, %v442_v6  ;;  %2968 = vmatprep.subr.bf16.mxu0 %v8854_v0  ;;  %v2661_v53 = vshll.u32 %v7352_v23, 16 }
  0xfd   :  { %v1816_v61 = vpop.f32.mrf.mxu1  ;;  %v5035_v6 = vrot.slane %v7336_v14, 9  ;;  %v2649_v0 = vrot.slane %v2647_v57, 5  ;;  %v2596_v14 = vshrl.u32 %v6932_v60, 16 }
  0xfe   :  { %v2644_v61 = vor.u32 %v2643_v62, %v2640_v35  ;;  %v558_v8 = vmul.f32 1.442695, %v443_v32  ;;  %v1978_v35 = vrot.slane %v7093_v45, 5  ;;  %5811 = vpow2.f32 %v556_v47  ;;  %v7366_v62 = vld [vmem:[#allocation2 + $0x40] sm:$0xee] }
  0xff   :  { %v7355_v22 = vpop.f32.mrf.mxu1  ;;  %2969 = vmatpush1.bf16.msra.mxu0 %v5629_v44  ;;  %v2582_v32 = vshrl.u32 %v6930_v33, 16  ;;  %v2599_v45 = vshll.u32 %v6932_v60, 16  ;;  %v8892_v47 = vmov 0   ;;  %v2663_v44 = vrot.slane %v2661_v53, 5  ;;  %v5635_v53 = vld [vmem:[%s8844_s1 + $0x120] sm:$0xff]  }
 0x100   :  { %8891 = vst [vmem:[#allocation7_spill] sm:$0xff] %v7355_v22  ;;  %5813 = vpow2.f32 %v558_v8  ;;  %v2645_v58 = vrot.slane %v2644_v61, 4  ;;  %v2657_v22 = vrot.slane %v2655_v16, 5  ;;  %2509 = vmatmul.mubr.bf16.gmra.mxu1 %v5116_v46  ;;  %2970 = vmatprep.subr.bf16.mxu0 %v8892_v47  ;;  %v7383_v33 = vsel %vm6952_vm7, %v5191_v39, %v3125_v17 }
 0x101   :  { %v1819_v50 = vpop.f32.mrf.mxu1  ;;  %5137 = vmatprep.mubr.msk.bf16.mxu1 %vm1500_vm13, %v5119_v48  ;;  %v8893_v8 = vcombine.low %v7259_v2, %v7263_v52  ;;  %v2591_v48 = vshll.u32 %v7291_v49, 16  ;;  %v8895_v2 = vcombine.high %v7086_v29, %v7097_v38  ;;  %v7406_v52 = vrot.slane %v2582_v32, 4 }
 0x102   :  { %v2658_v57 = vor.u32 %v2657_v22, %v2654_v15  ;;  %v7378_v61 = vpop.f32.mrf.mxu0  ;;  %v7391_v15 = vld [vmem:[#allocation2 + $0x120] sm:$0xff]  ;;  %v2605_v22 = vshll.u32 %v7334_v36, 16  ;;  %v7400_v39 = vsel %vm6236_vm9, %v2645_v58, %v2649_v0  ;;  %v7410_v50 = vrot.slane %v2596_v14, 4  ;;  %v7414_v36 = vld [vmem:[#allocation2 + $0x50] sm:$0xee] }
 0x103   :  { %2194 = vmatmul.mubr.bf16.gmra.mxu0 %v8893_v8  ;;  %8894 = vst [vmem:[#allocation8_spill] sm:$0xff] %v7391_v15  ;;  %v7408_v8 = vrot.slane %v2585_v7, 5  ;;  %v7412_v49 = vrot.slane %v2599_v45, 5  ;;  %v2694_v32 = vshrl.u32 %v7198_v30, 16  ;;  %v5121_v45 = vcombine.high %v6956_v59, %v7391_v15 }
 0x104   :  { %v2659_v17 = vrot.slane %v2658_v57, 4  ;;  %v1561_v46 = vpop.f32.mrf.mxu0  ;;  %5084 = vmatprep.mubr.msk.bf16.mxu0 %vm1500_vm13, %v8895_v2  ;;  %2971 = vmatpush1.bf16.msra.mxu0 %v5632_v4  ;;  %v7423_v4 = vsel %vm6952_vm7, %v5035_v6, %v1978_v35  ;;  %v7439_v2 = vrot.slane %v2591_v48, 5  ;;  %v2697_v58 = vshll.u32 %v7198_v30, 16  ;;  %v5637_v57 = vld [vmem:[%s8844_s1 + $0x160] sm:$0xff]   ;;  %v7454_v6 = vld [vmem:[#allocation2 + $0xc8] sm:$0x11] }
 0x105   :  { %2972 = vmatprep.subr.bf16.mxu0 %v8892_v47  ;;  %v2696_v60 = vrot.slane %v2694_v32, 4  ;;  %v2588_v46 = vor.u32 %v7408_v8, %v7406_v52  ;;  %v2602_v48 = vor.u32 %v7412_v49, %v7410_v50  ;;  %v8899_v30 = vcombine.low %v6855_v63, %v6948_v34 }
 0x106   :  { %v7416_v0 = vpop.f32.mrf.mxu1  ;;  %v7427_v7 = vsel %vm6236_vm9, %v2659_v17, %v2663_v44  ;;  %v7430_v14 = vpop.f32.mrf.mxu0  ;;  %v7442_v17 = vld [vmem:[#allocation2 + $0xb8] sm:$0x11]  ;;  %v2711_v52 = vshll.u32 %v7200_v1, 16  ;;  %v2717_v50 = vshll.u32 %v7454_v6, 16  ;;  %v2666_v63 = vshrl.u32 %v7205_v42, 16 }
 0x107   :  { %8896 = vst [vmem:[#allocation9_spill] sm:$0xff] %v7416_v0  ;;  %8897 = vst [vmem:[#allocation10_spill] sm:$0xff] %v7427_v7  ;;  %v2703_v32 = vshll.u32 %v7442_v17, 16  ;;  %v8900_v49 = vcombine.low %v7086_v29, %v7097_v38  ;;  %v2680_v7 = vshrl.u32 %v7223_v31, 16  ;;  %v2683_v29 = vshll.u32 %v7223_v31, 16 }
 0x108   :  { %v1824_v35 = vpop.f32.mrf.mxu1  ;;  %v1564_v16 = vpop.f32.mrf.mxu0  ;;  %2973 = vmatpush1.bf16.msra.mxu0 %v5635_v53  ;;  %2517 = vmatmul.mubr.bf16.gmra.mxu1 %v8899_v30  ;;  %v2708_v53 = vshrl.u32 %v7200_v1, 16  ;;  %v3076_v1 = vld [vmem:[#allocation2 + $0x60] sm:$0xee] }
 0x109   :  { %v7452_v35 = vrot.slane %v2605_v22, 5  ;;  %2988 = vmatprep.subr.bf16.mxu0 %v8892_v47  ;;  %v2699_v16 = vrot.slane %v2697_v58, 5  ;;  %5138 = vmatprep.mubr.msk.bf16.mxu1 %vm1500_vm13, %v5121_v45  ;;  %v5120_v22 = vcombine.low %v6956_v59, %v7391_v15  ;;  %v2705_v30 = vrot.slane %v2703_v32, 5 }
 0x10a   :  { %v7457_v44 = vpop.f32.mrf.mxu1  ;;  %v2713_v45 = vrot.slane %v2711_v52, 5  ;;  %v8901_v59 = vcombine.high %v7109_v55, %v7115_v40  ;;  %v5195_v52 = vrot.slane %v3076_v1, 9 }
 0x10b   :  { %8898 = vst [vmem:[#allocation11_spill] sm:$0xff] %v7457_v44  ;;  %v5812_v8 = vpop.eup %5811  ;;  %2202 = vmatmul.mubr.bf16.gmra.mxu0 %v8900_v49  ;;  %v2700_v58 = vor.u32 %v2699_v16, %v2696_v60  ;;  %v2710_v44 = vrot.slane %v2708_v53, 4  ;;  %v2719_v16 = vrot.slane %v2717_v50, 5  ;;  %v3137_v53 = vrot.slane %v7324_v12, 5 }
 0x10c   :  { %v1827_v34 = vpop.f32.mrf.mxu1  ;;  %5085 = vmatprep.mubr.msk.bf16.mxu0 %vm1500_vm13, %v8901_v59  ;;  %2989 = vmatpush2.bf16.msra.mxu0 %v5637_v57  ;;  %v4851_v15 = vadd.f32 -1.0, %v5812_v8  ;;  %v3141_v49 = vrot.slane %v7352_v23, 5  ;;  %v2603_v50 = vrot.slane %v2602_v48, 4  ;;  %v2668_v12 = vrot.slane %v2666_v63, 4  ;;  %v61_v23 = vld [vmem:[%s8845_s0 + $0x128] sm:$0x11] }
 0x10d   :  { %v5814_v0 = vpop.eup %5813  ;;  %v2669_v34 = vshll.u32 %v7205_v42, 16  ;;  %3635 = vmatprep.subr.bf16.mxu0 %v8892_v47  ;;  %v2701_v60 = vrot.slane %v2700_v58, 4  ;;  %v2714_v32 = vor.u32 %v2713_v45, %v2710_v44  ;;  %v2589_v42 = vrot.slane %v2588_v46, 4 }
 0x10e   :  { %v4852_v38 = vadd.f32 -1.0, %v5814_v0  ;;  %v762_v57 = vsel %vm362_vm3, %v7310_v51, %v4851_v15  ;;  %v8902_v51 = vrot.slane %v7111_v13, 5  ;;  %v8903_v15 = vrot.slane %v7362_v56, 9 }
 0x10f   :  { %v7493_v0 = vsel %vm6236_vm9, %v2701_v60, %v2705_v30  ;;  %v2715_v44 = vrot.slane %v2714_v32, 4  ;;  %v2671_v1 = vrot.slane %v2669_v34, 5  ;;  %v2682_v46 = vrot.slane %v2680_v7, 4 }
 0x110   :  { %v763_v31 = vsel %vm363_vm4, %v7316_v10, %v4852_v38  ;;  %2525 = vmatmul.mubr.bf16.gmra.mxu1 %v5120_v22  ;;  %v7504_v10 = vsel %vm6952_vm7, %v8903_v15, %v8902_v51  ;;  %v2685_v58 = vrot.slane %v2683_v29, 5  ;;  %v8904_v63 = vcombine.high %v7350_v28, %v7383_v33  ;;  %v7554_v38 = vld [vmem:[#allocation2 + $0x78] sm:$0x11]  ;;  %v7596_v51 = vld [vmem:[#allocation2 + $0x80] sm:$0xee] }
 0x111   :  { %v5459_v8 = vpack.c.bf16 %v763_v31, %v762_v57  ;;  %v7508_v48 = vsel %vm6236_vm9, %v2715_v44, %v2719_v16  ;;  %v8905_v22 = vrot.slane %v7236_v18, 5  ;;  %v8906_v13 = vrot.slane %v7358_v37, 9  ;;  %v5641_v31 = vld [vmem:[%s8844_s1 + $0x230] sm:$0xff]  }
 0x112   :  { %5249 = vmatprep.mubr.msk.bf16.mxu1 %vm1500_vm13, %v8904_v63  ;;  %v8907_v7 = vrot.slane %v7270_v19, 5  ;;  %v8908_v30 = vrot.slane %v7366_v62, 9  ;;  %v8909_v59 = vcombine.low %v7109_v55, %v7115_v40  ;;  %v7542_v19 = vsel %vm6236_vm9, %v2589_v42, %v7439_v2  ;;  %v3083_v37 = vld [vmem:[#allocation2 + $0xf0] sm:$0xee] }
 0x113   :  { %v7520_v56 = vsel %vm6952_vm7, %v8906_v13, %v8905_v22  ;;  %1071 = vst.msk [vmem:[#allocation2 + $0x88] sm:$0x11] %vm6168_vm6, %v5459_v8  ;;  %v8910_v62 = vrot.slane %v7414_v36, 9  ;;  %v7552_v29 = vsel %vm6952_vm7, %v5195_v52, %v3141_v49  ;;  %v138_v60 = vunpack.c.l.bf16 %v61_v23  ;;  %v7587_v8 = vld [vmem:[#allocation2 + $0xb0] sm:$0xee] }
 0x114   :  { %v7528_v45 = vsel %vm6952_vm7, %v8908_v30, %v8907_v7  ;;  %2210 = vmatmul.mubr.bf16.gmra.mxu0 %v8909_v59  ;;  %v8911_v55 = vcombine.high %v7149_v43, %v7153_v11  ;;  %v7563_v40 = vsel %vm6236_vm9, %v2603_v50, %v7452_v35  ;;  %v2672_v36 = vor.u32 %v2671_v1, %v2668_v12  ;;  %v7589_v12 = vld [vmem:[#allocation2 + $0xc0] sm:$0xee]  ;;  %v5643_v59 = vld [vmem:[%s8844_s1 + $0x228] sm:$0xff]  }
 0x115   :  { %v7548_v34 = vsel %vm6952_vm7, %v8910_v62, %v3137_v53  ;;  %v2675_v2 = vshll.u32 %v7554_v38, 16  ;;  %v139_v32 = vunpack.c.h.bf16 %v61_v23  ;;  %v5224_v16 = vcombine.low %v7350_v28, %v7383_v33  ;;  %v7568_v53 = vld [vmem:[#allocation2 + $0x70] sm:$0xee]  ;;  %v7591_v1 = vld [vmem:[#allocation2 + $0xe0] sm:$0xff] }
 0x116   :  { %5086 = vmatprep.mubr.msk.bf16.mxu0 %vm1500_vm13, %v8911_v55  ;;  %v2686_v52 = vor.u32 %v2685_v58, %v2682_v46  ;;  %v230_v49 = vmul.f32 %v5935_v24, %v138_v60  ;;  %v5070_v57 = vcombine.high %v7423_v4, %v7504_v10  ;;  %v5069_v42 = vcombine.low %v7423_v4, %v7504_v10 }
 0x117   :  { %v5227_v35 = vcombine.high %v7520_v56, %v7528_v45  ;;  %v231_v28 = vmul.f32 %v5937_v25, %v139_v32  ;;  %v5158_v33 = vcombine.high %v7542_v19, %v7563_v40  ;;  %v5226_v44 = vcombine.low %v7520_v56, %v7528_v45  ;;  %v7621_v32 = vld [vmem:[#allocation2 + $0xd8] sm:$0x11] }
 0x118   :  { %v5229_v50 = vcombine.high %v7548_v34, %v7552_v29  ;;  %v7594_v23 = vadd.f32 %v5939_v26, %v230_v49  ;;  %v5196_v15 = vrot.slane %v7568_v53, 9  ;;  %v2673_v46 = vrot.slane %v2672_v36, 4  ;;  %3369 = vmatmul.mubr.bf16.vlgmr.msra.gmra.mxu1 %v5224_v16  ;;  %v3081_v16 = vld [vmem:[#allocation2 + $0xd0] sm:$0xee]  ;;  %v3084_v53 = vld [vmem:[#allocation2 + $0x100] sm:$0xee] }
 0x119   :  { %v2677_v58 = vrot.slane %v2675_v2, 5  ;;  %v7600_v63 = vadd.f32 %v5941_v27, %v231_v28  ;;  %v3145_v13 = vrot.slane %v7554_v38, 5  ;;  %v2687_v56 = vrot.slane %v2686_v52, 4  ;;  %5250 = vmatprep.mubr.msk.bf16.mxu1 %vm1500_vm13, %v5227_v35  ;;  %4158 = vmatpush1.bf16.msra.mxu1 %v5641_v31  ;;  %v3082_v31 = vld [vmem:[#allocation2 + $0xe0] sm:$0xee] }
 0x11a   :  { %v7602_v22 = vld [vmem:[#allocation2 + $0x88] sm:$0x11]  ;;  %v2722_v7 = vshrl.u32 %v7265_v5, 16  ;;  %v482_v30 = vmin.f32 %v7594_v23, 0.0  ;;  %v2725_v62 = vshll.u32 %v7265_v5, 16  ;;  %v2736_v60 = vshrl.u32 %v7591_v1, 16  ;;  %4159 = vmatprep.subr.bf16.mxu1 %v8892_v47 }
 0x11b   :  { %v2689_v45 = vshll.u32 %v7602_v22, 16  ;;  %v2739_v38 = vshll.u32 %v7591_v1, 16  ;;  %v8912_v55 = vcombine.low %v7149_v43, %v7153_v11  ;;  %v5197_v36 = vrot.slane %v7596_v51, 9 }
 0x11c   :  { %v5198_v2 = vrot.slane %v7587_v8, 9  ;;  %v483_v52 = vmin.f32 %v7600_v63, 0.0  ;;  %v636_v5 = vmul.f32 1.442695, %v482_v30  ;;  %v3153_v49 = vrot.slane %v7442_v17, 5 }
 0x11d   :  { %2218 = vmatmul.mubr.bf16.gmra.mxu0 %v8912_v55  ;;  %v5199_v35 = vrot.slane %v7589_v12, 9  ;;  %v7629_v43 = vsel %vm6236_vm9, %v2673_v46, %v2677_v58  ;;  %v2691_v11 = vrot.slane %v2689_v45, 5  ;;  %v3157_v28 = vrot.slane %v7454_v6, 5  ;;  %v7632_v8 = vld [vmem:[#allocation2 + $0xe8] sm:$0x11]  ;;  %4160 = vmatpush1.bf16.msra.mxu1 %v5643_v59  ;;  %v7645_v58 = vld [vmem:[#allocation2 + $0xf0] sm:$0xff] }
 0x11e   :  { %5087 = vmatprep.mubr.msk.bf16.mxu0 %vm1500_vm13, %v5070_v57  ;;  %v7634_v51 = vrot.slane %v2722_v7, 4  ;;  %5815 = vpow2.f32 %v636_v5  ;;  %v638_v30 = vmul.f32 1.442695, %v483_v52  ;;  %v7636_v55 = vpop.f32.mrf.mxu0  ;;  %v5644_v57 = vld [vmem:[%s8844_s1 + $0x220] sm:$0xff]   ;;  %v2727_v12 = vrot.slane %v2725_v62, 5  ;;  %8913 = vst [vmem:[#allocation12_spill] sm:$0xff] %v7645_v58  ;;  %4161 = vmatprep.subr.bf16.mxu1 %v8892_v47 }
 0x11f   :  { %v7640_v17 = vsel %vm6236_vm9, %v2687_v56, %v2691_v11  ;;  %v2738_v46 = vrot.slane %v2736_v60, 4  ;;  %v2741_v6 = vrot.slane %v2739_v38, 5  ;;  %v3149_v7 = vrot.slane %v7602_v22, 5  ;;  %v7659_v11 = vld [vmem:[#allocation2 + $0xf8] sm:$0x11]  ;;  %v7753_v52 = vld [vmem:[#allocation2 + $0x30] sm:$0xff] }
 0x120   :  { %5817 = vpow2.f32 %v638_v30  ;;  %v1569_v56 = vpop.f32.mrf.mxu0  ;;  %v5200_v59 = vrot.slane %v3081_v16, 9  ;;  %v3161_v5 = vrot.slane %v7621_v32, 5  ;;  %v5201_v62 = vrot.slane %v3082_v31, 9  ;;  %3377 = vmatmul.mubr.bf16.gmra.mxu1 %v5226_v44 }
 0x121   :  { %v3165_v60 = vrot.slane %v7632_v8, 5  ;;  %v5228_v22 = vcombine.low %v7548_v34, %v7552_v29  ;;  %v2750_v18 = vshrl.u32 %v7645_v58, 16  ;;  %v2753_v30 = vshll.u32 %v7645_v58, 16  ;;  %5251 = vmatprep.mubr.msk.bf16.mxu1 %vm1500_vm13, %v5229_v50  ;;  %4162 = vmatpush1.bf16.msra.mxu1 %v5644_v57  ;;  %v5646_v34 = vld [vmem:[%s8844_s1 + $0x218] sm:$0xff]   ;;  %v7686_v29 = vld [vmem:[#allocation2 + $0x108] sm:$0x11] }
 0x122   :  { %v7663_v16 = vpop.f32.mrf.mxu0  ;;  %v7673_v44 = vsel %vm6952_vm7, %v5196_v15, %v3145_v13  ;;  %v7677_v31 = vsel %vm6952_vm7, %v5198_v2, %v3153_v49  ;;  %v7681_v56 = vsel %vm6952_vm7, %v5199_v35, %v3157_v28  ;;  %v2731_v50 = vshll.u32 %v7621_v32, 16  ;;  %4163 = vmatprep.subr.bf16.mxu1 %v8892_v47  ;;  %v7699_v35 = vld [vmem:[#allocation2 + $0x100] sm:$0xff]  ;;  %v5648_v32 = vld [vmem:[%s8844_s1 + $0x210] sm:$0xff]  }
 0x123   :  { %v7694_v15 = vsel %vm6952_vm7, %v5197_v36, %v3149_v7  ;;  %v2728_v13 = vor.u32 %v2727_v12, %v7634_v51  ;;  %v2742_v2 = vor.u32 %v2741_v6, %v2738_v46  ;;  %v2745_v49 = vshll.u32 %v7632_v8, 16  ;;  %8914 = vst [vmem:[#allocation13_spill] sm:$0xff] %v7699_v35  ;;  %v7726_v7 = vld [vmem:[#allocation2 + $0x110] sm:$0xee] }
 0x124   :  { %v1572_v28 = vpop.f32.mrf.mxu0  ;;  %v7707_v4 = vsel %vm6952_vm7, %v5200_v59, %v3161_v5  ;;  %v7711_v10 = vsel %vm6952_vm7, %v5201_v62, %v3165_v60  ;;  %v3169_v36 = vrot.slane %v7659_v11, 5  ;;  %v5203_v8 = vrot.slane %v3084_v53, 9  ;;  %v7733_v53 = vld [vmem:[#allocation2 + $0x20] sm:$0xff] }
 0x125   :  { %2226 = vmatmul.mubr.bf16.gmra.mxu0 %v5069_v42  ;;  %v5202_v42 = vrot.slane %v3083_v37, 9  ;;  %v3173_v51 = vrot.slane %v7686_v29, 5  ;;  %v2752_v57 = vrot.slane %v2750_v18, 4  ;;  %v7718_v12 = vpop.f32.mrf.mxu1  ;;  %v5231_v46 = vcombine.high %v7673_v44, %v7694_v15  ;;  %4164 = vmatpush1.bf16.msra.mxu1 %v5646_v34  ;;  %v7724_v37 = vld [vmem:[#allocation2 + $0x118] sm:$0x11]  ;;  %v5638_v34 = vld [vmem:[%s8844_s1 + $0x1e8] sm:$0xff]  }
 0x126   :  { %5182 = vmatprep.mubr.msk.bf16.mxu0 %vm1500_vm13, %v5158_v33  ;;  %v2755_v33 = vrot.slane %v2753_v30, 5  ;;  %v2764_v59 = vshrl.u32 %v7699_v35, 16  ;;  %v2767_v5 = vshll.u32 %v7699_v35, 16  ;;  %4165 = vmatprep.subr.bf16.mxu1 %v8892_v47  ;;  %v2729_v18 = vrot.slane %v2728_v13, 4 }
 0x127   :  { %v2733_v62 = vrot.slane %v2731_v50, 5  ;;  %v7731_v60 = vrot.slane %v2742_v2, 4  ;;  %v2747_v30 = vrot.slane %v2745_v49, 5  ;;  %v1832_v28 = vpop.f32.mrf.mxu1  ;;  %v7744_v13 = vsel %vm6952_vm7, %v5202_v42, %v3169_v36  ;;  %v7802_v49 = vld [vmem:[#allocation2 + $0x120] sm:$0xee] }
 0x128   :  { %v2759_v50 = vshll.u32 %v7659_v11, 16  ;;  %3385 = vmatmul.mubr.bf16.gmra.mxu1 %v5228_v22  ;;  %v7749_v2 = vsel %vm6952_vm7, %v5203_v8, %v3173_v51  ;;  %v2756_v6 = vor.u32 %v2755_v33, %v2752_v57  ;;  %v5649_v22 = vld [vmem:[%s8844_s1 + $0x208] sm:$0xff]   ;;  %vm402_vm5 = vcmp.gt.f32.partialorder %v7594_v23, 0.0 }
 0x129   :  { %8915 = vst [vmem:[#allocation14_spill] sm:$0xff] %v7731_v60  ;;  %v7755_v38 = vpop.f32.mrf.mxu1  ;;  %5252 = vmatprep.mubr.msk.bf16.mxu1 %vm1500_vm13, %v5231_v46  ;;  %4166 = vmatpush1.bf16.msra.mxu1 %v5648_v32  ;;  %v2766_v11 = vrot.slane %v2764_v59, 4  ;;  %v2769_v42 = vrot.slane %v2767_v5, 5  ;;  %v3781_v36 = vshrl.u32 %v7733_v53, 16  ;;  %v8916_v8 = vcombine.low %v7542_v19, %v7563_v40  ;;  %v7776_v33 = vld [vmem:[#allocation2 + $0x28] sm:$0x11] }
 0x12a   :  { %v7768_v51 = vsel %vm6236_vm9, %v2729_v18, %v2733_v62  ;;  %v7773_v32 = vsel %vm6236_vm9, %v7731_v60, %v2747_v30  ;;  %4167 = vmatprep.subr.bf16.mxu1 %v8892_v47  ;;  %8917 = vst [vmem:[#allocation15_spill] sm:$0xff] %v7776_v33  ;;  %v3784_v46 = vshll.u32 %v7733_v53, 16  ;;  %v8918_v19 = vcombine.high %v7307_v9, %v7328_v21  ;;  %v5639_v40 = vld [vmem:[%s8844_s1 + $0x1e0] sm:$0xff]  }
 0x12b   :  { %v5816_v45 = vpop.eup %5815  ;;  %v1835_v59 = vpop.f32.mrf.mxu1  ;;  %vm403_vm8 = vcmp.gt.f32.partialorder %v7600_v63, 0.0  ;;  %v2761_v18 = vrot.slane %v2759_v50, 5  ;;  %v3798_v62 = vshll.u32 %v7753_v52, 16  ;;  %v5230_v30 = vcombine.low %v7673_v44, %v7694_v15  ;;  %v5651_v50 = vld [vmem:[%s8844_s1 + $0x200] sm:$0xff]  }
 0x12c   :  { %v4891_v57 = vadd.f32 -1.0, %v5816_v45  ;;  %v3795_v45 = vshrl.u32 %v7753_v52, 16  ;;  %v7795_v59 = vrot.slane %v2756_v6, 4  ;;  %v2770_v28 = vor.u32 %v2769_v42, %v2766_v11 }
 0x12d   :  { %2991 = vmatmul.mubr.bf16.vlgmr.msra.gmra.mxu0 %v8916_v8  ;;  %v5818_v5 = vpop.eup %5817  ;;  %4168 = vmatpush1.bf16.msra.mxu1 %v5649_v22  ;;  %v2773_v60 = vshll.u32 %v7686_v29, 16  ;;  %v7805_v44 = vrot.slane %v3781_v36, 4  ;;  %v3790_v15 = vshll.u32 %v7776_v33, 16  ;;  %v3786_v6 = vrot.slane %v3784_v46, 5  ;;  %v5640_v29 = vld [vmem:[%s8844_s1 + $0x1d8] sm:$0xff]  }
 0x12e   :  { %3636 = vmatpush1.bf16.msra.mxu0 %v5638_v34  ;;  %5183 = vmatprep.mubr.msk.bf16.mxu0 %vm1500_vm13, %v8918_v19  ;;  %v4892_v34 = vadd.f32 -1.0, %v5818_v5  ;;  %v802_v8 = vsel %vm402_vm5, %v7594_v23, %v4891_v57  ;;  %8919 = vst [vmem:[#allocation16_spill] sm:$0xff] %v7795_v59  ;;  %v7797_v19 = vld [vmem:[#allocation2 + $0x110] sm:$0xff]  ;;  %v7814_v22 = vadd.f32 %v7247_v54, %v7378_v61  ;;  %v7823_v36 = vld [vmem:[#allocation2 + $0x38] sm:$0x11]  ;;  %v7825_v5 = vrot.slane %v3795_v45, 4 }
 0x12f   :  { %3637 = vmatprep.subr.bf16.mxu0 %v8892_v47  ;;  %8920 = vst [vmem:[#allocation17_spill] sm:$0xff] %v7797_v19  ;;  %4169 = vmatprep.subr.bf16.mxu1 %v8892_v47  ;;  %v8922_v57 = vld [vmem:[#allocation5_spill] sm:$0xff]  ;;  %8924 = vst [vmem:[#allocation19_spill] sm:$0xff] %v7823_v36  ;;  %v2778_v46 = vshrl.u32 %v7797_v19, 16  ;;  %v8947_v35 = vcombine.low %v7707_v4, %v7711_v10 }
 0x130   :  { %v803_v23 = vsel %vm403_vm8, %v7600_v63, %v4892_v34  ;;  %8921 = vst [vmem:[#allocation18_spill] sm:$0xff] %v7814_v22  ;;  %v7818_v11 = vadd.f32 %v8922_v57, %v7430_v14  ;;  %v7827_v63 = vrot.slane %v3798_v62, 5  ;;  %3393 = vmatmul.mubr.bf16.gmra.mxu1 %v5230_v30  ;;  %v42_v45 = vld [vmem:[%s8845_s0 + $0x90] sm:$0xff]  ;;  %v8925_v62 = vcombine.high %v7677_v31, %v7681_v56  ;;  %v43_v14 = vld [vmem:[%s8845_s0 + $0x98] sm:$0x11] }
 0x131   :  { %v5479_v42 = vpack.c.bf16 %v803_v23, %v802_v8  ;;  %4170 = vmatpush1.bf16.msra.mxu1 %v5651_v50  ;;  %v8926_v34 = vrot.slane %v7724_v37, 5  ;;  %v8927_v8 = vrot.slane %v7726_v7, 9  ;;  %v7860_v57 = vsel %vm6236_vm9, %v7795_v59, %v2761_v18  ;;  %v5652_v50 = vld [vmem:[%s8844_s1 + $0x1f8] sm:$0xff]   ;;  %v7877_v18 = vld [vmem:[#allocation2 + $0x50] sm:$0xff] }
 0x132   :  { %8923 = vst [vmem:[#allocation5_spill] sm:$0xff] %v7818_v11  ;;  %3638 = vmatpush1.bf16.msra.mxu0 %v5639_v40  ;;  %5253 = vmatprep.mubr.msk.bf16.mxu1 %vm1500_vm13, %v8925_v62  ;;  %v7862_v62 = vrot.slane %v2770_v28, 4  ;;  %v8930_v7 = vcombine.low %v7307_v9, %v7328_v21  ;;  %v2775_v30 = vrot.slane %v2773_v60, 5  ;;  %v3804_v28 = vshll.u32 %v7823_v36, 16  ;;  %8931 = vst [vmem:[#allocation22_spill] sm:$0xff] %v7877_v18  ;;  %v8932_v40 = vld [vmem:[#allocation10_spill] sm:$0xff] }
 0x133   :  { %3639 = vmatprep.subr.bf16.mxu0 %v8892_v47  ;;  %1091 = vst.msk [vmem:[#allocation2 + $0x128] sm:$0x11] %vm6168_vm6, %v5479_v42  ;;  %v7855_v23 = vsel %vm6952_vm7, %v8927_v8, %v8926_v34  ;;  %v7867_v42 = vld [vmem:[#allocation2 + $0x40] sm:$0xff]  ;;  %4171 = vmatprep.subr.bf16.mxu1 %v8892_v47  ;;  %v3787_v34 = vor.u32 %v3786_v6, %v7805_v44  ;;  %v7874_v8 = vrot.slane %v3790_v15, 5  ;;  %v5642_v9 = vld [vmem:[%s8844_s1 + $0x1d0] sm:$0xff]   ;;  %v7891_v60 = vrot.slane %v2778_v46, 4 }
 0x134   :  { %8928 = vst [vmem:[#allocation20_spill] sm:$0xff] %v7862_v62  ;;  %8929 = vst [vmem:[#allocation21_spill] sm:$0xff] %v7867_v42  ;;  %v8933_v61 = vcombine.high %v7400_v39, %v8932_v40  ;;  %v3801_v21 = vor.u32 %v7827_v63, %v7825_v5  ;;  %v2781_v44 = vshll.u32 %v7797_v19, 16  ;;  %v100_v15 = vunpack.c.l.bf16 %v42_v45  ;;  %v8936_v11 = vld [vmem:[#allocation7_spill] sm:$0xff]  ;;  %v5654_v63 = vld [vmem:[%s8844_s1 + $0x238] sm:$0xff]  }
 0x135   :  { %2999 = vmatmul.mubr.bf16.gmra.mxu0 %v8930_v7  ;;  %v7894_v6 = vpop.f32.mrf.mxu0  ;;  %v3809_v7 = vshrl.u32 %v7867_v42, 16  ;;  %v7905_v5 = vadd.f32 %v8936_v11, %v7663_v16  ;;  %4172 = vmatpush1.bf16.msra.mxu1 %v5652_v50  ;;  %v3823_v46 = vshrl.u32 %v7877_v18, 16  ;;  %v101_v22 = vunpack.c.h.bf16 %v42_v45  ;;  %v5645_v50 = vld [vmem:[%s8844_s1 + $0x1c8] sm:$0xff]  }
 0x136   :  { %5184 = vmatprep.mubr.msk.bf16.mxu0 %vm1500_vm13, %v8933_v61  ;;  %3640 = vmatpush1.bf16.msra.mxu0 %v5640_v29  ;;  %v3812_v29 = vshll.u32 %v7867_v42, 16  ;;  %v8934_v61 = vld [vmem:[#allocation6_spill] sm:$0xff]  ;;  %v102_v59 = vunpack.c.l.bf16 %v43_v14  ;;  %v103_v36 = vunpack.c.h.bf16 %v43_v14  ;;  %v8938_v42 = vld [vmem:[#allocation8_spill] sm:$0xff]  ;;  %v3826_v16 = vshll.u32 %v7877_v18, 16 }
 0x137   :  { %3641 = vmatprep.subr.bf16.mxu0 %v8892_v47  ;;  %v7901_v54 = vadd.f32 %v8934_v61, %v7636_v55  ;;  %8937 = vst [vmem:[#allocation6_spill] sm:$0xff] %v7905_v5  ;;  %v1577_v33 = vpop.f32.mrf.mxu0  ;;  %4187 = vmatprep.subr.bf16.mxu1 %v8892_v47  ;;  %v2792_v55 = vshrl.u32 %v8938_v42, 16  ;;  %v2795_v61 = vshll.u32 %v8938_v42, 16  ;;  %v192_v11 = vmul.f32 %v5935_v24, %v100_v15 }
 0x138   :  { %v3788_v5 = vrot.slane %v3787_v34, 4  ;;  %v193_v45 = vmul.f32 %v5937_v25, %v101_v22  ;;  %v194_v33 = vmul.f32 %v5935_v24, %v102_v59  ;;  %v195_v14 = vmul.f32 %v5937_v25, %v103_v36  ;;  %v7942_v36 = vld [vmem:[#allocation2 + $0x48] sm:$0x11] }
 0x139   :  { %8935 = vst [vmem:[#allocation10_spill] sm:$0xff] %v7901_v54  ;;  %v7922_v54 = vpop.f32.mrf.mxu0  ;;  %v8939_v42 = vcombine.low %v7677_v31, %v7681_v56  ;;  %v3811_v15 = vrot.slane %v3809_v7, 4  ;;  %v3814_v18 = vrot.slane %v3812_v29, 5  ;;  %v7931_v34 = vadd.f32 %v5939_v26, %v192_v11  ;;  %4188 = vmatpush2.bf16.msra.mxu1 %v5654_v63  ;;  %8941 = vst [vmem:[#allocation7_spill] sm:$0xff] %v7942_v36  ;;  %v5647_v11 = vld [vmem:[%s8844_s1 + $0x1c0] sm:$0xff]  }
 0x13a   :  { %3642 = vmatpush1.bf16.msra.mxu0 %v5642_v9  ;;  %v7928_v9 = vrot.slane %v2781_v44, 5  ;;  %v8940_v59 = vcombine.high %v7707_v4, %v7711_v10  ;;  %v7940_v22 = vsel %vm6236_vm9, %v7862_v62, %v2775_v30  ;;  %v3802_v31 = vrot.slane %v3801_v21, 4  ;;  %5545 = vmatprep.subr.bf16.mxu1 %v8892_v47  ;;  %v7968_v63 = vld [vmem:[#allocation2 + $0x128] sm:$0x11] }
 0x13b   :  { %3401 = vmatmul.mubr.bf16.gmra.mxu1 %v8939_v42  ;;  %3643 = vmatprep.subr.bf16.mxu0 %v8892_v47  ;;  %v3806_v56 = vrot.slane %v3804_v28, 5  ;;  %v3825_v44 = vrot.slane %v3823_v46, 4  ;;  %v1580_v7 = vpop.f32.mrf.mxu0  ;;  %v8942_v29 = vcombine.low %v7400_v39, %v8932_v40  ;;  %v7950_v42 = vld [vmem:[#allocation2 + $0x58] sm:$0x11]  ;;  %v7953_v30 = vadd.f32 %v5941_v27, %v193_v45 }
 0x13c   :  { %5254 = vmatprep.mubr.msk.bf16.mxu1 %vm1500_vm13, %v8940_v59  ;;  %8943 = vst [vmem:[#allocation8_spill] sm:$0xff] %v7950_v42  ;;  %v3828_v59 = vrot.slane %v3826_v16, 5  ;;  %v7956_v28 = vadd.f32 %v5939_v26, %v194_v33  ;;  %v7959_v21 = vadd.f32 %v5941_v27, %v195_v14  ;;  %v7962_v39 = vpop.f32.mrf.mxu1  ;;  %v8945_v40 = vcombine.high %v7629_v43, %v7640_v17 }
 0x13d   :  { %3007 = vmatmul.mubr.bf16.gmra.mxu0 %v8942_v29  ;;  %8944 = vst [vmem:[#allocation23_spill] sm:$0xff] %v7962_v39  ;;  %v2787_v46 = vshll.u32 %v7724_v37, 16  ;;  %v7971_v16 = vrot.slane %v2792_v55, 4  ;;  %v7973_v45 = vrot.slane %v2795_v61, 5  ;;  %v444_v33 = vmin.f32 %v7931_v34, 0.0  ;;  %v7985_v37 = vld [vmem:[#allocation2 + $0x60] sm:$0xff] }
 0x13e   :  { %5185 = vmatprep.mubr.msk.bf16.mxu0 %vm1500_vm13, %v8945_v40  ;;  %3644 = vmatpush1.bf16.msra.mxu0 %v5645_v50  ;;  %v7980_v14 = vsel %vm6236_vm9, %v3788_v5, %v7874_v8  ;;  %v2784_v50 = vor.u32 %v7928_v9, %v7891_v60  ;;  %v3815_v7 = vor.u32 %v3814_v18, %v3811_v15  ;;  %v3818_v29 = vshll.u32 %v7942_v36, 16  ;;  %v1840_v55 = vpop.f32.mrf.mxu1  ;;  %v5650_v60 = vld [vmem:[%s8844_s1 + $0x1b8] sm:$0xff]   ;;  %v7998_v9 = vld [vmem:[#allocation2 + $0x70] sm:$0xff] }
 0x13f   :  { %3645 = vmatprep.subr.bf16.mxu0 %v8892_v47  ;;  %v7989_v61 = vsel %vm6236_vm9, %v3802_v31, %v3806_v56  ;;  %v3832_v40 = vshll.u32 %v7950_v42, 16  ;;  %v445_v62 = vmin.f32 %v7953_v30, 0.0  ;;  %v446_v8 = vmin.f32 %v7956_v28, 0.0 }
 0x140   :  { %v3181_v18 = vrot.slane %v7968_v63, 5  ;;  %v3829_v5 = vor.u32 %v3828_v59, %v3825_v44  ;;  %v447_v15 = vmin.f32 %v7959_v21, 0.0  ;;  %v560_v55 = vmul.f32 1.442695, %v444_v33  ;;  %v8001_v31 = vpop.f32.mrf.mxu1  ;;  %v8948_v33 = vld [vmem:[#allocation9_spill] sm:$0xff] }
 0x141   :  { %8946 = vst [vmem:[#allocation24_spill] sm:$0xff] %v8001_v31  ;;  %v3837_v56 = vshrl.u32 %v7985_v37, 16  ;;  %v3840_v39 = vshll.u32 %v7985_v37, 16  ;;  %v562_v42 = vmul.f32 1.442695, %v445_v62  ;;  %v3816_v44 = vrot.slane %v3815_v7, 4 }
 0x142   :  { %3646 = vmatpush1.bf16.msra.mxu0 %v5647_v11  ;;  %v564_v36 = vmul.f32 1.442695, %v446_v8  ;;  %5819 = vpow2.f32 %v560_v55  ;;  %v566_v59 = vmul.f32 1.442695, %v447_v15  ;;  %v8011_v19 = vadd.f32 %v8948_v33, %v7894_v6  ;;  %v1843_v11 = vpop.f32.mrf.mxu1  ;;  %v8030_v15 = vld [vmem:[#allocation2 + $0x68] sm:$0x11] }
 0x143   :  { %3409 = vmatmul.mubr.bf16.gmra.mxu1 %v8947_v35  ;;  %3647 = vmatprep.subr.bf16.mxu0 %v8892_v47  ;;  %v8950_v31 = vcombine.high %v7744_v13, %v7749_v2  ;;  %v3820_v62 = vrot.slane %v3818_v29, 5  ;;  %v3834_v8 = vrot.slane %v3832_v40, 5  ;;  %5821 = vpow2.f32 %v562_v42  ;;  %v8951_v35 = vld [vmem:[#allocation11_spill] sm:$0xff] }
 0x144   :  { %8949 = vst [vmem:[#allocation9_spill] sm:$0xff] %v8011_v19  ;;  %v8019_v4 = vadd.f32 %v8951_v35, %v7922_v54  ;;  %v8953_v10 = vcombine.low %v7629_v43, %v7640_v17  ;;  %v8954_v6 = vrot.slane %v7802_v49, 9  ;;  %v3851_v29 = vshrl.u32 %v7998_v9, 16  ;;  %v5653_v43 = vld [vmem:[%s8844_s1 + $0x1b0] sm:$0xff]   ;;  %v8041_v49 = vld [vmem:[#allocation2 + $0x78] sm:$0x11] }
 0x145   :  { %5255 = vmatprep.mubr.msk.bf16.mxu1 %vm1500_vm13, %v8950_v31  ;;  %v3854_v42 = vshll.u32 %v7998_v9, 16  ;;  %5823 = vpow2.f32 %v564_v36  ;;  %v8955_v54 = vcombine.high %v7493_v0, %v7508_v48  ;;  %v3830_v17 = vrot.slane %v3829_v5, 4  ;;  %v8050_v33 = vld [vmem:[#allocation2 + $0x80] sm:$0xff] }
 0x146   :  { %8952 = vst [vmem:[#allocation11_spill] sm:$0xff] %v8019_v4  ;;  %3015 = vmatmul.mubr.bf16.gmra.mxu0 %v8953_v10  ;;  %v8028_v7 = vsel %vm6952_vm7, %v8954_v6, %v3181_v18  ;;  %v3839_v40 = vrot.slane %v3837_v56, 4  ;;  %v3842_v18 = vrot.slane %v3840_v39, 5  ;;  %5825 = vpow2.f32 %v566_v59  ;;  %v5655_v6 = vld [vmem:[%s8844_s1 + $0x1f0] sm:$0xff]  }
 0x147   :  { %5186 = vmatprep.mubr.msk.bf16.mxu0 %vm1500_vm13, %v8955_v54  ;;  %3648 = vmatpush1.bf16.msra.mxu0 %v5650_v60  ;;  %v5167_v55 = vcombine.low %v7768_v51, %v7773_v32  ;;  %v5170_v36 = vcombine.high %v7860_v57, %v7940_v22  ;;  %v2789_v60 = vrot.slane %v2787_v46, 5  ;;  %v5239_v5 = vcombine.high %v7855_v23, %v8028_v7 }
 0x148   :  { %3649 = vmatprep.subr.bf16.mxu0 %v8892_v47  ;;  %v5326_v39 = vcombine.low %v7980_v14, %v7989_v61  ;;  %v8056_v56 = vrot.slane %v2784_v50, 4  ;;  %v2798_v59 = vor.u32 %v7973_v45, %v7971_v16  ;;  %v3846_v11 = vshll.u32 %v8030_v15, 16 }
 0x149   :  { %v8061_v35 = vrot.slane %v3851_v29, 4  ;;  %v8063_v10 = vrot.slane %v3854_v42, 5  ;;  %v3860_v46 = vshll.u32 %v8041_v49, 16  ;;  %v8071_v50 = vsel %vm6236_vm9, %v3816_v44, %v3820_v62 }
 0x14a   :  { %v8075_v16 = vsel %vm6236_vm9, %v3830_v17, %v3834_v8  ;;  %v3843_v45 = vor.u32 %v3842_v18, %v3839_v40  ;;  %v3865_v29 = vshrl.u32 %v8050_v33, 16  ;;  %v8956_v42 = vcombine.low %v7744_v13, %v7749_v2  ;;  %v62_v8 = vld [vmem:[%s8845_s0 + $0x130] sm:$0xff] }
 0x14b   :  { %3650 = vmatpush1.bf16.msra.mxu0 %v5653_v43  ;;  %v5327_v54 = vcombine.high %v7980_v14, %v7989_v61  ;;  %v3868_v43 = vshll.u32 %v8050_v33, 16  ;;  %v8096_v13 = vsel %vm6236_vm9, %v8056_v56, %v2789_v60  ;;  %v8098_v2 = vrot.slane %v2798_v59, 4  ;;  %v8236_v61 = vld [vmem:[%s8844_s1 + $0x270] sm:$0xff]  }
 0x14c   :  { %3417 = vmatmul.mubr.bf16.gmra.mxu1 %v8956_v42  ;;  %3665 = vmatprep.subr.bf16.mxu0 %v8892_v47  ;;  %v2801_v17 = vshll.u32 %v7968_v63, 16  ;;  %v8957_v18 = vcombine.low %v7493_v0, %v7508_v48  ;;  %v3857_v62 = vor.u32 %v8063_v10, %v8061_v35  ;;  %v8110_v60 = vrot.slane %v3860_v46, 5  ;;  %v63_v63 = vld [vmem:[%s8845_s0 + $0x138] sm:$0x11] }
 0x14d   :  { %5256 = vmatprep.mubr.msk.bf16.mxu1 %vm1500_vm13, %v5239_v5  ;;  %v3848_v5 = vrot.slane %v3846_v11, 5  ;;  %v8958_v59 = vcombine.high %v7768_v51, %v7773_v32  ;;  %v3844_v0 = vrot.slane %v3843_v45, 4  ;;  %v8119_v48 = vrot.slane %v3865_v29, 4 }
 0x14e   :  { %3023 = vmatmul.mubr.bf16.gmra.mxu0 %v8957_v18  ;;  %v1583_v18 = vpop.f32.mrf.mxu0  ;;  %v140_v11 = vunpack.c.l.bf16 %v62_v8  ;;  %v141_v44 = vunpack.c.h.bf16 %v62_v8  ;;  %v5238_v35 = vcombine.low %v7855_v23, %v8028_v7  ;;  %vm364_vm11 = vcmp.gt.f32.partialorder %v7931_v34, 0.0 }
 0x14f   :  { %5187 = vmatprep.mubr.msk.bf16.mxu0 %vm1500_vm13, %v8958_v59  ;;  %3666 = vmatpush2.bf16.msra.mxu0 %v5655_v6  ;;  %v8125_v10 = vrot.slane %v3868_v43, 5  ;;  %v8128_v46 = vadd.f32 %v7718_v12, %v1583_v18  ;;  %v5820_v59 = vpop.eup %5819  ;;  %v2803_v6 = vrot.slane %v2801_v17, 5  ;;  %vm365_vm12 = vcmp.gt.f32.partialorder %v7953_v30, 0.0 }
 0x150   :  { %4535 = vmatprep.subr.bf16.mxu0 %v8892_v47  ;;  %v1585_v45 = vpop.f32.mrf.mxu0  ;;  %v142_v29 = vunpack.c.l.bf16 %v63_v63  ;;  %v143_v40 = vunpack.c.h.bf16 %v63_v63  ;;  %v5822_v8 = vpop.eup %5821  ;;  %vm366_vm14 = vcmp.gt.f32.partialorder %v7956_v28, 0.0  ;;  %v4853_v23 = vadd.f32 -1.0, %v5820_v59 }
 0x151   :  { %8959 = vst [vmem:[#allocation25_spill] sm:$0xff] %v8128_v46  ;;  %v232_v7 = vmul.f32 %v5935_v24, %v140_v11  ;;  %v233_v31 = vmul.f32 %v5937_v25, %v141_v44  ;;  %vm367_vm15 = vcmp.gt.f32.partialorder %v7959_v21, 0.0  ;;  %v4854_v12 = vadd.f32 -1.0, %v5822_v8  ;;  %v8969_v46 = vld [vmem:[#allocation19_spill] sm:$0xff] }
 0x152   :  { %v5824_v43 = vpop.eup %5823  ;;  %v1586_v18 = vpop.f32.mrf.mxu0  ;;  %v234_v17 = vmul.f32 %v5935_v24, %v142_v29  ;;  %v235_v42 = vmul.f32 %v5937_v25, %v143_v40  ;;  %v764_v59 = vsel %vm364_vm11, %v7931_v34, %v4853_v23  ;;  %v8162_v29 = vld [vmem:[#allocation2 + $0x88] sm:$0x11]  ;;  %v3871_v32 = vor.u32 %v8125_v10, %v8119_v48  ;;  %v8200_v48 = vld [vmem:[#allocation2 + $0xd0] sm:$0xff] }
 0x153   :  { %v5826_v45 = vpop.eup %5825  ;;  %v4855_v63 = vadd.f32 -1.0, %v5824_v43  ;;  %v8141_v11 = vadd.f32 %v7755_v38, %v1586_v18  ;;  %v8144_v44 = vadd.f32 %v5939_v26, %v232_v7  ;;  %v765_v24 = vsel %vm365_vm12, %v7953_v30, %v4854_v12  ;;  %v8164_v30 = vld [vmem:[#allocation2 + $0xc0] sm:$0xff] }
 0x154   :  { %3425 = vmatmul.mubr.bf16.gmra.mxu1 %v5238_v35  ;;  %v4856_v8 = vadd.f32 -1.0, %v5826_v45  ;;  %v1588_v25 = vpop.f32.mrf.mxu0  ;;  %v8151_v40 = vadd.f32 %v5941_v27, %v233_v31  ;;  %v8154_v35 = vadd.f32 %v5939_v26, %v234_v17  ;;  %v3858_v38 = vrot.slane %v3857_v62, 4  ;;  %v8272_v45 = vld [vmem:[%s8844_s1 + $0x268] sm:$0xff]  }
 0x155   :  { %8960 = vst [vmem:[#allocation26_spill] sm:$0xff] %v8141_v11  ;;  %5351 = vmatprep.mubr.msk.bf16.mxu1 %vm1500_vm13, %v5327_v54  ;;  %v766_v34 = vsel %vm366_vm14, %v7956_v28, %v4855_v63  ;;  %v5460_v54 = vpack.c.bf16 %v765_v24, %v764_v59  ;;  %v8167_v31 = vadd.f32 %v5941_v27, %v235_v42  ;;  %v484_v28 = vmin.f32 %v8144_v44, 0.0  ;;  %v8221_v25 = vld [vmem:[#allocation2 + $0xc8] sm:$0x11] }
 0x156   :  { %3031 = vmatmul.mubr.bf16.gmra.mxu0 %v5167_v55  ;;  %v8175_v26 = vsel %vm6236_vm9, %v3844_v0, %v3848_v5  ;;  %v767_v51 = vsel %vm367_vm15, %v7959_v21, %v4856_v8  ;;  %v8186_v27 = vsel %vm6236_vm9, %v8098_v2, %v2803_v6  ;;  %v8191_v55 = vld [vmem:[%s8844_s1 + $0x278] sm:$0xff]   ;;  %v8195_v21 = vpop.f32.mrf.mxu1  ;;  %v485_v42 = vmin.f32 %v8151_v40, 0.0 }
 0x157   :  { %5188 = vmatprep.mubr.msk.bf16.mxu0 %vm1500_vm13, %v5170_v36  ;;  %v5461_v36 = vpack.c.bf16 %v767_v51, %v766_v34  ;;  %1072 = vst.msk [vmem:[#allocation2 + $0x90] sm:$0xff] %vm6093_vm10, %v5460_v54  ;;  %v486_v5 = vmin.f32 %v8154_v35, 0.0  ;;  %v3874_v0 = vshll.u32 %v8162_v29, 16  ;;  %v3893_v2 = vshrl.u32 %v8164_v30, 16 }
 0x158   :  { %v487_v10 = vmin.f32 %v8167_v31, 0.0  ;;  %v640_v6 = vmul.f32 1.442695, %v484_v28  ;;  %v3896_v23 = vshll.u32 %v8164_v30, 16  ;;  %v1848_v7 = vpop.f32.mrf.mxu1  ;;  %v642_v43 = vmul.f32 1.442695, %v485_v42 }
 0x159   :  { %1073 = vst.msk [vmem:[#allocation2 + $0x98] sm:$0x11] %vm6168_vm6, %v5461_v36  ;;  %v644_v12 = vmul.f32 1.442695, %v486_v5  ;;  %v5172_v63 = vcombine.high %v8096_v13, %v8186_v27  ;;  %v8219_v24 = vsel %vm6236_vm9, %v3858_v38, %v8110_v60  ;;  %v3907_v34 = vshrl.u32 %v8200_v48, 16  ;;  %v8966_v36 = vld [vmem:[#allocation22_spill] sm:$0xff] }
 0x15a   :  { %5827 = vpow2.f32 %v640_v6  ;;  %v646_v59 = vmul.f32 1.442695, %v487_v10  ;;  %v3910_v54 = vshll.u32 %v8200_v48, 16  ;;  %v8225_v51 = vpop.f32.mrf.mxu1  ;;  %v8964_v28 = vcombine.high %v8071_v50, %v8075_v16  ;;  %v8967_v42 = vld [vmem:[#allocation21_spill] sm:$0xff]  ;;  %v8244_v10 = vld [vmem:[#allocation2 + $0xd8] sm:$0x11] }
 0x15b   :  { %5829 = vpow2.f32 %v642_v43  ;;  %v3876_v60 = vrot.slane %v3874_v0, 5  ;;  %v8965_v38 = vcombine.low %v7860_v57, %v7940_v22  ;;  %v3895_v6 = vrot.slane %v3893_v2, 4 }
 0x15c   :  { %4190 = vmatmul.mubr.bf16.vlgmr.msra.gmra.mxu1 %v5326_v39  ;;  %v3872_v39 = vrot.slane %v3871_v32, 4  ;;  %5831 = vpow2.f32 %v644_v12  ;;  %v3898_v7 = vrot.slane %v3896_v23, 5  ;;  %v1851_v43 = vpop.f32.mrf.mxu1  ;;  %v5328_v32 = vcombine.low %v8071_v50, %v8075_v16  ;;  %v4270_v23 = vld [vmem:[#allocation2 + $0x20] sm:$0xee] }
 0x15d   :  { %5352 = vmatprep.mubr.msk.bf16.mxu1 %vm1500_vm13, %v8964_v28  ;;  %5554 = vmatpush1.bf16.msra.mxu1 %v8191_v55  ;;  %5833 = vpow2.f32 %v646_v59  ;;  %v5331_v57 = vcombine.high %v8175_v26, %v8219_v24  ;;  %v3902_v2 = vshll.u32 %v8221_v25, 16  ;;  %v3909_v28 = vrot.slane %v3907_v34, 4  ;;  %v8968_v16 = vld [vmem:[#allocation15_spill] sm:$0xff] }
 0x15e   :  { %3039 = vmatmul.mubr.bf16.gmra.mxu0 %v8965_v38  ;;  %5546 = vmatprep.subr.bf16.mxu1 %v8892_v47  ;;  %v8254_v0 = vld [vmem:[#allocation2 + $0x90] sm:$0xff]  ;;  %v5171_v50 = vcombine.low %v8096_v13, %v8186_v27  ;;  %v8267_v8 = vsel %vm6236_vm9, %v3872_v39, %v3876_v60  ;;  %v3916_v34 = vshll.u32 %v8244_v10, 16  ;;  %v3899_v5 = vor.u32 %v3898_v7, %v3895_v6  ;;  %v8280_v39 = vld [vmem:[#allocation2 + $0xf8] sm:$0x11]  ;;  %v8288_v6 = vld [vmem:[%s8844_s1 + $0x260] sm:$0xff]  }
 0x15f   :  { %5189 = vmatprep.mubr.msk.bf16.mxu0 %vm1500_vm13, %v5172_v63  ;;  %v3879_v12 = vshrl.u32 %v8254_v0, 16  ;;  %v3882_v59 = vshll.u32 %v8254_v0, 16  ;;  %v3912_v63 = vrot.slane %v3910_v54, 5  ;;  %v4271_v38 = vld [vmem:[#allocation2 + $0x30] sm:$0xee]  ;;  %v5359_v60 = vrot.slane %v4270_v23, 9 }
 0x160   :  { %v8263_v43 = vld [vmem:[#allocation2 + $0x98] sm:$0x11]  ;;  %v8276_v54 = vld [vmem:[#allocation2 + $0xe8] sm:$0x11]  ;;  %v4320_v14 = vrot.slane %v8968_v16, 5  ;;  %v5360_v11 = vrot.slane %v4271_v38, 9 }
 0x161   :  { %5555 = vmatpush1.bf16.msra.mxu1 %v8236_v61  ;;  %v3881_v13 = vrot.slane %v3879_v12, 4  ;;  %v3884_v27 = vrot.slane %v3882_v59, 5  ;;  %v3888_v22 = vshll.u32 %v8263_v43, 16  ;;  %v4324_v4 = vrot.slane %v8969_v46, 5  ;;  %v4272_v12 = vld [vmem:[#allocation2 + $0x40] sm:$0xee] }
 0x162   :  { %5547 = vmatprep.subr.bf16.mxu1 %v8892_v47  ;;  %v3904_v17 = vrot.slane %v3902_v2, 5  ;;  %v3913_v58 = vor.u32 %v3912_v63, %v3909_v28  ;;  %v4273_v59 = vld [vmem:[#allocation2 + $0x50] sm:$0xee]  ;;  %v3918_v2 = vrot.slane %v3916_v34, 5  ;;  %v8970_v63 = vcombine.high %v7733_v53, %v7753_v52 }
 0x163   :  { %v3885_v19 = vor.u32 %v3884_v27, %v3881_v13  ;;  %v3890_v18 = vrot.slane %v3888_v22, 5  ;;  %v8299_v22 = vsel %vm6952_vm7, %v5360_v11, %v4324_v4  ;;  %v5361_v38 = vrot.slane %v4272_v12, 9  ;;  %v8971_v4 = vld [vmem:[#allocation7_spill] sm:$0xff]  ;;  %v8972_v27 = vld [vmem:[#allocation8_spill] sm:$0xff]  ;;  %v4275_v46 = vld [vmem:[#allocation2 + $0x70] sm:$0xee] }
 0x164   :  { %4198 = vmatmul.mubr.bf16.gmra.mxu1 %v5328_v32  ;;  %v8295_v32 = vsel %vm6952_vm7, %v5359_v60, %v4320_v14  ;;  %v3900_v14 = vrot.slane %v3899_v5, 4  ;;  %v4328_v11 = vrot.slane %v8971_v4, 5  ;;  %v3914_v34 = vrot.slane %v3913_v58, 4  ;;  %v8322_v5 = vld [vmem:[%s8844_s1 + $0x258] sm:$0xff]   ;;  %v8973_v12 = vld [vmem:[#allocation23_spill] sm:$0xff] }
 0x165   :  { %5353 = vmatprep.mubr.msk.bf16.mxu1 %vm1500_vm13, %v5331_v57  ;;  %5556 = vmatpush1.bf16.msra.mxu1 %v8272_v45  ;;  %v3886_v57 = vrot.slane %v3885_v19, 4  ;;  %v1591_v13 = vpop.f32.mrf.mxu0  ;;  %vm404_vm0 = vcmp.gt.f32.partialorder %v8144_v44, 0.0  ;;  %v4332_v60 = vrot.slane %v8972_v27, 5  ;;  %vm405_vm1 = vcmp.gt.f32.partialorder %v8151_v40, 0.0 }
 0x166   :  { %3047 = vmatmul.mubr.bf16.gmra.mxu0 %v5171_v50  ;;  %5548 = vmatprep.subr.bf16.mxu1 %v8892_v47  ;;  %v5362_v50 = vrot.slane %v4273_v59, 9  ;;  %v8325_v59 = vadd.f32 %v8973_v12, %v1591_v13  ;;  %vm406_vm2 = vcmp.gt.f32.partialorder %v8154_v35, 0.0  ;;  %v8333_v27 = vsel %vm6952_vm7, %v5361_v38, %v4328_v11  ;;  %v4274_v12 = vld [vmem:[#allocation2 + $0x60] sm:$0xee] }
 0x167   :  { %5300 = vmatprep.mubr.msk.bf16.mxu0 %vm1500_vm13, %v8970_v63  ;;  %v5828_v19 = vpop.eup %5827  ;;  %v8313_v16 = vsel %vm6236_vm9, %v3886_v57, %v3890_v18  ;;  %v1593_v57 = vpop.f32.mrf.mxu0  ;;  %vm407_vm3 = vcmp.gt.f32.partialorder %v8167_v31, 0.0  ;;  %v8974_v38 = vcombine.low %v8175_v26, %v8219_v24  ;;  %v8350_v11 = vsel %vm6236_vm9, %v3900_v14, %v3904_v17  ;;  %v8365_v26 = vld [vmem:[%s8844_s1 + $0x250] sm:$0xff]  }
 0x168   :  { %v5830_v23 = vpop.eup %5829  ;;  %v5333_v63 = vcombine.high %v8267_v8, %v8313_v16  ;;  %v4893_v58 = vadd.f32 -1.0, %v5828_v19  ;;  %v8337_v13 = vsel %vm6952_vm7, %v5362_v50, %v4332_v60  ;;  %v5363_v24 = vrot.slane %v4274_v12, 9 }
 0x169   :  { %5557 = vmatpush1.bf16.msra.mxu1 %v8288_v6  ;;  %v5832_v18 = vpop.eup %5831  ;;  %v4894_v4 = vadd.f32 -1.0, %v5830_v23  ;;  %v1594_v50 = vpop.f32.mrf.mxu0  ;;  %v8975_v23 = vld [vmem:[#allocation24_spill] sm:$0xff]  ;;  %v8976_v14 = vcombine.low %v7733_v53, %v7753_v52  ;;  %v8977_v52 = vcombine.high %v8967_v42, %v8966_v36  ;;  %v4344_v12 = vrot.slane %v8162_v29, 5 }
 0x16a   :  { %5549 = vmatprep.subr.bf16.mxu1 %v8892_v47  ;;  %v5834_v28 = vpop.eup %5833  ;;  %v4895_v19 = vadd.f32 -1.0, %v5832_v18  ;;  %v804_v57 = vsel %vm404_vm0, %v8144_v44, %v4893_v58  ;;  %v5395_v44 = vcombine.low %v8333_v27, %v8337_v13  ;;  %v4276_v58 = vld [vmem:[#allocation2 + $0x80] sm:$0xee]  ;;  %v8359_v7 = vadd.f32 %v8975_v23, %v1594_v50  ;;  %v8409_v29 = vld [vmem:[%s8844_s1 + $0x248] sm:$0xff]  }
 0x16b   :  { %v4896_v60 = vadd.f32 -1.0, %v5834_v28  ;;  %v805_v18 = vsel %vm405_vm1, %v8151_v40, %v4894_v4  ;;  %v4277_v28 = vld [vmem:[#allocation2 + $0x90] sm:$0xee]  ;;  %v1596_v4 = vpop.f32.mrf.mxu0  ;;  %v4352_v41 = vrot.slane %v8221_v25, 5  ;;  %v8984_v25 = vld [vmem:[#allocation12_spill] sm:$0xff] }
 0x16c   :  { %4206 = vmatmul.mubr.bf16.gmra.mxu1 %v8974_v38  ;;  %v806_v40 = vsel %vm406_vm2, %v8154_v35, %v4895_v19  ;;  %v5480_v17 = vpack.c.bf16 %v805_v18, %v804_v57  ;;  %v4336_v35 = vrot.slane %v8030_v15, 5  ;;  %v5364_v19 = vrot.slane %v4275_v46, 9 }
 0x16d   :  { %5354 = vmatprep.mubr.msk.bf16.mxu1 %vm1500_vm13, %v5333_v63  ;;  %5558 = vmatpush1.bf16.msra.mxu1 %v8322_v5  ;;  %v8375_v63 = vsel %vm6236_vm9, %v3914_v34, %v3918_v2  ;;  %v807_v23 = vsel %vm407_vm3, %v8167_v31, %v4896_v60  ;;  %v4340_v2 = vrot.slane %v8041_v49, 5  ;;  %v5365_v34 = vrot.slane %v4276_v58, 9  ;;  %v8424_v60 = vld [vmem:[#allocation2 + $0x120] sm:$0xff] }
 0x16e   :  { %3668 = vmatmul.mubr.bf16.vlgmr.msra.gmra.mxu0 %v8976_v14  ;;  %5550 = vmatprep.subr.bf16.mxu1 %v8892_v47  ;;  %v5481_v53 = vpack.c.bf16 %v807_v23, %v806_v40  ;;  %1092 = vst.msk [vmem:[#allocation2 + $0x130] sm:$0xff] %vm6093_vm10, %v5480_v17  ;;  %v5332_v15 = vcombine.low %v8267_v8, %v8313_v16  ;;  %v4348_v46 = vrot.slane %v8263_v43, 5  ;;  %v8978_v49 = vshll.u32 %v8276_v54, 16  ;;  %v8403_v38 = vpop.f32.mrf.mxu1  ;;  %v8437_v17 = vld [vmem:[#allocation2 + $0x108] sm:$0x11] }
 0x16f   :  { %4536 = vmatpush1.bf16.msra.mxu0 %v8191_v55  ;;  %5301 = vmatprep.mubr.msk.bf16.mxu0 %vm1500_vm13, %v8977_v52  ;;  %v8396_v31 = vsel %vm6952_vm7, %v5363_v24, %v4336_v35  ;;  %v5366_v55 = vrot.slane %v4277_v28, 9  ;;  %v5335_v62 = vcombine.high %v8350_v11, %v8375_v63  ;;  %v8415_v8 = vsel %vm6952_vm7, %v5364_v19, %v4340_v2  ;;  %v8439_v24 = vld [vmem:[#allocation2 + $0x118] sm:$0x11]  ;;  %v8455_v19 = vld [vmem:[%s8844_s1 + $0x240] sm:$0xff]  }
 0x170   :  { %4537 = vmatprep.subr.bf16.mxu0 %v8892_v47  ;;  %v3932_v57 = vrot.slane %v8978_v49, 5  ;;  %1093 = vst.msk [vmem:[#allocation2 + $0x138] sm:$0x11] %vm6168_vm6, %v5481_v53  ;;  %v8419_v43 = vsel %vm6952_vm7, %v5365_v34, %v4344_v12  ;;  %v8979_v16 = vshll.u32 %v8280_v39, 16  ;;  %v5398_v18 = vcombine.high %v8396_v31, %v8415_v8  ;;  %v1856_v28 = vpop.f32.mrf.mxu1  ;;  %v8981_v53 = vld [vmem:[#allocation14_spill] sm:$0xff]  ;;  %v8982_v34 = vld [vmem:[#allocation16_spill] sm:$0xff] }
 0x171   :  { %5559 = vmatpush1.bf16.msra.mxu1 %v8365_v26  ;;  %v5397_v20 = vcombine.low %v8396_v31, %v8415_v8  ;;  %v8432_v58 = vsel %vm6952_vm7, %v5366_v55, %v4348_v46  ;;  %v5280_v40 = vcombine.high %v7985_v37, %v7998_v9  ;;  %v3977_v23 = vshrl.u32 %v8424_v60, 16 }
 0x172   :  { %v3946_v50 = vrot.slane %v8979_v16, 5  ;;  %5551 = vmatprep.subr.bf16.mxu1 %v8892_v47  ;;  %v5400_v14 = vcombine.high %v8419_v43, %v8432_v58  ;;  %v5399_v4 = vcombine.low %v8419_v43, %v8432_v58  ;;  %v3980_v35 = vshll.u32 %v8424_v60, 16 }
 0x173   :  { %4538 = vmatpush1.bf16.msra.mxu0 %v8236_v61  ;;  %v8447_v61 = vpop.f32.mrf.mxu1  ;;  %v8980_v52 = vcombine.low %v8967_v42, %v8966_v36  ;;  %v3933_v2 = vsel %vm6236_vm9, %v8981_v53, %v3932_v57  ;;  %v3972_v55 = vshll.u32 %v8439_v24, 16  ;;  %v5334_v49 = vcombine.low %v8350_v11, %v8375_v63  ;;  %v8486_v53 = vld [vmem:[#allocation2 + $0x128] sm:$0x11] }
 0x174   :  { %4539 = vmatprep.subr.bf16.mxu0 %v8892_v47  ;;  %4214 = vmatmul.mubr.bf16.gmra.mxu1 %v5332_v15  ;;  %v3947_v12 = vsel %vm6236_vm9, %v8982_v34, %v3946_v50  ;;  %v3958_v15 = vshll.u32 %v8437_v17, 16  ;;  %v5279_v57 = vcombine.low %v7985_v37, %v7998_v9  ;;  %v3979_v50 = vrot.slane %v3977_v23, 4  ;;  %v8983_v23 = vld [vmem:[#allocation20_spill] sm:$0xff] }
 0x175   :  { %5355 = vmatprep.mubr.msk.bf16.mxu1 %vm1500_vm13, %v5335_v62  ;;  %5560 = vmatpush1.bf16.msra.mxu1 %v8409_v29  ;;  %v8468_v46 = vld [vmem:[#allocation2 + $0x130] sm:$0xff]  ;;  %v1859_v36 = vpop.f32.mrf.mxu1  ;;  %v5337_v16 = vcombine.high %v3933_v2, %v3947_v12  ;;  %v3982_v28 = vrot.slane %v3980_v35, 5  ;;  %v5282_v37 = vcombine.high %v8050_v33, %v8254_v0  ;;  %v3986_v63 = vshll.u32 %v8486_v53, 16 }
 0x176   :  { %3676 = vmatmul.mubr.bf16.gmra.mxu0 %v8980_v52  ;;  %5552 = vmatprep.subr.bf16.mxu1 %v8892_v47  ;;  %v3991_v42 = vshrl.u32 %v8468_v46, 16  ;;  %v3994_v62 = vshll.u32 %v8468_v46, 16  ;;  %v3974_v52 = vrot.slane %v3972_v55, 5 }
 0x177   :  { %5302 = vmatprep.mubr.msk.bf16.mxu0 %vm1500_vm13, %v5280_v40  ;;  %4540 = vmatpush1.bf16.msra.mxu0 %v8272_v45  ;;  %v8484_v45 = vld [vmem:[%s8844_s1 + $0x280] sm:$0xff]   ;;  %v3960_v40 = vrot.slane %v3958_v15, 5  ;;  %v8492_v9 = vld [vmem:[#allocation2 + $0x138] sm:$0x11]  ;;  %v3983_v11 = vor.u32 %v3982_v28, %v3979_v50  ;;  %v5281_v50 = vcombine.low %v8050_v33, %v8254_v0 }
 0x178   :  { %4541 = vmatprep.subr.bf16.mxu0 %v8892_v47  ;;  %v3993_v34 = vrot.slane %v3991_v42, 4  ;;  %v3996_v36 = vrot.slane %v3994_v62, 5  ;;  %v3975_v35 = vsel %vm6236_vm9, %v8056_v56, %v3974_v52  ;;  %v4000_v55 = vshll.u32 %v8492_v9, 16 }
 0x179   :  { %5561 = vmatpush1.bf16.msra.mxu1 %v8455_v19  ;;  %v5336_v42 = vcombine.low %v3933_v2, %v3947_v12  ;;  %v5284_v52 = vcombine.high %v8164_v30, %v8200_v48  ;;  %v4278_v12 = vld [vmem:[#allocation2 + $0xc0] sm:$0xee] }
 0x17a   :  { %5553 = vmatprep.subr.bf16.mxu1 %v8892_v47  ;;  %v3997_v15 = vor.u32 %v3996_v36, %v3993_v34  ;;  %v4279_v34 = vld [vmem:[#allocation2 + $0xd0] sm:$0xee] }
 0x17b   :  { %4542 = vmatpush1.bf16.msra.mxu0 %v8288_v6  ;;  %v3961_v6 = vsel %vm6236_vm9, %v8983_v23, %v3960_v40  ;;  %v4002_v40 = vrot.slane %v4000_v55, 5  ;;  %v5367_v23 = vrot.slane %v4278_v12, 9  ;;  %v4356_v55 = vrot.slane %v8244_v10, 5 }
 0x17c   :  { %4222 = vmatmul.mubr.bf16.gmra.mxu1 %v5334_v49  ;;  %4543 = vmatprep.subr.bf16.mxu0 %v8892_v47  ;;  %v5339_v62 = vcombine.high %v3961_v6, %v3975_v35  ;;  %v3998_v56 = vrot.slane %v3997_v15, 4  ;;  %v5338_v36 = vcombine.low %v3961_v6, %v3975_v35  ;;  %v5368_v15 = vrot.slane %v4279_v34, 9  ;;  %v4281_v35 = vld [vmem:[#allocation2 + $0xf0] sm:$0xee] }
 0x17d   :  { %5356 = vmatprep.mubr.msk.bf16.mxu1 %vm1500_vm13, %v5337_v16  ;;  %5562 = vmatpush2.bf16.msra.mxu1 %v8484_v45  ;;  %v3988_v16 = vrot.slane %v3986_v63, 5  ;;  %v8985_v10 = vcombine.high %v7591_v1, %v8984_v25 }
 0x17e   :  { %3684 = vmatmul.mubr.bf16.gmra.mxu0 %v5279_v57  ;;  %v1599_v49 = vpop.f32.mrf.mxu0  ;;  %v3984_v57 = vrot.slane %v3983_v11, 4  ;;  %v4003_v0 = vsel %vm6236_vm9, %v3998_v56, %v4002_v40  ;;  %v4364_v56 = vrot.slane %v8280_v39, 5  ;;  %v4282_v39 = vld [vmem:[#allocation2 + $0x100] sm:$0xee] }
 0x17f   :  { %5303 = vmatprep.mubr.msk.bf16.mxu0 %vm1500_vm13, %v5282_v37  ;;  %4544 = vmatpush1.bf16.msra.mxu0 %v8322_v5  ;;  %v8511_v28 = vadd.f32 %v8195_v21, %v1599_v49 }
 0x180   :  { %4545 = vmatprep.subr.bf16.mxu0 %v8892_v47  ;;  %v1601_v5 = vpop.f32.mrf.mxu0  ;;  %v3989_v21 = vsel %vm6236_vm9, %v3984_v57, %v3988_v16  ;;  %v4360_v16 = vrot.slane %v8276_v54, 5  ;;  %v8987_v54 = vld [vmem:[#allocation13_spill] sm:$0xff] }
 0x181   :  { %v5341_v11 = vcombine.high %v3989_v21, %v4003_v0 }
 0x182   :  { %v1602_v2 = vpop.f32.mrf.mxu0 }
 0x183   :  { %4546 = vmatpush1.bf16.msra.mxu0 %v8365_v26  ;;  %v8519_v33 = vadd.f32 %v8225_v51, %v1602_v2  ;;  %v5283_v51 = vcombine.low %v8164_v30, %v8200_v48  ;;  %v4353_v30 = vsel %vm6952_vm7, %v5367_v23, %v4352_v41  ;;  %v4357_v48 = vsel %vm6952_vm7, %v5368_v15, %v4356_v55 }
 0x184   :  { %4230 = vmatmul.mubr.bf16.gmra.mxu1 %v5336_v42  ;;  %4547 = vmatprep.subr.bf16.mxu0 %v8892_v47  ;;  %v1604_v26 = vpop.f32.mrf.mxu0  ;;  %v5401_v12 = vcombine.low %v4353_v30, %v4357_v48  ;;  %v4372_v41 = vrot.slane %v8439_v24, 5  ;;  %v5290_v55 = vcombine.high %v8424_v60, %v8468_v46 }
 0x185   :  { %5357 = vmatprep.mubr.msk.bf16.mxu1 %vm1500_vm13, %v5339_v62  ;;  %v8527_v37 = vpop.f32.mrf.mxu1  ;;  %v5402_v62 = vcombine.high %v4353_v30, %v4357_v48  ;;  %v4283_v26 = vld [vmem:[#allocation2 + $0x110] sm:$0xee] }
 0x186   :  { %3692 = vmatmul.mubr.bf16.gmra.mxu0 %v5281_v50  ;;  %v5370_v50 = vrot.slane %v4281_v35, 9  ;;  %v5372_v23 = vrot.slane %v4283_v26, 9  ;;  %v4285_v35 = vld [vmem:[#allocation2 + $0x130] sm:$0xee] }
 0x187   :  { %5304 = vmatprep.mubr.msk.bf16.mxu0 %vm1500_vm13, %v5284_v52  ;;  %4548 = vmatpush1.bf16.msra.mxu0 %v8409_v29  ;;  %v1864_v63 = vpop.f32.mrf.mxu1 }
 0x188   :  { %4549 = vmatprep.subr.bf16.mxu0 %v8892_v47  ;;  %v4365_v2 = vsel %vm6952_vm7, %v5370_v50, %v4364_v56  ;;  %v4368_v63 = vrot.slane %v8437_v17, 5  ;;  %v5289_v50 = vcombine.low %v8424_v60, %v8468_v46  ;;  %v8991_v46 = vcombine.high %v8295_v32, %v8299_v22 }
 0x189   :  { %v8535_v29 = vpop.f32.mrf.mxu1 }
 0x18b   :  { %4550 = vmatpush1.bf16.msra.mxu0 %v8455_v19  ;;  %v1867_v6 = vpop.f32.mrf.mxu1  ;;  %v4280_v19 = vld [vmem:[#allocation2 + $0xe0] sm:$0xee] }
 0x18c   :  { %4238 = vmatmul.mubr.bf16.gmra.mxu1 %v5338_v36  ;;  %4565 = vmatprep.subr.bf16.mxu0 %v8892_v47  ;;  %v5340_v47 = vcombine.low %v3989_v21, %v4003_v0  ;;  %v5369_v57 = vrot.slane %v4280_v19, 9  ;;  %v8988_v21 = vld [vmem:[#allocation17_spill] sm:$0xff] }
 0x18d   :  { %5358 = vmatprep.mubr.msk.bf16.mxu1 %vm1500_vm13, %v5341_v11  ;;  %v8548_v42 = vpop.f32.mrf.mxu1  ;;  %v8989_v0 = vcombine.high %v8987_v54, %v8988_v21  ;;  %v5371_v11 = vrot.slane %v4282_v39, 9  ;;  %v8990_v48 = vcombine.low %v8987_v54, %v8988_v21  ;;  %v4380_v54 = vrot.slane %v8492_v9, 5 }
 0x18e   :  { %3700 = vmatmul.mubr.bf16.gmra.mxu0 %v5283_v51  ;;  %v4361_v5 = vsel %vm6952_vm7, %v5369_v57, %v4360_v16 }
 0x18f   :  { %5305 = vmatprep.mubr.msk.bf16.mxu0 %vm1500_vm13, %v8985_v10  ;;  %4566 = vmatpush2.bf16.msra.mxu0 %v8484_v45  ;;  %v2472_v49 = vpop.f32.mrf.mxu1  ;;  %v8986_v45 = vcombine.low %v7591_v1, %v8984_v25  ;;  %v5404_v36 = vcombine.high %v4361_v5, %v4365_v2  ;;  %v4369_v24 = vsel %vm6952_vm7, %v5371_v11, %v4368_v63  ;;  %v4284_v10 = vld [vmem:[#allocation2 + $0x120] sm:$0xee] }
 0x190   :  { %v5373_v16 = vrot.slane %v4284_v10, 9  ;;  %v8994_v11 = vcombine.high %v8333_v27, %v8337_v13 }
 0x191   :  { %v8552_v40 = vpop.f32.mrf.mxu1 }
 0x193   :  { %v2475_v52 = vpop.f32.mrf.mxu1 }
 0x194   :  { %4246 = vmatmul.mubr.bf16.gmra.mxu1 %v5340_v47  ;;  %v5374_v52 = vrot.slane %v4285_v35, 9 }
 0x195   :  { %5422 = vmatprep.mubr.msk.bf16.mxu1 %vm1500_vm13, %v5402_v62  ;;  %v8566_v34 = vpop.f32.mrf.mxu1  ;;  %v5403_v62 = vcombine.low %v4361_v5, %v4365_v2 }
 0x196   :  { %3708 = vmatmul.mubr.bf16.gmra.mxu0 %v8986_v45  ;;  %v1607_v1 = vpop.f32.mrf.mxu0  ;;  %v4376_v45 = vrot.slane %v8486_v53, 5  ;;  %v4381_v2 = vsel %vm6952_vm7, %v5374_v52, %v4380_v54 }
 0x197   :  { %5306 = vmatprep.mubr.msk.bf16.mxu0 %vm1500_vm13, %v8989_v0  ;;  %v2480_v51 = vpop.f32.mrf.mxu1  ;;  %v8571_v15 = vadd.f32 %v8403_v38, %v1607_v1  ;;  %v4373_v38 = vsel %vm6952_vm7, %v5372_v23, %v4372_v41  ;;  %v8993_v1 = vld [vmem:[#allocation18_spill] sm:$0xff] }
 0x198   :  { %v1609_v6 = vpop.f32.mrf.mxu0  ;;  %v5406_v57 = vcombine.high %v4369_v24, %v4373_v38  ;;  %v4377_v5 = vsel %vm6952_vm7, %v5373_v16, %v4376_v45  ;;  %v5405_v9 = vcombine.low %v4369_v24, %v4373_v38  ;;  %v8996_v24 = vld [vmem:[#allocation10_spill] sm:$0xff] }
 0x199   :  { %v8575_v30 = vpop.f32.mrf.mxu1  ;;  %v5408_v39 = vcombine.high %v4377_v5, %v4381_v2  ;;  %v5407_v23 = vcombine.low %v4377_v5, %v4381_v2 }
 0x19a   :  { %v1610_v17 = vpop.f32.mrf.mxu0 }
 0x19b   :  { %v2483_v25 = vpop.f32.mrf.mxu1  ;;  %v8586_v19 = vadd.f32 %v8447_v61, %v1610_v17 }
 0x19c   :  { %4600 = vmatmul.mubr.bf16.vlgmr.msra.gmra.mxu1 %v5401_v12  ;;  %v1612_v47 = vpop.f32.mrf.mxu0 }
 0x19d   :  { %5423 = vmatprep.mubr.msk.bf16.mxu1 %vm1500_vm13, %v5404_v36  ;;  %v2486_v49 = vpop.f32.mrf.mxu1 }
 0x19e   :  { %3716 = vmatmul.mubr.bf16.gmra.mxu0 %v8990_v48 }
 0x19f   :  { %5307 = vmatprep.mubr.msk.bf16.mxu0 %vm1500_vm13, %v5290_v55  ;;  %v2488_v56 = vpop.f32.mrf.mxu1  ;;  %v8995_v55 = vld [vmem:[#allocation5_spill] sm:$0xff] }
 0x1a1   :  { %v2489_v61 = vpop.f32.mrf.mxu1 }
 0x1a2   :  { %v1615_v21 = vpop.f32.mrf.mxu0 }
 0x1a3   :  { %v2491_v0 = vpop.f32.mrf.mxu1  ;;  %v8599_v60 = vadd.f32 %v8527_v37, %v1615_v21  ;;  %v8992_v37 = vcombine.low %v8295_v32, %v8299_v22  ;;  %v8999_v21 = vld [vmem:[#allocation11_spill] sm:$0xff] }
 0x1a4   :  { %4608 = vmatmul.mubr.bf16.gmra.mxu1 %v5403_v62  ;;  %v1617_v53 = vpop.f32.mrf.mxu0  ;;  %v8997_v62 = vld [vmem:[#allocation6_spill] sm:$0xff] }
 0x1a5   :  { %5424 = vmatprep.mubr.msk.bf16.mxu1 %vm1500_vm13, %v5406_v57 }
 0x1a6   :  { %3724 = vmatmul.mubr.bf16.gmra.mxu0 %v5289_v50  ;;  %v1618_v26 = vpop.f32.mrf.mxu0  ;;  %v8998_v50 = vld [vmem:[#allocation9_spill] sm:$0xff] }
 0x1a7   :  { %5418 = vmatprep.mubr.msk.bf16.mxu0 %vm1500_vm13, %v8991_v46  ;;  %v8606_v12 = vadd.f32 %v8535_v29, %v1618_v26  ;;  %v9000_v46 = vld [vmem:[#allocation25_spill] sm:$0xff] }
 0x1a8   :  { %v1620_v36 = vpop.f32.mrf.mxu0 }
 0x1a9   :  { %v9001_v36 = vld [vmem:[#allocation26_spill] sm:$0xff] }
 0x1aa   :  { %v2171_v3 = vpop.f32.mrf.mxu0 }
 0x1ab   :  { %v2234_v51 = vadd.f32 %v2171_v3, %v8993_v1 }
 0x1ac   :  { %4616 = vmatmul.mubr.bf16.gmra.mxu1 %v5405_v9  ;;  %v2173_v63 = vpop.f32.mrf.mxu0 }
 0x1ad   :  { %5425 = vmatprep.mubr.msk.bf16.mxu1 %vm1500_vm13, %v5408_v39  ;;  %v8618_v29 = vadd.f32 %v8548_v42, %v2234_v51 }
 0x1ae   :  { %4568 = vmatmul.mubr.bf16.vlgmr.msra.gmra.mxu0 %v8992_v37  ;;  %v2174_v41 = vpop.f32.mrf.mxu0 }
 0x1af   :  { %5419 = vmatprep.mubr.msk.bf16.mxu0 %vm1500_vm13, %v8994_v11  ;;  %v2235_v6 = vadd.f32 %v2174_v41, %v8995_v55 }
 0x1b0   :  { %v2176_v48 = vpop.f32.mrf.mxu0  ;;  %v2494_v17 = vpop.f32.mrf.mxu1 }
 0x1b1   :  { %v8622_v32 = vadd.f32 %v8552_v40, %v2235_v6 }
 0x1b2   :  { %v2179_v22 = vpop.f32.mrf.mxu0  ;;  %v2496_v25 = vpop.f32.mrf.mxu1 }
 0x1b3   :  { %v2236_v38 = vadd.f32 %v2179_v22, %v8996_v24 }
 0x1b4   :  { %4624 = vmatmul.mubr.bf16.gmra.mxu1 %v5407_v23  ;;  %v2181_v42 = vpop.f32.mrf.mxu0  ;;  %v2497_v10 = vpop.f32.mrf.mxu1 }
 0x1b5   :  { %v8633_v35 = vadd.f32 %v8566_v34, %v2236_v38 }
 0x1b6   :  { %4576 = vmatmul.mubr.bf16.gmra.mxu0 %v5395_v44  ;;  %v2182_v40 = vpop.f32.mrf.mxu0  ;;  %v2499_v47 = vpop.f32.mrf.mxu1 }
 0x1b7   :  { %5420 = vmatprep.mubr.msk.bf16.mxu0 %vm1500_vm13, %v5398_v18  ;;  %v2237_v57 = vadd.f32 %v2182_v40, %v8997_v62 }
 0x1b8   :  { %v2184_v16 = vpop.f32.mrf.mxu0  ;;  %v2502_v27 = vpop.f32.mrf.mxu1 }
 0x1b9   :  { %v8637_v13 = vadd.f32 %v8575_v30, %v2237_v57 }
 0x1ba   :  { %v2187_v44 = vpop.f32.mrf.mxu0  ;;  %v2504_v18 = vpop.f32.mrf.mxu1 }
 0x1bb   :  { %v2238_v56 = vadd.f32 %v2187_v44, %v8998_v50 }
 0x1bc   :  { %v2189_v34 = vpop.f32.mrf.mxu0  ;;  %v2505_v45 = vpop.f32.mrf.mxu1 }
 0x1bd   :  { %v8647_v52 = vadd.f32 %v2486_v49, %v2238_v56 }
 0x1be   :  { %4584 = vmatmul.mubr.bf16.gmra.mxu0 %v5397_v20  ;;  %v2190_v54 = vpop.f32.mrf.mxu0  ;;  %v2507_v30 = vpop.f32.mrf.mxu1 }
 0x1bf   :  { %5421 = vmatprep.mubr.msk.bf16.mxu0 %vm1500_vm13, %v5400_v14  ;;  %v2239_v0 = vadd.f32 %v2190_v54, %v8999_v21 }
 0x1c0   :  { %v2192_v5 = vpop.f32.mrf.mxu0  ;;  %v2510_v2 = vpop.f32.mrf.mxu1 }
 0x1c1   :  { %v8650_v31 = vadd.f32 %v2489_v61, %v2239_v0 }
 0x1c2   :  { %v2512_v20 = vpop.f32.mrf.mxu1 }
 0x1c3   :  { %v2195_v8 = vpop.f32.mrf.mxu0 }
 0x1c4   :  { %v2240_v14 = vadd.f32 %v2195_v8, %v9000_v46  ;;  %v2513_v9 = vpop.f32.mrf.mxu1 }
 0x1c5   :  { %v2197_v53 = vpop.f32.mrf.mxu0 }
 0x1c6   :  { %4592 = vmatmul.mubr.bf16.gmra.mxu0 %v5399_v4  ;;  %v8656_v49 = vadd.f32 %v2494_v17, %v2240_v14  ;;  %v2515_v26 = vpop.f32.mrf.mxu1 }
 0x1c7   :  { %v2198_v39 = vpop.f32.mrf.mxu0 }
 0x1c8   :  { %v2241_v3 = vadd.f32 %v2198_v39, %v9001_v36  ;;  %v2518_v1 = vpop.f32.mrf.mxu1 }
 0x1c9   :  { %v2200_v37 = vpop.f32.mrf.mxu0 }
 0x1ca   :  { %v8659_v61 = vadd.f32 %v2497_v10, %v2241_v3  ;;  %v2520_v11 = vpop.f32.mrf.mxu1 }
 0x1cb   :  { %v2203_v51 = vpop.f32.mrf.mxu0 }
 0x1cc   :  { %v2242_v43 = vadd.f32 %v2203_v51, %v8325_v59  ;;  %v2521_v4 = vpop.f32.mrf.mxu1 }
 0x1cd   :  { %v2205_v58 = vpop.f32.mrf.mxu0 }
 0x1ce   :  { %v8662_v63 = vadd.f32 %v2502_v27, %v2242_v43  ;;  %v2523_v41 = vpop.f32.mrf.mxu1 }
 0x1cf   :  { %v2206_v23 = vpop.f32.mrf.mxu0 }
 0x1d0   :  { %v2243_v55 = vadd.f32 %v2206_v23, %v8359_v7  ;;  %v2526_v48 = vpop.f32.mrf.mxu1 }
 0x1d1   :  { %v2208_v6 = vpop.f32.mrf.mxu0 }
 0x1d2   :  { %v8665_v17 = vadd.f32 %v2505_v45, %v2243_v55  ;;  %v2528_v25 = vpop.f32.mrf.mxu1 }
 0x1d4   :  { %v2211_v22 = vpop.f32.mrf.mxu0  ;;  %v2529_v42 = vpop.f32.mrf.mxu1 }
 0x1d5   :  { %v2244_v24 = vadd.f32 %v2211_v22, %v8511_v28 }
 0x1d6   :  { %v2213_v38 = vpop.f32.mrf.mxu0  ;;  %v2531_v40 = vpop.f32.mrf.mxu1 }
 0x1d7   :  { %v8668_v10 = vadd.f32 %v2510_v2, %v2244_v24 }
 0x1d8   :  { %v2214_v59 = vpop.f32.mrf.mxu0  ;;  %v3370_v57 = vpop.f32.mrf.mxu1 }
 0x1d9   :  { %v2245_v47 = vadd.f32 %v2214_v59, %v8519_v33 }
 0x1da   :  { %v2216_v62 = vpop.f32.mrf.mxu0  ;;  %v3372_v27 = vpop.f32.mrf.mxu1 }
 0x1db   :  { %v8671_v16 = vadd.f32 %v2513_v9, %v2245_v47 }
 0x1dc   :  { %v3373_v50 = vpop.f32.mrf.mxu1 }
 0x1dd   :  { %v2219_v7 = vpop.f32.mrf.mxu0 }
 0x1de   :  { %v2246_v44 = vadd.f32 %v2219_v7, %v8571_v15  ;;  %v3375_v34 = vpop.f32.mrf.mxu1 }
 0x1df   :  { %v2221_v18 = vpop.f32.mrf.mxu0 }
 0x1e0   :  { %v8674_v56 = vadd.f32 %v2518_v1, %v2246_v44  ;;  %v3378_v30 = vpop.f32.mrf.mxu1 }
 0x1e1   :  { %v2222_v28 = vpop.f32.mrf.mxu0 }
 0x1e2   :  { %v2247_v45 = vadd.f32 %v2222_v28, %v8586_v19  ;;  %v3380_v0 = vpop.f32.mrf.mxu1 }
 0x1e3   :  { %v2224_v54 = vpop.f32.mrf.mxu0 }
 0x1e4   :  { %v8677_v21 = vadd.f32 %v2521_v4, %v2247_v45  ;;  %v3381_v8 = vpop.f32.mrf.mxu1 }
 0x1e5   :  { %v2227_v33 = vpop.f32.mrf.mxu0 }
 0x1e6   :  { %v2248_v5 = vadd.f32 %v2227_v33, %v8599_v60  ;;  %v3383_v46 = vpop.f32.mrf.mxu1 }
 0x1e7   :  { %v2229_v2 = vpop.f32.mrf.mxu0 }
 0x1e8   :  { %v8680_v20 = vadd.f32 %v2526_v48, %v2248_v5  ;;  %v3386_v9 = vpop.f32.mrf.mxu1 }
 0x1e9   :  { %v2230_v15 = vpop.f32.mrf.mxu0 }
 0x1ea   :  { %v2249_v14 = vadd.f32 %v2230_v15, %v8606_v12  ;;  %v3388_v26 = vpop.f32.mrf.mxu1 }
 0x1eb   :  { %v2232_v53 = vpop.f32.mrf.mxu0 }
 0x1ec   :  { %v8683_v39 = vadd.f32 %v2529_v42, %v2249_v14  ;;  %v3389_v37 = vpop.f32.mrf.mxu1 }
 0x1ed   :  { %v2992_v19 = vpop.f32.mrf.mxu0 }
 0x1ee   :  { %v3055_v36 = vadd.f32 %v2992_v19, %v8618_v29  ;;  %v3391_v51 = vpop.f32.mrf.mxu1 }
 0x1ef   :  { %v2994_v3 = vpop.f32.mrf.mxu0 }
 0x1f0   :  { %v8686_v1 = vadd.f32 %v3370_v57, %v3055_v36  ;;  %v3394_v58 = vpop.f32.mrf.mxu1 }
 0x1f1   :  { %v2995_v60 = vpop.f32.mrf.mxu0 }
 0x1f2   :  { %v3056_v11 = vadd.f32 %v2995_v60, %v8622_v32  ;;  %v3396_v23 = vpop.f32.mrf.mxu1 }
 0x1f3   :  { %v2997_v43 = vpop.f32.mrf.mxu0 }
 0x1f4   :  { %v8689_v4 = vadd.f32 %v3373_v50, %v3056_v11  ;;  %v3397_v6 = vpop.f32.mrf.mxu1 }
 0x1f5   :  { %v3000_v12 = vpop.f32.mrf.mxu0 }
 0x1f6   :  { %v3057_v41 = vadd.f32 %v3000_v12, %v8633_v35  ;;  %v3399_v22 = vpop.f32.mrf.mxu1 }
 0x1f7   :  { %v3002_v55 = vpop.f32.mrf.mxu0 }
 0x1f8   :  { %v8692_v48 = vadd.f32 %v3378_v30, %v3057_v41 }
 0x1f9   :  { %v3003_v29 = vpop.f32.mrf.mxu0 }
 0x1fa   :  { %v3058_v25 = vadd.f32 %v3003_v29, %v8637_v13 }
 0x1fb   :  { %v3005_v24 = vpop.f32.mrf.mxu0  ;;  %v3402_v38 = vpop.f32.mrf.mxu1 }
 0x1fc   :  { %v8695_v42 = vadd.f32 %v3381_v8, %v3058_v25 }
 0x1fd   :  { %v3008_v32 = vpop.f32.mrf.mxu0  ;;  %v3404_v59 = vpop.f32.mrf.mxu1 }
 0x1fe   :  { %v3059_v40 = vadd.f32 %v3008_v32, %v8647_v52 }
 0x1ff   :  { %v3010_v47 = vpop.f32.mrf.mxu0  ;;  %v3405_v62 = vpop.f32.mrf.mxu1 }
 0x200   :  { %v8698_v57 = vadd.f32 %v3386_v9, %v3059_v40 }
 0x201   :  { %v3011_v35 = vpop.f32.mrf.mxu0  ;;  %v3407_v7 = vpop.f32.mrf.mxu1 }
 0x202   :  { %v3060_v27 = vadd.f32 %v3011_v35, %v8650_v31 }
 0x203   :  { %v3013_v44 = vpop.f32.mrf.mxu0  ;;  %v3410_v18 = vpop.f32.mrf.mxu1 }
 0x204   :  { %v8701_v50 = vadd.f32 %v3389_v37, %v3060_v27 }
 0x205   :  { %v3412_v28 = vpop.f32.mrf.mxu1 }
 0x206   :  { %v3016_v13 = vpop.f32.mrf.mxu0 }
 0x207   :  { %v3061_v34 = vadd.f32 %v3016_v13, %v8656_v49  ;;  %v3413_v54 = vpop.f32.mrf.mxu1 }
 0x208   :  { %v3018_v45 = vpop.f32.mrf.mxu0 }
 0x209   :  { %v8704_v30 = vadd.f32 %v3394_v58, %v3061_v34  ;;  %v3415_v33 = vpop.f32.mrf.mxu1 }
 0x20a   :  { %v3019_v52 = vpop.f32.mrf.mxu0 }
 0x20b   :  { %v3062_v0 = vadd.f32 %v3019_v52, %v8659_v61 }
 0x20c   :  { %v3021_v5 = vpop.f32.mrf.mxu0  ;;  %v3418_v2 = vpop.f32.mrf.mxu1 }
 0x20d   :  { %v8707_v8 = vadd.f32 %v3397_v6, %v3062_v0 }
 0x20e   :  { %v3024_v31 = vpop.f32.mrf.mxu0  ;;  %v3420_v15 = vpop.f32.mrf.mxu1 }
 0x20f   :  { %v3063_v46 = vadd.f32 %v3024_v31, %v8662_v63 }
 0x210   :  { %v3026_v14 = vpop.f32.mrf.mxu0  ;;  %v3421_v53 = vpop.f32.mrf.mxu1 }
 0x211   :  { %v8710_v9 = vadd.f32 %v3402_v38, %v3063_v46 }
 0x212   :  { %v3027_v49 = vpop.f32.mrf.mxu0  ;;  %v3423_v19 = vpop.f32.mrf.mxu1 }
 0x213   :  { %v3064_v26 = vadd.f32 %v3027_v49, %v8665_v17 }
 0x214   :  { %v3029_v36 = vpop.f32.mrf.mxu0  ;;  %v3426_v3 = vpop.f32.mrf.mxu1 }
 0x215   :  { %v8713_v37 = vadd.f32 %v3405_v62, %v3064_v26 }
 0x216   :  { %v3032_v61 = vpop.f32.mrf.mxu0  ;;  %v3428_v60 = vpop.f32.mrf.mxu1 }
 0x217   :  { %v3065_v51 = vadd.f32 %v3032_v61, %v8668_v10 }
 0x218   :  { %v3034_v11 = vpop.f32.mrf.mxu0  ;;  %v3429_v43 = vpop.f32.mrf.mxu1 }
 0x219   :  { %v8716_v58 = vadd.f32 %v3410_v18, %v3065_v51 }
 0x21a   :  { %v3035_v63 = vpop.f32.mrf.mxu0  ;;  %v3431_v12 = vpop.f32.mrf.mxu1 }
 0x21b   :  { %v3066_v23 = vadd.f32 %v3035_v63, %v8671_v16 }
 0x21c   :  { %v3037_v41 = vpop.f32.mrf.mxu0  ;;  %v4191_v55 = vpop.f32.mrf.mxu1 }
 0x21d   :  { %v8719_v6 = vadd.f32 %v3413_v54, %v3066_v23 }
 0x21e   :  { %v3040_v17 = vpop.f32.mrf.mxu0  ;;  %v4193_v29 = vpop.f32.mrf.mxu1 }
 0x21f   :  { %v3067_v22 = vadd.f32 %v3040_v17, %v8674_v56 }
 0x220   :  { %v3042_v25 = vpop.f32.mrf.mxu0  ;;  %v4194_v24 = vpop.f32.mrf.mxu1 }
 0x221   :  { %v8722_v38 = vadd.f32 %v3418_v2, %v3067_v22 }
 0x222   :  { %v3043_v10 = vpop.f32.mrf.mxu0  ;;  %v4196_v32 = vpop.f32.mrf.mxu1 }
 0x223   :  { %v3068_v59 = vadd.f32 %v3043_v10, %v8677_v21 }
 0x224   :  { %v3045_v40 = vpop.f32.mrf.mxu0  ;;  %v4199_v47 = vpop.f32.mrf.mxu1 }
 0x225   :  { %v8725_v62 = vadd.f32 %v3421_v53, %v3068_v59 }
 0x226   :  { %v3048_v16 = vpop.f32.mrf.mxu0  ;;  %v4201_v35 = vpop.f32.mrf.mxu1 }
 0x227   :  { %v3069_v7 = vadd.f32 %v3048_v16, %v8680_v20 }
 0x228   :  { %v3050_v27 = vpop.f32.mrf.mxu0  ;;  %v4202_v44 = vpop.f32.mrf.mxu1 }
 0x229   :  { %v8728_v18 = vadd.f32 %v3426_v3, %v3069_v7 }
 0x22a   :  { %v3051_v56 = vpop.f32.mrf.mxu0  ;;  %v4204_v13 = vpop.f32.mrf.mxu1 }
 0x22b   :  { %v3070_v28 = vadd.f32 %v3051_v56, %v8683_v39 }
 0x22c   :  { %v3053_v34 = vpop.f32.mrf.mxu0  ;;  %v4207_v45 = vpop.f32.mrf.mxu1 }
 0x22d   :  { %v8731_v54 = vadd.f32 %v3429_v43, %v3070_v28 }
 0x22e   :  { %v3669_v21 = vpop.f32.mrf.mxu0  ;;  %v4209_v52 = vpop.f32.mrf.mxu1 }
 0x22f   :  { %v3732_v33 = vadd.f32 %v3669_v21, %v8686_v1 }
 0x230   :  { %v3671_v0 = vpop.f32.mrf.mxu0  ;;  %v4210_v5 = vpop.f32.mrf.mxu1 }
 0x231   :  { %v8734_v2 = vadd.f32 %v4191_v55, %v3732_v33 }
 0x232   :  { %v3672_v20 = vpop.f32.mrf.mxu0  ;;  %v4212_v31 = vpop.f32.mrf.mxu1 }
 0x233   :  { %v3733_v15 = vadd.f32 %v3672_v20, %v8689_v4 }
 0x234   :  { %v3674_v46 = vpop.f32.mrf.mxu0  ;;  %v4215_v14 = vpop.f32.mrf.mxu1 }
 0x235   :  { %v8737_v53 = vadd.f32 %v4194_v24, %v3733_v15 }
 0x236   :  { %v3677_v39 = vpop.f32.mrf.mxu0  ;;  %v4217_v49 = vpop.f32.mrf.mxu1 }
 0x237   :  { %v3734_v19 = vadd.f32 %v3677_v39, %v8692_v48 }
 0x238   :  { %v3679_v26 = vpop.f32.mrf.mxu0  ;;  %v4218_v36 = vpop.f32.mrf.mxu1 }
 0x239   :  { %v8740_v3 = vadd.f32 %v4199_v47, %v3734_v19 }
 0x23a   :  { %v3680_v1 = vpop.f32.mrf.mxu0  ;;  %v4220_v61 = vpop.f32.mrf.mxu1 }
 0x23b   :  { %v3735_v60 = vadd.f32 %v3680_v1, %v8695_v42 }
 0x23c   :  { %v3682_v51 = vpop.f32.mrf.mxu0  ;;  %v4223_v11 = vpop.f32.mrf.mxu1 }
 0x23d   :  { %v8743_v43 = vadd.f32 %v4202_v44, %v3735_v60 }
 0x23e   :  { %v3685_v4 = vpop.f32.mrf.mxu0  ;;  %v4225_v63 = vpop.f32.mrf.mxu1 }
 0x23f   :  { %v3736_v12 = vadd.f32 %v3685_v4, %v8698_v57 }
 0x240   :  { %v3687_v23 = vpop.f32.mrf.mxu0  ;;  %v4226_v41 = vpop.f32.mrf.mxu1 }
 0x241   :  { %v8746_v55 = vadd.f32 %v4207_v45, %v3736_v12 }
 0x242   :  { %v3688_v48 = vpop.f32.mrf.mxu0  ;;  %v4228_v17 = vpop.f32.mrf.mxu1 }
 0x243   :  { %v3737_v29 = vadd.f32 %v3688_v48, %v8701_v50 }
 0x244   :  { %v3690_v22 = vpop.f32.mrf.mxu0  ;;  %v4231_v25 = vpop.f32.mrf.mxu1 }
 0x245   :  { %v8749_v24 = vadd.f32 %v4210_v5, %v3737_v29 }
 0x246   :  { %v3693_v42 = vpop.f32.mrf.mxu0  ;;  %v4233_v10 = vpop.f32.mrf.mxu1 }
 0x247   :  { %v3738_v32 = vadd.f32 %v3693_v42, %v8704_v30 }
 0x248   :  { %v3695_v59 = vpop.f32.mrf.mxu0  ;;  %v4234_v40 = vpop.f32.mrf.mxu1 }
 0x249   :  { %v8752_v47 = vadd.f32 %v4215_v14, %v3738_v32 }
 0x24a   :  { %v3696_v57 = vpop.f32.mrf.mxu0  ;;  %v4236_v16 = vpop.f32.mrf.mxu1 }
 0x24b   :  { %v3739_v35 = vadd.f32 %v3696_v57, %v8707_v8 }
 0x24c   :  { %v3698_v7 = vpop.f32.mrf.mxu0  ;;  %v4239_v27 = vpop.f32.mrf.mxu1 }
 0x24d   :  { %v8755_v44 = vadd.f32 %v4218_v36, %v3739_v35 }
 0x24e   :  { %v3701_v50 = vpop.f32.mrf.mxu0  ;;  %v4241_v56 = vpop.f32.mrf.mxu1 }
 0x24f   :  { %v3740_v31 = vadd.f32 %v3701_v50, %v8710_v9 }
 0x250   :  { %v3703_v13 = vpop.f32.mrf.mxu0  ;;  %v4242_v28 = vpop.f32.mrf.mxu1 }
 0x251   :  { %v4262_v19 = vadd.f32 %v4223_v11, %v3740_v31 }
 0x252   :  { %v3704_v34 = vpop.f32.mrf.mxu0  ;;  %v4244_v45 = vpop.f32.mrf.mxu1 }
 0x253   :  { %v3741_v15 = vadd.f32 %v3704_v34, %v8713_v37 }
 0x254   :  { %v3706_v21 = vpop.f32.mrf.mxu0  ;;  %v8757_v30 = vpop.f32.mrf.mxu1 }
 0x255   :  { %v4263_v26 = vadd.f32 %v4226_v41, %v3741_v15 }
 0x256   :  { %v3709_v52 = vpop.f32.mrf.mxu0  ;;  %v4249_v33 = vpop.f32.mrf.mxu1 }
 0x257   :  { %v3742_v63 = vadd.f32 %v3709_v52, %v8716_v58 }
 0x258   :  { %v3711_v0 = vpop.f32.mrf.mxu0  ;;  %v8759_v5 = vpop.f32.mrf.mxu1 }
 0x259   :  { %v4264_v48 = vadd.f32 %v4231_v25, %v3742_v63 }
 0x25a   :  { %v3712_v20 = vpop.f32.mrf.mxu0  ;;  %v4252_v8 = vpop.f32.mrf.mxu1 }
 0x25b   :  { %v3743_v9 = vadd.f32 %v3712_v20, %v8719_v6 }
 0x25c   :  { %v3714_v46 = vpop.f32.mrf.mxu0  ;;  %v4601_v14 = vpop.f32.mrf.mxu1 }
 0x25d   :  { %v8763_v61 = vadd.f32 %v4601_v14, %v4262_v19  ;;  %v4265_v17 = vadd.f32 %v4234_v40, %v3743_v9 }
 0x25e   :  { %v3717_v39 = vpop.f32.mrf.mxu0  ;;  %v4603_v49 = vpop.f32.mrf.mxu1 }
 0x25f   :  { %v3744_v32 = vadd.f32 %v3717_v39, %v8722_v38 }
 0x260   :  { %v3719_v36 = vpop.f32.mrf.mxu0  ;;  %v4604_v1 = vpop.f32.mrf.mxu1 }
 0x261   :  { %v8765_v60 = vadd.f32 %v4604_v1, %v4263_v26  ;;  %v4266_v7 = vadd.f32 %v4239_v27, %v3744_v32 }
 0x262   :  { %v3720_v51 = vpop.f32.mrf.mxu0  ;;  %v4606_v4 = vpop.f32.mrf.mxu1 }
 0x263   :  { %v5521_v37 = vpack.c.bf16 %v8765_v60, %v8763_v61  ;;  %v3745_v59 = vadd.f32 %v3720_v51, %v8725_v62 }
 0x264   :  { %v3722_v12 = vpop.f32.mrf.mxu0  ;;  %v4609_v23 = vpop.f32.mrf.mxu1 }
 0x265   :  { %5541 = vst [vmem:[%s8848_s4 + $0x20] sm:$0xff] %v5521_v37   ;;  %v8774_v42 = vadd.f32 %v4609_v23, %v4264_v48  ;;  %v4267_v50 = vadd.f32 %v4242_v28, %v3745_v59 }
 0x266   :  { %v3725_v11 = vpop.f32.mrf.mxu0  ;;  %v4611_v41 = vpop.f32.mrf.mxu1 }
 0x267   :  { %v3746_v52 = vadd.f32 %v3725_v11, %v8728_v18 }
 0x268   :  { %v3727_v29 = vpop.f32.mrf.mxu0  ;;  %v4612_v22 = vpop.f32.mrf.mxu1 }
 0x269   :  { %v8776_v58 = vadd.f32 %v4612_v22, %v4265_v17 }
 0x26a   :  { %v3728_v6 = vpop.f32.mrf.mxu0  ;;  %v4614_v10 = vpop.f32.mrf.mxu1 }
 0x26b   :  { %v5526_v57 = vpack.c.bf16 %v8776_v58, %v8774_v42  ;;  %v3747_v33 = vadd.f32 %v3728_v6, %v8731_v54 }
 0x26c   :  { %v3730_v16 = vpop.f32.mrf.mxu0  ;;  %v4617_v35 = vpop.f32.mrf.mxu1 }
 0x26d   :  { %5542 = vst [vmem:[%s8848_s4 + $0x28] sm:$0xff] %v5526_v57   ;;  %v8786_v38 = vadd.f32 %v4617_v35, %v4266_v7  ;;  %v4269_v39 = vadd.f32 %v8759_v5, %v3747_v33  ;;  %v4757_v33 = vmul.f32 %v8763_v61, %v8763_v61 }
 0x26e   :  { %v4569_v25 = vpop.f32.mrf.mxu0  ;;  %v4619_v40 = vpop.f32.mrf.mxu1 }
 0x26f   :  { %v4632_v34 = vadd.f32 %v4569_v25, %v8734_v2 }
 0x270   :  { %v4571_v56 = vpop.f32.mrf.mxu0  ;;  %v4620_v13 = vpop.f32.mrf.mxu1 }
 0x271   :  { %v8788_v62 = vadd.f32 %v4620_v13, %v4267_v50  ;;  %v4749_v8 = vmul.f32 %v4632_v34, %v4632_v34 }
 0x272   :  { %v4572_v45 = vpop.f32.mrf.mxu0  ;;  %v4622_v21 = vpop.f32.mrf.mxu1 }
 0x273   :  { %v4633_v0 = vadd.f32 %v4572_v45, %v8737_v53  ;;  %v5531_v27 = vpack.c.bf16 %v8788_v62, %v8786_v38  ;;  %v4268_v53 = vadd.f32 %v8757_v30, %v3746_v52 }
 0x274   :  { %v4574_v28 = vpop.f32.mrf.mxu0  ;;  %v4625_v20 = vpop.f32.mrf.mxu1 }
 0x275   :  { %v5501_v31 = vpack.c.bf16 %v4633_v0, %v4632_v34  ;;  %v4728_v2 = vadd.f32 %v4633_v0, %v4632_v34  ;;  %v4750_v15 = vmul.f32 %v4633_v0, %v4633_v0  ;;  %5543 = vst [vmem:[%s8848_s4 + $0x30] sm:$0xff] %v5531_v27   ;;  %v4646_v1 = vadd.f32 %v4625_v20, %v4268_v53 }
 0x276   :  { %v4577_v46 = vpop.f32.mrf.mxu0  ;;  %v4627_v14 = vpop.f32.mrf.mxu1  ;;  %v4758_v27 = vmul.f32 %v8765_v60, %v8765_v60  ;;  %v4759_v20 = vmul.f32 %v8774_v42, %v8774_v42 }
 0x277   :  { %5502 = vst [vmem:[%s8848_s4] sm:$0xff] %v5501_v31   ;;  %v4765_v18 = vadd.f32 %v4750_v15, %v4749_v8  ;;  %v4634_v54 = vadd.f32 %v4577_v46, %v8740_v3 }
 0x278   :  { %v4579_v49 = vpop.f32.mrf.mxu0  ;;  %v4628_v19 = vpop.f32.mrf.mxu1 }
 0x279   :  { %v4729_v26 = vadd.f32 %v4728_v2, %v4634_v54  ;;  %v4751_v36 = vmul.f32 %v4634_v54, %v4634_v54  ;;  %v4647_v51 = vadd.f32 %v4628_v19, %v4269_v39  ;;  %v4760_v2 = vmul.f32 %v8776_v58, %v8776_v58 }
 0x27a   :  { %v4580_v4 = vpop.f32.mrf.mxu0  ;;  %v4630_v63 = vpop.f32.mrf.mxu1 }
 0x27b   :  { %v4766_v9 = vadd.f32 %v4765_v18, %v4751_v36  ;;  %v4635_v37 = vadd.f32 %v4580_v4, %v8743_v43  ;;  %v5536_v12 = vpack.c.bf16 %v4647_v51, %v4646_v1  ;;  %v4764_v19 = vmul.f32 %v4647_v51, %v4647_v51 }
 0x27c   :  { %v4582_v23 = vpop.f32.mrf.mxu0 }
 0x27d   :  { %v5506_v11 = vpack.c.bf16 %v4635_v37, %v4634_v54  ;;  %v4730_v41 = vadd.f32 %v4729_v26, %v4635_v37  ;;  %v4752_v3 = vmul.f32 %v4635_v37, %v4635_v37  ;;  %5544 = vst [vmem:[%s8848_s4 + $0x38] sm:$0xff] %v5536_v12  }
 0x27e   :  { %v4585_v30 = vpop.f32.mrf.mxu0 }
 0x27f   :  { %5538 = vst [vmem:[%s8848_s4 + $0x8] sm:$0xff] %v5506_v11   ;;  %v4767_v5 = vadd.f32 %v4766_v9, %v4752_v3  ;;  %v4636_v48 = vadd.f32 %v4585_v30, %v8746_v55 }
 0x280   :  { %v4587_v17 = vpop.f32.mrf.mxu0 }
 0x281   :  { %v4731_v29 = vadd.f32 %v4730_v41, %v4636_v48  ;;  %v4753_v43 = vmul.f32 %v4636_v48, %v4636_v48  ;;  %v9002_v17 = vld [vmem:[#allocation3_spill] sm:$0xff] }
 0x282   :  { %v4588_v22 = vpop.f32.mrf.mxu0 }
 0x283   :  { %v4768_v6 = vadd.f32 %v4767_v5, %v4753_v43  ;;  %v4637_v10 = vadd.f32 %v4588_v22, %v8749_v24  ;;  %v9003_v22 = vlaneseq }
 0x284   :  { %v4590_v32 = vpop.f32.mrf.mxu0 }
 0x285   :  { %v5511_v59 = vpack.c.bf16 %v4637_v10, %v4636_v48  ;;  %v4732_v57 = vadd.f32 %v4731_v29, %v4637_v10  ;;  %v4754_v16 = vmul.f32 %v4637_v10, %v4637_v10  ;;  %vm4806_vm10 = vcmp.lt.s32.totalorder %v9003_v22, 256 }
 0x286   :  { %v4593_v35 = vpop.f32.mrf.mxu0 }
 0x287   :  { %5539 = vst [vmem:[%s8848_s4 + $0x10] sm:$0xff] %v5511_v59   ;;  %v4769_v25 = vadd.f32 %v4768_v6, %v4754_v16  ;;  %v4638_v40 = vadd.f32 %v4593_v35, %v8752_v47 }
 0x288   :  { %v4595_v55 = vpop.f32.mrf.mxu0 }
 0x289   :  { %v4733_v7 = vadd.f32 %v4732_v57, %v4638_v40  ;;  %v4755_v50 = vmul.f32 %v4638_v40, %v4638_v40 }
 0x28a   :  { %v4596_v56 = vpop.f32.mrf.mxu0 }
 0x28b   :  { %v4770_v13 = vadd.f32 %v4769_v25, %v4755_v50  ;;  %v4639_v34 = vadd.f32 %v4596_v56, %v8755_v44 }
 0x28c   :  { %v4598_v24 = vpop.f32.mrf.mxu0 }
 0x28d   :  { %v5516_v45 = vpack.c.bf16 %v4639_v34, %v4638_v40  ;;  %v4734_v21 = vadd.f32 %v4733_v7, %v4639_v34  ;;  %v4756_v52 = vmul.f32 %v4639_v34, %v4639_v34 }
 0x28f   :  { %5540 = vst [vmem:[%s8848_s4 + $0x18] sm:$0xff] %v5516_v45   ;;  %v4735_v47 = vadd.f32 %v4734_v21, %v8763_v61  ;;  %v4771_v0 = vadd.f32 %v4770_v13, %v4756_v52  ;;  %v4761_v61 = vmul.f32 %v8786_v38, %v8786_v38 }
 0x291   :  { %v4736_v28 = vadd.f32 %v4735_v47, %v8765_v60  ;;  %v4772_v44 = vadd.f32 %v4771_v0, %v4757_v33  ;;  %v4762_v60 = vmul.f32 %v8788_v62, %v8788_v62 }
 0x293   :  { %v4737_v8 = vadd.f32 %v4736_v28, %v8774_v42  ;;  %v4773_v31 = vadd.f32 %v4772_v44, %v4758_v27  ;;  %v4763_v42 = vmul.f32 %v4646_v1, %v4646_v1 }
 0x295   :  { %v4738_v15 = vadd.f32 %v4737_v8, %v8776_v58  ;;  %v4774_v46 = vadd.f32 %v4773_v31, %v4759_v20 }
 0x297   :  { %v4739_v14 = vadd.f32 %v4738_v15, %v8786_v38  ;;  %v4775_v18 = vadd.f32 %v4774_v46, %v4760_v2  ;;  %v5844_v38 = vmov 1966171168  }
 0x298   :  { %v4790_v23 = vunpack.c.l.s4 %v5844_v38 }
 0x299   :  { %v4740_v54 = vadd.f32 %v4739_v14, %v8788_v62  ;;  %v4776_v53 = vadd.f32 %v4775_v18, %v4761_v61 }
 0x29a   :  { %v4791_v62 = vunpack.c.0.s8 %v4790_v23 }
 0x29b   :  { %v4741_v39 = vadd.f32 %v4740_v54, %v4646_v1  ;;  %v4777_v49 = vadd.f32 %v4776_v53, %v4762_v60 }
 0x29c   :  { %v4794_v29 = vsub.s32 %v4791_v62, %v9002_v17 }
 0x29d   :  { %v4742_v26 = vadd.f32 %v4741_v39, %v4647_v51  ;;  %v4778_v36 = vadd.f32 %v4777_v49, %v4763_v42 }
 0x29f   :  { %v4743_v58 = vrot.slane %v4742_v26, 4  ;;  %v4779_v4 = vadd.f32 %v4778_v36, %v4764_v19 }
 0x2a1   :  { %v4744_v63 = vadd.f32 %v4743_v58, %v4742_v26  ;;  %v4780_v9 = vrot.slane %v4779_v4, 4 }
 0x2a3   :  { %v4745_v37 = vrot.slane %v4744_v63, 2  ;;  %v4781_v12 = vadd.f32 %v4780_v9, %v4779_v4 }
 0x2a5   :  { %v4746_v11 = vadd.f32 %v4745_v37, %v4744_v63  ;;  %v4782_v41 = vrot.slane %v4781_v12, 2 }
 0x2a7   :  { %v4747_v3 = vrot.slane %v4746_v11, 1  ;;  %v4783_v30 = vadd.f32 %v4782_v41, %v4781_v12 }
 0x2a9   :  { %v4784_v5 = vrot.slane %v4783_v30, 1  ;;  %v4748_v48 = vadd.f32 %v4747_v3, %v4746_v11 }
 0x2ab   :  { %v4785_v1 = vadd.f32 %v4784_v5, %v4783_v30 }
 0x2ad   :  { %v4788_v51 = vcombine.low %v4748_v48, %v4785_v1 }
 0x2af   :  { %v4795_v43 = vrot.slane %v4788_v51, %v4794_v29 }
 0x2b1   :  { %v4802_v6 = vrot.slane %v4795_v43, %v4794_v29 }
 0x2b3   :  { %4808 = vst.msk [vmem:[%s8849_s5] sm:$0x3] %vm4806_vm10, %v4802_v6 }

</bundles_post_ra>
